<compile_context>
chip_gen: v7x
topology: tpu7x:2x2x1
jax: 0.10.0
libtpu: 0.0.40
codegen_flags: <defaults>
</compile_context>

<pallas_src>
import jax
import jax.numpy as jnp
import numpy as np
from jax import lax
from jax.experimental import pallas as pl
from jax.experimental.pallas import tpu as pltpu

# ---------------------------------------------------------------------------
# Static network dimensions (LeNet, bias=False, 1x28x28 input -> 10 logits)
# ---------------------------------------------------------------------------
K = 5                      # conv kernel size
H0 = 28                    # input spatial size (forced by fc1 = 16*4*4)
C1, C1P = 6, 8             # conv1 out-channels (padded 6 -> 8)
C2 = 16                    # conv2 out-channels
H1 = H0 - K + 1            # 24 : conv1 output spatial
P1 = H1 // 2               # 12 : after 2x2 max-pool
H2 = P1 - K + 1            # 8  : conv2 output spatial
P2 = H2 // 2               # 4  : after 2x2 max-pool
KF1 = P2 * P2 * C2         # 256: flattened features for fc1
NF = 128                   # padded lane width for all fc outputs
N_OUT = 10
TB_MAX = 32                # samples per grid step (multiple of 8)

W1_COLS = H1 * C1P         # 192 : conv1 matmul output lanes (ow, c)
S1_COLS = P1 * C1P         # 96  : pooled-1 lanes (pw, c)
W2_ROWS = K * P1 * C1P     # 480 : conv2 contraction
W2_COLS = H2 * C2          # 128 : conv2 matmul output lanes (ow2, co)
S2_COLS = P2 * C2          # 64  : pooled-2 lanes (pw2, co)

_PREC = jax.lax.Precision.HIGHEST


# ---------------------------------------------------------------------------
# Fused Pallas kernel: TB samples per grid step, everything stays in VMEM
# ---------------------------------------------------------------------------
def lenet_kernel(x_ref, w1_ref, s1e_ref, s1o_ref, w2_ref, s2e_ref, s2o_ref,
                 wf1_ref, wf2_ref, wf3_ref, o_ref):
    f32 = jnp.float32
    x = x_ref[...]                                        # (28, TB, 28): (h, b, w)
    tb = x.shape[1]

    def mm(a, b):
        return jnp.dot(a, b, preferred_element_type=f32, precision=_PREC)

    # ---- conv1 (1->6, k=5): 5 contiguous row slabs + lane concat + ONE matmul
    # columns of y1 are (ow, c) -> lane-dense 192.
    xc = jnp.concatenate([x[i:i + H1] for i in range(K)], axis=-1)       # (24, TB, 140)
    y1 = jnp.maximum(mm(xc.reshape(H1 * tb, K * H0), w1_ref[...]), 0.0)  # (24*TB, 192)

    # ---- 2x2 max-pool #1: vertical pairs via leading-dim reshape + max,
    # horizontal pairs via even/odd column-selection matmuls.
    y1 = y1.reshape(P1, 2, tb, W1_COLS)
    y1 = jnp.maximum(y1[:, 0], y1[:, 1]).reshape(P1 * tb, W1_COLS)       # (12*TB, 192)
    h1 = jnp.maximum(mm(y1, s1e_ref[...]), mm(y1, s1o_ref[...]))         # (12*TB, 96)

    # ---- conv2 (6->16, k=5): same banded-matmul structure ------------------
    h1 = h1.reshape(P1, tb, S1_COLS)
    xc2 = jnp.concatenate([h1[i:i + H2] for i in range(K)], axis=-1)     # (8, TB, 480)
    y2 = jnp.maximum(mm(xc2.reshape(H2 * tb, W2_ROWS), w2_ref[...]), 0.0)  # (8*TB, 128)

    # ---- 2x2 max-pool #2 ----------------------------------------------------
    y2 = y2.reshape(P2, 2, tb, W2_COLS)
    y2 = jnp.maximum(y2[:, 0], y2[:, 1]).reshape(P2 * tb, W2_COLS)       # (4*TB, 128)
    h2 = jnp.maximum(mm(y2, s2e_ref[...]), mm(y2, s2o_ref[...]))         # (4*TB, 64)

    # ---- flatten in (h, w, c) order (wf1 is permuted to match) + FC stack ---
    h2 = h2.reshape(P2, tb, S2_COLS)
    flat = jnp.concatenate([h2[i] for i in range(P2)], axis=-1)          # (TB, 256)
    h = jnp.maximum(mm(flat, wf1_ref[...]), 0.0)                         # (TB, 128)
    h = jnp.maximum(mm(h, wf2_ref[...]), 0.0)                            # (TB, 128)
    o_ref[...] = mm(h, wf3_ref[...])                                     # (TB, 128)


def _kernel_call(bp: int, tb: int):
    const = lambda b: (0, 0)
    in_specs = [
        pl.BlockSpec((H0, tb, H0), lambda b: (0, b, 0)),      # images (h, b, w)
        pl.BlockSpec((K * H0, W1_COLS), const),               # conv1 banded weight
        pl.BlockSpec((W1_COLS, S1_COLS), const),              # pool1 even selector
        pl.BlockSpec((W1_COLS, S1_COLS), const),              # pool1 odd selector
        pl.BlockSpec((W2_ROWS, W2_COLS), const),              # conv2 banded weight
        pl.BlockSpec((W2_COLS, S2_COLS), const),              # pool2 even selector
        pl.BlockSpec((W2_COLS, S2_COLS), const),              # pool2 odd selector
        pl.BlockSpec((KF1, NF), const),                       # fc1
        pl.BlockSpec((NF, NF), const),                        # fc2
        pl.BlockSpec((NF, NF), const),                        # fc3
    ]
    flops_per_sample = 2 * (H1 * (K * H0) * W1_COLS
                            + 2 * P1 * W1_COLS * S1_COLS
                            + H2 * W2_ROWS * W2_COLS
                            + 2 * P2 * W2_COLS * S2_COLS
                            + KF1 * NF + NF * NF + NF * NF)
    weight_bytes = 4 * (K * H0 * W1_COLS + 2 * W1_COLS * S1_COLS
                        + W2_ROWS * W2_COLS + 2 * W2_COLS * S2_COLS
                        + KF1 * NF + 2 * NF * NF)
    cost = pl.CostEstimate(
        flops=int(bp * flops_per_sample),
        transcendentals=0,
        bytes_accessed=int(4 * bp * (H0 * H0 + NF) + weight_bytes),
    )
    return pl.pallas_call(
        lenet_kernel,
        out_shape=jax.ShapeDtypeStruct((bp, NF), jnp.float32),
        grid=(bp // tb,),
        in_specs=in_specs,
        out_specs=pl.BlockSpec((tb, NF), lambda b: (b, 0)),
        compiler_params=pltpu.CompilerParams(
            dimension_semantics=("parallel",)),   # shard batch blocks over TCs
        cost_estimate=cost,
    )


def lenet_forward(params, x_nchw):
    b = x_nchw.shape[0]
    tb = min(TB_MAX, 8 * pl.cdiv(b, 8))          # sublane-aligned block of samples
    bp = tb * pl.cdiv(b, tb)
    x = x_nchw[:, 0, :, :]                       # (B, 28, 28): drop size-1 channel
    if bp != b:
        x = jnp.pad(x, ((0, bp - b), (0, 0), (0, 0)))
    x = jnp.transpose(x, (1, 0, 2))              # (28, Bp, 28): batch in sublanes
    out = _kernel_call(bp, tb)(
        x, params["w1t"], params["s1e"], params["s1o"],
        params["w2t"], params["s2e"], params["s2o"],
        params["wf1"], params["wf2"], params["wf3"])
    return out[:b, :N_OUT]                       # drop batch + lane padding


# ---------------------------------------------------------------------------
# Weight packing (host-side, one-time): banded conv matrices, pool selectors,
# permuted/padded FC matrices matching the kernel's lane-dense layouts.
# ---------------------------------------------------------------------------
def _pack_params(conv1, conv2, fc1, fc2, fc3):
    n_out = fc3.shape[0]

    # conv1 as a banded matrix: rows (i, w) of the 5-slab lane concat,
    # cols (ow, c_pad8).  w1t[i*28 + ow + j, ow*8 + c] = conv1[c, 0, i, j].
    w1t = np.zeros((K * H0, W1_COLS), np.float32)
    for i in range(K):
        for j in range(K):
            for ow in range(H1):
                w1t[i * H0 + ow + j, ow * C1P: ow * C1P + C1] = conv1[:, 0, i, j]

    # pool-1 even / odd column selectors (horizontal max-pool on the MXU).
    s1e = np.zeros((W1_COLS, S1_COLS), np.float32)
    s1o = np.zeros((W1_COLS, S1_COLS), np.float32)
    for pw in range(P1):
        for c in range(C1P):
            s1e[(2 * pw) * C1P + c, pw * C1P + c] = 1.0
            s1o[(2 * pw + 1) * C1P + c, pw * C1P + c] = 1.0

    # conv2 banded matrix: rows (i, pw, ci_pad8), cols (ow2, co).
    w2t = np.zeros((W2_ROWS, W2_COLS), np.float32)
    for i in range(K):
        for j in range(K):
            for ow in range(H2):
                for ci in range(C1):
                    w2t[i * S1_COLS + (ow + j) * C1P + ci,
                        ow * C2: (ow + 1) * C2] = conv2[:, ci, i, j]

    # pool-2 even / odd column selectors.
    s2e = np.zeros((W2_COLS, S2_COLS), np.float32)
    s2o = np.zeros((W2_COLS, S2_COLS), np.float32)
    for pw in range(P2):
        for c in range(C2):
            s2e[(2 * pw) * C2 + c, pw * C2 + c] = 1.0
            s2o[(2 * pw + 1) * C2 + c, pw * C2 + c] = 1.0

    # fc1: permute its input dim from PyTorch's (c,h,w) flatten to the kernel's
    # (h,w,c) flatten; transpose to (in,out); pad lanes to 128.
    wf1 = fc1.reshape(120, C2, P2, P2).transpose(2, 3, 1, 0).reshape(KF1, 120)
    wf1 = np.pad(wf1, ((0, 0), (0, NF - 120)))
    wf2 = np.pad(fc2.T, ((0, NF - 120), (0, NF - 84)))
    wf3 = np.pad(fc3.T, ((0, NF - 84), (0, NF - n_out)))

    packed = dict(w1t=w1t, s1e=s1e, s1o=s1o, w2t=w2t, s2e=s2e, s2o=s2o,
                  wf1=wf1, wf2=wf2, wf3=wf3)
    return {k: jnp.asarray(v) for k, v in packed.items()}


def init_params(key, n_out=N_OUT):
    ks = jax.random.split(key, 5)

    def kaiming(rng, shape, fan_in):
        return jax.random.normal(rng, shape, jnp.float32) * jnp.sqrt(2.0 / fan_in)

    conv1 = kaiming(ks[0], (C1, 1, K, K), 1 * K * K)        # PyTorch OIHW
    conv2 = kaiming(ks[1], (C2, C1, K, K), C1 * K * K)
    fc1 = kaiming(ks[2], (120, KF1), KF1)                   # PyTorch (out, in)
    fc2 = kaiming(ks[3], (84, 120), 120)
    fc3 = kaiming(ks[4], (n_out, 84), 84)

    params = _pack_params(np.asarray(conv1), np.asarray(conv2),
                          np.asarray(fc1), np.asarray(fc2), np.asarray(fc3))
    # PyTorch-layout copies for the pure-JAX reference check.
    params.update({"_conv1": conv1, "_conv2": conv2,
                   "_fc1": fc1, "_fc2": fc2, "_fc3": fc3})
    return params


# ---------------------------------------------------------------------------
# Pure-JAX reference (high precision) for validation
# ---------------------------------------------------------------------------
def lenet_reference(params, x_nchw):
    prec = lax.Precision.HIGHEST

    def conv(x, w):
        return lax.conv_general_dilated(
            x, w, (1, 1), "VALID",
            dimension_numbers=("NCHW", "OIHW", "NCHW"), precision=prec)

    def pool(x):
        return lax.reduce_window(x, -jnp.inf, lax.max,
                                 (1, 1, 2, 2), (1, 1, 2, 2), "VALID")

    h = pool(jax.nn.relu(conv(x_nchw, params["_conv1"])))
    h = pool(jax.nn.relu(conv(h, params["_conv2"])))
    h = h.reshape(h.shape[0], -1)                      # PyTorch (c,h,w) flatten
    h = jax.nn.relu(jnp.dot(h, params["_fc1"].T, precision=prec))
    h = jax.nn.relu(jnp.dot(h, params["_fc2"].T, precision=prec))
    return jnp.dot(h, params["_fc3"].T, precision=prec)


if __name__ == "__main__":
    key = jax.random.PRNGKey(0)
    kx, kp = jax.random.split(key)
    # Spatial size 28 is forced by fc1 = 16*4*4; small batch for the check.
    x = jax.random.normal(kx, (2, 1, 28, 28), jnp.float32)   # NCHW (PyTorch)
    params = init_params(kp)

    out = jax.jit(lenet_forward)(params, x)
    out = jax.block_until_ready(out)

    ref = lenet_reference(params, x)
    assert out.shape == (2, N_OUT), out.shape
    assert jnp.allclose(out, ref, rtol=5e-3, atol=5e-3), (out, ref)
    print("KERNEL_OK")
</pallas_src>

<mosaic_0001>
module attributes {stable_mosaic.version = 11 : i64} {
  func.func @lenet_kernel(%arg0: i32, %arg1: memref<28x8x28xf32, #tpu.memory_space<vmem>>, %arg2: memref<140x192xf32, #tpu.memory_space<vmem>>, %arg3: memref<192x96xf32, #tpu.memory_space<vmem>>, %arg4: memref<192x96xf32, #tpu.memory_space<vmem>>, %arg5: memref<480x128xf32, #tpu.memory_space<vmem>>, %arg6: memref<128x64xf32, #tpu.memory_space<vmem>>, %arg7: memref<128x64xf32, #tpu.memory_space<vmem>>, %arg8: memref<256x128xf32, #tpu.memory_space<vmem>>, %arg9: memref<128x128xf32, #tpu.memory_space<vmem>>, %arg10: memref<128x128xf32, #tpu.memory_space<vmem>>, %arg11: memref<8x128xf32, #tpu.memory_space<vmem>>) attributes {dimension_semantics = [#tpu.dimension_semantics<parallel>], iteration_bounds = array<i64: 1>, scalar_prefetch = 0 : i64, scratch_operands = 0 : i64, tpu.core_type = #tpu.core_type<tc>, window_params = [{transform_indices = @transform_0, window_bounds = array<i64: 28, 8, 28>}, {pipeline_mode = #tpu.pipeline_mode<synchronous>, transform_indices = @transform_1, window_bounds = array<i64: 140, 192>}, {pipeline_mode = #tpu.pipeline_mode<synchronous>, transform_indices = @transform_2, window_bounds = array<i64: 192, 96>}, {pipeline_mode = #tpu.pipeline_mode<synchronous>, transform_indices = @transform_3, window_bounds = array<i64: 192, 96>}, {pipeline_mode = #tpu.pipeline_mode<synchronous>, transform_indices = @transform_4, window_bounds = array<i64: 480, 128>}, {pipeline_mode = #tpu.pipeline_mode<synchronous>, transform_indices = @transform_5, window_bounds = array<i64: 128, 64>}, {pipeline_mode = #tpu.pipeline_mode<synchronous>, transform_indices = @transform_6, window_bounds = array<i64: 128, 64>}, {pipeline_mode = #tpu.pipeline_mode<synchronous>, transform_indices = @transform_7, window_bounds = array<i64: 256, 128>}, {pipeline_mode = #tpu.pipeline_mode<synchronous>, transform_indices = @transform_8, window_bounds = array<i64: 128, 128>}, {pipeline_mode = #tpu.pipeline_mode<synchronous>, transform_indices = @transform_9, window_bounds = array<i64: 128, 128>}, {transform_indices = @transform_10, window_bounds = array<i64: 8, 128>}]} {
    %c0 = arith.constant 0 : index
    %c0_0 = arith.constant 0 : index
    %c0_1 = arith.constant 0 : index
    %0 = vector.load %arg1[%c0, %c0_0, %c0_1] : memref<28x8x28xf32, #tpu.memory_space<vmem>>, vector<28x8x28xf32>
    %1 = vector.extract_strided_slice %0 {offsets = [0, 0, 0], sizes = [24, 8, 28], strides = [1, 1, 1]} : vector<28x8x28xf32> to vector<24x8x28xf32>
    %2 = vector.extract_strided_slice %0 {offsets = [1, 0, 0], sizes = [24, 8, 28], strides = [1, 1, 1]} : vector<28x8x28xf32> to vector<24x8x28xf32>
    %3 = vector.extract_strided_slice %0 {offsets = [2, 0, 0], sizes = [24, 8, 28], strides = [1, 1, 1]} : vector<28x8x28xf32> to vector<24x8x28xf32>
    %4 = vector.extract_strided_slice %0 {offsets = [3, 0, 0], sizes = [24, 8, 28], strides = [1, 1, 1]} : vector<28x8x28xf32> to vector<24x8x28xf32>
    %5 = vector.extract_strided_slice %0 {offsets = [4, 0, 0], sizes = [24, 8, 28], strides = [1, 1, 1]} : vector<28x8x28xf32> to vector<24x8x28xf32>
    %6 = tpu.concatenate %1, %2, %3, %4, %5 in 2 : vector<24x8x28xf32>, vector<24x8x28xf32>, vector<24x8x28xf32>, vector<24x8x28xf32>, vector<24x8x28xf32> -> vector<24x8x140xf32>
    %7 = vector.shape_cast %6 : vector<24x8x140xf32> to vector<192x140xf32>
    %c0_2 = arith.constant 0 : index
    %c0_3 = arith.constant 0 : index
    %8 = vector.load %arg2[%c0_2, %c0_3] : memref<140x192xf32, #tpu.memory_space<vmem>>, vector<140x192xf32>
    %cst = arith.constant dense<0.000000e+00> : vector<192x192xf32>
    %9 = tpu.matmul %7, %8, %cst {dimension_numbers = #tpu.dot_dimension_numbers<[1], [0], [0], [1], [0, 0, 1, 1], [], []>, precision = #tpu.contract_precision<fp32>} : vector<192x140xf32>, vector<140x192xf32>, vector<192x192xf32> -> vector<192x192xf32>
    %cst_4 = arith.constant 0.000000e+00 : f32
    %10 = vector.broadcast %cst_4 : f32 to vector<192x192xf32>
    %11 = arith.maximumf %9, %10 : vector<192x192xf32>
    %12 = vector.shape_cast %11 : vector<192x192xf32> to vector<12x2x8x192xf32>
    %13 = vector.extract_strided_slice %12 {offsets = [0, 0, 0, 0], sizes = [12, 1, 8, 192], strides = [1, 1, 1, 1]} : vector<12x2x8x192xf32> to vector<12x1x8x192xf32>
    %14 = vector.shape_cast %13 : vector<12x1x8x192xf32> to vector<12x8x192xf32>
    %15 = vector.extract_strided_slice %12 {offsets = [0, 1, 0, 0], sizes = [12, 1, 8, 192], strides = [1, 1, 1, 1]} : vector<12x2x8x192xf32> to vector<12x1x8x192xf32>
    %16 = vector.shape_cast %15 : vector<12x1x8x192xf32> to vector<12x8x192xf32>
    %17 = arith.maximumf %14, %16 : vector<12x8x192xf32>
    %18 = vector.shape_cast %17 : vector<12x8x192xf32> to vector<96x192xf32>
    %c0_5 = arith.constant 0 : index
    %c0_6 = arith.constant 0 : index
    %19 = vector.load %arg3[%c0_5, %c0_6] : memref<192x96xf32, #tpu.memory_space<vmem>>, vector<192x96xf32>
    %cst_7 = arith.constant dense<0.000000e+00> : vector<96x96xf32>
    %20 = tpu.matmul %18, %19, %cst_7 {dimension_numbers = #tpu.dot_dimension_numbers<[1], [0], [0], [1], [0, 0, 1, 1], [], []>, precision = #tpu.contract_precision<fp32>} : vector<96x192xf32>, vector<192x96xf32>, vector<96x96xf32> -> vector<96x96xf32>
    %c0_8 = arith.constant 0 : index
    %c0_9 = arith.constant 0 : index
    %21 = vector.load %arg4[%c0_8, %c0_9] : memref<192x96xf32, #tpu.memory_space<vmem>>, vector<192x96xf32>
    %cst_10 = arith.constant dense<0.000000e+00> : vector<96x96xf32>
    %22 = tpu.matmul %18, %21, %cst_10 {dimension_numbers = #tpu.dot_dimension_numbers<[1], [0], [0], [1], [0, 0, 1, 1], [], []>, precision = #tpu.contract_precision<fp32>} : vector<96x192xf32>, vector<192x96xf32>, vector<96x96xf32> -> vector<96x96xf32>
    %23 = arith.maximumf %20, %22 : vector<96x96xf32>
    %24 = vector.shape_cast %23 : vector<96x96xf32> to vector<12x8x96xf32>
    %25 = vector.extract_strided_slice %24 {offsets = [0, 0, 0], sizes = [8, 8, 96], strides = [1, 1, 1]} : vector<12x8x96xf32> to vector<8x8x96xf32>
    %26 = vector.extract_strided_slice %24 {offsets = [1, 0, 0], sizes = [8, 8, 96], strides = [1, 1, 1]} : vector<12x8x96xf32> to vector<8x8x96xf32>
    %27 = vector.extract_strided_slice %24 {offsets = [2, 0, 0], sizes = [8, 8, 96], strides = [1, 1, 1]} : vector<12x8x96xf32> to vector<8x8x96xf32>
    %28 = vector.extract_strided_slice %24 {offsets = [3, 0, 0], sizes = [8, 8, 96], strides = [1, 1, 1]} : vector<12x8x96xf32> to vector<8x8x96xf32>
    %29 = vector.extract_strided_slice %24 {offsets = [4, 0, 0], sizes = [8, 8, 96], strides = [1, 1, 1]} : vector<12x8x96xf32> to vector<8x8x96xf32>
    %30 = tpu.concatenate %25, %26, %27, %28, %29 in 2 : vector<8x8x96xf32>, vector<8x8x96xf32>, vector<8x8x96xf32>, vector<8x8x96xf32>, vector<8x8x96xf32> -> vector<8x8x480xf32>
    %31 = vector.shape_cast %30 : vector<8x8x480xf32> to vector<64x480xf32>
    %c0_11 = arith.constant 0 : index
    %c0_12 = arith.constant 0 : index
    %32 = vector.load %arg5[%c0_11, %c0_12] : memref<480x128xf32, #tpu.memory_space<vmem>>, vector<480x128xf32>
    %cst_13 = arith.constant dense<0.000000e+00> : vector<64x128xf32>
    %33 = tpu.matmul %31, %32, %cst_13 {dimension_numbers = #tpu.dot_dimension_numbers<[1], [0], [0], [1], [0, 0, 1, 1], [], []>, precision = #tpu.contract_precision<fp32>} : vector<64x480xf32>, vector<480x128xf32>, vector<64x128xf32> -> vector<64x128xf32>
    %cst_14 = arith.constant 0.000000e+00 : f32
    %34 = vector.broadcast %cst_14 : f32 to vector<64x128xf32>
    %35 = arith.maximumf %33, %34 : vector<64x128xf32>
    %36 = vector.shape_cast %35 : vector<64x128xf32> to vector<4x2x8x128xf32>
    %37 = vector.extract_strided_slice %36 {offsets = [0, 0, 0, 0], sizes = [4, 1, 8, 128], strides = [1, 1, 1, 1]} : vector<4x2x8x128xf32> to vector<4x1x8x128xf32>
    %38 = vector.shape_cast %37 : vector<4x1x8x128xf32> to vector<4x8x128xf32>
    %39 = vector.extract_strided_slice %36 {offsets = [0, 1, 0, 0], sizes = [4, 1, 8, 128], strides = [1, 1, 1, 1]} : vector<4x2x8x128xf32> to vector<4x1x8x128xf32>
    %40 = vector.shape_cast %39 : vector<4x1x8x128xf32> to vector<4x8x128xf32>
    %41 = arith.maximumf %38, %40 : vector<4x8x128xf32>
    %42 = vector.shape_cast %41 : vector<4x8x128xf32> to vector<32x128xf32>
    %c0_15 = arith.constant 0 : index
    %c0_16 = arith.constant 0 : index
    %43 = vector.load %arg6[%c0_15, %c0_16] : memref<128x64xf32, #tpu.memory_space<vmem>>, vector<128x64xf32>
    %cst_17 = arith.constant dense<0.000000e+00> : vector<32x64xf32>
    %44 = tpu.matmul %42, %43, %cst_17 {dimension_numbers = #tpu.dot_dimension_numbers<[1], [0], [0], [1], [0, 0, 1, 1], [], []>, precision = #tpu.contract_precision<fp32>} : vector<32x128xf32>, vector<128x64xf32>, vector<32x64xf32> -> vector<32x64xf32>
    %c0_18 = arith.constant 0 : index
    %c0_19 = arith.constant 0 : index
    %45 = vector.load %arg7[%c0_18, %c0_19] : memref<128x64xf32, #tpu.memory_space<vmem>>, vector<128x64xf32>
    %cst_20 = arith.constant dense<0.000000e+00> : vector<32x64xf32>
    %46 = tpu.matmul %42, %45, %cst_20 {dimension_numbers = #tpu.dot_dimension_numbers<[1], [0], [0], [1], [0, 0, 1, 1], [], []>, precision = #tpu.contract_precision<fp32>} : vector<32x128xf32>, vector<128x64xf32>, vector<32x64xf32> -> vector<32x64xf32>
    %47 = arith.maximumf %44, %46 : vector<32x64xf32>
    %48 = vector.shape_cast %47 : vector<32x64xf32> to vector<4x8x64xf32>
    %49 = vector.extract_strided_slice %48 {offsets = [0, 0, 0], sizes = [1, 8, 64], strides = [1, 1, 1]} : vector<4x8x64xf32> to vector<1x8x64xf32>
    %50 = vector.shape_cast %49 : vector<1x8x64xf32> to vector<8x64xf32>
    %51 = vector.extract_strided_slice %48 {offsets = [1, 0, 0], sizes = [1, 8, 64], strides = [1, 1, 1]} : vector<4x8x64xf32> to vector<1x8x64xf32>
    %52 = vector.shape_cast %51 : vector<1x8x64xf32> to vector<8x64xf32>
    %53 = vector.extract_strided_slice %48 {offsets = [2, 0, 0], sizes = [1, 8, 64], strides = [1, 1, 1]} : vector<4x8x64xf32> to vector<1x8x64xf32>
    %54 = vector.shape_cast %53 : vector<1x8x64xf32> to vector<8x64xf32>
    %55 = vector.extract_strided_slice %48 {offsets = [3, 0, 0], sizes = [1, 8, 64], strides = [1, 1, 1]} : vector<4x8x64xf32> to vector<1x8x64xf32>
    %56 = vector.shape_cast %55 : vector<1x8x64xf32> to vector<8x64xf32>
    %57 = tpu.concatenate %50, %52, %54, %56 in 1 : vector<8x64xf32>, vector<8x64xf32>, vector<8x64xf32>, vector<8x64xf32> -> vector<8x256xf32>
    %c0_21 = arith.constant 0 : index
    %c0_22 = arith.constant 0 : index
    %58 = vector.load %arg8[%c0_21, %c0_22] : memref<256x128xf32, #tpu.memory_space<vmem>>, vector<256x128xf32>
    %cst_23 = arith.constant dense<0.000000e+00> : vector<8x128xf32>
    %59 = tpu.matmul %57, %58, %cst_23 {dimension_numbers = #tpu.dot_dimension_numbers<[1], [0], [0], [1], [0, 0, 1, 1], [], []>, precision = #tpu.contract_precision<fp32>} : vector<8x256xf32>, vector<256x128xf32>, vector<8x128xf32> -> vector<8x128xf32>
    %cst_24 = arith.constant 0.000000e+00 : f32
    %60 = vector.broadcast %cst_24 : f32 to vector<8x128xf32>
    %61 = arith.maximumf %59, %60 : vector<8x128xf32>
    %c0_25 = arith.constant 0 : index
    %c0_26 = arith.constant 0 : index
    %62 = vector.load %arg9[%c0_25, %c0_26] : memref<128x128xf32, #tpu.memory_space<vmem>>, vector<128x128xf32>
    %cst_27 = arith.constant dense<0.000000e+00> : vector<8x128xf32>
    %63 = tpu.matmul %61, %62, %cst_27 {dimension_numbers = #tpu.dot_dimension_numbers<[1], [0], [0], [1], [0, 0, 1, 1], [], []>, precision = #tpu.contract_precision<fp32>} : vector<8x128xf32>, vector<128x128xf32>, vector<8x128xf32> -> vector<8x128xf32>
    %cst_28 = arith.constant 0.000000e+00 : f32
    %64 = vector.broadcast %cst_28 : f32 to vector<8x128xf32>
    %65 = arith.maximumf %63, %64 : vector<8x128xf32>
    %c0_29 = arith.constant 0 : index
    %c0_30 = arith.constant 0 : index
    %66 = vector.load %arg10[%c0_29, %c0_30] : memref<128x128xf32, #tpu.memory_space<vmem>>, vector<128x128xf32>
    %cst_31 = arith.constant dense<0.000000e+00> : vector<8x128xf32>
    %67 = tpu.matmul %65, %66, %cst_31 {dimension_numbers = #tpu.dot_dimension_numbers<[1], [0], [0], [1], [0, 0, 1, 1], [], []>, precision = #tpu.contract_precision<fp32>} : vector<8x128xf32>, vector<128x128xf32>, vector<8x128xf32> -> vector<8x128xf32>
    %c0_32 = arith.constant 0 : index
    %c0_33 = arith.constant 0 : index
    %68 = vector.load %arg11[%c0_32, %c0_33] : memref<8x128xf32, #tpu.memory_space<vmem>>, vector<8x128xf32>
    tpu.vector_store %arg11[%c0_32, %c0_33], %67 {strides = array<i32>} : memref<8x128xf32, #tpu.memory_space<vmem>>, vector<8x128xf32>,
    return
  }
  func.func @transform_0(%arg0: i32) -> (i32, i32, i32) {
    %c0_i32 = arith.constant 0 : i32
    %c0_i32_0 = arith.constant 0 : i32
    %c0_i32_1 = arith.constant 0 : i32
    return %c0_i32, %arg0, %c0_i32_0 : i32, i32, i32
  }
  func.func @transform_1(%arg0: i32) -> (i32, i32) {
    %c0_i32 = arith.constant 0 : i32
    %c0_i32_0 = arith.constant 0 : i32
    %c0_i32_1 = arith.constant 0 : i32
    return %c0_i32, %c0_i32_0 : i32, i32
  }
  func.func @transform_2(%arg0: i32) -> (i32, i32) {
    %c0_i32 = arith.constant 0 : i32
    %c0_i32_0 = arith.constant 0 : i32
    %c0_i32_1 = arith.constant 0 : i32
    return %c0_i32, %c0_i32_0 : i32, i32
  }
  func.func @transform_3(%arg0: i32) -> (i32, i32) {
    %c0_i32 = arith.constant 0 : i32
    %c0_i32_0 = arith.constant 0 : i32
    %c0_i32_1 = arith.constant 0 : i32
    return %c0_i32, %c0_i32_0 : i32, i32
  }
  func.func @transform_4(%arg0: i32) -> (i32, i32) {
    %c0_i32 = arith.constant 0 : i32
    %c0_i32_0 = arith.constant 0 : i32
    %c0_i32_1 = arith.constant 0 : i32
    return %c0_i32, %c0_i32_0 : i32, i32
  }
  func.func @transform_5(%arg0: i32) -> (i32, i32) {
    %c0_i32 = arith.constant 0 : i32
    %c0_i32_0 = arith.constant 0 : i32
    %c0_i32_1 = arith.constant 0 : i32
    return %c0_i32, %c0_i32_0 : i32, i32
  }
  func.func @transform_6(%arg0: i32) -> (i32, i32) {
    %c0_i32 = arith.constant 0 : i32
    %c0_i32_0 = arith.constant 0 : i32
    %c0_i32_1 = arith.constant 0 : i32
    return %c0_i32, %c0_i32_0 : i32, i32
  }
  func.func @transform_7(%arg0: i32) -> (i32, i32) {
    %c0_i32 = arith.constant 0 : i32
    %c0_i32_0 = arith.constant 0 : i32
    %c0_i32_1 = arith.constant 0 : i32
    return %c0_i32, %c0_i32_0 : i32, i32
  }
  func.func @transform_8(%arg0: i32) -> (i32, i32) {
    %c0_i32 = arith.constant 0 : i32
    %c0_i32_0 = arith.constant 0 : i32
    %c0_i32_1 = arith.constant 0 : i32
    return %c0_i32, %c0_i32_0 : i32, i32
  }
  func.func @transform_9(%arg0: i32) -> (i32, i32) {
    %c0_i32 = arith.constant 0 : i32
    %c0_i32_0 = arith.constant 0 : i32
    %c0_i32_1 = arith.constant 0 : i32
    return %c0_i32, %c0_i32_0 : i32, i32
  }
  func.func @transform_10(%arg0: i32) -> (i32, i32) {
    %c0_i32 = arith.constant 0 : i32
    %c0_i32_0 = arith.constant 0 : i32
    return %arg0, %c0_i32 : i32, i32
  }
}

</mosaic_0001>

<bundles_post_ra>
// kernel: lenet_forward.1
= control target key start
LH: loop header
LB: loop body
LE: loop exit
PB: predicated region body
PF: predicated region fallthrough
CT: control target
= control target key end

     0   :  { %15 = vsyncpa [#allocation3], 0  ;;  %s23989_s0 = inlined_call_operand.vmem [shape: f32[28,8,28], index: 0, kind: input, shape index: {}]   ;;  %s23990_s1 = inlined_call_operand.vmem [shape: f32[140,192], index: 1, kind: input, shape index: {}]   ;;  %s23991_s2 = inlined_call_operand.hbm [shape: f32[192,96], index: 2, kind: input, shape index: {}]   ;;  %s23992_s3 = inlined_call_operand.hbm [shape: f32[192,96], index: 3, kind: input, shape index: {}]   ;;  %s23993_s4 = inlined_call_operand.vmem [shape: f32[480,128], index: 4, kind: input, shape index: {}]   ;;  %s23994_s5 = inlined_call_operand.vmem [shape: f32[128,64], index: 5, kind: input, shape index: {}]   ;;  %s23995_s6 = inlined_call_operand.vmem [shape: f32[128,64], index: 6, kind: input, shape index: {}]   ;;  %s23996_s7 = inlined_call_operand.hbm [shape: f32[256,128], index: 7, kind: input, shape index: {}]   ;;  %s23997_s8 = inlined_call_operand.hbm [shape: f32[128,128], index: 8, kind: input, shape index: {}]   ;;  %s23998_s9 = inlined_call_operand.hbm [shape: f32[128,128], index: 9, kind: input, shape index: {}]   ;;  %s23999_s10 = inlined_call_operand.vmem [shape: f32[8,128], index: 10, kind: output, shape index: {}]  }
   0x1   :  { %16 = vsyncpa [#allocation5], 0 }
   0x2   :  { %17 = vsyncpa [#allocation8], 0  ;;  %s16947_s13 = smov [#allocation4]   ;;  %s16948_s15 = smov [#allocation7]  }
   0x3   :  { %s39_s14 = sshll.u32 %s16947_s13, 4  ;;  %s69_s16 = sshll.u32 %s16948_s15, 4  ;;  %s40_s14 = int_to_ptr.vmem [resolvable:$true] %s39_s14  ;;  %s17019_s16 = int_to_ptr.vmem [resolvable:$true] %s69_s16 }
   0x4   :  { %s16831_s19 = scalar_lea.hbm %s23992_s3, 3072 }
   0x5   :  { %p16832_p0 = scmp.ne.s32.totalorder %s23992_s3, %s16831_s19  ;;  %p16835_p1 = scmp.lt.u32.totalorder %s16831_s19, %s23992_s3 }
   0x7   :  { %p16837_p2 = pnand %p16835_p1, %p16832_p0 }
   0x9   :  { %16840 = shalt.err (!%p16837_p2)
}
   0xa   :  { %s16841_s24 = scalar_lea.vmem %s40_s14, 3072  ;;  %p16846_p4 = scmp.lt.s32.totalorder %s40_s14, %s40_s14 }
   0xb   :  { %p16842_p3 = scmp.ne.s32.totalorder %s40_s14, %s16841_s24  ;;  %p16847_p5 = scmp.lt.s32.totalorder %s16841_s24, %s16841_s24 }
   0xd   :  { %p16848_p6 = por %p16847_p5, %p16846_p4 }
   0xf   :  { %p16849_p7 = pnand %p16848_p6, %p16842_p3 }
  0x11   :  { %16852 = shalt.err (!%p16849_p7)
}
  0x12   :  { %s16949_s25 = smov 128   ;;  %s16950_s26 = smov 8  }
  0x13   :  { %45 = dma.hbm_to_vmem [thread:$0]  %s23992_s3, 3072, %s40_s14, [#allocation5], %s16949_s25, %s16949_s25, %s16950_s26  }
  0x14   :  { %s16853_s11 = scalar_lea.hbm %s23997_s8, 2048 }
  0x15   :  { %p16854_p8 = scmp.ne.s32.totalorder %s23997_s8, %s16853_s11  ;;  %p16857_p9 = scmp.lt.u32.totalorder %s16853_s11, %s23997_s8 }
  0x17   :  { %p16859_p10 = pnand %p16857_p9, %p16854_p8 }
  0x19   :  { %16862 = shalt.err (!%p16859_p10)
}
  0x1a   :  { %s16863_s18 = scalar_lea.vmem %s17019_s16, 2048  ;;  %p16868_p12 = scmp.lt.s32.totalorder %s17019_s16, %s17019_s16 }
  0x1b   :  { %p16864_p11 = scmp.ne.s32.totalorder %s17019_s16, %s16863_s18  ;;  %p16869_p13 = scmp.lt.s32.totalorder %s16863_s18, %s16863_s18 }
  0x1d   :  { %p16870_p0 = por %p16869_p13, %p16868_p12 }
  0x1f   :  { %p16871_p1 = pnand %p16870_p0, %p16864_p11 }
  0x21   :  { %16874 = shalt.err (!%p16871_p1)
}
  0x22   :  { %75 = dma.hbm_to_vmem [thread:$0]  %s23997_s8, 2048, %s17019_s16, [#allocation8], %s16949_s25, %s16949_s25, %s16950_s26  }
  0x23   :  { %s16951_s19 = smov [#allocation2]   ;;  %s16952_s21 = smov [#allocation6]  }
  0x24   :  { %s27_s20 = sshll.u32 %s16951_s19, 4  ;;  %s57_s22 = sshll.u32 %s16952_s21, 4  ;;  %s28_s20 = int_to_ptr.vmem [resolvable:$true] %s27_s20  ;;  %s17056_s22 = int_to_ptr.vmem [resolvable:$true] %s57_s22 }
  0x25   :  { %s16875_s27 = scalar_lea.hbm %s23991_s2, 3072 }
  0x26   :  { %p16876_p2 = scmp.ne.s32.totalorder %s23991_s2, %s16875_s27  ;;  %p16879_p3 = scmp.lt.u32.totalorder %s16875_s27, %s23991_s2 }
  0x28   :  { %p16881_p4 = pnand %p16879_p3, %p16876_p2 }
  0x2a   :  { %16884 = shalt.err (!%p16881_p4)
}
  0x2b   :  { %s16885_s8 = scalar_lea.vmem %s28_s20, 3072  ;;  %p16890_p6 = scmp.lt.s32.totalorder %s28_s20, %s28_s20 }
  0x2c   :  { %p16886_p5 = scmp.ne.s32.totalorder %s28_s20, %s16885_s8  ;;  %p16891_p7 = scmp.lt.s32.totalorder %s16885_s8, %s16885_s8 }
  0x2e   :  { %p16892_p8 = por %p16891_p7, %p16890_p6 }
  0x30   :  { %p16893_p9 = pnand %p16892_p8, %p16886_p5 }
  0x32   :  { %16896 = shalt.err (!%p16893_p9)
}
  0x33   :  { %33 = dma.hbm_to_vmem [thread:$0]  %s23991_s2, 3072, %s28_s20, [#allocation3], %s16949_s25, %s16949_s25, %s16950_s26  }
  0x34   :  { %s16897_s17 = scalar_lea.hbm %s23996_s7, 4096 }
  0x35   :  { %p16898_p10 = scmp.ne.s32.totalorder %s23996_s7, %s16897_s17  ;;  %p16901_p11 = scmp.lt.u32.totalorder %s16897_s17, %s23996_s7 }
  0x37   :  { %p16903_p12 = pnand %p16901_p11, %p16898_p10 }
  0x39   :  { %16906 = shalt.err (!%p16903_p12)
}
  0x3a   :  { %s16907_s21 = scalar_lea.vmem %s17056_s22, 4096  ;;  %p16912_p0 = scmp.lt.s32.totalorder %s17056_s22, %s17056_s22 }
  0x3b   :  { %p16908_p13 = scmp.ne.s32.totalorder %s17056_s22, %s16907_s21  ;;  %p16913_p1 = scmp.lt.s32.totalorder %s16907_s21, %s16907_s21 }
  0x3d   :  { %p16914_p2 = por %p16913_p1, %p16912_p0 }
  0x3f   :  { %p16915_p3 = pnand %p16914_p2, %p16908_p13 }
  0x41   :  { %16918 = shalt.err (!%p16915_p3)
}
  0x42   :  { %63 = dma.hbm_to_vmem [thread:$0]  %s23996_s7, 4096, %s17056_s22, [#allocation5], %s16949_s25, %s16949_s25, %s16950_s26  }
  0x43   :  { %s16953_s23 = smov [#allocation9]   ;;  %s16919_s29 = scalar_lea.hbm %s23998_s9, 2048 }
  0x44   :  { %s81_s24 = sshll.u32 %s16953_s23, 4  ;;  %p16920_p4 = scmp.ne.s32.totalorder %s23998_s9, %s16919_s29  ;;  %s82_s24 = int_to_ptr.vmem [resolvable:$true] %s81_s24 }
  0x45   :  { %p16923_p5 = scmp.lt.u32.totalorder %s16919_s29, %s23998_s9 }
  0x47   :  { %p16925_p6 = pnand %p16923_p5, %p16920_p4 }
  0x49   :  { %16928 = shalt.err (!%p16925_p6)
}
  0x4a   :  { %s16929_s12 = scalar_lea.vmem %s82_s24, 2048  ;;  %p16934_p8 = scmp.lt.s32.totalorder %s82_s24, %s82_s24 }
  0x4b   :  { %p16930_p7 = scmp.ne.s32.totalorder %s82_s24, %s16929_s12  ;;  %p16935_p9 = scmp.lt.s32.totalorder %s16929_s12, %s16929_s12 }
  0x4d   :  { %p16936_p10 = por %p16935_p9, %p16934_p8 }
  0x4f   :  { %p16937_p11 = pnand %p16936_p10, %p16930_p7 }
  0x51   :  { %16940 = shalt.err (!%p16937_p11)
}
  0x52   :  { %87 = dma.hbm_to_vmem [thread:$0]  %s23998_s9, 2048, %s82_s24, [#allocation8], %s16949_s25, %s16949_s25, %s16950_s26  }
  0x53   :  { %16941 = dma.done.wait [#allocation3], 3072  }
  0x54   :  { %16942 = vsyncadd [#allocation3], 4294964224 }
  0x55   :  { %16943 = dma.done.wait [#allocation5], 7168  }
  0x56   :  { %16944 = vsyncadd [#allocation5], 4294960128 }
  0x57   :  { %16945 = dma.done.wait [#allocation8], 4096  }
  0x58   :  { %16946 = vsyncadd [#allocation8], 4294963200  ;;  %v17111_v0 = vld [vmem:[%s23989_s0 + $0x18] sm:$0xff]  ;;  %v17116_v1 = vld [vmem:[%s23989_s0 + $0x8] sm:$0xff]  ;;  %s16954_s3 = smov 84   ;;  %s16955_s9 = smov 28  }
  0x59   :  { %301 = vrot.lane.b32.xlu1 %v17111_v0, %s16954_s3  ;;  %155 = vrot.lane.b32.xlu0 %v17116_v1, %s16955_s9  ;;  %v17125_v2 = vld [vmem:[%s23989_s0 + $0x20] sm:$0xff]  ;;  %v17130_v3 = vld [vmem:[%s23989_s0 + $0x10] sm:$0xff]  ;;  %s16956_s21 = smov 112   ;;  %s16957_s2 = smov 56   ;;  %vm631_vm0 = vcmask 1043456   ;;  %vm446_vm1 = vcmask 228352  }
  0x5a   :  { %v547_v4 = vld [vmem:[%s23990_s1 + $0x8] sm:$0xff]  ;;  %v549_v5 = vld [vmem:[%s23990_s1 + $0x18] sm:$0xff]  ;;  %v546_v7 = vld [vmem:[%s23990_s1] sm:$0xff]  ;;  %vm582_vm2 = vcmask 97280   ;;  %vm471_vm3 = vcmask 457728   ;;  %vm496_vm4 = vcmask 687104  }
  0x5b   :  { %v638_v6 = vand.u32 4294901760, %v547_v4  ;;  %v548_v8 = vld [vmem:[%s23990_s1 + $0x10] sm:$0xff]  ;;  %v642_v9 = vand.u32 4294901760, %v549_v5  ;;  %v640_v10 = vand.u32 4294901760, %v546_v7  ;;  %v551_v12 = vld [vmem:[%s23990_s1 + $0x28] sm:$0xff]  ;;  %v553_v13 = vld [vmem:[%s23990_s1 + $0x38] sm:$0xff] }
  0x5c   :  { %v644_v11 = vand.u32 4294901760, %v548_v8  ;;  %v17157_v14 = vld [vmem:[%s23989_s0 + $0x28] sm:$0xff]  ;;  %v646_v16 = vand.u32 4294901760, %v551_v12  ;;  %v650_v17 = vand.u32 4294901760, %v553_v13  ;;  %v550_v18 = vld [vmem:[%s23990_s1 + $0x20] sm:$0xff]  ;;  %v552_v19 = vld [vmem:[%s23990_s1 + $0x30] sm:$0xff] }
  0x5d   :  { %374 = vrot.lane.b32.xlu1 %v17125_v2, %s16956_s21  ;;  %228 = vrot.lane.b32.xlu0 %v17130_v3, %s16957_s2  ;;  %v17159_v15 = vsub.f32 %v547_v4, %v638_v6  ;;  %v555_v20 = vld [vmem:[%s23990_s1 + $0x48] sm:$0xff]  ;;  %v17174_v21 = vpack.c.bf16 %v642_v9, %v638_v6  ;;  %v17176_v22 = vsub.f32 %v549_v5, %v642_v9  ;;  %v648_v24 = vand.u32 4294901760, %v550_v18  ;;  %v557_v25 = vld [vmem:[%s23990_s1 + $0x58] sm:$0xff]  ;;  %s16959_s8 = smov 96   ;;  %s16960_s16 = smov 64  }
  0x5e   :  { %v17178_v23 = vpack.c.bf16 %v644_v11, %v640_v10  ;;  %v554_v26 = vld [vmem:[%s23990_s1 + $0x40] sm:$0xff]  ;;  %v17186_v27 = vsub.f32 %v546_v7, %v640_v10  ;;  %v17188_v28 = vsub.f32 %v548_v8, %v644_v11  ;;  %v17190_v29 = vpack.c.bf16 %v650_v17, %v646_v16  ;;  %v556_v31 = vld [vmem:[%s23990_s1 + $0x50] sm:$0xff]  ;;  %v559_v32 = vld [vmem:[%s23990_s1 + $0x68] sm:$0xff]  ;;  %s16961_s12 = smov 32  }
  0x5f   :  { %24865 = vst [vmem:[#allocation13_spill] sm:$0xff] %v17159_v15  ;;  %24866 = vst [vmem:[#allocation14_spill] sm:$0xff] %v17174_v21  ;;  %v17192_v30 = vsub.f32 %v551_v12, %v646_v16  ;;  %v561_v33 = vld [vmem:[%s23990_s1 + $0x78] sm:$0xff]  ;;  %14225 = vmatprep.subr.bf16.mxu0 %v17174_v21  ;;  %v17204_v34 = vsub.f32 %v553_v13, %v650_v17  ;;  %v652_v35 = vand.u32 4294901760, %v552_v19  ;;  %v654_v37 = vand.u32 4294901760, %v555_v20  ;;  %v558_v42 = vld [vmem:[%s23990_s1 + $0x60] sm:$0xff] }
  0x60   :  { %24867 = vst [vmem:[#allocation15_spill] sm:$0xff] %v17176_v22  ;;  %24868 = vst [vmem:[#allocation16_spill] sm:$0xff] %v17178_v23  ;;  %v17206_v36 = vsub.f32 %v550_v18, %v648_v24  ;;  %14227 = vmatpush1.bf16.msra.mxu0 %v17178_v23  ;;  %v658_v38 = vand.u32 4294901760, %v557_v25  ;;  %v656_v39 = vand.u32 4294901760, %v554_v26  ;;  %v660_v40 = vand.u32 4294901760, %v556_v31  ;;  %v560_v47 = vld [vmem:[%s23990_s1 + $0x70] sm:$0xff] }
  0x61   :  { %230 = vrot.lane.b32.xlu1 %v17111_v0, %s16957_s2  ;;  %157 = vrot.lane.b32.xlu0 %v17130_v3, %s16955_s9  ;;  %24869 = vst [vmem:[#allocation17_spill] sm:$0xff] %v17186_v27  ;;  %24870 = vst [vmem:[#allocation18_spill] sm:$0xff] %v17188_v28  ;;  %v662_v41 = vand.u32 4294901760, %v559_v32  ;;  %v17216_v43 = vpack.c.bf16 %v652_v35, %v648_v24  ;;  %v17218_v44 = vsub.f32 %v552_v19, %v652_v35  ;;  %v563_v48 = vld [vmem:[%s23990_s1 + $0x88] sm:$0xff]  ;;  %v565_v52 = vld [vmem:[%s23990_s1 + $0x98] sm:$0xff]  ;;  %vm521_vm5 = vcmask 916480  }
  0x62   :  { %24871 = vst [vmem:[#allocation19_spill] sm:$0xff] %v17190_v29  ;;  %24872 = vst [vmem:[#allocation20_spill] sm:$0xff] %v17192_v30  ;;  %v17220_v45 = vsub.f32 %v555_v20, %v654_v37  ;;  %v666_v46 = vand.u32 4294901760, %v561_v33  ;;  %14229 = vmatprep.subr.bf16.mxu0 %v17190_v29  ;;  %v17229_v49 = vpack.c.bf16 %v658_v38, %v654_v37  ;;  %v562_v53 = vld [vmem:[%s23990_s1 + $0x80] sm:$0xff]  ;;  %v564_v54 = vld [vmem:[%s23990_s1 + $0x90] sm:$0xff]  ;;  %v664_v62 = vand.u32 4294901760, %v558_v42 }
  0x63   :  { %24873 = vst [vmem:[#allocation21_spill] sm:$0xff] %v17204_v34  ;;  %24874 = vst [vmem:[#allocation22_spill] sm:$0xff] %v17206_v36  ;;  %v17231_v50 = vsub.f32 %v557_v25, %v658_v38  ;;  %v17233_v51 = vsub.f32 %v554_v26, %v656_v39  ;;  %v17244_v55 = vsub.f32 %v556_v31, %v660_v40  ;;  %v17253_v58 = vld [vmem:[%s23990_s1 + $0xa8] sm:$0xff]  ;;  %v17258_v59 = vld [vmem:[%s23990_s1 + $0xb8] sm:$0xff]  ;;  %v668_v63 = vand.u32 4294901760, %v560_v47 }
  0x64   :  { %24875 = vst [vmem:[#allocation23_spill] sm:$0xff] %v17216_v43  ;;  %24876 = vst [vmem:[#allocation24_spill] sm:$0xff] %v17218_v44  ;;  %v17246_v56 = vsub.f32 %v559_v32, %v662_v41  ;;  %v17248_v57 = vsub.f32 %v561_v33, %v666_v46  ;;  %14231 = vmatpush1.bf16.msra.mxu0 %v17216_v43  ;;  %v17261_v60 = vpack.c.bf16 %v660_v40, %v656_v39  ;;  %v17272_v8 = vld [vmem:[%s23989_s0 + $0x30] sm:$0xff]  ;;  %v566_v13 = vld [vmem:[%s23990_s1 + $0xa0] sm:$0xff]  ;;  %vm3080_vm6 = vcmask 523264  }
  0x65   :  { %376 = vrot.lane.b32.xlu1 %v17157_v14, %s16956_s21  ;;  %303 = vrot.lane.b32.xlu0 %v17125_v2, %s16954_s3  ;;  %24877 = vst [vmem:[#allocation25_spill] sm:$0xff] %v17229_v49  ;;  %24878 = vst [vmem:[#allocation26_spill] sm:$0xff] %v17231_v50  ;;  %v17263_v61 = vpack.c.bf16 %v666_v46, %v662_v41  ;;  %v670_v4 = vand.u32 4294901760, %v563_v48  ;;  %v674_v5 = vand.u32 4294901760, %v565_v52  ;;  %v672_v6 = vand.u32 4294901760, %v562_v53  ;;  %v568_v16 = vld [vmem:[%s23990_s1 + $0xb0] sm:$0xff] }
  0x66   :  { %24879 = vst [vmem:[#allocation27_spill] sm:$0xff] %v17233_v51  ;;  %24880 = vst [vmem:[#allocation28_spill] sm:$0xff] %v17244_v55  ;;  %v676_v7 = vand.u32 4294901760, %v564_v54  ;;  %14233 = vmatprep.subr.bf16.mxu0 %v17229_v49  ;;  %v17275_v9 = vsub.f32 %v558_v42, %v664_v62  ;;  %v17277_v10 = vsub.f32 %v560_v47, %v668_v63  ;;  %v678_v11 = vand.u32 4294901760, %v17253_v58  ;;  %v17296_v20 = vld [vmem:[%s23990_s1 + $0xc8] sm:$0xff]  ;;  %v17301_v24 = vld [vmem:[%s23990_s1 + $0xd8] sm:$0xff] }
  0x67   :  { %24881 = vst [vmem:[#allocation29_spill] sm:$0xff] %v17261_v60  ;;  %24882 = vst [vmem:[#allocation30_spill] sm:$0xff] %v17263_v61  ;;  %v682_v12 = vand.u32 4294901760, %v17258_v59  ;;  %v17287_v17 = vsub.f32 %v563_v48, %v670_v4  ;;  %v17289_v18 = vsub.f32 %v565_v52, %v674_v5  ;;  %v17291_v19 = vsub.f32 %v562_v53, %v672_v6  ;;  %v17306_v25 = vld [vmem:[%s23990_s1 + $0xc0] sm:$0xff]  ;;  %v572_v35 = vld [vmem:[%s23990_s1 + $0xd0] sm:$0xff] }
  0x68   :  { %14235 = vmatpush1.bf16.msra.mxu0 %v17261_v60  ;;  %v17309_v26 = vpack.c.bf16 %v668_v63, %v664_v62  ;;  %v17311_v31 = vsub.f32 %v564_v54, %v676_v7  ;;  %v17314_v32 = vsub.f32 %v17253_v58, %v678_v11  ;;  %v17325_v37 = vld [vmem:[%s23990_s1 + $0xe8] sm:$0xff]  ;;  %v17331_v38 = vpack.c.bf16 %v674_v5, %v670_v4  ;;  %v577_v41 = vld [vmem:[%s23990_s1 + $0xf8] sm:$0xff]  ;;  %v574_v52 = vld [vmem:[%s23990_s1 + $0xe0] sm:$0xff] }
  0x69   :  { %232 = vrot.lane.b32.xlu1 %v17125_v2, %s16957_s2  ;;  %159 = vrot.lane.b32.xlu0 %v17111_v0, %s16955_s9  ;;  %v17317_v33 = vsub.f32 %v17258_v59, %v682_v12  ;;  %v680_v39 = vand.u32 4294901760, %v566_v13  ;;  %v684_v40 = vand.u32 4294901760, %v568_v16  ;;  %v17337_v42 = vpack.c.bf16 %v676_v7, %v672_v6  ;;  %v576_v62 = vld [vmem:[%s23990_s1 + $0xf0] sm:$0xff]  ;;  %v579_v63 = vld [vmem:[%s23990_s1 + $0x108] sm:$0xff] }
  0x6a   :  { %24883 = vst [vmem:[#allocation31_spill] sm:$0xff] %v17309_v26  ;;  %24884 = vst [vmem:[#allocation32_spill] sm:$0xff] %v17331_v38  ;;  %14237 = vmatprep.subr.bf16.mxu0 %v17263_v61  ;;  %v686_v46 = vand.u32 4294901760, %v17296_v20  ;;  %v690_v47 = vand.u32 4294901760, %v17301_v24  ;;  %v688_v48 = vand.u32 4294901760, %v17306_v25  ;;  %v692_v58 = vand.u32 4294901760, %v572_v35 }
  0x6b   :  { %24885 = vst [vmem:[#allocation33_spill] sm:$0xff] %v17337_v42  ;;  %v17345_v53 = vsub.f32 %v566_v13, %v680_v39  ;;  %v17347_v54 = vsub.f32 %v568_v16, %v684_v40  ;;  %v694_v59 = vand.u32 4294901760, %v17325_v37  ;;  %v581_v4 = vld [vmem:[%s23990_s1 + $0x118] sm:$0xf]  ;;  %v698_v13 = vand.u32 4294901760, %v577_v41  ;;  %v578_v16 = vld [vmem:[%s23990_s1 + $0x100] sm:$0xff] }
  0x6c   :  { %14239 = vmatpush1.bf16.msra.mxu0 %v17309_v26  ;;  %v17361_v5 = vsub.f32 %v17296_v20, %v686_v46  ;;  %v17364_v6 = vsub.f32 %v17301_v24, %v690_v47  ;;  %v17367_v7 = vsub.f32 %v17306_v25, %v688_v48  ;;  %v580_v61 = vld [vmem:[%s23990_s1 + $0x110] sm:$0xf]  ;;  %v17379_v20 = vpack.c.bf16 %v682_v12, %v678_v11  ;;  %v17389_v60 = vld [vmem:[%s23989_s0 + $0x38] sm:$0xff] }
  0x6d   :  { %378 = vrot.lane.b32.xlu1 %v17272_v8, %s16956_s21  ;;  %305 = vrot.lane.b32.xlu0 %v17157_v14, %s16954_s3  ;;  %v17381_v24 = vsub.f32 %v572_v35, %v692_v58  ;;  %v17384_v25 = vsub.f32 %v17325_v37, %v694_v59  ;;  %v696_v26 = vand.u32 4294901760, %v574_v52  ;;  %v17392_v49 = vsub.f32 %v577_v41, %v698_v13 }
  0x6e   :  { %24886 = vst [vmem:[#allocation34_spill] sm:$0xff] %v17367_v7  ;;  %24887 = vst [vmem:[#allocation35_spill] sm:$0xff] %v17379_v20  ;;  %14241 = vmatprep.subr.bf16.mxu0 %v17331_v38  ;;  %v700_v43 = vand.u32 4294901760, %v576_v62  ;;  %v636_v29 = vsel %vm631_vm0, %v581_v4, 0  ;;  %v702_v11 = vand.u32 4294901760, %v579_v63  ;;  %v633_v37 = vsel %vm631_vm0, %v580_v61, 0 }
  0x6f   :  { %24888 = vst [vmem:[#allocation36_spill] sm:$0xff] %v17381_v24  ;;  %24889 = vst [vmem:[#allocation37_spill] sm:$0xff] %v17384_v25  ;;  %v17395_v12 = vsub.f32 %v574_v52, %v696_v26  ;;  %v706_v35 = vand.u32 4294901760, %v636_v29  ;;  %v704_v23 = vand.u32 4294901760, %v578_v16  ;;  %v17399_v21 = vpack.c.bf16 %v684_v40, %v680_v39 }
  0x70   :  { %14243 = vmatpush1.bf16.msra.mxu0 %v17337_v42  ;;  %v17401_v25 = vsub.f32 %v576_v62, %v700_v43  ;;  %v17403_v24 = vsub.f32 %v579_v63, %v702_v11  ;;  %v708_v41 = vand.u32 4294901760, %v633_v37  ;;  %v17414_v61 = vpack.c.bf16 %v690_v47, %v686_v46  ;;  %v17507_v62 = vld [vmem:[%s23989_s0 + $0x68] sm:$0xff]  ;;  %v17520_v63 = vld [vmem:[%s23989_s0 + $0x70] sm:$0xff] }
  0x71   :  { %234 = vrot.lane.b32.xlu1 %v17157_v14, %s16957_s2  ;;  %161 = vrot.lane.b32.xlu0 %v17125_v2, %s16955_s9  ;;  %24890 = vst [vmem:[#allocation38_spill] sm:$0xff] %v17395_v12  ;;  %24891 = vst [vmem:[#allocation39_spill] sm:$0xff] %v17399_v21  ;;  %v17409_v52 = vsub.f32 %v636_v29, %v706_v35  ;;  %v17411_v4 = vsub.f32 %v578_v16, %v704_v23  ;;  %v17428_v29 = vld [vmem:[%s23989_s0 + $0x40] sm:$0xff]  ;;  %v24025_v16 = vand.u32 4294901760, %v17159_v15  ;;  %vm5983_vm7 = vcmask 785408  }
  0x72   :  { %14245 = vmatprep.subr.bf16.mxu0 %v17379_v20  ;;  %24892 = vst [vmem:[#allocation40_spill] sm:$0xff] %v17414_v61  ;;  %v17416_v39 = vsub.f32 %v633_v37, %v708_v41  ;;  %v17419_v40 = vpack.c.bf16 %v692_v58, %v688_v48  ;;  %v17431_v46 = vpack.c.bf16 %v698_v13, %v694_v59  ;;  %v17494_v59 = vld [vmem:[%s23989_s0 + $0x60] sm:$0xff]  ;;  %24900 = vst [vmem:[#allocation48_spill] sm:$0xff] %v17507_v62  ;;  %v118_v13 = vld [vmem:[%s23989_s0 + $0x78] sm:$0xff]  ;;  %vm6000_vm8 = vcmask 261120  }
  0x73   :  { %v17434_v47 = vpack.c.bf16 %v700_v43, %v696_v26  ;;  %v17441_v48 = vpack.c.bf16 %v706_v35, %v702_v11  ;;  %v17444_v58 = vpack.c.bf16 %v708_v41, %v704_v23  ;;  %v17453_v43 = vld [vmem:[%s23989_s0 + $0x48] sm:$0xff]  ;;  %v17468_v23 = vld [vmem:[%s23989_s0 + $0x50] sm:$0xff]  ;;  %v17481_v26 = vld [vmem:[%s23989_s0 + $0x58] sm:$0xff]  ;;  %24899 = vst [vmem:[#allocation47_spill] sm:$0xff] %v17494_v59  ;;  %v24024_v11 = vand.u32 4294901760, %v17176_v22 }
  0x74   :  { %24893 = vst [vmem:[#allocation41_spill] sm:$0xff] %v17416_v39  ;;  %14247 = vmatpush1.bf16.msra.mxu0 %v17399_v21  ;;  %24894 = vst [vmem:[#allocation42_spill] sm:$0xff] %v17419_v40  ;;  %v1126_v35 = vsub.f32 %v17159_v15, %v24025_v16  ;;  %v24902_v21 = vand.u32 4294901760, %v17186_v27  ;;  %vm16962_vm9 = vmmov 0  }
  0x75   :  { %380 = vrot.lane.b32.xlu1 %v17389_v60, %s16956_s21  ;;  %307 = vrot.lane.b32.xlu0 %v17272_v8, %s16954_s3  ;;  %24895 = vst [vmem:[#allocation43_spill] sm:$0xff] %v17431_v46  ;;  %24896 = vst [vmem:[#allocation44_spill] sm:$0xff] %v17434_v47  ;;  %v1138_v37 = vsub.f32 %v17176_v22, %v24024_v11  ;;  %v103_v11 = vld [vmem:[%s23989_s0] sm:$0xff] }
  0x76   :  { %14249 = vmatprep.subr.bf16.mxu0 %v17414_v61  ;;  %24897 = vst [vmem:[#allocation45_spill] sm:$0xff] %v17441_v48  ;;  %24898 = vst [vmem:[#allocation46_spill] sm:$0xff] %v17444_v58  ;;  %v1127_v41 = vand.u32 4294901760, %v1126_v35  ;;  %v17559_v35 = vld [vmem:[%s23989_s0 + $0x88] sm:$0xff]  ;;  %v1132_v20 = vsub.f32 %v17186_v27, %v24902_v21  ;;  %v24906_v21 = vand.u32 4294901760, %v17204_v34 }
  0x77   :  { %24901 = vst [vmem:[#allocation49_spill] sm:$0xff] %v17520_v63 }
  0x78   :  { %14251 = vmatpush1.bf16.msra.mxu0 %v17419_v40  ;;  %v1133_v27 = vand.u32 4294901760, %v1132_v20 }
  0x79   :  { %236 = vrot.lane.b32.xlu1 %v17272_v8, %s16957_s2  ;;  %163 = vrot.lane.b32.xlu0 %v17157_v14, %s16955_s9 }
  0x7a   :  { %14253 = vmatprep.subr.bf16.mxu0 %v17431_v46 }
  0x7c   :  { %14255 = vmatpush1.bf16.msra.mxu0 %v17434_v47 }
  0x7d   :  { %382 = vrot.lane.b32.xlu1 %v17428_v29, %s16956_s21  ;;  %309 = vrot.lane.b32.xlu0 %v17389_v60, %s16954_s3 }
  0x7e   :  { %14257 = vmatprep.subr.bf16.mxu0 %v17441_v48  ;;  %v119_v48 = vld [vmem:[%s23989_s0 + $0x80] sm:$0xff] }
  0x80   :  { %14259 = vmatpush1.bf16.msra.mxu0 %v17444_v58  ;;  %v1139_v58 = vand.u32 4294901760, %v1138_v37 }
  0x81   :  { %238 = vrot.lane.b32.xlu1 %v17389_v60, %s16957_s2  ;;  %165 = vrot.lane.b32.xlu0 %v17272_v8, %s16955_s9 }
  0x82   :  { %v14260_v47 = vpack.c.bf16 %v1139_v58, %v1127_v41 }
  0x84   :  { %14261 = vmatprep.subr.bf16.mxu0 %v14260_v47  ;;  %v17569_v47 = vld [vmem:[%s23989_s0 + $0x90] sm:$0xff] }
  0x85   :  { %384 = vrot.lane.b32.xlu1 %v17453_v43, %s16956_s21  ;;  %311 = vrot.lane.b32.xlu0 %v17428_v29, %s16954_s3 }
  0x89   :  { %240 = vrot.lane.b32.xlu1 %v17428_v29, %s16957_s2  ;;  %167 = vrot.lane.b32.xlu0 %v17389_v60, %s16955_s9 }
  0x8d   :  { %386 = vrot.lane.b32.xlu1 %v17468_v23, %s16956_s21  ;;  %313 = vrot.lane.b32.xlu0 %v17453_v43, %s16954_s3 }
  0x91   :  { %242 = vrot.lane.b32.xlu1 %v17453_v43, %s16957_s2  ;;  %169 = vrot.lane.b32.xlu0 %v17428_v29, %s16955_s9 }
  0x95   :  { %388 = vrot.lane.b32.xlu1 %v17481_v26, %s16956_s21  ;;  %315 = vrot.lane.b32.xlu0 %v17468_v23, %s16954_s3 }
  0x99   :  { %244 = vrot.lane.b32.xlu1 %v17468_v23, %s16957_s2  ;;  %171 = vrot.lane.b32.xlu0 %v17453_v43, %s16955_s9 }
  0x9d   :  { %390 = vrot.lane.b32.xlu1 %v17494_v59, %s16956_s21  ;;  %317 = vrot.lane.b32.xlu0 %v17481_v26, %s16954_s3 }
  0xa1   :  { %246 = vrot.lane.b32.xlu1 %v17481_v26, %s16957_s2  ;;  %173 = vrot.lane.b32.xlu0 %v17468_v23, %s16955_s9 }
  0xa5   :  { %392 = vrot.lane.b32.xlu1 %v17507_v62, %s16956_s21  ;;  %319 = vrot.lane.b32.xlu0 %v17494_v59, %s16954_s3 }
  0xa9   :  { %248 = vrot.lane.b32.xlu1 %v17494_v59, %s16957_s2  ;;  %175 = vrot.lane.b32.xlu0 %v17481_v26, %s16955_s9 }
  0xad   :  { %394 = vrot.lane.b32.xlu1 %v17520_v63, %s16956_s21  ;;  %321 = vrot.lane.b32.xlu0 %v17507_v62, %s16954_s3 }
  0xb1   :  { %250 = vrot.lane.b32.xlu1 %v17507_v62, %s16957_s2  ;;  %177 = vrot.lane.b32.xlu0 %v17494_v59, %s16955_s9 }
  0xb5   :  { %396 = vrot.lane.b32.xlu1 %v118_v13, %s16956_s21  ;;  %323 = vrot.lane.b32.xlu0 %v17520_v63, %s16954_s3 }
  0xb9   :  { %252 = vrot.lane.b32.xlu1 %v17520_v63, %s16957_s2  ;;  %179 = vrot.lane.b32.xlu0 %v17507_v62, %s16955_s9 }
  0xbd   :  { %398 = vrot.lane.b32.xlu1 %v119_v48, %s16956_s21  ;;  %325 = vrot.lane.b32.xlu0 %v118_v13, %s16954_s3 }
  0xc1   :  { %254 = vrot.lane.b32.xlu1 %v118_v13, %s16957_s2  ;;  %181 = vrot.lane.b32.xlu0 %v17520_v63, %s16955_s9  ;;  %v24904_v63 = vand.u32 4294901760, %v17192_v30 }
  0xc3   :  { %v1150_v40 = vsub.f32 %v17192_v30, %v24904_v63  ;;  %v17612_v63 = vld [vmem:[%s23989_s0 + $0x98] sm:$0xff] }
  0xc5   :  { %400 = vrot.lane.b32.xlu1 %v17559_v35, %s16956_s21  ;;  %327 = vrot.lane.b32.xlu0 %v119_v48, %s16954_s3  ;;  %v1151_v30 = vand.u32 4294901760, %v1150_v40 }
  0xc9   :  { %256 = vrot.lane.b32.xlu1 %v119_v48, %s16957_s2  ;;  %183 = vrot.lane.b32.xlu0 %v118_v13, %s16955_s9  ;;  %v24903_v13 = vand.u32 4294901760, %v17188_v28 }
  0xcb   :  { %v302_v58 = vpop.permute.xlu1 %301  ;;  %v156_v37 = vpop.permute.xlu0 %155  ;;  %v1144_v41 = vsub.f32 %v17188_v28, %v24903_v13 }
  0xcc   :  { %v447_v61 = vsel %vm446_vm1, %v103_v11, %v156_v37 }
  0xcd   :  { %402 = vrot.lane.b32.xlu1 %v17569_v47, %s16956_s21  ;;  %329 = vrot.lane.b32.xlu0 %v17559_v35, %s16954_s3  ;;  %v1145_v62 = vand.u32 4294901760, %v1144_v41  ;;  %v24913_v41 = vand.u32 4294901760, %v17231_v50 }
  0xcf   :  { %v375_v16 = vpop.permute.xlu1 %374  ;;  %v229_v46 = vpop.permute.xlu0 %228 }
  0xd0   :  { %v583_v42 = vsel %vm582_vm2, %v375_v16, 0  ;;  %v472_v38 = vsel %vm471_vm3, %v447_v61, %v229_v46  ;;  %v1162_v61 = vsub.f32 %v17204_v34, %v24906_v21  ;;  %v24907_v46 = vand.u32 4294901760, %v17206_v36 }
  0xd1   :  { %v17596_v11 = vand.u32 4294901760, %v583_v42  ;;  %v497_v37 = vsel %vm496_vm4, %v472_v38, %v302_v58  ;;  %258 = vrot.lane.b32.xlu1 %v17559_v35, %s16957_s2  ;;  %185 = vrot.lane.b32.xlu0 %v119_v48, %s16955_s9  ;;  %v24908_v38 = vand.u32 4294901760, %v17218_v44 }
  0xd2   :  { %v1156_v13 = vsub.f32 %v17206_v36, %v24907_v46  ;;  %v522_v28 = vsel %vm521_vm5, %v497_v37, %v375_v16  ;;  %v1163_v37 = vand.u32 4294901760, %v1162_v61  ;;  %v24914_v61 = vand.u32 4294901760, %v17233_v51 }
  0xd3   :  { %24905 = vst [vmem:[#allocation50_spill] sm:$0xff] %v17596_v11  ;;  %v1168_v58 = vsub.f32 %v17218_v44, %v24908_v38  ;;  %v17620_v21 = vsub.f32 %v583_v42, %v17596_v11  ;;  %v17622_v34 = vand.u32 4294901760, %v522_v28  ;;  %v231_v46 = vpop.permute.xlu1 %230  ;;  %v158_v16 = vpop.permute.xlu0 %157 }
  0xd4   :  { %v448_v36 = vsel %vm446_vm1, %v17116_v1, %v158_v16  ;;  %v1157_v44 = vand.u32 4294901760, %v1156_v13  ;;  %v24912_v1 = vand.u32 4294901760, %v17220_v45  ;;  %v17650_v13 = vsub.f32 %v17233_v51, %v24914_v61 }
  0xd5   :  { %24909 = vst [vmem:[#allocation51_spill] sm:$0xff] %v17620_v21  ;;  %24910 = vst [vmem:[#allocation52_spill] sm:$0xff] %v17622_v34  ;;  %v17629_v48 = vsub.f32 %v522_v28, %v17622_v34  ;;  %404 = vrot.lane.b32.xlu1 %v17612_v63, %s16956_s21  ;;  %331 = vrot.lane.b32.xlu0 %v17569_v47, %s16954_s3  ;;  %v24061_v42 = vand.u32 4294901760, %v17620_v21  ;;  %v1169_v11 = vand.u32 4294901760, %v1168_v58 }
  0xd6   :  { %v1174_v20 = vsub.f32 %v17220_v45, %v24912_v1  ;;  %v1186_v28 = vsub.f32 %v17231_v50, %v24913_v41  ;;  %v473_v38 = vsel %vm471_vm3, %v448_v36, %v231_v46  ;;  %v14262_v41 = vpack.c.bf16 %v1145_v62, %v1133_v27 }
  0xd7   :  { %24911 = vst [vmem:[#allocation53_spill] sm:$0xff] %v17629_v48  ;;  %v377_v16 = vpop.permute.xlu1 %376  ;;  %v304_v34 = vpop.permute.xlu0 %303  ;;  %v741_v59 = vsub.f32 %v17620_v21, %v24061_v42  ;;  %v24066_v40 = vand.u32 4294901760, %v17629_v48  ;;  %v24915_v50 = vand.u32 4294901760, %v17244_v55  ;;  %v14264_v62 = vpack.c.bf16 %v1163_v37, %v1151_v30 }
  0xd8   :  { %v585_v58 = vsel %vm582_vm2, %v377_v16, 0  ;;  %v498_v1 = vsel %vm496_vm4, %v473_v38, %v304_v34  ;;  %v1175_v38 = vand.u32 4294901760, %v1174_v20  ;;  %v24072_v30 = vand.u32 4294901760, %v17246_v56 }
  0xd9   :  { %v17657_v36 = vsub.f32 %v17244_v55, %v24915_v50  ;;  %v17659_v46 = vand.u32 4294901760, %v585_v58  ;;  %v523_v42 = vsel %vm521_vm5, %v498_v1, %v377_v16  ;;  %260 = vrot.lane.b32.xlu1 %v17569_v47, %s16957_s2  ;;  %187 = vrot.lane.b32.xlu0 %v17559_v35, %s16955_s9  ;;  %v742_v61 = vand.u32 4294901760, %v741_v59  ;;  %v17674_v50 = vld [vmem:[%s23989_s0 + $0xa0] sm:$0xff] }
  0xda   :  { %v747_v27 = vsub.f32 %v17629_v48, %v24066_v40  ;;  %v17669_v34 = vand.u32 4294901760, %v523_v42  ;;  %v1187_v16 = vand.u32 4294901760, %v1186_v28  ;;  %v14266_v55 = vpack.c.bf16 %v1169_v11, %v1157_v44 }
  0xdb   :  { %24916 = vst [vmem:[#allocation54_spill] sm:$0xff] %v17659_v46  ;;  %v17677_v1 = vsub.f32 %v585_v58, %v17659_v46  ;;  %743 = vmatprep.mubr.f32.mxu0 %v742_v61  ;;  %v233_v35 = vpop.permute.xlu1 %232  ;;  %v160_v59 = vpop.permute.xlu0 %159  ;;  %v1181_v40 = vand.u32 4294901760, %v17650_v13  ;;  %v24071_v37 = vand.u32 4294901760, %v17248_v57  ;;  %v1193_v11 = vand.u32 4294901760, %v17657_v36 }
  0xdc   :  { %24917 = vst [vmem:[#allocation55_spill] sm:$0xff] %v17669_v34  ;;  %v748_v21 = vand.u32 4294901760, %v747_v27  ;;  %v17681_v48 = vsub.f32 %v523_v42, %v17669_v34  ;;  %v449_v51 = vsel %vm446_vm1, %v17130_v3, %v160_v59  ;;  %v24074_v42 = vand.u32 4294901760, %v17275_v9 }
  0xdd   :  { %24918 = vst [vmem:[#allocation56_spill] sm:$0xff] %v17677_v1  ;;  %406 = vrot.lane.b32.xlu1 %v17674_v50, %s16956_s21  ;;  %333 = vrot.lane.b32.xlu0 %v17612_v63, %s16954_s3  ;;  %v24075_v44 = vand.u32 4294901760, %v17677_v1  ;;  %v24073_v20 = vand.u32 4294901760, %v17277_v10  ;;  %v14268_v28 = vpack.c.bf16 %v1187_v16, %v1175_v38  ;;  %v1198_v13 = vsub.f32 %v17246_v56, %v24072_v30 }
  0xde   :  { %24919 = vst [vmem:[#allocation57_spill] sm:$0xff] %v17681_v48  ;;  %749 = vmatmul.mubr.f32.vlgmr.msra.gmra.mrb[0].mxu0 %v748_v21  ;;  %v24076_v3 = vand.u32 4294901760, %v17681_v48  ;;  %v1210_v58 = vsub.f32 %v17248_v57, %v24071_v37  ;;  %v474_v27 = vsel %vm471_vm3, %v449_v51, %v233_v35  ;;  %v1204_v21 = vsub.f32 %v17275_v9, %v24074_v42 }
  0xdf   :  { %v379_v61 = vpop.permute.xlu1 %378  ;;  %v306_v36 = vpop.permute.xlu0 %305  ;;  %v757_v59 = vsub.f32 %v17677_v1, %v24075_v44  ;;  %14263 = vmatpush1.bf16.msra.mxu0 %v14262_v41  ;;  %v1216_v38 = vsub.f32 %v17277_v10, %v24073_v20  ;;  %v1199_v35 = vand.u32 4294901760, %v1198_v13 }
  0xe0   :  { %v587_v16 = vsel %vm582_vm2, %v379_v61, 0  ;;  %v499_v37 = vsel %vm496_vm4, %v474_v27, %v306_v36  ;;  %v763_v51 = vsub.f32 %v17681_v48, %v24076_v3  ;;  %14265 = vmatprep.subr.bf16.mxu0 %v14264_v62  ;;  %v1211_v42 = vand.u32 4294901760, %v1210_v58  ;;  %v17729_v62 = vld [vmem:[%s23989_s0 + $0xa8] sm:$0xff] }
  0xe1   :  { %v17717_v30 = vand.u32 4294901760, %v587_v16  ;;  %v524_v41 = vsel %vm521_vm5, %v499_v37, %v379_v61  ;;  %262 = vrot.lane.b32.xlu1 %v17612_v63, %s16957_s2  ;;  %189 = vrot.lane.b32.xlu0 %v17569_v47, %s16955_s9  ;;  %v758_v20 = vand.u32 4294901760, %v757_v59  ;;  %v1205_v13 = vand.u32 4294901760, %v1204_v21 }
  0xe2   :  { %v17724_v44 = vand.u32 4294901760, %v524_v41  ;;  %v764_v27 = vand.u32 4294901760, %v763_v51  ;;  %v1217_v36 = vand.u32 4294901760, %v1216_v38  ;;  %v14270_v47 = vpack.c.bf16 %v1193_v11, %v1181_v40 }
  0xe3   :  { %24920 = vst [vmem:[#allocation58_spill] sm:$0xff] %v17717_v30  ;;  %v17732_v37 = vsub.f32 %v587_v16, %v17717_v30  ;;  %v235_v61 = vpop.permute.xlu1 %234  ;;  %v162_v3 = vpop.permute.xlu0 %161  ;;  %759 = vmatprep.mubr.f32.mxu0 %v758_v20  ;;  %14267 = vmatpush1.bf16.msra.mxu0 %v14266_v55  ;;  %v14272_v51 = vpack.c.bf16 %v1211_v42, %v1199_v35  ;;  %v24077_v21 = vand.u32 4294901760, %v17287_v17  ;;  %v24079_v40 = vand.u32 4294901760, %v17289_v18 }
  0xe4   :  { %24921 = vst [vmem:[#allocation59_spill] sm:$0xff] %v17724_v44  ;;  %v17735_v58 = vsub.f32 %v524_v41, %v17724_v44  ;;  %v450_v59 = vsel %vm446_vm1, %v17111_v0, %v162_v3  ;;  %765 = vmatmul.mubr.f32.gmra.mrb[2].mxu0 %v764_v27  ;;  %14269 = vmatprep.subr.bf16.mxu0 %v14268_v28  ;;  %v24078_v11 = vand.u32 4294901760, %v17291_v19  ;;  %v24082_v3 = vand.u32 4294901760, %v17311_v31 }
  0xe5   :  { %24922 = vst [vmem:[#allocation60_spill] sm:$0xff] %v17732_v37  ;;  %408 = vrot.lane.b32.xlu1 %v17729_v62, %s16956_s21  ;;  %335 = vrot.lane.b32.xlu0 %v17674_v50, %s16954_s3  ;;  %v24080_v55 = vand.u32 4294901760, %v17732_v37  ;;  %v14274_v0 = vpack.c.bf16 %v1217_v36, %v1205_v13  ;;  %v1222_v42 = vsub.f32 %v17287_v17, %v24077_v21 }
  0xe6   :  { %24923 = vst [vmem:[#allocation61_spill] sm:$0xff] %v17735_v58  ;;  %v24081_v20 = vand.u32 4294901760, %v17735_v58  ;;  %v475_v38 = vsel %vm471_vm3, %v450_v59, %v235_v61  ;;  %v1234_v41 = vsub.f32 %v17289_v18, %v24079_v40  ;;  %v1228_v27 = vsub.f32 %v17291_v19, %v24078_v11 }
  0xe7   :  { %v381_v28 = vpop.permute.xlu1 %380  ;;  %v308_v16 = vpop.permute.xlu0 %307  ;;  %v773_v35 = vsub.f32 %v17732_v37, %v24080_v55  ;;  %14271 = vmatpush1.bf16.msra.mxu0 %v14270_v47  ;;  %v1223_v59 = vand.u32 4294901760, %v1222_v42 }
  0xe8   :  { %v589_v13 = vsel %vm582_vm2, %v381_v28, 0  ;;  %v500_v36 = vsel %vm496_vm4, %v475_v38, %v308_v16  ;;  %v779_v61 = vsub.f32 %v17735_v58, %v24081_v20  ;;  %14273 = vmatprep.subr.bf16.mxu0 %v14272_v51  ;;  %v1235_v40 = vand.u32 4294901760, %v1234_v41  ;;  %v17779_v51 = vld [vmem:[%s23989_s0 + $0xb0] sm:$0xff] }
  0xe9   :  { %v17767_v21 = vand.u32 4294901760, %v589_v13  ;;  %v525_v47 = vsel %vm521_vm5, %v500_v36, %v381_v28  ;;  %264 = vrot.lane.b32.xlu1 %v17674_v50, %s16957_s2  ;;  %191 = vrot.lane.b32.xlu0 %v17612_v63, %s16955_s9  ;;  %v774_v11 = vand.u32 4294901760, %v773_v35  ;;  %v1229_v42 = vand.u32 4294901760, %v1228_v27 }
  0xea   :  { %v17774_v55 = vand.u32 4294901760, %v525_v47  ;;  %v780_v38 = vand.u32 4294901760, %v779_v61  ;;  %v1240_v28 = vsub.f32 %v17311_v31, %v24082_v3  ;;  %v14276_v35 = vpack.c.bf16 %v1235_v40, %v1223_v59 }
  0xeb   :  { %24924 = vst [vmem:[#allocation62_spill] sm:$0xff] %v17767_v21  ;;  %v17785_v16 = vsub.f32 %v589_v13, %v17767_v21  ;;  %v237_v36 = vpop.permute.xlu1 %236  ;;  %v164_v63 = vpop.permute.xlu0 %163  ;;  %775 = vmatprep.mubr.f32.mxu0 %v774_v11  ;;  %14275 = vmatpush1.bf16.msra.mxu0 %v14274_v0  ;;  %v24083_v20 = vand.u32 4294901760, %v17314_v32  ;;  %v24086_v40 = vand.u32 4294901760, %v17317_v33  ;;  %v24085_v0 = vand.u32 4294901760, %v17345_v53 }
  0xec   :  { %24925 = vst [vmem:[#allocation63_spill] sm:$0xff] %v17774_v55  ;;  %v17788_v41 = vsub.f32 %v525_v47, %v17774_v55  ;;  %v451_v61 = vsel %vm446_vm1, %v17125_v2, %v164_v63  ;;  %781 = vmatmul.mubr.f32.gmra.mrb[4].mxu0 %v780_v38  ;;  %v1241_v27 = vand.u32 4294901760, %v1240_v28  ;;  %14277 = vmatprep.subr.bf16.mxu0 %v14276_v35 }
  0xed   :  { %24926 = vst [vmem:[#allocation64_spill] sm:$0xff] %v17785_v16  ;;  %410 = vrot.lane.b32.xlu1 %v17779_v51, %s16956_s21  ;;  %337 = vrot.lane.b32.xlu0 %v17729_v62, %s16954_s3  ;;  %v24084_v11 = vand.u32 4294901760, %v17785_v16  ;;  %v1246_v59 = vsub.f32 %v17314_v32, %v24083_v20  ;;  %v476_v28 = vsel %vm471_vm3, %v451_v61, %v237_v36 }
  0xee   :  { %24927 = vst [vmem:[#allocation65_spill] sm:$0xff] %v17788_v41  ;;  %v14278_v2 = vpack.c.bf16 %v1241_v27, %v1229_v42  ;;  %v1258_v13 = vsub.f32 %v17317_v33, %v24086_v40  ;;  %v1252_v42 = vsub.f32 %v17345_v53, %v24085_v0  ;;  %v24928_v20 = vand.u32 4294901760, %v17788_v41 }
  0xef   :  { %v383_v38 = vpop.permute.xlu1 %382  ;;  %v310_v63 = vpop.permute.xlu0 %309  ;;  %v789_v3 = vsub.f32 %v17785_v16, %v24084_v11  ;;  %v1247_v61 = vand.u32 4294901760, %v1246_v59  ;;  %v24931_v59 = vand.u32 4294901760, %v17347_v54 }
  0xf0   :  { %v591_v35 = vsel %vm582_vm2, %v383_v38, 0  ;;  %v501_v27 = vsel %vm496_vm4, %v476_v28, %v310_v63  ;;  %v795_v36 = vsub.f32 %v17788_v41, %v24928_v20  ;;  %14279 = vmatpush1.bf16.msra.mxu0 %v14278_v2  ;;  %v1259_v40 = vand.u32 4294901760, %v1258_v13  ;;  %v17832_v20 = vld [vmem:[%s23989_s0 + $0xb8] sm:$0xff] }
  0xf1   :  { %v17820_v47 = vand.u32 4294901760, %v591_v35  ;;  %v526_v11 = vsel %vm521_vm5, %v501_v27, %v383_v38  ;;  %266 = vrot.lane.b32.xlu1 %v17729_v62, %s16957_s2  ;;  %193 = vrot.lane.b32.xlu0 %v17674_v50, %s16955_s9  ;;  %v790_v0 = vand.u32 4294901760, %v789_v3  ;;  %v1253_v2 = vand.u32 4294901760, %v1252_v42 }
  0xf2   :  { %v17827_v16 = vand.u32 4294901760, %v526_v11  ;;  %v796_v28 = vand.u32 4294901760, %v795_v36  ;;  %v1264_v38 = vsub.f32 %v17347_v54, %v24931_v59  ;;  %v14280_v3 = vpack.c.bf16 %v1259_v40, %v1247_v61 }
  0xf3   :  { %24929 = vst [vmem:[#allocation66_spill] sm:$0xff] %v17820_v47  ;;  %v17838_v63 = vsub.f32 %v591_v35, %v17820_v47  ;;  %v239_v27 = vpop.permute.xlu1 %238  ;;  %v166_v50 = vpop.permute.xlu0 %165  ;;  %791 = vmatprep.mubr.f32.mxu0 %v790_v0 }
  0xf4   :  { %24930 = vst [vmem:[#allocation67_spill] sm:$0xff] %v17827_v16  ;;  %v17841_v13 = vsub.f32 %v526_v11, %v17827_v16  ;;  %v452_v36 = vsel %vm446_vm1, %v17157_v14, %v166_v50  ;;  %797 = vmatmul.mubr.f32.gmra.mrb[6].mxu0 %v796_v28  ;;  %v1265_v41 = vand.u32 4294901760, %v1264_v38  ;;  %14281 = vmatprep.subr.bf16.mxu0 %v14280_v3 }
  0xf5   :  { %24932 = vst [vmem:[#allocation68_spill] sm:$0xff] %v17838_v63  ;;  %412 = vrot.lane.b32.xlu1 %v17832_v20, %s16956_s21  ;;  %339 = vrot.lane.b32.xlu0 %v17779_v51, %s16954_s3  ;;  %v24092_v42 = vand.u32 4294901760, %v17838_v63  ;;  %v477_v11 = vsel %vm471_vm3, %v452_v36, %v239_v27  ;;  %v17872_v36 = vld [vmem:[%s23989_s0 + $0xc0] sm:$0xff] }
  0xf6   :  { %24933 = vst [vmem:[#allocation69_spill] sm:$0xff] %v17841_v13  ;;  %v24091_v35 = vand.u32 4294901760, %v17841_v13  ;;  %v14282_v40 = vpack.c.bf16 %v1265_v41, %v1253_v2 }
  0xf7   :  { %v385_v0 = vpop.permute.xlu1 %384  ;;  %v312_v61 = vpop.permute.xlu0 %311  ;;  %v805_v14 = vsub.f32 %v17838_v63, %v24092_v42 }
  0xf8   :  { %v593_v28 = vsel %vm582_vm2, %v385_v0, 0  ;;  %v502_v59 = vsel %vm496_vm4, %v477_v11, %v312_v61  ;;  %v811_v38 = vsub.f32 %v17841_v13, %v24091_v35  ;;  %14283 = vmatpush1.bf16.msra.mxu0 %v14282_v40  ;;  %v24939_v35 = vand.u32 4294901760, %v17367_v7 }
  0xf9   :  { %v17860_v50 = vand.u32 4294901760, %v593_v28  ;;  %v527_v41 = vsel %vm521_vm5, %v502_v59, %v385_v0  ;;  %268 = vrot.lane.b32.xlu1 %v17779_v51, %s16957_s2  ;;  %195 = vrot.lane.b32.xlu0 %v17729_v62, %s16955_s9  ;;  %v806_v2 = vand.u32 4294901760, %v805_v14  ;;  %v24099_v59 = vand.u32 4294901760, %v17361_v5 }
  0xfa   :  { %v17867_v27 = vand.u32 4294901760, %v527_v41  ;;  %v812_v3 = vand.u32 4294901760, %v811_v38  ;;  %v24102_v38 = vand.u32 4294901760, %v17364_v6  ;;  %v1276_v42 = vsub.f32 %v17367_v7, %v24939_v35  ;;  %v24946_v7 = vld [vmem:[#allocation37_spill] sm:$0xff] }
  0xfb   :  { %24934 = vst [vmem:[#allocation70_spill] sm:$0xff] %v17860_v50  ;;  %v17875_v40 = vsub.f32 %v593_v28, %v17860_v50  ;;  %v241_v11 = vpop.permute.xlu1 %240  ;;  %v168_v0 = vpop.permute.xlu0 %167  ;;  %807 = vmatprep.mubr.f32.mxu0 %v806_v2 }
  0xfc   :  { %24935 = vst [vmem:[#allocation71_spill] sm:$0xff] %v17867_v27  ;;  %v17878_v61 = vsub.f32 %v527_v41, %v17867_v27  ;;  %v453_v14 = vsel %vm446_vm1, %v17272_v8, %v168_v0  ;;  %813 = vmatmul.mubr.f32.gmra.mrb[8].mxu0 %v812_v3  ;;  %v24938_v41 = vld [vmem:[#allocation36_spill] sm:$0xff]  ;;  %v1270_v8 = vsub.f32 %v17361_v5, %v24099_v59  ;;  %v24117_v27 = vand.u32 4294901760, %v24946_v7 }
  0xfd   :  { %24936 = vst [vmem:[#allocation72_spill] sm:$0xff] %v17875_v40  ;;  %414 = vrot.lane.b32.xlu1 %v17872_v36, %s16956_s21  ;;  %341 = vrot.lane.b32.xlu0 %v17832_v20, %s16954_s3  ;;  %v24107_v28 = vand.u32 4294901760, %v17875_v40  ;;  %v1282_v3 = vsub.f32 %v17364_v6, %v24102_v38  ;;  %v478_v13 = vsel %vm471_vm3, %v453_v14, %v241_v11  ;;  %v24940_v58 = vand.u32 4294901760, %v24938_v41 }
  0xfe   :  { %24937 = vst [vmem:[#allocation73_spill] sm:$0xff] %v17878_v61  ;;  %v24941_v48 = vand.u32 4294901760, %v17878_v61  ;;  %v1271_v14 = vand.u32 4294901760, %v1270_v8 }
  0xff   :  { %v387_v0 = vpop.permute.xlu1 %386  ;;  %v314_v63 = vpop.permute.xlu0 %313  ;;  %v821_v2 = vsub.f32 %v17875_v40, %v24107_v28  ;;  %v1288_v59 = vsub.f32 %v24938_v41, %v24940_v58  ;;  %v1283_v35 = vand.u32 4294901760, %v1282_v3 }
 0x100   :  { %v595_v37 = vsel %vm582_vm2, %v387_v0, 0  ;;  %v503_v38 = vsel %vm496_vm4, %v478_v13, %v314_v63  ;;  %v827_v11 = vsub.f32 %v17878_v61, %v24941_v48  ;;  %v17925_v48 = vld [vmem:[%s23989_s0 + $0xc8] sm:$0xff]  ;;  %v1277_v13 = vand.u32 4294901760, %v1276_v42 }
 0x101   :  { %v17913_v1 = vand.u32 4294901760, %v595_v37  ;;  %v528_v28 = vsel %vm521_vm5, %v503_v38, %v387_v0  ;;  %270 = vrot.lane.b32.xlu1 %v17832_v20, %s16957_s2  ;;  %197 = vrot.lane.b32.xlu0 %v17779_v51, %s16955_s9  ;;  %v822_v58 = vand.u32 4294901760, %v821_v2  ;;  %v1289_v8 = vand.u32 4294901760, %v1288_v59 }
 0x102   :  { %v17920_v40 = vand.u32 4294901760, %v528_v28  ;;  %v828_v63 = vand.u32 4294901760, %v827_v11  ;;  %v14284_v41 = vpack.c.bf16 %v1283_v35, %v1271_v14  ;;  %v24119_v42 = vand.u32 4294901760, %v17392_v49 }
 0x103   :  { %24942 = vst [vmem:[#allocation74_spill] sm:$0xff] %v17913_v1  ;;  %v17928_v38 = vsub.f32 %v595_v37, %v17913_v1  ;;  %v243_v0 = vpop.permute.xlu1 %242  ;;  %v170_v61 = vpop.permute.xlu0 %169  ;;  %823 = vmatprep.mubr.f32.mxu0 %v822_v58  ;;  %v14286_v11 = vpack.c.bf16 %v1289_v8, %v1277_v13  ;;  %v24118_v59 = vand.u32 4294901760, %v17395_v12 }
 0x104   :  { %24943 = vst [vmem:[#allocation75_spill] sm:$0xff] %v17920_v40  ;;  %v17931_v2 = vsub.f32 %v528_v28, %v17920_v40  ;;  %v454_v3 = vsel %vm446_vm1, %v17389_v60, %v170_v61  ;;  %829 = vmatmul.mubr.f32.gmra.mrb[10].mxu0 %v828_v63  ;;  %14285 = vmatprep.subr.bf16.mxu0 %v14284_v41 }
 0x105   :  { %24944 = vst [vmem:[#allocation76_spill] sm:$0xff] %v17928_v38  ;;  %416 = vrot.lane.b32.xlu1 %v17925_v48, %s16956_s21  ;;  %343 = vrot.lane.b32.xlu0 %v17872_v36, %s16954_s3  ;;  %v24120_v37 = vand.u32 4294901760, %v17928_v38  ;;  %v1294_v60 = vsub.f32 %v24946_v7, %v24117_v27  ;;  %v479_v58 = vsel %vm471_vm3, %v454_v3, %v243_v0 }
 0x106   :  { %24945 = vst [vmem:[#allocation77_spill] sm:$0xff] %v17931_v2  ;;  %v24121_v28 = vand.u32 4294901760, %v17931_v2  ;;  %14287 = vmatpush1.bf16.msra.mxu0 %v14286_v11  ;;  %v1306_v13 = vsub.f32 %v17392_v49, %v24119_v42  ;;  %v1300_v41 = vsub.f32 %v17395_v12, %v24118_v59 }
 0x107   :  { %v389_v14 = vpop.permute.xlu1 %388  ;;  %v316_v35 = vpop.permute.xlu0 %315  ;;  %v837_v63 = vsub.f32 %v17928_v38, %v24120_v37  ;;  %v1295_v3 = vand.u32 4294901760, %v1294_v60 }
 0x108   :  { %v597_v8 = vsel %vm582_vm2, %v389_v14, 0  ;;  %v504_v27 = vsel %vm496_vm4, %v479_v58, %v316_v35  ;;  %v843_v0 = vsub.f32 %v17931_v2, %v24121_v28  ;;  %v1307_v42 = vand.u32 4294901760, %v1306_v13  ;;  %v129_v35 = vld [vmem:[%s23989_s0 + $0xd0] sm:$0xff] }
 0x109   :  { %v17963_v61 = vand.u32 4294901760, %v597_v8  ;;  %v529_v11 = vsel %vm521_vm5, %v504_v27, %v389_v14  ;;  %272 = vrot.lane.b32.xlu1 %v17872_v36, %s16957_s2  ;;  %199 = vrot.lane.b32.xlu0 %v17832_v20, %s16955_s9  ;;  %v838_v59 = vand.u32 4294901760, %v837_v63  ;;  %v1301_v60 = vand.u32 4294901760, %v1300_v41 }
 0x10a   :  { %v17970_v37 = vand.u32 4294901760, %v529_v11  ;;  %v844_v58 = vand.u32 4294901760, %v843_v0  ;;  %v24949_v28 = vand.u32 4294901760, %v17401_v25  ;;  %v14288_v63 = vpack.c.bf16 %v1307_v42, %v1295_v3 }
 0x10b   :  { %24947 = vst [vmem:[#allocation37_spill] sm:$0xff] %v17963_v61  ;;  %v17979_v14 = vsub.f32 %v597_v8, %v17963_v61  ;;  %v245_v2 = vpop.permute.xlu1 %244  ;;  %v172_v38 = vpop.permute.xlu0 %171  ;;  %839 = vmatprep.mubr.f32.mxu0 %v838_v59  ;;  %v24128_v41 = vand.u32 4294901760, %v17403_v24  ;;  %v24952_v42 = vand.u32 4294901760, %v17409_v52 }
 0x10c   :  { %24948 = vst [vmem:[#allocation78_spill] sm:$0xff] %v17970_v37  ;;  %v1312_v27 = vsub.f32 %v17401_v25, %v24949_v28  ;;  %v17982_v13 = vsub.f32 %v529_v11, %v17970_v37  ;;  %v455_v0 = vsel %vm446_vm1, %v17428_v29, %v172_v38  ;;  %845 = vmatmul.mubr.f32.gmra.mrb[12].mxu0 %v844_v58 }
 0x10d   :  { %24950 = vst [vmem:[#allocation79_spill] sm:$0xff] %v17979_v14  ;;  %418 = vrot.lane.b32.xlu1 %v129_v35, %s16956_s21  ;;  %345 = vrot.lane.b32.xlu0 %v17925_v48, %s16954_s3  ;;  %v24131_v28 = vand.u32 4294901760, %v17979_v14  ;;  %v1318_v29 = vsub.f32 %v17403_v24, %v24128_v41  ;;  %v480_v58 = vsel %vm471_vm3, %v455_v0, %v245_v2 }
 0x10e   :  { %24951 = vst [vmem:[#allocation80_spill] sm:$0xff] %v17982_v13  ;;  %v1313_v12 = vand.u32 4294901760, %v1312_v27  ;;  %14289 = vmatprep.subr.bf16.mxu0 %v14288_v63  ;;  %v1330_v8 = vsub.f32 %v17409_v52, %v24952_v42  ;;  %v24954_v38 = vand.u32 4294901760, %v17982_v13 }
 0x10f   :  { %v391_v11 = vpop.permute.xlu1 %390  ;;  %v318_v27 = vpop.permute.xlu0 %317  ;;  %v853_v59 = vsub.f32 %v17979_v14, %v24131_v28  ;;  %v1319_v0 = vand.u32 4294901760, %v1318_v29 }
 0x110   :  { %v14290_v3 = vpack.c.bf16 %v1313_v12, %v1301_v60  ;;  %v24953_v12 = vand.u32 4294901760, %v17411_v4  ;;  %v599_v63 = vsel %vm582_vm2, %v391_v11, 0  ;;  %v505_v41 = vsel %vm496_vm4, %v480_v58, %v318_v27 }
 0x111   :  { %v859_v2 = vsub.f32 %v17982_v13, %v24954_v38  ;;  %v18013_v37 = vand.u32 4294901760, %v599_v63  ;;  %v530_v28 = vsel %vm521_vm5, %v505_v41, %v391_v11  ;;  %274 = vrot.lane.b32.xlu1 %v17925_v48, %s16957_s2  ;;  %201 = vrot.lane.b32.xlu0 %v17872_v36, %s16955_s9  ;;  %v854_v42 = vand.u32 4294901760, %v853_v59 }
 0x112   :  { %v1324_v60 = vsub.f32 %v17411_v4, %v24953_v12  ;;  %14291 = vmatpush1.bf16.msra.mxu0 %v14290_v3  ;;  %v1331_v12 = vand.u32 4294901760, %v1330_v8  ;;  %v18020_v14 = vand.u32 4294901760, %v530_v28  ;;  %v130_v3 = vld [vmem:[%s23989_s0 + $0xd8] sm:$0xff]  ;;  %v24957_v38 = vand.u32 4294901760, %v17416_v39 }
 0x113   :  { %24955 = vst [vmem:[#allocation81_spill] sm:$0xff] %v18013_v37  ;;  %v860_v58 = vand.u32 4294901760, %v859_v2  ;;  %v18029_v11 = vsub.f32 %v599_v63, %v18013_v37  ;;  %v247_v48 = vpop.permute.xlu1 %246  ;;  %v174_v27 = vpop.permute.xlu0 %173  ;;  %855 = vmatprep.mubr.f32.mxu0 %v854_v42  ;;  %v14296_v63 = vpack.c.bf16 %v17176_v22, %v17159_v15 }
 0x114   :  { %24956 = vst [vmem:[#allocation82_spill] sm:$0xff] %v18020_v14  ;;  %v1325_v29 = vand.u32 4294901760, %v1324_v60  ;;  %v1336_v41 = vsub.f32 %v17416_v39, %v24957_v38  ;;  %v14292_v36 = vpack.c.bf16 %v1331_v12, %v1319_v0  ;;  %v18032_v59 = vsub.f32 %v530_v28, %v18020_v14 }
 0x115   :  { %24958 = vst [vmem:[#allocation83_spill] sm:$0xff] %v18029_v11  ;;  %v456_v8 = vsel %vm446_vm1, %v17453_v43, %v174_v27  ;;  %861 = vmatmul.mubr.f32.gmra.mrb[14].mxu0 %v860_v58  ;;  %420 = vrot.lane.b32.xlu1 %v130_v3, %s16956_s21  ;;  %v24134_v60 = vand.u32 4294901760, %v18029_v11 }
 0x116   :  { %24959 = vst [vmem:[#allocation84_spill] sm:$0xff] %v18032_v59  ;;  %v1337_v2 = vand.u32 4294901760, %v1336_v41  ;;  %347 = vrot.lane.b32.xlu0 %v129_v35, %s16954_s3  ;;  %v24135_v42 = vand.u32 4294901760, %v18032_v59  ;;  %14293 = vmatprep.subr.bf16.mxu0 %v14292_v36  ;;  %v481_v12 = vsel %vm471_vm3, %v456_v8, %v247_v48 }
 0x117   :  { %v393_v28 = vpop.permute.xlu1 %392  ;;  %v320_v38 = vpop.permute.xlu0 %319  ;;  %v869_v43 = vsub.f32 %v18029_v11, %v24134_v60 }
 0x118   :  { %v14294_v0 = vpack.c.bf16 %v1337_v2, %v1325_v29  ;;  %v601_v58 = vsel %vm582_vm2, %v393_v28, 0  ;;  %v506_v35 = vsel %vm496_vm4, %v481_v12, %v320_v38  ;;  %v875_v3 = vsub.f32 %v18032_v59, %v24135_v42 }
 0x119   :  { %v18051_v41 = vand.u32 4294901760, %v601_v58  ;;  %v531_v29 = vsel %vm521_vm5, %v506_v35, %v393_v28  ;;  %v870_v27 = vand.u32 4294901760, %v869_v43 }
 0x11a   :  { %14295 = vmatpush1.bf16.msra.mxu0 %v14294_v0  ;;  %v18054_v48 = vand.u32 4294901760, %v531_v29  ;;  %v876_v36 = vand.u32 4294901760, %v875_v3 }
 0x11b   :  { %24960 = vst [vmem:[#allocation85_spill] sm:$0xff] %v18051_v41  ;;  %14297 = vmatprep.subr.bf16.mxu0 %v14296_v63  ;;  %v18057_v8 = vsub.f32 %v601_v58, %v18051_v41  ;;  %v249_v2 = vpop.permute.xlu1 %248  ;;  %v176_v60 = vpop.permute.xlu0 %175  ;;  %871 = vmatprep.mubr.f32.mxu0 %v870_v27 }
 0x11c   :  { %24961 = vst [vmem:[#allocation86_spill] sm:$0xff] %v18054_v48  ;;  %v18060_v12 = vsub.f32 %v531_v29, %v18054_v48  ;;  %v457_v0 = vsel %vm446_vm1, %v17468_v23, %v176_v60  ;;  %877 = vmatmul.mubr.f32.gmra.mrb[16].mxu0 %v876_v36 }
 0x11d   :  { %24962 = vst [vmem:[#allocation87_spill] sm:$0xff] %v18057_v8  ;;  %v24136_v28 = vand.u32 4294901760, %v18057_v8  ;;  %v482_v43 = vsel %vm471_vm3, %v457_v0, %v249_v2 }
 0x11e   :  { %24963 = vst [vmem:[#allocation88_spill] sm:$0xff] %v18060_v12  ;;  %v24139_v63 = vand.u32 4294901760, %v18060_v12 }
 0x11f   :  { %v395_v38 = vpop.permute.xlu1 %394  ;;  %v322_v35 = vpop.permute.xlu0 %321  ;;  %v885_v58 = vsub.f32 %v18057_v8, %v24136_v28 }
 0x120   :  { %v603_v3 = vsel %vm582_vm2, %v395_v38, 0  ;;  %v507_v29 = vsel %vm496_vm4, %v482_v43, %v322_v35  ;;  %v891_v23 = vsub.f32 %v18060_v12, %v24139_v63 }
 0x121   :  { %v18075_v60 = vand.u32 4294901760, %v603_v3  ;;  %v532_v27 = vsel %vm521_vm5, %v507_v29, %v395_v38  ;;  %v886_v36 = vand.u32 4294901760, %v885_v58 }
 0x122   :  { %v18078_v42 = vand.u32 4294901760, %v532_v27  ;;  %v892_v2 = vand.u32 4294901760, %v891_v23 }
 0x123   :  { %24964 = vst [vmem:[#allocation89_spill] sm:$0xff] %v18075_v60  ;;  %v18081_v0 = vsub.f32 %v603_v3, %v18075_v60  ;;  %v251_v28 = vpop.permute.xlu1 %250  ;;  %v178_v8 = vpop.permute.xlu0 %177  ;;  %887 = vmatprep.mubr.f32.mxu0 %v886_v36 }
 0x124   :  { %24965 = vst [vmem:[#allocation90_spill] sm:$0xff] %v18078_v42  ;;  %v18084_v43 = vsub.f32 %v532_v27, %v18078_v42  ;;  %v458_v35 = vsel %vm446_vm1, %v17481_v26, %v178_v8  ;;  %893 = vmatmul.mubr.f32.gmra.mrb[18].mxu0 %v892_v2 }
 0x125   :  { %24966 = vst [vmem:[#allocation91_spill] sm:$0xff] %v18081_v0  ;;  %v24144_v63 = vand.u32 4294901760, %v18081_v0  ;;  %v483_v29 = vsel %vm471_vm3, %v458_v35, %v251_v28 }
 0x126   :  { %24967 = vst [vmem:[#allocation92_spill] sm:$0xff] %v18084_v43  ;;  %v24147_v38 = vand.u32 4294901760, %v18084_v43 }
 0x127   :  { %v397_v58 = vpop.permute.xlu1 %396  ;;  %v324_v23 = vpop.permute.xlu0 %323  ;;  %v901_v3 = vsub.f32 %v18081_v0, %v24144_v63 }
 0x128   :  { %v605_v36 = vsel %vm582_vm2, %v397_v58, 0  ;;  %v508_v27 = vsel %vm496_vm4, %v483_v29, %v324_v23  ;;  %v907_v26 = vsub.f32 %v18084_v43, %v24147_v38  ;;  %v24972_v23 = vld [vmem:[#allocation47_spill] sm:$0xff] }
 0x129   :  { %v18099_v8 = vand.u32 4294901760, %v605_v36  ;;  %v533_v2 = vsel %vm521_vm5, %v508_v27, %v397_v58  ;;  %v902_v12 = vand.u32 4294901760, %v901_v3 }
 0x12a   :  { %v18102_v59 = vand.u32 4294901760, %v533_v2  ;;  %v908_v28 = vand.u32 4294901760, %v907_v26 }
 0x12b   :  { %24968 = vst [vmem:[#allocation93_spill] sm:$0xff] %v18099_v8  ;;  %v18105_v35 = vsub.f32 %v605_v36, %v18099_v8  ;;  %v253_v63 = vpop.permute.xlu1 %252  ;;  %v180_v0 = vpop.permute.xlu0 %179  ;;  %903 = vmatprep.mubr.f32.mxu0 %v902_v12 }
 0x12c   :  { %24969 = vst [vmem:[#allocation94_spill] sm:$0xff] %v18102_v59  ;;  %v18108_v29 = vsub.f32 %v533_v2, %v18102_v59  ;;  %v459_v38 = vsel %vm446_vm1, %v24972_v23, %v180_v0  ;;  %909 = vmatmul.mubr.f32.gmra.mrb[20].mxu0 %v908_v28 }
 0x12d   :  { %24970 = vst [vmem:[#allocation95_spill] sm:$0xff] %v18105_v35  ;;  %v24152_v43 = vand.u32 4294901760, %v18105_v35  ;;  %v484_v27 = vsel %vm471_vm3, %v459_v38, %v253_v63 }
 0x12e   :  { %24971 = vst [vmem:[#allocation96_spill] sm:$0xff] %v18108_v29  ;;  %v24155_v58 = vand.u32 4294901760, %v18108_v29 }
 0x12f   :  { %v399_v3 = vpop.permute.xlu1 %398  ;;  %v326_v26 = vpop.permute.xlu0 %325  ;;  %v917_v36 = vsub.f32 %v18105_v35, %v24152_v43 }
 0x130   :  { %v607_v12 = vsel %vm582_vm2, %v399_v3, 0  ;;  %v509_v2 = vsel %vm496_vm4, %v484_v27, %v326_v26  ;;  %v923_v0 = vsub.f32 %v18108_v29, %v24155_v58  ;;  %v24977_v26 = vld [vmem:[#allocation48_spill] sm:$0xff] }
 0x131   :  { %v18123_v28 = vand.u32 4294901760, %v607_v12  ;;  %v534_v23 = vsel %vm521_vm5, %v509_v2, %v399_v3  ;;  %v918_v22 = vand.u32 4294901760, %v917_v36 }
 0x132   :  { %v18126_v15 = vand.u32 4294901760, %v534_v23  ;;  %v924_v63 = vand.u32 4294901760, %v923_v0 }
 0x133   :  { %24973 = vst [vmem:[#allocation47_spill] sm:$0xff] %v18123_v28  ;;  %v18129_v38 = vsub.f32 %v607_v12, %v18123_v28  ;;  %v255_v43 = vpop.permute.xlu1 %254  ;;  %v182_v35 = vpop.permute.xlu0 %181  ;;  %919 = vmatprep.mubr.f32.mxu0 %v918_v22 }
 0x134   :  { %24974 = vst [vmem:[#allocation97_spill] sm:$0xff] %v18126_v15  ;;  %v18132_v27 = vsub.f32 %v534_v23, %v18126_v15  ;;  %v460_v58 = vsel %vm446_vm1, %v24977_v26, %v182_v35  ;;  %925 = vmatmul.mubr.f32.gmra.mrb[22].mxu0 %v924_v63 }
 0x135   :  { %24975 = vst [vmem:[#allocation98_spill] sm:$0xff] %v18129_v38  ;;  %v24162_v29 = vand.u32 4294901760, %v18129_v38  ;;  %v485_v2 = vsel %vm471_vm3, %v460_v58, %v255_v43 }
 0x136   :  { %24976 = vst [vmem:[#allocation99_spill] sm:$0xff] %v18132_v27  ;;  %v24165_v3 = vand.u32 4294901760, %v18132_v27 }
 0x137   :  { %v401_v36 = vpop.permute.xlu1 %400  ;;  %v328_v0 = vpop.permute.xlu0 %327  ;;  %v933_v12 = vsub.f32 %v18129_v38, %v24162_v29 }
 0x138   :  { %v609_v22 = vsel %vm582_vm2, %v401_v36, 0  ;;  %v510_v23 = vsel %vm496_vm4, %v485_v2, %v328_v0  ;;  %v939_v35 = vsub.f32 %v18132_v27, %v24165_v3  ;;  %v24982_v0 = vld [vmem:[#allocation49_spill] sm:$0xff] }
 0x139   :  { %v18147_v63 = vand.u32 4294901760, %v609_v22  ;;  %v535_v26 = vsel %vm521_vm5, %v510_v23, %v401_v36  ;;  %v934_v11 = vand.u32 4294901760, %v933_v12 }
 0x13a   :  { %v18150_v13 = vand.u32 4294901760, %v535_v26  ;;  %v940_v43 = vand.u32 4294901760, %v939_v35 }
 0x13b   :  { %24978 = vst [vmem:[#allocation48_spill] sm:$0xff] %v18147_v63  ;;  %v18153_v58 = vsub.f32 %v609_v22, %v18147_v63  ;;  %v257_v29 = vpop.permute.xlu1 %256  ;;  %v184_v38 = vpop.permute.xlu0 %183  ;;  %935 = vmatprep.mubr.f32.mxu0 %v934_v11 }
 0x13c   :  { %24979 = vst [vmem:[#allocation100_spill] sm:$0xff] %v18150_v13  ;;  %v18156_v2 = vsub.f32 %v535_v26, %v18150_v13  ;;  %v461_v3 = vsel %vm446_vm1, %v24982_v0, %v184_v38  ;;  %941 = vmatmul.mubr.f32.gmra.mrb[24].mxu0 %v940_v43 }
 0x13d   :  { %24980 = vst [vmem:[#allocation101_spill] sm:$0xff] %v18153_v58  ;;  %v24172_v27 = vand.u32 4294901760, %v18153_v58  ;;  %v486_v23 = vsel %vm471_vm3, %v461_v3, %v257_v29 }
 0x13e   :  { %24981 = vst [vmem:[#allocation102_spill] sm:$0xff] %v18156_v2  ;;  %v24175_v36 = vand.u32 4294901760, %v18156_v2 }
 0x13f   :  { %v403_v12 = vpop.permute.xlu1 %402  ;;  %v330_v35 = vpop.permute.xlu0 %329  ;;  %v949_v22 = vsub.f32 %v18153_v58, %v24172_v27 }
 0x140   :  { %v611_v11 = vsel %vm582_vm2, %v403_v12, 0  ;;  %v511_v26 = vsel %vm496_vm4, %v486_v23, %v330_v35  ;;  %v955_v38 = vsub.f32 %v18156_v2, %v24175_v36  ;;  %v16825_v35 = vld [vmem:[%s23989_s0 + $0x78] sm:$0xff] }
 0x141   :  { %v18171_v43 = vand.u32 4294901760, %v611_v11  ;;  %v536_v0 = vsel %vm521_vm5, %v511_v26, %v403_v12  ;;  %v950_v13 = vand.u32 4294901760, %v949_v22 }
 0x142   :  { %v18174_v63 = vand.u32 4294901760, %v536_v0  ;;  %v956_v29 = vand.u32 4294901760, %v955_v38 }
 0x143   :  { %24983 = vst [vmem:[#allocation49_spill] sm:$0xff] %v18171_v43  ;;  %v18177_v3 = vsub.f32 %v611_v11, %v18171_v43  ;;  %v259_v27 = vpop.permute.xlu1 %258  ;;  %v186_v58 = vpop.permute.xlu0 %185  ;;  %951 = vmatprep.mubr.f32.mxu0 %v950_v13 }
 0x144   :  { %24984 = vst [vmem:[#allocation103_spill] sm:$0xff] %v18174_v63  ;;  %v18180_v23 = vsub.f32 %v536_v0, %v18174_v63  ;;  %v462_v36 = vsel %vm446_vm1, %v16825_v35, %v186_v58  ;;  %957 = vmatmul.mubr.f32.gmra.mrb[26].mxu0 %v956_v29 }
 0x145   :  { %24985 = vst [vmem:[#allocation104_spill] sm:$0xff] %v18177_v3  ;;  %v24182_v12 = vand.u32 4294901760, %v18177_v3  ;;  %v487_v11 = vsel %vm471_vm3, %v462_v36, %v259_v27 }
 0x146   :  { %24986 = vst [vmem:[#allocation105_spill] sm:$0xff] %v18180_v23  ;;  %v24185_v22 = vand.u32 4294901760, %v18180_v23 }
 0x147   :  { %v405_v26 = vpop.permute.xlu1 %404  ;;  %v332_v38 = vpop.permute.xlu0 %331  ;;  %v965_v13 = vsub.f32 %v18177_v3, %v24182_v12 }
 0x148   :  { %v613_v0 = vsel %vm582_vm2, %v405_v26, 0  ;;  %v512_v2 = vsel %vm496_vm4, %v487_v11, %v332_v38  ;;  %v971_v58 = vsub.f32 %v18180_v23, %v24185_v22  ;;  %v16826_v38 = vld [vmem:[%s23989_s0 + $0x80] sm:$0xff] }
 0x149   :  { %v18197_v29 = vand.u32 4294901760, %v613_v0  ;;  %v537_v35 = vsel %vm521_vm5, %v512_v2, %v405_v26  ;;  %v966_v63 = vand.u32 4294901760, %v965_v13 }
 0x14a   :  { %v18200_v43 = vand.u32 4294901760, %v537_v35  ;;  %v972_v27 = vand.u32 4294901760, %v971_v58 }
 0x14b   :  { %24987 = vst [vmem:[#allocation106_spill] sm:$0xff] %v18197_v29  ;;  %v18203_v36 = vsub.f32 %v613_v0, %v18197_v29  ;;  %v261_v12 = vpop.permute.xlu1 %260  ;;  %v188_v3 = vpop.permute.xlu0 %187  ;;  %967 = vmatprep.mubr.f32.mxu0 %v966_v63 }
 0x14c   :  { %24988 = vst [vmem:[#allocation107_spill] sm:$0xff] %v18200_v43  ;;  %v18206_v11 = vsub.f32 %v537_v35, %v18200_v43  ;;  %v463_v22 = vsel %vm446_vm1, %v16826_v38, %v188_v3  ;;  %973 = vmatmul.mubr.f32.gmra.mrb[28].mxu0 %v972_v27 }
 0x14d   :  { %24989 = vst [vmem:[#allocation108_spill] sm:$0xff] %v18203_v36  ;;  %v24192_v2 = vand.u32 4294901760, %v18203_v36  ;;  %v488_v0 = vsel %vm471_vm3, %v463_v22, %v261_v12 }
 0x14e   :  { %24990 = vst [vmem:[#allocation109_spill] sm:$0xff] %v18206_v11  ;;  %v24195_v26 = vand.u32 4294901760, %v18206_v11 }
 0x14f   :  { %v407_v13 = vpop.permute.xlu1 %406  ;;  %v334_v58 = vpop.permute.xlu0 %333  ;;  %v981_v63 = vsub.f32 %v18203_v36, %v24192_v2 }
 0x150   :  { %v615_v35 = vsel %vm582_vm2, %v407_v13, 0  ;;  %v513_v23 = vsel %vm496_vm4, %v488_v0, %v334_v58  ;;  %v987_v3 = vsub.f32 %v18206_v11, %v24195_v26  ;;  %v16827_v58 = vld [vmem:[%s23989_s0 + $0x88] sm:$0xff] }
 0x151   :  { %v18223_v27 = vand.u32 4294901760, %v615_v35  ;;  %v538_v38 = vsel %vm521_vm5, %v513_v23, %v407_v13  ;;  %v982_v43 = vand.u32 4294901760, %v981_v63 }
 0x152   :  { %v18226_v29 = vand.u32 4294901760, %v538_v38  ;;  %v988_v12 = vand.u32 4294901760, %v987_v3 }
 0x153   :  { %24991 = vst [vmem:[#allocation110_spill] sm:$0xff] %v18223_v27  ;;  %v18229_v22 = vsub.f32 %v615_v35, %v18223_v27  ;;  %v263_v2 = vpop.permute.xlu1 %262  ;;  %v190_v36 = vpop.permute.xlu0 %189  ;;  %983 = vmatprep.mubr.f32.mxu0 %v982_v43 }
 0x154   :  { %24992 = vst [vmem:[#allocation111_spill] sm:$0xff] %v18226_v29  ;;  %v18232_v0 = vsub.f32 %v538_v38, %v18226_v29  ;;  %v464_v26 = vsel %vm446_vm1, %v16827_v58, %v190_v36  ;;  %989 = vmatmul.mubr.f32.gmra.mrb[30].mxu0 %v988_v12 }
 0x155   :  { %24993 = vst [vmem:[#allocation112_spill] sm:$0xff] %v18229_v22  ;;  %v24202_v23 = vand.u32 4294901760, %v18229_v22  ;;  %v489_v35 = vsel %vm471_vm3, %v464_v26, %v263_v2 }
 0x156   :  { %24994 = vst [vmem:[#allocation113_spill] sm:$0xff] %v18232_v0  ;;  %v24205_v13 = vand.u32 4294901760, %v18232_v0 }
 0x157   :  { %v409_v63 = vpop.permute.xlu1 %408  ;;  %v336_v3 = vpop.permute.xlu0 %335  ;;  %v997_v43 = vsub.f32 %v18229_v22, %v24202_v23 }
 0x158   :  { %v617_v38 = vsel %vm582_vm2, %v409_v63, 0  ;;  %v514_v11 = vsel %vm496_vm4, %v489_v35, %v336_v3  ;;  %v1003_v36 = vsub.f32 %v18232_v0, %v24205_v13  ;;  %v16828_v3 = vld [vmem:[%s23989_s0 + $0x90] sm:$0xff] }
 0x159   :  { %v18249_v12 = vand.u32 4294901760, %v617_v38  ;;  %v539_v58 = vsel %vm521_vm5, %v514_v11, %v409_v63  ;;  %v998_v29 = vand.u32 4294901760, %v997_v43 }
 0x15a   :  { %v18252_v27 = vand.u32 4294901760, %v539_v58  ;;  %v1004_v2 = vand.u32 4294901760, %v1003_v36 }
 0x15b   :  { %24995 = vst [vmem:[#allocation114_spill] sm:$0xff] %v18249_v12  ;;  %v18255_v26 = vsub.f32 %v617_v38, %v18249_v12  ;;  %v265_v23 = vpop.permute.xlu1 %264  ;;  %v192_v22 = vpop.permute.xlu0 %191  ;;  %999 = vmatprep.mubr.f32.mxu0 %v998_v29 }
 0x15c   :  { %24996 = vst [vmem:[#allocation115_spill] sm:$0xff] %v18252_v27  ;;  %v18258_v35 = vsub.f32 %v539_v58, %v18252_v27  ;;  %v465_v13 = vsel %vm446_vm1, %v16828_v3, %v192_v22  ;;  %1005 = vmatmul.mubr.f32.gmra.mrb[32].mxu0 %v1004_v2 }
 0x15d   :  { %24997 = vst [vmem:[#allocation116_spill] sm:$0xff] %v18255_v26  ;;  %v24212_v11 = vand.u32 4294901760, %v18255_v26  ;;  %v490_v38 = vsel %vm471_vm3, %v465_v13, %v265_v23 }
 0x15e   :  { %24998 = vst [vmem:[#allocation117_spill] sm:$0xff] %v18258_v35  ;;  %v24215_v63 = vand.u32 4294901760, %v18258_v35 }
 0x15f   :  { %v411_v43 = vpop.permute.xlu1 %410  ;;  %v338_v36 = vpop.permute.xlu0 %337  ;;  %v1013_v29 = vsub.f32 %v18255_v26, %v24212_v11 }
 0x160   :  { %v619_v58 = vsel %vm582_vm2, %v411_v43, 0  ;;  %v515_v0 = vsel %vm496_vm4, %v490_v38, %v338_v36  ;;  %v1019_v22 = vsub.f32 %v18258_v35, %v24215_v63  ;;  %v16829_v36 = vld [vmem:[%s23989_s0 + $0x98] sm:$0xff] }
 0x161   :  { %v18275_v2 = vand.u32 4294901760, %v619_v58  ;;  %v540_v3 = vsel %vm521_vm5, %v515_v0, %v411_v43  ;;  %v1014_v27 = vand.u32 4294901760, %v1013_v29 }
 0x162   :  { %v18278_v12 = vand.u32 4294901760, %v540_v3  ;;  %v1020_v23 = vand.u32 4294901760, %v1019_v22 }
 0x163   :  { %24999 = vst [vmem:[#allocation118_spill] sm:$0xff] %v18275_v2  ;;  %v18281_v13 = vsub.f32 %v619_v58, %v18275_v2  ;;  %v267_v11 = vpop.permute.xlu1 %266  ;;  %v194_v26 = vpop.permute.xlu0 %193  ;;  %1015 = vmatprep.mubr.f32.mxu0 %v1014_v27 }
 0x164   :  { %25000 = vst [vmem:[#allocation119_spill] sm:$0xff] %v18278_v12  ;;  %v18284_v38 = vsub.f32 %v540_v3, %v18278_v12  ;;  %v466_v63 = vsel %vm446_vm1, %v16829_v36, %v194_v26  ;;  %1021 = vmatmul.mubr.f32.gmra.mrb[34].mxu0 %v1020_v23 }
 0x165   :  { %25001 = vst [vmem:[#allocation120_spill] sm:$0xff] %v18281_v13  ;;  %v24222_v0 = vand.u32 4294901760, %v18281_v13  ;;  %v491_v58 = vsel %vm471_vm3, %v466_v63, %v267_v11 }
 0x166   :  { %25002 = vst [vmem:[#allocation121_spill] sm:$0xff] %v18284_v38  ;;  %v24225_v43 = vand.u32 4294901760, %v18284_v38 }
 0x167   :  { %v413_v29 = vpop.permute.xlu1 %412  ;;  %v340_v22 = vpop.permute.xlu0 %339  ;;  %v1029_v27 = vsub.f32 %v18281_v13, %v24222_v0 }
 0x168   :  { %v621_v3 = vsel %vm582_vm2, %v413_v29, 0  ;;  %v516_v35 = vsel %vm496_vm4, %v491_v58, %v340_v22  ;;  %v1035_v26 = vsub.f32 %v18284_v38, %v24225_v43  ;;  %v16830_v22 = vld [vmem:[%s23989_s0 + $0xa0] sm:$0xff] }
 0x169   :  { %v18301_v23 = vand.u32 4294901760, %v621_v3  ;;  %v541_v36 = vsel %vm521_vm5, %v516_v35, %v413_v29  ;;  %v1030_v12 = vand.u32 4294901760, %v1029_v27 }
 0x16a   :  { %v18304_v2 = vand.u32 4294901760, %v541_v36  ;;  %v1036_v11 = vand.u32 4294901760, %v1035_v26 }
 0x16b   :  { %25003 = vst [vmem:[#allocation122_spill] sm:$0xff] %v18301_v23  ;;  %v18307_v63 = vsub.f32 %v621_v3, %v18301_v23  ;;  %v269_v0 = vpop.permute.xlu1 %268  ;;  %v196_v13 = vpop.permute.xlu0 %195  ;;  %1031 = vmatprep.mubr.f32.mxu0 %v1030_v12 }
 0x16c   :  { %25004 = vst [vmem:[#allocation123_spill] sm:$0xff] %v18304_v2  ;;  %v18310_v58 = vsub.f32 %v541_v36, %v18304_v2  ;;  %v467_v43 = vsel %vm446_vm1, %v16830_v22, %v196_v13  ;;  %1037 = vmatmul.mubr.f32.gmra.mrb[36].mxu0 %v1036_v11 }
 0x16d   :  { %25005 = vst [vmem:[#allocation124_spill] sm:$0xff] %v18307_v63  ;;  %v24232_v35 = vand.u32 4294901760, %v18307_v63  ;;  %v492_v3 = vsel %vm471_vm3, %v467_v43, %v269_v0 }
 0x16e   :  { %25006 = vst [vmem:[#allocation125_spill] sm:$0xff] %v18310_v58  ;;  %v24235_v29 = vand.u32 4294901760, %v18310_v58 }
 0x16f   :  { %v415_v27 = vpop.permute.xlu1 %414  ;;  %v342_v26 = vpop.permute.xlu0 %341  ;;  %v1045_v12 = vsub.f32 %v18307_v63, %v24232_v35 }
 0x170   :  { %v623_v36 = vsel %vm582_vm2, %v415_v27, 0  ;;  %v517_v38 = vsel %vm496_vm4, %v492_v3, %v342_v26  ;;  %v1051_v13 = vsub.f32 %v18310_v58, %v24235_v29 }
 0x171   :  { %v18327_v11 = vand.u32 4294901760, %v623_v36  ;;  %v542_v22 = vsel %vm521_vm5, %v517_v38, %v415_v27  ;;  %v1046_v2 = vand.u32 4294901760, %v1045_v12 }
 0x172   :  { %v18330_v23 = vand.u32 4294901760, %v542_v22  ;;  %v1052_v0 = vand.u32 4294901760, %v1051_v13 }
 0x173   :  { %25007 = vst [vmem:[#allocation126_spill] sm:$0xff] %v18327_v11  ;;  %v18333_v43 = vsub.f32 %v623_v36, %v18327_v11  ;;  %v271_v35 = vpop.permute.xlu1 %270  ;;  %v198_v63 = vpop.permute.xlu0 %197  ;;  %1047 = vmatprep.mubr.f32.mxu0 %v1046_v2 }
 0x174   :  { %25008 = vst [vmem:[#allocation127_spill] sm:$0xff] %v18330_v23  ;;  %v18336_v3 = vsub.f32 %v542_v22, %v18330_v23  ;;  %v468_v26 = vsel %vm446_vm1, %v17729_v62, %v198_v63  ;;  %1053 = vmatmul.mubr.f32.gmra.mrb[38].mxu0 %v1052_v0 }
 0x175   :  { %25009 = vst [vmem:[#allocation128_spill] sm:$0xff] %v18333_v43  ;;  %v24240_v29 = vand.u32 4294901760, %v18333_v43  ;;  %v493_v12 = vsel %vm471_vm3, %v468_v26, %v271_v35 }
 0x176   :  { %25010 = vst [vmem:[#allocation129_spill] sm:$0xff] %v18336_v3  ;;  %v24243_v38 = vand.u32 4294901760, %v18336_v3 }
 0x177   :  { %v417_v27 = vpop.permute.xlu1 %416  ;;  %v344_v13 = vpop.permute.xlu0 %343  ;;  %v1061_v36 = vsub.f32 %v18333_v43, %v24240_v29 }
 0x178   :  { %v625_v2 = vsel %vm582_vm2, %v417_v27, 0  ;;  %v518_v22 = vsel %vm496_vm4, %v493_v12, %v344_v13  ;;  %v1067_v62 = vsub.f32 %v18336_v3, %v24243_v38 }
 0x179   :  { %v18351_v63 = vand.u32 4294901760, %v625_v2  ;;  %v543_v0 = vsel %vm521_vm5, %v518_v22, %v417_v27  ;;  %v1062_v58 = vand.u32 4294901760, %v1061_v36 }
 0x17a   :  { %v18354_v23 = vand.u32 4294901760, %v543_v0  ;;  %v1068_v35 = vand.u32 4294901760, %v1067_v62 }
 0x17b   :  { %25011 = vst [vmem:[#allocation130_spill] sm:$0xff] %v18351_v63  ;;  %v18357_v26 = vsub.f32 %v625_v2, %v18351_v63  ;;  %v273_v29 = vpop.permute.xlu1 %272  ;;  %v200_v43 = vpop.permute.xlu0 %199  ;;  %1063 = vmatprep.mubr.f32.mxu0 %v1062_v58 }
 0x17c   :  { %25012 = vst [vmem:[#allocation131_spill] sm:$0xff] %v18354_v23  ;;  %v18360_v12 = vsub.f32 %v543_v0, %v18354_v23  ;;  %v469_v13 = vsel %vm446_vm1, %v17779_v51, %v200_v43  ;;  %1069 = vmatmul.mubr.f32.gmra.mrb[40].mxu0 %v1068_v35 }
 0x17d   :  { %25013 = vst [vmem:[#allocation132_spill] sm:$0xff] %v18357_v26  ;;  %v24248_v38 = vand.u32 4294901760, %v18357_v26  ;;  %v494_v22 = vsel %vm471_vm3, %v469_v13, %v273_v29 }
 0x17e   :  { %25014 = vst [vmem:[#allocation133_spill] sm:$0xff] %v18360_v12  ;;  %v24251_v27 = vand.u32 4294901760, %v18360_v12 }
 0x17f   :  { %v419_v36 = vpop.permute.xlu1 %418  ;;  %v346_v62 = vpop.permute.xlu0 %345  ;;  %v1077_v2 = vsub.f32 %v18357_v26, %v24248_v38 }
 0x180   :  { %v627_v58 = vsel %vm582_vm2, %v419_v36, 0  ;;  %v519_v0 = vsel %vm496_vm4, %v494_v22, %v346_v62  ;;  %v1083_v51 = vsub.f32 %v18360_v12, %v24251_v27 }
 0x181   :  { %v18375_v43 = vand.u32 4294901760, %v627_v58  ;;  %v544_v35 = vsel %vm521_vm5, %v519_v0, %v419_v36  ;;  %v1078_v3 = vand.u32 4294901760, %v1077_v2 }
 0x182   :  { %v18378_v23 = vand.u32 4294901760, %v544_v35  ;;  %v1084_v29 = vand.u32 4294901760, %v1083_v51 }
 0x183   :  { %25015 = vst [vmem:[#allocation134_spill] sm:$0xff] %v18375_v43  ;;  %v18381_v13 = vsub.f32 %v627_v58, %v18375_v43  ;;  %v275_v38 = vpop.permute.xlu1 %274  ;;  %v202_v26 = vpop.permute.xlu0 %201  ;;  %1079 = vmatprep.mubr.f32.mxu0 %v1078_v3 }
 0x184   :  { %25016 = vst [vmem:[#allocation135_spill] sm:$0xff] %v18378_v23  ;;  %v18384_v22 = vsub.f32 %v544_v35, %v18378_v23  ;;  %v470_v62 = vsel %vm446_vm1, %v17832_v20, %v202_v26  ;;  %1085 = vmatmul.mubr.f32.gmra.mrb[42].mxu0 %v1084_v29 }
 0x185   :  { %25017 = vst [vmem:[#allocation136_spill] sm:$0xff] %v18381_v13  ;;  %v24256_v27 = vand.u32 4294901760, %v18381_v13  ;;  %v495_v0 = vsel %vm471_vm3, %v470_v62, %v275_v38 }
 0x186   :  { %25018 = vst [vmem:[#allocation137_spill] sm:$0xff] %v18384_v22  ;;  %v24257_v36 = vand.u32 4294901760, %v18384_v22 }
 0x187   :  { %v421_v2 = vpop.permute.xlu1 %420  ;;  %v1093_v58 = vsub.f32 %v18381_v13, %v24256_v27 }
 0x188   :  { %v348_v51 = vpop.permute.xlu0 %347  ;;  %v629_v3 = vsel %vm582_vm2, %v421_v2, 0  ;;  %v1099_v20 = vsub.f32 %v18384_v22, %v24257_v36  ;;  %v25025_v36 = vld [vmem:[#allocation20_spill] sm:$0xff]  ;;  %v25026_v22 = vld [vmem:[#allocation21_spill] sm:$0xff] }
 0x189   :  { %v520_v35 = vsel %vm496_vm4, %v495_v0, %v348_v51  ;;  %v18399_v26 = vand.u32 4294901760, %v629_v3  ;;  %v1094_v12 = vand.u32 4294901760, %v1093_v58  ;;  %v14300_v13 = vpack.c.bf16 %v25026_v22, %v25025_v36 }
 0x18a   :  { %v545_v29 = vsel %vm521_vm5, %v520_v35, %v421_v2  ;;  %v1100_v38 = vand.u32 4294901760, %v1099_v20  ;;  %v25023_v20 = vld [vmem:[#allocation17_spill] sm:$0xff] }
 0x18b   :  { %25019 = vst [vmem:[#allocation138_spill] sm:$0xff] %v18399_v26  ;;  %v18402_v23 = vand.u32 4294901760, %v545_v29  ;;  %v18405_v62 = vsub.f32 %v629_v3, %v18399_v26  ;;  %1095 = vmatprep.mubr.f32.mxu0 %v1094_v12  ;;  %v25022_v12 = vld [vmem:[#allocation50_spill] sm:$0xff] }
 0x18c   :  { %1101 = vmatmul.mubr.f32.gmra.mrb[44].mxu0 %v1100_v38 }
 0x18d   :  { %25020 = vst [vmem:[#allocation139_spill] sm:$0xff] %v18402_v23  ;;  %25021 = vst [vmem:[#allocation140_spill] sm:$0xff] %v18405_v62  ;;  %v18408_v27 = vsub.f32 %v545_v29, %v18402_v23  ;;  %v24264_v0 = vand.u32 4294901760, %v18405_v62  ;;  %v25024_v29 = vld [vmem:[#allocation18_spill] sm:$0xff]  ;;  %v25027_v23 = vld [vmem:[#allocation52_spill] sm:$0xff] }
 0x18e   :  { %v14298_v38 = vpack.c.bf16 %v25024_v29, %v25023_v20 }
 0x18f   :  { %v24267_v51 = vand.u32 4294901760, %v18408_v27  ;;  %v1109_v2 = vsub.f32 %v18405_v62, %v24264_v0  ;;  %v25028_v0 = vld [vmem:[#allocation22_spill] sm:$0xff]  ;;  %v25029_v62 = vld [vmem:[#allocation24_spill] sm:$0xff] }
 0x191   :  { %v1115_v58 = vsub.f32 %v18408_v27, %v24267_v51  ;;  %v1110_v35 = vand.u32 4294901760, %v1109_v2  ;;  %v14302_v51 = vpack.c.bf16 %v25029_v62, %v25028_v0  ;;  %v25030_v2 = vld [vmem:[#allocation26_spill] sm:$0xff] }
 0x193   :  { %v1116_v3 = vand.u32 4294901760, %v1115_v58  ;;  %1111 = vmatprep.mubr.f32.mxu0 %v1110_v35  ;;  %v14304_v58 = vpack.c.bf16 %v25030_v2, %v17220_v45  ;;  %v25031_v35 = vld [vmem:[#allocation27_spill] sm:$0xff] }
 0x195   :  { %1117 = vmatmul.mubr.f32.gmra.mrb[46].mxu0 %v1116_v3  ;;  %v25032_v3 = vld [vmem:[#allocation28_spill] sm:$0xff] }
 0x196   :  { %1368 = vmatprep.mubr.f32.mxu0 %v25022_v12  ;;  %v14306_v12 = vpack.c.bf16 %v25032_v3, %v25031_v35 }
 0x199   :  { %1370 = vmatmul.mubr.f32.vlgmr.msra.gmra.mrb[0].mxu0 %v25027_v23  ;;  %v25095_v23 = vld [vmem:[#allocation87_spill] sm:$0xff] }
 0x19a   :  { %14299 = vmatpush1.bf16.msra.mxu0 %v14298_v38  ;;  %1376 = vmatprep.mubr.f32.mxu0 %v17659_v46  ;;  %v14308_v38 = vpack.c.bf16 %v17248_v57, %v17246_v56 }
 0x19b   :  { %14301 = vmatprep.subr.bf16.mxu0 %v14300_v13  ;;  %v14310_v13 = vpack.c.bf16 %v17277_v10, %v17275_v9 }
 0x19d   :  { %1378 = vmatmul.mubr.f32.gmra.mrb[2].mxu0 %v17669_v34  ;;  %v25090_v34 = vld [vmem:[#allocation13_spill] sm:$0xff] }
 0x19e   :  { %1384 = vmatprep.mubr.f32.mxu0 %v17717_v30  ;;  %14303 = vmatpush1.bf16.msra.mxu0 %v14302_v51  ;;  %v14312_v30 = vpack.c.bf16 %v17289_v18, %v17287_v17  ;;  %v14314_v51 = vpack.c.bf16 %v17311_v31, %v17291_v19 }
 0x19f   :  { %14305 = vmatprep.subr.bf16.mxu0 %v14304_v58  ;;  %v14316_v58 = vpack.c.bf16 %v17317_v33, %v17314_v32 }
 0x1a1   :  { %1386 = vmatmul.mubr.f32.gmra.mrb[4].mxu0 %v17724_v44  ;;  %v25085_v44 = vld [vmem:[#allocation43_spill] sm:$0xff] }
 0x1a2   :  { %1392 = vmatprep.mubr.f32.mxu0 %v17767_v21  ;;  %14307 = vmatpush1.bf16.msra.mxu0 %v14306_v12  ;;  %v14318_v12 = vpack.c.bf16 %v17347_v54, %v17345_v53  ;;  %v25082_v21 = vld [vmem:[#allocation77_spill] sm:$0xff] }
 0x1a3   :  { %14309 = vmatprep.subr.bf16.mxu0 %v14308_v38  ;;  %v14320_v38 = vpack.c.bf16 %v17364_v6, %v17361_v5 }
 0x1a5   :  { %1394 = vmatmul.mubr.f32.gmra.mrb[6].mxu0 %v17774_v55 }
 0x1a6   :  { %1400 = vmatprep.mubr.f32.mxu0 %v17820_v47  ;;  %14311 = vmatpush1.bf16.msra.mxu0 %v14310_v13  ;;  %v25033_v13 = vld [vmem:[#allocation71_spill] sm:$0xff]  ;;  %v25035_v47 = vld [vmem:[#allocation36_spill] sm:$0xff] }
 0x1a7   :  { %14313 = vmatprep.subr.bf16.mxu0 %v14312_v30  ;;  %v25034_v30 = vld [vmem:[#allocation34_spill] sm:$0xff] }
 0x1a8   :  { %v14322_v55 = vpack.c.bf16 %v25035_v47, %v25034_v30 }
 0x1a9   :  { %1402 = vmatmul.mubr.f32.gmra.mrb[8].mxu0 %v17827_v16  ;;  %v25079_v16 = vld [vmem:[#allocation76_spill] sm:$0xff] }
 0x1aa   :  { %1408 = vmatprep.mubr.f32.mxu0 %v17860_v50  ;;  %14315 = vmatpush1.bf16.msra.mxu0 %v14314_v51  ;;  %v14324_v50 = vpack.c.bf16 %v17392_v49, %v24946_v7  ;;  %v25036_v51 = vld [vmem:[#allocation38_spill] sm:$0xff] }
 0x1ab   :  { %14317 = vmatprep.subr.bf16.mxu0 %v14316_v58  ;;  %v14326_v58 = vpack.c.bf16 %v17401_v25, %v25036_v51 }
 0x1ad   :  { %1410 = vmatmul.mubr.f32.gmra.mrb[10].mxu0 %v25033_v13  ;;  %v25078_v13 = vld [vmem:[#allocation73_spill] sm:$0xff] }
 0x1ae   :  { %1416 = vmatprep.mubr.f32.mxu0 %v17913_v1  ;;  %14319 = vmatpush1.bf16.msra.mxu0 %v14318_v12  ;;  %v14328_v1 = vpack.c.bf16 %v17409_v52, %v17403_v24  ;;  %v25037_v12 = vld [vmem:[#allocation78_spill] sm:$0xff] }
 0x1af   :  { %14321 = vmatprep.subr.bf16.mxu0 %v14320_v38  ;;  %v14330_v38 = vpack.c.bf16 %v17416_v39, %v17411_v4  ;;  %v25099_v39 = vld [vmem:[#allocation92_spill] sm:$0xff] }
 0x1b1   :  { %1418 = vmatmul.mubr.f32.gmra.mrb[12].mxu0 %v17920_v40  ;;  %v25077_v40 = vld [vmem:[#allocation35_spill] sm:$0xff] }
 0x1b2   :  { %1424 = vmatprep.mubr.f32.mxu0 %v17963_v61  ;;  %14323 = vmatpush1.bf16.msra.mxu0 %v14322_v55  ;;  %v25038_v55 = vld [vmem:[#allocation14_spill] sm:$0xff]  ;;  %v25076_v61 = vld [vmem:[#allocation33_spill] sm:$0xff] }
 0x1b3   :  { %14325 = vmatprep.subr.bf16.mxu0 %v14324_v50  ;;  %v25040_v50 = vld [vmem:[#allocation100_spill] sm:$0xff] }
 0x1b5   :  { %1426 = vmatmul.mubr.f32.gmra.mrb[14].mxu0 %v25037_v12  ;;  %v25075_v12 = vld [vmem:[#allocation72_spill] sm:$0xff] }
 0x1b6   :  { %1432 = vmatprep.mubr.f32.mxu0 %v18013_v37  ;;  %14327 = vmatpush1.bf16.msra.mxu0 %v14326_v58  ;;  %v25041_v58 = vld [vmem:[#allocation49_spill] sm:$0xff] }
 0x1b7   :  { %14329 = vmatprep.subr.bf16.mxu0 %v14328_v1  ;;  %v25039_v1 = vld [vmem:[#allocation48_spill] sm:$0xff]  ;;  %v25074_v37 = vld [vmem:[#allocation69_spill] sm:$0xff] }
 0x1b9   :  { %1434 = vmatmul.mubr.f32.gmra.mrb[16].mxu0 %v18020_v14  ;;  %v25073_v14 = vld [vmem:[#allocation32_spill] sm:$0xff] }
 0x1ba   :  { %1440 = vmatprep.mubr.f32.mxu0 %v18051_v41  ;;  %14331 = vmatpush1.bf16.msra.mxu0 %v14330_v38  ;;  %v25042_v38 = vld [vmem:[#allocation103_spill] sm:$0xff] }
 0x1bb   :  { %14333 = vmatprep.subr.bf16.mxu0 %v25038_v55  ;;  %v25072_v41 = vld [vmem:[#allocation31_spill] sm:$0xff] }
 0x1bc   :  { %v25098_v55 = vld [vmem:[#allocation91_spill] sm:$0xff] }
 0x1bd   :  { %1442 = vmatmul.mubr.f32.gmra.mrb[18].mxu0 %v18054_v48  ;;  %v25043_v48 = vld [vmem:[#allocation106_spill] sm:$0xff] }
 0x1be   :  { %1448 = vmatprep.mubr.f32.mxu0 %v18075_v60  ;;  %v25044_v60 = vld [vmem:[#allocation107_spill] sm:$0xff] }
 0x1c1   :  { %1450 = vmatmul.mubr.f32.gmra.mrb[20].mxu0 %v18078_v42  ;;  %v25045_v42 = vld [vmem:[#allocation110_spill] sm:$0xff] }
 0x1c2   :  { %1456 = vmatprep.mubr.f32.mxu0 %v18099_v8  ;;  %v25046_v8 = vld [vmem:[#allocation111_spill] sm:$0xff] }
 0x1c5   :  { %1458 = vmatmul.mubr.f32.gmra.mrb[22].mxu0 %v18102_v59  ;;  %v25047_v59 = vld [vmem:[#allocation114_spill] sm:$0xff] }
 0x1c6   :  { %1464 = vmatprep.mubr.f32.mxu0 %v18123_v28  ;;  %v25048_v28 = vld [vmem:[#allocation115_spill] sm:$0xff] }
 0x1c9   :  { %1466 = vmatmul.mubr.f32.gmra.mrb[24].mxu0 %v18126_v15  ;;  %v25049_v15 = vld [vmem:[#allocation118_spill] sm:$0xff] }
 0x1ca   :  { %1472 = vmatprep.mubr.f32.mxu0 %v25039_v1  ;;  %v25050_v1 = vld [vmem:[#allocation119_spill] sm:$0xff] }
 0x1cd   :  { %1474 = vmatmul.mubr.f32.gmra.mrb[26].mxu0 %v25040_v50  ;;  %v25051_v50 = vld [vmem:[#allocation122_spill] sm:$0xff] }
 0x1ce   :  { %1480 = vmatprep.mubr.f32.mxu0 %v25041_v58  ;;  %v25052_v58 = vld [vmem:[#allocation123_spill] sm:$0xff] }
 0x1d1   :  { %1482 = vmatmul.mubr.f32.gmra.mrb[28].mxu0 %v25042_v38  ;;  %v25071_v38 = vld [vmem:[#allocation68_spill] sm:$0xff] }
 0x1d2   :  { %1488 = vmatprep.mubr.f32.mxu0 %v25043_v48  ;;  %v25053_v48 = vld [vmem:[#allocation127_spill] sm:$0xff] }
 0x1d5   :  { %1490 = vmatmul.mubr.f32.gmra.mrb[30].mxu0 %v25044_v60  ;;  %v25070_v60 = vld [vmem:[#allocation65_spill] sm:$0xff] }
 0x1d6   :  { %1496 = vmatprep.mubr.f32.mxu0 %v25045_v42  ;;  %v25054_v42 = vld [vmem:[#allocation131_spill] sm:$0xff] }
 0x1d9   :  { %1498 = vmatmul.mubr.f32.gmra.mrb[32].mxu0 %v25046_v8  ;;  %v25069_v8 = vld [vmem:[#allocation30_spill] sm:$0xff] }
 0x1da   :  { %1504 = vmatprep.mubr.f32.mxu0 %v25047_v59  ;;  %v25055_v59 = vld [vmem:[#allocation135_spill] sm:$0xff] }
 0x1dd   :  { %1506 = vmatmul.mubr.f32.gmra.mrb[34].mxu0 %v25048_v28  ;;  %v25068_v28 = vld [vmem:[#allocation29_spill] sm:$0xff] }
 0x1de   :  { %1512 = vmatprep.mubr.f32.mxu0 %v25049_v15  ;;  %v25056_v15 = vld [vmem:[#allocation139_spill] sm:$0xff] }
 0x1e1   :  { %1514 = vmatmul.mubr.f32.gmra.mrb[36].mxu0 %v25050_v1  ;;  %v25057_v1 = vld [vmem:[#allocation51_spill] sm:$0xff] }
 0x1e2   :  { %1520 = vmatprep.mubr.f32.mxu0 %v25051_v50  ;;  %v25058_v50 = vld [vmem:[#allocation53_spill] sm:$0xff] }
 0x1e5   :  { %1522 = vmatmul.mubr.f32.gmra.mrb[38].mxu0 %v25052_v58  ;;  %v25059_v58 = vld [vmem:[#allocation16_spill] sm:$0xff] }
 0x1e6   :  { %1528 = vmatprep.mubr.f32.mxu0 %v18327_v11  ;;  %v25060_v11 = vld [vmem:[#allocation56_spill] sm:$0xff] }
 0x1e9   :  { %1530 = vmatmul.mubr.f32.gmra.mrb[40].mxu0 %v25053_v48  ;;  %v25061_v48 = vld [vmem:[#allocation19_spill] sm:$0xff] }
 0x1ea   :  { %1536 = vmatprep.mubr.f32.mxu0 %v18351_v63  ;;  %v25062_v63 = vld [vmem:[#allocation57_spill] sm:$0xff] }
 0x1ed   :  { %1538 = vmatmul.mubr.f32.gmra.mrb[42].mxu0 %v25054_v42  ;;  %v25063_v42 = vld [vmem:[#allocation60_spill] sm:$0xff] }
 0x1ee   :  { %1544 = vmatprep.mubr.f32.mxu0 %v18375_v43  ;;  %v25064_v43 = vld [vmem:[#allocation23_spill] sm:$0xff] }
 0x1f1   :  { %1546 = vmatmul.mubr.f32.gmra.mrb[44].mxu0 %v25055_v59  ;;  %v25065_v59 = vld [vmem:[#allocation25_spill] sm:$0xff] }
 0x1f2   :  { %1552 = vmatprep.mubr.f32.mxu0 %v18399_v26  ;;  %v25066_v26 = vld [vmem:[#allocation61_spill] sm:$0xff] }
 0x1f5   :  { %1554 = vmatmul.mubr.f32.gmra.mrb[46].mxu0 %v25056_v15  ;;  %v25067_v15 = vld [vmem:[#allocation64_spill] sm:$0xff] }
 0x1f6   :  { %1698 = vmatprep.mubr.f32.mxu0 %v25057_v1 }
 0x1f9   :  { %1701 = vmatmul.mubr.f32.vlgmr.msra.gmra.mrb[0].mxu0 %v25058_v50 }
 0x1fa   :  { %14335 = vmatpush1.bf16.msra.mxu0 %v25059_v58  ;;  %1708 = vmatprep.mubr.f32.mxu0 %v25060_v11  ;;  %v25094_v58 = vld [vmem:[#allocation84_spill] sm:$0xff] }
 0x1fb   :  { %14337 = vmatprep.subr.bf16.mxu0 %v25061_v48  ;;  %v25092_v48 = vld [vmem:[#allocation15_spill] sm:$0xff] }
 0x1fd   :  { %1711 = vmatmul.mubr.f32.gmra.mrb[2].mxu0 %v25062_v63 }
 0x1fe   :  { %1718 = vmatprep.mubr.f32.mxu0 %v25063_v42  ;;  %14339 = vmatpush1.bf16.msra.mxu0 %v25064_v43  ;;  %v25089_v43 = vld [vmem:[#allocation45_spill] sm:$0xff] }
 0x1ff   :  { %14341 = vmatprep.subr.bf16.mxu0 %v25065_v59  ;;  %v25086_v59 = vld [vmem:[#allocation80_spill] sm:$0xff] }
 0x201   :  { %1721 = vmatmul.mubr.f32.gmra.mrb[4].mxu0 %v25066_v26 }
 0x202   :  { %1728 = vmatprep.mubr.f32.mxu0 %v25067_v15  ;;  %14343 = vmatpush1.bf16.msra.mxu0 %v25068_v28  ;;  %v25081_v28 = vld [vmem:[#allocation40_spill] sm:$0xff] }
 0x203   :  { %14345 = vmatprep.subr.bf16.mxu0 %v25069_v8  ;;  %v25080_v8 = vld [vmem:[#allocation39_spill] sm:$0xff] }
 0x205   :  { %1731 = vmatmul.mubr.f32.gmra.mrb[6].mxu0 %v25070_v60 }
 0x206   :  { %1738 = vmatprep.mubr.f32.mxu0 %v25071_v38  ;;  %14347 = vmatpush1.bf16.msra.mxu0 %v25072_v41  ;;  %v25083_v41 = vld [vmem:[#allocation79_spill] sm:$0xff] }
 0x207   :  { %14349 = vmatprep.subr.bf16.mxu0 %v25073_v14  ;;  %v25084_v14 = vld [vmem:[#allocation42_spill] sm:$0xff] }
 0x209   :  { %1741 = vmatmul.mubr.f32.gmra.mrb[8].mxu0 %v25074_v37 }
 0x20a   :  { %1748 = vmatprep.mubr.f32.mxu0 %v25075_v12  ;;  %14351 = vmatpush1.bf16.msra.mxu0 %v25076_v61  ;;  %v25087_v61 = vld [vmem:[#allocation83_spill] sm:$0xff] }
 0x20b   :  { %14353 = vmatprep.subr.bf16.mxu0 %v25077_v40  ;;  %v25088_v40 = vld [vmem:[#allocation44_spill] sm:$0xff] }
 0x20d   :  { %1751 = vmatmul.mubr.f32.gmra.mrb[10].mxu0 %v25078_v13 }
 0x20e   :  { %1758 = vmatprep.mubr.f32.mxu0 %v25079_v16  ;;  %14355 = vmatpush1.bf16.msra.mxu0 %v25080_v8  ;;  %v25091_v8 = vand.u32 4294901760, %v25090_v34  ;;  %v25102_v34 = vld [vmem:[#allocation98_spill] sm:$0xff] }
 0x20f   :  { %14357 = vmatprep.subr.bf16.mxu0 %v25081_v28  ;;  %v25093_v28 = vand.u32 4294901760, %v25092_v48  ;;  %v25103_v48 = vld [vmem:[#allocation99_spill] sm:$0xff] }
 0x211   :  { %1761 = vmatmul.mubr.f32.gmra.mrb[12].mxu0 %v25082_v21  ;;  %v14368_v46 = vpack.c.bf16 %v25093_v28, %v25091_v8  ;;  %v25104_v8 = vld [vmem:[#allocation101_spill] sm:$0xff]  ;;  %v25105_v28 = vld [vmem:[#allocation102_spill] sm:$0xff] }
 0x212   :  { %1768 = vmatprep.mubr.f32.mxu0 %v25083_v41  ;;  %14359 = vmatpush1.bf16.msra.mxu0 %v25084_v14  ;;  %v25096_v14 = vld [vmem:[#allocation46_spill] sm:$0xff] }
 0x213   :  { %14361 = vmatprep.subr.bf16.mxu0 %v25085_v44  ;;  %v25097_v44 = vld [vmem:[#allocation88_spill] sm:$0xff] }
 0x215   :  { %1771 = vmatmul.mubr.f32.gmra.mrb[14].mxu0 %v25086_v59 }
 0x216   :  { %1778 = vmatprep.mubr.f32.mxu0 %v25087_v61  ;;  %14363 = vmatpush1.bf16.msra.mxu0 %v25088_v40  ;;  %v25100_v40 = vld [vmem:[#allocation95_spill] sm:$0xff] }
 0x217   :  { %14365 = vmatprep.subr.bf16.mxu0 %v25089_v43  ;;  %v25101_v43 = vld [vmem:[#allocation96_spill] sm:$0xff] }
 0x219   :  { %1781 = vmatmul.mubr.f32.gmra.mrb[16].mxu0 %v25094_v58 }
 0x21a   :  { %1788 = vmatprep.mubr.f32.mxu0 %v25095_v23  ;;  %14367 = vmatpush1.bf16.msra.mxu0 %v25096_v14  ;;  %v25106_v14 = vld [vmem:[#allocation104_spill] sm:$0xff] }
 0x21b   :  { %14369 = vmatprep.subr.bf16.mxu0 %v14368_v46  ;;  %v25107_v46 = vld [vmem:[#allocation105_spill] sm:$0xff] }
 0x21d   :  { %1791 = vmatmul.mubr.f32.gmra.mrb[18].mxu0 %v25097_v44  ;;  %v25108_v44 = vld [vmem:[#allocation108_spill] sm:$0xff] }
 0x21e   :  { %1798 = vmatprep.mubr.f32.mxu0 %v25098_v55  ;;  %v25109_v55 = vld [vmem:[#allocation109_spill] sm:$0xff] }
 0x221   :  { %1801 = vmatmul.mubr.f32.gmra.mrb[20].mxu0 %v25099_v39  ;;  %v25110_v39 = vld [vmem:[#allocation112_spill] sm:$0xff] }
 0x222   :  { %1808 = vmatprep.mubr.f32.mxu0 %v25100_v40  ;;  %v25111_v40 = vld [vmem:[#allocation113_spill] sm:$0xff] }
 0x225   :  { %1811 = vmatmul.mubr.f32.gmra.mrb[22].mxu0 %v25101_v43  ;;  %v25112_v43 = vld [vmem:[#allocation116_spill] sm:$0xff] }
 0x226   :  { %1818 = vmatprep.mubr.f32.mxu0 %v25102_v34  ;;  %v25113_v34 = vld [vmem:[#allocation117_spill] sm:$0xff] }
 0x229   :  { %1821 = vmatmul.mubr.f32.gmra.mrb[24].mxu0 %v25103_v48  ;;  %v25114_v48 = vld [vmem:[#allocation120_spill] sm:$0xff] }
 0x22a   :  { %1828 = vmatprep.mubr.f32.mxu0 %v25104_v8  ;;  %v25115_v8 = vld [vmem:[#allocation121_spill] sm:$0xff] }
 0x22d   :  { %1831 = vmatmul.mubr.f32.gmra.mrb[26].mxu0 %v25105_v28  ;;  %v25116_v28 = vld [vmem:[#allocation124_spill] sm:$0xff] }
 0x22e   :  { %1838 = vmatprep.mubr.f32.mxu0 %v25106_v14  ;;  %v25117_v14 = vld [vmem:[#allocation125_spill] sm:$0xff] }
 0x231   :  { %1841 = vmatmul.mubr.f32.gmra.mrb[28].mxu0 %v25107_v46  ;;  %v25118_v46 = vld [vmem:[#allocation128_spill] sm:$0xff] }
 0x232   :  { %1848 = vmatprep.mubr.f32.mxu0 %v25108_v44  ;;  %v25119_v44 = vld [vmem:[#allocation129_spill] sm:$0xff] }
 0x235   :  { %1851 = vmatmul.mubr.f32.gmra.mrb[30].mxu0 %v25109_v55  ;;  %v25120_v55 = vld [vmem:[#allocation132_spill] sm:$0xff] }
 0x236   :  { %1858 = vmatprep.mubr.f32.mxu0 %v25110_v39  ;;  %v25121_v39 = vld [vmem:[#allocation133_spill] sm:$0xff] }
 0x239   :  { %1861 = vmatmul.mubr.f32.gmra.mrb[32].mxu0 %v25111_v40  ;;  %v25122_v40 = vld [vmem:[#allocation136_spill] sm:$0xff] }
 0x23a   :  { %1868 = vmatprep.mubr.f32.mxu0 %v25112_v43  ;;  %v25123_v43 = vld [vmem:[#allocation137_spill] sm:$0xff] }
 0x23d   :  { %1871 = vmatmul.mubr.f32.gmra.mrb[34].mxu0 %v25113_v34  ;;  %v25124_v34 = vld [vmem:[#allocation140_spill] sm:$0xff] }
 0x23e   :  { %1878 = vmatprep.mubr.f32.mxu0 %v25114_v48 }
 0x241   :  { %1881 = vmatmul.mubr.f32.gmra.mrb[36].mxu0 %v25115_v8 }
 0x242   :  { %1888 = vmatprep.mubr.f32.mxu0 %v25116_v28  ;;  %v25125_v28 = vand.u32 4294901760, %v25057_v1  ;;  %v25132_v1 = vand.u32 4294901760, %v25028_v0 }
 0x245   :  { %1891 = vmatmul.mubr.f32.gmra.mrb[38].mxu0 %v25117_v14  ;;  %v25126_v14 = vand.u32 4294901760, %v25023_v20 }
 0x246   :  { %1898 = vmatprep.mubr.f32.mxu0 %v25118_v46  ;;  %v25127_v46 = vand.u32 4294901760, %v25024_v29 }
 0x249   :  { %1901 = vmatmul.mubr.f32.gmra.mrb[40].mxu0 %v25119_v44  ;;  %v14370_v44 = vpack.c.bf16 %v25127_v46, %v25126_v14  ;;  %v25134_v14 = vand.u32 4294901760, %v17220_v45  ;;  %v25141_v45 = vand.u32 4294901760, %v17248_v57  ;;  %v25148_v57 = vand.u32 4294901760, %v25070_v60 }
 0x24a   :  { %1908 = vmatprep.mubr.f32.mxu0 %v25120_v55  ;;  %v25128_v55 = vand.u32 4294901760, %v25025_v36  ;;  %v25135_v36 = vand.u32 4294901760, %v25030_v2  ;;  %v25142_v2 = vand.u32 4294901760, %v25066_v26  ;;  %v25149_v26 = vand.u32 4294901760, %v25071_v38 }
 0x24b   :  { %v25155_v60 = vand.u32 4294901760, %v25075_v12  ;;  %v25156_v38 = vand.u32 4294901760, %v17345_v53  ;;  %v25162_v12 = vand.u32 4294901760, %v25034_v30  ;;  %v25163_v53 = vand.u32 4294901760, %v25035_v47 }
 0x24c   :  { %v14376_v29 = vpack.c.bf16 %v25135_v36, %v25134_v14  ;;  %v25169_v30 = vand.u32 4294901760, %v17401_v25  ;;  %v25170_v47 = vand.u32 4294901760, %v17403_v24  ;;  %v25177_v25 = vand.u32 4294901760, %v25094_v58  ;;  %v25188_v58 = vld [vmem:[#allocation96_spill] sm:$0xff] }
 0x24d   :  { %1911 = vmatmul.mubr.f32.gmra.mrb[42].mxu0 %v25121_v39  ;;  %v25129_v39 = vand.u32 4294901760, %v25026_v22  ;;  %v25178_v24 = vand.u32 4294901760, %v25095_v23  ;;  %v25190_v23 = vld [vmem:[#allocation98_spill] sm:$0xff] }
 0x24e   :  { %1918 = vmatprep.mubr.f32.mxu0 %v25122_v40  ;;  %v25130_v40 = vand.u32 4294901760, %v25058_v50 }
 0x24f   :  { %v14372_v8 = vpack.c.bf16 %v25129_v39, %v25128_v55  ;;  %v25136_v39 = vand.u32 4294901760, %v25062_v63  ;;  %v25143_v63 = vand.u32 4294901760, %v25067_v15  ;;  %v25150_v15 = vand.u32 4294901760, %v17291_v19 }
 0x250   :  { %v25157_v19 = vand.u32 4294901760, %v17347_v54  ;;  %v25164_v54 = vand.u32 4294901760, %v24946_v7  ;;  %v25171_v7 = vand.u32 4294901760, %v17409_v52  ;;  %v25179_v52 = vld [vmem:[#allocation14_spill] sm:$0xff] }
 0x251   :  { %1921 = vmatmul.mubr.f32.gmra.mrb[44].mxu0 %v25123_v43 }
 0x252   :  { %1928 = vmatprep.mubr.f32.mxu0 %v25124_v34  ;;  %v25131_v34 = vand.u32 4294901760, %v25060_v11  ;;  %v25139_v11 = vand.u32 4294901760, %v25032_v3  ;;  %v25146_v3 = vand.u32 4294901760, %v17287_v17  ;;  %v25153_v17 = vand.u32 4294901760, %v17317_v33 }
 0x253   :  { %v14390_v46 = vpack.c.bf16 %v25157_v19, %v25156_v38  ;;  %v25160_v33 = vand.u32 4294901760, %v25078_v13  ;;  %v25167_v13 = vand.u32 4294901760, %v25083_v41  ;;  %v14400_v36 = vpack.c.bf16 %v25171_v7, %v25170_v47  ;;  %v25210_v38 = vld [vmem:[#allocation116_spill] sm:$0xff] }
 0x254   :  { %v25174_v41 = vand.u32 4294901760, %v17411_v4  ;;  %v25184_v4 = vld [vmem:[#allocation92_spill] sm:$0xff]  ;;  %v25211_v19 = vand.u32 4294901760, %v25210_v38  ;;  %v25231_v7 = vand.u32 4294901760, %v25123_v43  ;;  %v25241_v43 = vld [vmem:[#allocation58_spill] sm:$0xff]  ;;  %v25274_v38 = vld [vmem:[#allocation93_spill] sm:$0xff] }
 0x255   :  { %1931 = vmatmul.mubr.f32.gmra.mrb[46].mxu0 %v18408_v27 }
 0x256   :  { %2040 = vmatprep.mubr.f32.mxu0 %v25125_v28  ;;  %v25133_v28 = vand.u32 4294901760, %v25029_v62  ;;  %v25140_v62 = vand.u32 4294901760, %v17246_v56  ;;  %v25147_v56 = vand.u32 4294901760, %v17289_v18  ;;  %v25154_v18 = vand.u32 4294901760, %v25074_v37 }
 0x257   :  { %v25161_v37 = vand.u32 4294901760, %v25079_v16  ;;  %v25168_v16 = vand.u32 4294901760, %v25036_v51 }
 0x258   :  { %v14374_v20 = vpack.c.bf16 %v25133_v28, %v25132_v1  ;;  %v14380_v0 = vpack.c.bf16 %v25141_v45, %v25140_v62  ;;  %v14384_v50 = vpack.c.bf16 %v25147_v56, %v25146_v3  ;;  %v14394_v28 = vpack.c.bf16 %v25163_v53, %v25162_v12  ;;  %v25198_v56 = vld [vmem:[#allocation104_spill] sm:$0xff]  ;;  %v25219_v53 = vld [vmem:[#allocation125_spill] sm:$0xff] }
 0x259   :  { %2044 = vmatmul.mubr.f32.vlgmr.msra.gmra.mrb[0].mxu0 %v25130_v40  ;;  %v25137_v40 = vand.u32 4294901760, %v25063_v42  ;;  %v25144_v42 = vand.u32 4294901760, %v17275_v9  ;;  %v25151_v9 = vand.u32 4294901760, %v17311_v31  ;;  %v25158_v31 = vand.u32 4294901760, %v17361_v5 }
 0x25a   :  { %14371 = vmatpush1.bf16.msra.mxu0 %v14370_v44  ;;  %2052 = vmatprep.mubr.f32.mxu0 %v25131_v34  ;;  %v25138_v44 = vand.u32 4294901760, %v25031_v35  ;;  %v25145_v35 = vand.u32 4294901760, %v17277_v10  ;;  %v25152_v10 = vand.u32 4294901760, %v17314_v32  ;;  %v25159_v32 = vand.u32 4294901760, %v17364_v6 }
 0x25b   :  { %14373 = vmatprep.subr.bf16.mxu0 %v14372_v8  ;;  %v14386_v34 = vpack.c.bf16 %v25151_v9, %v25150_v15  ;;  %v25165_v5 = vand.u32 4294901760, %v17392_v49  ;;  %v25166_v6 = vand.u32 4294901760, %v25082_v21  ;;  %v14398_v14 = vpack.c.bf16 %v25169_v30, %v25168_v16  ;;  %v25202_v15 = vld [vmem:[#allocation108_spill] sm:$0xff] }
 0x25c   :  { %v14378_v22 = vpack.c.bf16 %v25139_v11, %v25138_v44  ;;  %v14382_v55 = vpack.c.bf16 %v25145_v35, %v25144_v42  ;;  %v14388_v8 = vpack.c.bf16 %v25153_v17, %v25152_v10  ;;  %v14392_v1 = vpack.c.bf16 %v25159_v32, %v25158_v31  ;;  %v25194_v42 = vld [vmem:[#allocation101_spill] sm:$0xff]  ;;  %v25206_v17 = vld [vmem:[#allocation112_spill] sm:$0xff] }
 0x25d   :  { %2056 = vmatmul.mubr.f32.gmra.mrb[2].mxu0 %v25136_v39  ;;  %v25172_v49 = vand.u32 4294901760, %v25086_v59  ;;  %v25173_v21 = vand.u32 4294901760, %v25087_v61  ;;  %v25180_v59 = vld [vmem:[#allocation88_spill] sm:$0xff]  ;;  %v25182_v61 = vld [vmem:[#allocation91_spill] sm:$0xff]  ;;  %v25185_v11 = vand.u32 4294901760, %v25184_v4  ;;  %v25189_v45 = vand.u32 4294901760, %v25188_v58 }
 0x25e   :  { %2064 = vmatprep.mubr.f32.mxu0 %v25137_v40  ;;  %14375 = vmatpush1.bf16.msra.mxu0 %v14374_v20  ;;  %v14396_v20 = vpack.c.bf16 %v25165_v5, %v25164_v54  ;;  %v25181_v40 = vand.u32 4294901760, %v25180_v59  ;;  %v25183_v44 = vand.u32 4294901760, %v25182_v61  ;;  %v25195_v35 = vand.u32 4294901760, %v25194_v42  ;;  %v25221_v54 = vld [vmem:[#allocation128_spill] sm:$0xff]  ;;  %v25243_v59 = vld [vmem:[#allocation25_spill] sm:$0xff]  ;;  %v25248_v4 = vld [vmem:[#allocation63_spill] sm:$0xff] }
 0x25f   :  { %14377 = vmatprep.subr.bf16.mxu0 %v14376_v29  ;;  %v25175_v29 = vld [vmem:[#allocation41_spill] sm:$0xff]  ;;  %v25203_v9 = vand.u32 4294901760, %v25202_v15  ;;  %v25214_v32 = vand.u32 4294901760, %v25114_v48  ;;  %v25222_v5 = vand.u32 4294901760, %v25221_v54  ;;  %v25252_v58 = vld [vmem:[#allocation67_spill] sm:$0xff]  ;;  %v25266_v15 = vld [vmem:[#allocation44_spill] sm:$0xff] }
 0x260   :  { %v25176_v51 = vand.u32 4294901760, %v25175_v29  ;;  %v25227_v48 = vld [vmem:[#allocation133_spill] sm:$0xff]  ;;  %v25236_v29 = vld [vmem:[#allocation52_spill] sm:$0xff]  ;;  %v25258_v42 = vld [vmem:[#allocation39_spill] sm:$0xff] }
 0x261   :  { %2068 = vmatmul.mubr.f32.gmra.mrb[4].mxu0 %v25142_v2  ;;  %v25192_v2 = vld [vmem:[#allocation99_spill] sm:$0xff]  ;;  %v25228_v30 = vand.u32 4294901760, %v25227_v48  ;;  %v25246_v61 = vld [vmem:[#allocation29_spill] sm:$0xff]  ;;  %v3057_v54 = vld [vmem:[#allocation2 + $0x8] sm:$0xff] }
 0x262   :  { %2076 = vmatprep.mubr.f32.mxu0 %v25143_v63  ;;  %14379 = vmatpush1.bf16.msra.mxu0 %v14378_v22  ;;  %v14402_v39 = vpack.c.bf16 %v25176_v51, %v25174_v41  ;;  %v25186_v22 = vld [vmem:[#allocation95_spill] sm:$0xff]  ;;  %v25193_v63 = vand.u32 4294901760, %v25192_v2  ;;  %v25235_v41 = vld [vmem:[#allocation50_spill] sm:$0xff]  ;;  %v25237_v51 = vld [vmem:[#allocation16_spill] sm:$0xff] }
 0x263   :  { %14381 = vmatprep.subr.bf16.mxu0 %v14380_v0  ;;  %v25187_v62 = vand.u32 4294901760, %v25186_v22  ;;  %v25191_v0 = vand.u32 4294901760, %v25190_v23  ;;  %v25250_v22 = vld [vmem:[#allocation31_spill] sm:$0xff]  ;;  %v25254_v23 = vld [vmem:[#allocation33_spill] sm:$0xff]  ;;  %v3059_v48 = vld [vmem:[#allocation2 + $0x18] sm:$0xff] }
 0x264   :  { %v25256_v2 = vld [vmem:[#allocation71_spill] sm:$0xff] }
 0x265   :  { %2080 = vmatmul.mubr.f32.gmra.mrb[6].mxu0 %v25148_v57  ;;  %v25200_v57 = vld [vmem:[#allocation105_spill] sm:$0xff] }
 0x266   :  { %2088 = vmatprep.mubr.f32.mxu0 %v25149_v26  ;;  %14383 = vmatpush1.bf16.msra.mxu0 %v14382_v55  ;;  %v25196_v55 = vld [vmem:[#allocation102_spill] sm:$0xff]  ;;  %v25201_v26 = vand.u32 4294901760, %v25200_v57 }
 0x267   :  { %14385 = vmatprep.subr.bf16.mxu0 %v14384_v50  ;;  %v25197_v3 = vand.u32 4294901760, %v25196_v55  ;;  %v25199_v50 = vand.u32 4294901760, %v25198_v56  ;;  %v25260_v55 = vld [vmem:[#allocation75_spill] sm:$0xff]  ;;  %v25262_v56 = vld [vmem:[#allocation42_spill] sm:$0xff] }
 0x268   :  { %v25264_v57 = vld [vmem:[#allocation78_spill] sm:$0xff] }
 0x269   :  { %2092 = vmatmul.mubr.f32.gmra.mrb[8].mxu0 %v25154_v18  ;;  %v25208_v18 = vld [vmem:[#allocation113_spill] sm:$0xff] }
 0x26a   :  { %2100 = vmatprep.mubr.f32.mxu0 %v25155_v60  ;;  %14387 = vmatpush1.bf16.msra.mxu0 %v14386_v34  ;;  %v25204_v34 = vld [vmem:[#allocation109_spill] sm:$0xff]  ;;  %v25209_v60 = vand.u32 4294901760, %v25208_v18 }
 0x26b   :  { %14389 = vmatprep.subr.bf16.mxu0 %v14388_v8  ;;  %v25205_v10 = vand.u32 4294901760, %v25204_v34  ;;  %v25207_v8 = vand.u32 4294901760, %v25206_v17  ;;  %v25268_v34 = vld [vmem:[#allocation82_spill] sm:$0xff]  ;;  %v25272_v18 = vld [vmem:[#allocation89_spill] sm:$0xff] }
 0x26c   :  { %v25270_v17 = vld [vmem:[#allocation46_spill] sm:$0xff] }
 0x26d   :  { %2104 = vmatmul.mubr.f32.gmra.mrb[10].mxu0 %v25160_v33 }
 0x26e   :  { %2112 = vmatprep.mubr.f32.mxu0 %v25161_v37  ;;  %14391 = vmatpush1.bf16.msra.mxu0 %v14390_v46  ;;  %v25212_v46 = vld [vmem:[#allocation117_spill] sm:$0xff]  ;;  %v25217_v37 = vld [vmem:[#allocation124_spill] sm:$0xff] }
 0x26f   :  { %14393 = vmatprep.subr.bf16.mxu0 %v14392_v1  ;;  %v25213_v31 = vand.u32 4294901760, %v25212_v46  ;;  %v25215_v1 = vld [vmem:[#allocation121_spill] sm:$0xff]  ;;  %v25218_v12 = vand.u32 4294901760, %v25217_v37  ;;  %v25276_v46 = vld [vmem:[#allocation47_spill] sm:$0xff] }
 0x270   :  { %v25216_v33 = vand.u32 4294901760, %v25215_v1  ;;  %v25279_v1 = vld [vmem:[#allocation100_spill] sm:$0xff]  ;;  %v25281_v37 = vld [vmem:[#allocation103_spill] sm:$0xff] }
 0x271   :  { %2116 = vmatmul.mubr.f32.gmra.mrb[12].mxu0 %v25166_v6 }
 0x272   :  { %2124 = vmatprep.mubr.f32.mxu0 %v25167_v13  ;;  %14395 = vmatpush1.bf16.msra.mxu0 %v14394_v28  ;;  %v25220_v28 = vand.u32 4294901760, %v25219_v53  ;;  %v25225_v13 = vld [vmem:[#allocation132_spill] sm:$0xff]  ;;  %v25283_v53 = vld [vmem:[#allocation107_spill] sm:$0xff] }
 0x273   :  { %14397 = vmatprep.subr.bf16.mxu0 %v14396_v20  ;;  %v25223_v20 = vld [vmem:[#allocation129_spill] sm:$0xff]  ;;  %v25226_v16 = vand.u32 4294901760, %v25225_v13 }
 0x274   :  { %v25224_v6 = vand.u32 4294901760, %v25223_v20  ;;  %v25284_v20 = vld [vmem:[#allocation110_spill] sm:$0xff] }
 0x275   :  { %2128 = vmatmul.mubr.f32.gmra.mrb[14].mxu0 %v25172_v49 }
 0x276   :  { %2136 = vmatprep.mubr.f32.mxu0 %v25173_v21  ;;  %14399 = vmatpush1.bf16.msra.mxu0 %v14398_v14  ;;  %v25229_v14 = vld [vmem:[#allocation136_spill] sm:$0xff]  ;;  %v25234_v21 = vand.u32 4294901760, %v18408_v27  ;;  %v25244_v27 = vld [vmem:[#allocation59_spill] sm:$0xff] }
 0x277   :  { %14401 = vmatprep.subr.bf16.mxu0 %v14400_v36  ;;  %v25230_v47 = vand.u32 4294901760, %v25229_v14  ;;  %v25232_v36 = vld [vmem:[#allocation140_spill] sm:$0xff]  ;;  %v3060_v14 = vld [vmem:[#allocation2 + $0x20] sm:$0xff] }
 0x278   :  { %v25233_v49 = vand.u32 4294901760, %v25232_v36  ;;  %v3130_v36 = vand.u32 4294901760, %v3060_v14 }
 0x279   :  { %2140 = vmatmul.mubr.f32.gmra.mrb[16].mxu0 %v25177_v25  ;;  %v25239_v25 = vld [vmem:[#allocation19_spill] sm:$0xff] }
 0x27a   :  { %2148 = vmatprep.mubr.f32.mxu0 %v25178_v24  ;;  %14403 = vmatpush1.bf16.msra.mxu0 %v14402_v39  ;;  %v25238_v39 = vld [vmem:[#allocation54_spill] sm:$0xff]  ;;  %v25240_v24 = vld [vmem:[#allocation55_spill] sm:$0xff] }
 0x27b   :  { %14405 = vmatprep.subr.bf16.mxu0 %v25179_v52  ;;  %v25242_v52 = vld [vmem:[#allocation23_spill] sm:$0xff] }
 0x27d   :  { %2152 = vmatmul.mubr.f32.gmra.mrb[18].mxu0 %v25181_v40  ;;  %v25245_v40 = vld [vmem:[#allocation62_spill] sm:$0xff] }
 0x27e   :  { %2160 = vmatprep.mubr.f32.mxu0 %v25183_v44  ;;  %v25247_v44 = vld [vmem:[#allocation30_spill] sm:$0xff] }
 0x281   :  { %2164 = vmatmul.mubr.f32.gmra.mrb[20].mxu0 %v25185_v11  ;;  %v25249_v11 = vld [vmem:[#allocation66_spill] sm:$0xff] }
 0x282   :  { %2172 = vmatprep.mubr.f32.mxu0 %v25187_v62  ;;  %v25251_v62 = vld [vmem:[#allocation32_spill] sm:$0xff] }
 0x285   :  { %2176 = vmatmul.mubr.f32.gmra.mrb[22].mxu0 %v25189_v45  ;;  %v25253_v45 = vld [vmem:[#allocation70_spill] sm:$0xff] }
 0x286   :  { %2184 = vmatprep.mubr.f32.mxu0 %v25191_v0  ;;  %v25255_v0 = vld [vmem:[#allocation35_spill] sm:$0xff] }
 0x289   :  { %2188 = vmatmul.mubr.f32.gmra.mrb[24].mxu0 %v25193_v63  ;;  %v25257_v63 = vld [vmem:[#allocation74_spill] sm:$0xff] }
 0x28a   :  { %2196 = vmatprep.mubr.f32.mxu0 %v25195_v35  ;;  %v25259_v35 = vld [vmem:[#allocation40_spill] sm:$0xff] }
 0x28d   :  { %2200 = vmatmul.mubr.f32.gmra.mrb[26].mxu0 %v25197_v3  ;;  %v25261_v3 = vld [vmem:[#allocation37_spill] sm:$0xff] }
 0x28e   :  { %2208 = vmatprep.mubr.f32.mxu0 %v25199_v50  ;;  %v25263_v50 = vld [vmem:[#allocation43_spill] sm:$0xff] }
 0x291   :  { %2212 = vmatmul.mubr.f32.gmra.mrb[28].mxu0 %v25201_v26  ;;  %v25265_v26 = vld [vmem:[#allocation81_spill] sm:$0xff] }
 0x292   :  { %2220 = vmatprep.mubr.f32.mxu0 %v25203_v9  ;;  %v25267_v9 = vld [vmem:[#allocation45_spill] sm:$0xff] }
 0x295   :  { %2224 = vmatmul.mubr.f32.gmra.mrb[30].mxu0 %v25205_v10  ;;  %v25269_v10 = vld [vmem:[#allocation85_spill] sm:$0xff] }
 0x296   :  { %2232 = vmatprep.mubr.f32.mxu0 %v25207_v8  ;;  %v25271_v8 = vld [vmem:[#allocation86_spill] sm:$0xff] }
 0x299   :  { %2236 = vmatmul.mubr.f32.gmra.mrb[32].mxu0 %v25209_v60  ;;  %v25273_v60 = vld [vmem:[#allocation90_spill] sm:$0xff] }
 0x29a   :  { %2244 = vmatprep.mubr.f32.mxu0 %v25211_v19  ;;  %v25275_v19 = vld [vmem:[#allocation94_spill] sm:$0xff] }
 0x29d   :  { %2248 = vmatmul.mubr.f32.gmra.mrb[34].mxu0 %v25213_v31  ;;  %v25277_v31 = vld [vmem:[#allocation97_spill] sm:$0xff] }
 0x29e   :  { %2256 = vmatprep.mubr.f32.mxu0 %v25214_v32  ;;  %v25278_v32 = vld [vmem:[#allocation48_spill] sm:$0xff] }
 0x2a1   :  { %2260 = vmatmul.mubr.f32.gmra.mrb[36].mxu0 %v25216_v33  ;;  %v25280_v33 = vld [vmem:[#allocation49_spill] sm:$0xff] }
 0x2a2   :  { %2268 = vmatprep.mubr.f32.mxu0 %v25218_v12  ;;  %v25282_v12 = vld [vmem:[#allocation106_spill] sm:$0xff] }
 0x2a5   :  { %2272 = vmatmul.mubr.f32.gmra.mrb[38].mxu0 %v25220_v28  ;;  %v3056_v28 = vld [vmem:[#allocation2] sm:$0xff] }
 0x2a6   :  { %2280 = vmatprep.mubr.f32.mxu0 %v25222_v5  ;;  %v3058_v5 = vld [vmem:[#allocation2 + $0x10] sm:$0xff]  ;;  %v3118_v13 = vand.u32 4294901760, %v3056_v28 }
 0x2a9   :  { %2284 = vmatmul.mubr.f32.gmra.mrb[40].mxu0 %v25224_v6  ;;  %v24326_v6 = vmov 0.0|0.0  }
 0x2aa   :  { %2292 = vmatprep.mubr.f32.mxu0 %v25226_v16  ;;  %14440 = vmatprep.subr.bf16.mxu1 %v24326_v6  ;;  %v3121_v16 = vand.u32 4294901760, %v3057_v54 }
 0x2ad   :  { %2296 = vmatmul.mubr.f32.gmra.mrb[42].mxu0 %v25228_v30  ;;  %v3124_v30 = vand.u32 4294901760, %v3058_v5 }
 0x2ae   :  { %2304 = vmatprep.mubr.f32.mxu0 %v25230_v47  ;;  %v3061_v47 = vld [vmem:[#allocation2 + $0x28] sm:$0xff] }
 0x2b1   :  { %2308 = vmatmul.mubr.f32.gmra.mrb[44].mxu0 %v25231_v7  ;;  %v3127_v7 = vand.u32 4294901760, %v3059_v48 }
 0x2b2   :  { %2316 = vmatprep.mubr.f32.mxu0 %v25233_v49  ;;  %v3133_v49 = vand.u32 4294901760, %v3061_v47 }
 0x2b5   :  { %2320 = vmatmul.mubr.f32.gmra.mrb[46].mxu0 %v25234_v21  ;;  %v3062_v21 = vld [vmem:[#allocation2 + $0x30] sm:$0xff] }
 0x2b6   :  { %2499 = vmatprep.mubr.f32.mxu0 %v25235_v41 }
 0x2b9   :  { %2501 = vmatmul.mubr.f32.vlgmr.msra.gmra.mrb[0].mxu0 %v25236_v29 }
 0x2ba   :  { %14407 = vmatpush1.bf16.msra.mxu0 %v25237_v51  ;;  %2507 = vmatprep.mubr.f32.mxu0 %v25238_v39  ;;  %v3063_v51 = vld [vmem:[#allocation2 + $0x38] sm:$0xff] }
 0x2bb   :  { %14409 = vmatprep.subr.bf16.mxu0 %v25239_v25  ;;  %v3064_v25 = vld [vmem:[#allocation2 + $0x40] sm:$0xff] }
 0x2bd   :  { %2509 = vmatmul.mubr.f32.gmra.mrb[2].mxu0 %v25240_v24 }
 0x2be   :  { %2515 = vmatprep.mubr.f32.mxu0 %v25241_v43  ;;  %14411 = vmatpush1.bf16.msra.mxu0 %v25242_v52  ;;  %v18786_v52 = vpack.c.bf16 %v3121_v16, %v3118_v13 }
 0x2bf   :  { %14413 = vmatprep.subr.bf16.mxu0 %v25243_v59  ;;  %v18788_v59 = vsub.f32 %v3056_v28, %v3118_v13  ;;  %v3139_v28 = vand.u32 4294901760, %v3063_v51 }
 0x2c0   :  { %25285 = vst [vmem:[#allocation17_spill] sm:$0xff] %v18786_v52  ;;  %14442 = vmatpush1.bf16.msra.mxu1 %v18786_v52 }
 0x2c1   :  { %2517 = vmatmul.mubr.f32.gmra.mrb[4].mxu0 %v25244_v27  ;;  %14443 = vmatprep.subr.bf16.mxu1 %v24326_v6  ;;  %v18819_v6 = vpack.c.bf16 %v3133_v49, %v3130_v36 }
 0x2c2   :  { %2523 = vmatprep.mubr.f32.mxu0 %v25245_v40  ;;  %14415 = vmatpush1.bf16.msra.mxu0 %v25246_v61  ;;  %v18790_v61 = vsub.f32 %v3057_v54, %v3121_v16  ;;  %v3142_v54 = vand.u32 4294901760, %v3064_v25 }
 0x2c3   :  { %14417 = vmatprep.subr.bf16.mxu0 %v25247_v44  ;;  %v18792_v44 = vsub.f32 %v3058_v5, %v3124_v30  ;;  %25297 = vst [vmem:[#allocation28_spill] sm:$0xff] %v18819_v6 }
 0x2c5   :  { %2525 = vmatmul.mubr.f32.gmra.mrb[6].mxu0 %v25248_v4  ;;  %25286 = vst [vmem:[#allocation18_spill] sm:$0xff] %v18792_v44 }
 0x2c6   :  { %2531 = vmatprep.mubr.f32.mxu0 %v25249_v11  ;;  %14419 = vmatpush1.bf16.msra.mxu0 %v25250_v22  ;;  %v3065_v22 = vld [vmem:[#allocation2 + $0x48] sm:$0xff] }
 0x2c7   :  { %14421 = vmatprep.subr.bf16.mxu0 %v25251_v62  ;;  %v3066_v62 = vld [vmem:[#allocation2 + $0x50] sm:$0xff]  ;;  %v3145_v5 = vand.u32 4294901760, %v3065_v22 }
 0x2c8   :  { %v3148_v13 = vand.u32 4294901760, %v3066_v62 }
 0x2c9   :  { %2533 = vmatmul.mubr.f32.gmra.mrb[8].mxu0 %v25252_v58 }
 0x2ca   :  { %2539 = vmatprep.mubr.f32.mxu0 %v25253_v45  ;;  %14423 = vmatpush1.bf16.msra.mxu0 %v25254_v23  ;;  %v3067_v23 = vld [vmem:[#allocation2 + $0x58] sm:$0xff]  ;;  %v18815_v52 = vsub.f32 %v3066_v62, %v3148_v13 }
 0x2cb   :  { %14425 = vmatprep.subr.bf16.mxu0 %v25255_v0  ;;  %v25287_v0 = vld [vmem:[#allocation111_spill] sm:$0xff]  ;;  %v3151_v16 = vand.u32 4294901760, %v3067_v23 }
 0x2cd   :  { %2541 = vmatmul.mubr.f32.gmra.mrb[10].mxu0 %v25256_v2  ;;  %v18821_v44 = vsub.f32 %v3067_v23, %v3151_v16  ;;  %v18837_v23 = vpack.c.bf16 %v3145_v5, %v3142_v54 }
 0x2ce   :  { %2547 = vmatprep.mubr.f32.mxu0 %v25257_v63  ;;  %14427 = vmatpush1.bf16.msra.mxu0 %v25258_v42  ;;  %v18795_v42 = vpack.c.bf16 %v3127_v7, %v3124_v30  ;;  %v3069_v30 = vld [vmem:[#allocation2 + $0x68] sm:$0xff] }
 0x2cf   :  { %14429 = vmatprep.subr.bf16.mxu0 %v25259_v35  ;;  %v18797_v35 = vsub.f32 %v3059_v48, %v3127_v7  ;;  %v18810_v7 = vsub.f32 %v3064_v25, %v3142_v54  ;;  %v25298_v25 = vmov 0.0|0.0   ;;  %25304 = vst [vmem:[#allocation36_spill] sm:$0xff] %v18837_v23 }
 0x2d0   :  { %25288 = vst [vmem:[#allocation20_spill] sm:$0xff] %v18795_v42  ;;  %14445 = vmatpush1.bf16.msra.mxu1 %v18795_v42 }
 0x2d1   :  { %2549 = vmatmul.mubr.f32.gmra.mrb[12].mxu0 %v25260_v55  ;;  %25289 = vst [vmem:[#allocation21_spill] sm:$0xff] %v18797_v35  ;;  %25294 = vst [vmem:[#allocation27_spill] sm:$0xff] %v18810_v7  ;;  %v25295_v35 = vld [vmem:[#allocation115_spill] sm:$0xff]  ;;  %14446 = vmatprep.subr.bf16.mxu1 %v25298_v25 }
 0x2d2   :  { %2555 = vmatprep.mubr.f32.mxu0 %v25261_v3  ;;  %14431 = vmatpush1.bf16.msra.mxu0 %v25262_v56  ;;  %v18799_v56 = vsub.f32 %v3060_v14, %v3130_v36  ;;  %v18808_v14 = vsub.f32 %v3063_v51, %v3139_v28  ;;  %v25302_v36 = vld [vmem:[#allocation123_spill] sm:$0xff] }
 0x2d3   :  { %14433 = vmatprep.subr.bf16.mxu0 %v25263_v50  ;;  %v3068_v50 = vld [vmem:[#allocation2 + $0x60] sm:$0xff] }
 0x2d4   :  { %25290 = vst [vmem:[#allocation22_spill] sm:$0xff] %v18799_v56  ;;  %25293 = vst [vmem:[#allocation26_spill] sm:$0xff] %v18808_v14  ;;  %v3154_v56 = vand.u32 4294901760, %v3068_v50  ;;  %v25299_v14 = vld [vmem:[#allocation119_spill] sm:$0xff]  ;;  %14448 = vmatpush1.bf16.msra.mxu1 %v18819_v6  ;;  %v25309_v6 = vld [vmem:[#allocation134_spill] sm:$0xff] }
 0x2d5   :  { %2557 = vmatmul.mubr.f32.gmra.mrb[14].mxu0 %v25264_v57  ;;  %14449 = vmatprep.subr.bf16.mxu1 %v25298_v25 }
 0x2d6   :  { %2563 = vmatprep.mubr.f32.mxu0 %v25265_v26  ;;  %14435 = vmatpush1.bf16.msra.mxu0 %v25266_v15  ;;  %v25291_v15 = vld [vmem:[#allocation114_spill] sm:$0xff]  ;;  %v18823_v51 = vsub.f32 %v3068_v50, %v3154_v56  ;;  %v25305_v50 = vld [vmem:[#allocation127_spill] sm:$0xff] }
 0x2d7   :  { %14437 = vmatprep.subr.bf16.mxu0 %v25267_v9  ;;  %v18803_v9 = vsub.f32 %v3061_v47, %v3133_v49  ;;  %v18813_v47 = vsub.f32 %v3065_v22, %v3145_v5  ;;  %v25300_v22 = vld [vmem:[#allocation122_spill] sm:$0xff]  ;;  %v25311_v5 = vld [vmem:[#allocation135_spill] sm:$0xff] }
 0x2d8   :  { %v25303_v49 = vld [vmem:[#allocation126_spill] sm:$0xff] }
 0x2d9   :  { %2565 = vmatmul.mubr.f32.gmra.mrb[16].mxu0 %v25268_v34  ;;  %25292 = vst [vmem:[#allocation24_spill] sm:$0xff] %v18803_v9  ;;  %v25296_v9 = vld [vmem:[#allocation118_spill] sm:$0xff] }
 0x2da   :  { %2571 = vmatprep.mubr.f32.mxu0 %v25269_v10  ;;  %14439 = vmatpush1.bf16.msra.mxu0 %v25270_v17  ;;  %v3136_v17 = vand.u32 4294901760, %v3062_v21 }
 0x2dc   :  { %v18806_v48 = vsub.f32 %v3062_v21, %v3136_v17  ;;  %v3157_v21 = vand.u32 4294901760, %v3069_v30  ;;  %v18831_v62 = vpack.c.bf16 %v3139_v28, %v3136_v17  ;;  %v18843_v17 = vpack.c.bf16 %v3151_v16, %v3148_v13  ;;  %v25308_v28 = vld [vmem:[#allocation131_spill] sm:$0xff] }
 0x2dd   :  { %2573 = vmatmul.mubr.f32.gmra.mrb[18].mxu0 %v25271_v8  ;;  %v25313_v13 = vld [vmem:[#allocation139_spill] sm:$0xff] }
 0x2de   :  { %2579 = vmatprep.mubr.f32.mxu0 %v25272_v18  ;;  %v18826_v7 = vsub.f32 %v3069_v30, %v3157_v21  ;;  %25301 = vst [vmem:[#allocation34_spill] sm:$0xff] %v18831_v62  ;;  %14451 = vmatpush1.bf16.msra.mxu1 %v18831_v62  ;;  %v25306_v30 = vld [vmem:[#allocation130_spill] sm:$0xff]  ;;  %25307 = vst [vmem:[#allocation38_spill] sm:$0xff] %v18843_v17  ;;  %v18849_v54 = vpack.c.bf16 %v3157_v21, %v3154_v56  ;;  %v24357_v56 = vand.u32 4294901760, %v18790_v61 }
 0x2df   :  { %14452 = vmatprep.subr.bf16.mxu1 %v25298_v25  ;;  %v25312_v62 = vld [vmem:[#allocation138_spill] sm:$0xff] }
 0x2e0   :  { %25310 = vst [vmem:[#allocation51_spill] sm:$0xff] %v18849_v54  ;;  %v25319_v21 = vld [vmem:[#allocation18_spill] sm:$0xff] }
 0x2e1   :  { %2581 = vmatmul.mubr.f32.gmra.mrb[20].mxu0 %v25273_v60 }
 0x2e2   :  { %2587 = vmatprep.mubr.f32.mxu0 %v25274_v38  ;;  %14454 = vmatpush1.bf16.msra.mxu1 %v18837_v23 }
 0x2e3   :  { %14455 = vmatprep.subr.bf16.mxu1 %v25298_v25 }
 0x2e5   :  { %2589 = vmatmul.mubr.f32.gmra.mrb[22].mxu0 %v25275_v19 }
 0x2e6   :  { %2595 = vmatprep.mubr.f32.mxu0 %v25276_v46  ;;  %14457 = vmatpush1.bf16.msra.mxu1 %v18843_v17 }
 0x2e7   :  { %14458 = vmatprep.subr.bf16.mxu1 %v25298_v25 }
 0x2e9   :  { %2597 = vmatmul.mubr.f32.gmra.mrb[24].mxu0 %v25277_v31 }
 0x2ea   :  { %2603 = vmatprep.mubr.f32.mxu0 %v25278_v32  ;;  %14460 = vmatpush1.bf16.msra.mxu1 %v18849_v54 }
 0x2eb   :  { %14461 = vmatprep.subr.bf16.mxu1 %v25298_v25 }
 0x2ed   :  { %2605 = vmatmul.mubr.f32.gmra.mrb[26].mxu0 %v25279_v1 }
 0x2ee   :  { %2611 = vmatprep.mubr.f32.mxu0 %v25280_v33 }
 0x2f1   :  { %2613 = vmatmul.mubr.f32.gmra.mrb[28].mxu0 %v25281_v37 }
 0x2f2   :  { %2619 = vmatprep.mubr.f32.mxu0 %v25282_v12 }
 0x2f5   :  { %2621 = vmatmul.mubr.f32.gmra.mrb[30].mxu0 %v25283_v53 }
 0x2f6   :  { %2627 = vmatprep.mubr.f32.mxu0 %v25284_v20 }
 0x2f9   :  { %2629 = vmatmul.mubr.f32.gmra.mrb[32].mxu0 %v25287_v0 }
 0x2fa   :  { %2635 = vmatprep.mubr.f32.mxu0 %v25291_v15 }
 0x2fd   :  { %2637 = vmatmul.mubr.f32.gmra.mrb[34].mxu0 %v25295_v35 }
 0x2fe   :  { %2643 = vmatprep.mubr.f32.mxu0 %v25296_v9 }
 0x301   :  { %2645 = vmatmul.mubr.f32.gmra.mrb[36].mxu0 %v25299_v14 }
 0x302   :  { %2651 = vmatprep.mubr.f32.mxu0 %v25300_v22 }
 0x305   :  { %2653 = vmatmul.mubr.f32.gmra.mrb[38].mxu0 %v25302_v36 }
 0x306   :  { %2659 = vmatprep.mubr.f32.mxu0 %v25303_v49 }
 0x309   :  { %2661 = vmatmul.mubr.f32.gmra.mrb[40].mxu0 %v25305_v50 }
 0x30a   :  { %2667 = vmatprep.mubr.f32.mxu0 %v25306_v30 }
 0x30d   :  { %2669 = vmatmul.mubr.f32.gmra.mrb[42].mxu0 %v25308_v28 }
 0x30e   :  { %2675 = vmatprep.mubr.f32.mxu0 %v25309_v6 }
 0x311   :  { %2677 = vmatmul.mubr.f32.gmra.mrb[44].mxu0 %v25311_v5 }
 0x312   :  { %2683 = vmatprep.mubr.f32.mxu0 %v25312_v62 }
 0x315   :  { %2685 = vmatmul.mubr.f32.gmra.mrb[46].mxu0 %v25313_v13 }
 0x316   :  { %2792 = vmatprep.mubr.f32.mxu0 %v25235_v41  ;;  %v3070_v41 = vld [vmem:[#allocation2 + $0x70] sm:$0xff] }
 0x319   :  { %2794 = vmatmul.mubr.f32.vlgmr.msra.gmra.mrb[0].mxu0 %v25236_v29  ;;  %v3071_v29 = vld [vmem:[#allocation2 + $0x78] sm:$0xff] }
 0x31a   :  { %2800 = vmatprep.mubr.f32.mxu0 %v25238_v39  ;;  %v3160_v39 = vand.u32 4294901760, %v3070_v41 }
 0x31d   :  { %2802 = vmatmul.mubr.f32.gmra.mrb[2].mxu0 %v25240_v24  ;;  %v3163_v24 = vand.u32 4294901760, %v3071_v29 }
 0x31e   :  { %2808 = vmatprep.mubr.f32.mxu0 %v25241_v43 }
 0x31f   :  { %v18902_v43 = vpack.c.bf16 %v3163_v24, %v3160_v39 }
 0x321   :  { %2810 = vmatmul.mubr.f32.gmra.mrb[4].mxu0 %v25244_v27  ;;  %25314 = vst [vmem:[#allocation53_spill] sm:$0xff] %v18902_v43  ;;  %v18904_v27 = vsub.f32 %v3070_v41, %v3160_v39  ;;  %14463 = vmatpush1.bf16.msra.mxu1 %v18902_v43 }
 0x322   :  { %2816 = vmatprep.mubr.f32.mxu0 %v25245_v40  ;;  %v18906_v40 = vsub.f32 %v3071_v29, %v3163_v24  ;;  %14464 = vmatprep.subr.bf16.mxu1 %v25298_v25  ;;  %v25322_v29 = vld [vmem:[#allocation24_spill] sm:$0xff] }
 0x323   :  { %v24353_v39 = vand.u32 4294901760, %v25322_v29 }
 0x325   :  { %2818 = vmatmul.mubr.f32.gmra.mrb[6].mxu0 %v25248_v4  ;;  %v3072_v4 = vld [vmem:[#allocation2 + $0x80] sm:$0xff] }
 0x326   :  { %2824 = vmatprep.mubr.f32.mxu0 %v25249_v11  ;;  %v3073_v11 = vld [vmem:[#allocation2 + $0x88] sm:$0xff] }
 0x329   :  { %2826 = vmatmul.mubr.f32.gmra.mrb[8].mxu0 %v25252_v58  ;;  %v3166_v58 = vand.u32 4294901760, %v3072_v4 }
 0x32a   :  { %2832 = vmatprep.mubr.f32.mxu0 %v25253_v45  ;;  %v3169_v45 = vand.u32 4294901760, %v3073_v11 }
 0x32d   :  { %2834 = vmatmul.mubr.f32.gmra.mrb[10].mxu0 %v25256_v2  ;;  %v18912_v2 = vpack.c.bf16 %v3169_v45, %v3166_v58 }
 0x32e   :  { %2840 = vmatprep.mubr.f32.mxu0 %v25257_v63  ;;  %v3074_v63 = vld [vmem:[#allocation2 + $0x90] sm:$0xff] }
 0x32f   :  { %25315 = vst [vmem:[#allocation56_spill] sm:$0xff] %v18912_v2  ;;  %14466 = vmatpush1.bf16.msra.mxu1 %v18912_v2 }
 0x330   :  { %14467 = vmatprep.subr.bf16.mxu1 %v25298_v25 }
 0x331   :  { %2842 = vmatmul.mubr.f32.gmra.mrb[12].mxu0 %v25260_v55  ;;  %v3075_v55 = vld [vmem:[#allocation2 + $0x98] sm:$0xff] }
 0x332   :  { %2848 = vmatprep.mubr.f32.mxu0 %v25261_v3  ;;  %v3172_v3 = vand.u32 4294901760, %v3074_v63 }
 0x335   :  { %2850 = vmatmul.mubr.f32.gmra.mrb[14].mxu0 %v25264_v57  ;;  %v3175_v57 = vand.u32 4294901760, %v3075_v55 }
 0x336   :  { %2856 = vmatprep.mubr.f32.mxu0 %v25265_v26 }
 0x337   :  { %v18917_v26 = vpack.c.bf16 %v3175_v57, %v3172_v3 }
 0x339   :  { %2858 = vmatmul.mubr.f32.gmra.mrb[16].mxu0 %v25268_v34  ;;  %25316 = vst [vmem:[#allocation57_spill] sm:$0xff] %v18917_v26  ;;  %v3076_v34 = vld [vmem:[#allocation2 + $0xa0] sm:$0xff]  ;;  %14469 = vmatpush1.bf16.msra.mxu1 %v18917_v26 }
 0x33a   :  { %2864 = vmatprep.mubr.f32.mxu0 %v25269_v10  ;;  %v3077_v10 = vld [vmem:[#allocation2 + $0xa8] sm:$0xff]  ;;  %14470 = vmatprep.subr.bf16.mxu1 %v25298_v25 }
 0x33d   :  { %2866 = vmatmul.mubr.f32.gmra.mrb[18].mxu0 %v25271_v8  ;;  %v3178_v8 = vand.u32 4294901760, %v3076_v34 }
 0x33e   :  { %2872 = vmatprep.mubr.f32.mxu0 %v25272_v18  ;;  %v3181_v18 = vand.u32 4294901760, %v3077_v10 }
 0x341   :  { %2874 = vmatmul.mubr.f32.gmra.mrb[20].mxu0 %v25273_v60  ;;  %v18920_v60 = vsub.f32 %v3072_v4, %v3166_v58 }
 0x342   :  { %2880 = vmatprep.mubr.f32.mxu0 %v25274_v38  ;;  %v18922_v38 = vsub.f32 %v3073_v11, %v3169_v45  ;;  %v3425_v11 = vsub.f32 %v25322_v29, %v24353_v39 }
 0x344   :  { %v3426_v45 = vand.u32 4294901760, %v3425_v11 }
 0x345   :  { %2882 = vmatmul.mubr.f32.gmra.mrb[22].mxu0 %v25275_v19  ;;  %v18924_v19 = vsub.f32 %v3074_v63, %v3172_v3  ;;  %v24352_v63 = vand.u32 4294901760, %v18806_v48 }
 0x346   :  { %2888 = vmatprep.mubr.f32.mxu0 %v25276_v46  ;;  %v18926_v46 = vsub.f32 %v3075_v55, %v3175_v57  ;;  %v25323_v55 = vld [vmem:[#allocation26_spill] sm:$0xff] }
 0x347   :  { %v24348_v3 = vand.u32 4294901760, %v25323_v55 }
 0x349   :  { %2890 = vmatmul.mubr.f32.gmra.mrb[24].mxu0 %v25277_v31  ;;  %v18929_v31 = vpack.c.bf16 %v3181_v18, %v3178_v8 }
 0x34a   :  { %2896 = vmatprep.mubr.f32.mxu0 %v25278_v32  ;;  %v3078_v32 = vld [vmem:[#allocation2 + $0xb0] sm:$0xff] }
 0x34b   :  { %25317 = vst [vmem:[#allocation60_spill] sm:$0xff] %v18929_v31  ;;  %14472 = vmatpush1.bf16.msra.mxu1 %v18929_v31 }
 0x34c   :  { %14473 = vmatprep.subr.bf16.mxu1 %v25298_v25 }
 0x34d   :  { %2898 = vmatmul.mubr.f32.gmra.mrb[26].mxu0 %v25279_v1  ;;  %v3079_v1 = vld [vmem:[#allocation2 + $0xb8] sm:$0xff] }
 0x34e   :  { %2904 = vmatprep.mubr.f32.mxu0 %v25280_v33  ;;  %v3184_v33 = vand.u32 4294901760, %v3078_v32 }
 0x351   :  { %2906 = vmatmul.mubr.f32.gmra.mrb[28].mxu0 %v25281_v37  ;;  %v3187_v37 = vand.u32 4294901760, %v3079_v1 }
 0x352   :  { %2912 = vmatprep.mubr.f32.mxu0 %v25282_v12 }
 0x353   :  { %v18933_v12 = vpack.c.bf16 %v3187_v37, %v3184_v33 }
 0x355   :  { %2914 = vmatmul.mubr.f32.gmra.mrb[30].mxu0 %v25283_v53  ;;  %25318 = vst [vmem:[#allocation61_spill] sm:$0xff] %v18933_v12  ;;  %14475 = vmatpush1.bf16.msra.mxu1 %v18933_v12  ;;  %v18936_v53 = vsub.f32 %v3076_v34, %v3178_v8  ;;  %v3432_v34 = vsub.f32 %v18806_v48, %v24352_v63 }
 0x356   :  { %2920 = vmatprep.mubr.f32.mxu0 %v25284_v20  ;;  %v18938_v20 = vsub.f32 %v3077_v10, %v3181_v18  ;;  %14476 = vmatprep.subr.bf16.mxu1 %v25298_v25  ;;  %v3439_v10 = vsub.f32 %v25323_v55, %v24348_v3 }
 0x357   :  { %v3433_v8 = vand.u32 4294901760, %v3432_v34  ;;  %v24336_v34 = vand.u32 4294901760, %v18826_v7 }
 0x358   :  { %v3440_v18 = vand.u32 4294901760, %v3439_v10 }
 0x359   :  { %2922 = vmatmul.mubr.f32.gmra.mrb[32].mxu0 %v25287_v0  ;;  %v18942_v0 = vsub.f32 %v3079_v1, %v3187_v37 }
 0x35a   :  { %2928 = vmatprep.mubr.f32.mxu0 %v25291_v15  ;;  %v18985_v37 = vpack.c.bf16 %v3440_v18, %v3433_v8  ;;  %v3481_v18 = vsub.f32 %v18826_v7, %v24336_v34  ;;  %v24340_v34 = vand.u32 4294901760, %v18920_v60 }
 0x35d   :  { %2930 = vmatmul.mubr.f32.gmra.mrb[34].mxu0 %v25295_v35  ;;  %v24358_v35 = vand.u32 4294901760, %v18788_v59 }
 0x35e   :  { %2936 = vmatprep.mubr.f32.mxu0 %v25296_v9  ;;  %v3397_v9 = vsub.f32 %v18790_v61, %v24357_v56 }
 0x35f   :  { %v3390_v15 = vsub.f32 %v18788_v59, %v24358_v35 }
 0x361   :  { %2938 = vmatmul.mubr.f32.gmra.mrb[36].mxu0 %v25299_v14  ;;  %v3391_v16 = vand.u32 4294901760, %v3390_v15  ;;  %v3398_v14 = vand.u32 4294901760, %v3397_v9 }
 0x362   :  { %2944 = vmatprep.mubr.f32.mxu0 %v25300_v22  ;;  %v24356_v22 = vand.u32 4294901760, %v25319_v21 }
 0x365   :  { %2946 = vmatmul.mubr.f32.gmra.mrb[38].mxu0 %v25302_v36 }
 0x366   :  { %2952 = vmatprep.mubr.f32.mxu0 %v25303_v49  ;;  %v18955_v49 = vpack.c.bf16 %v3398_v14, %v3391_v16 }
 0x369   :  { %2954 = vmatmul.mubr.f32.gmra.mrb[40].mxu0 %v25305_v50  ;;  %v3404_v50 = vsub.f32 %v25319_v21, %v24356_v22 }
 0x36a   :  { %2960 = vmatprep.mubr.f32.mxu0 %v25306_v30 }
 0x36d   :  { %2962 = vmatmul.mubr.f32.gmra.mrb[42].mxu0 %v25308_v28  ;;  %v3405_v28 = vand.u32 4294901760, %v3404_v50  ;;  %v24341_v50 = vand.u32 4294901760, %v18815_v52 }
 0x36e   :  { %2968 = vmatprep.mubr.f32.mxu0 %v25309_v6  ;;  %v18940_v6 = vsub.f32 %v3078_v32, %v3184_v33  ;;  %v25324_v32 = vld [vmem:[#allocation27_spill] sm:$0xff]  ;;  %v24344_v33 = vand.u32 4294901760, %v18813_v47 }
 0x36f   :  { %v24347_v1 = vand.u32 4294901760, %v25324_v32 }
 0x370   :  { %v3453_v9 = vsub.f32 %v18813_v47, %v24344_v33 }
 0x371   :  { %2970 = vmatmul.mubr.f32.gmra.mrb[44].mxu0 %v25311_v5  ;;  %v3446_v15 = vsub.f32 %v25324_v32, %v24347_v1 }
 0x372   :  { %2976 = vmatprep.mubr.f32.mxu0 %v25312_v62  ;;  %v25320_v62 = vld [vmem:[#allocation21_spill] sm:$0xff]  ;;  %v3454_v14 = vand.u32 4294901760, %v3453_v9  ;;  %v3482_v9 = vand.u32 4294901760, %v3481_v18 }
 0x373   :  { %v24355_v36 = vand.u32 4294901760, %v25320_v62  ;;  %v3447_v16 = vand.u32 4294901760, %v3446_v15 }
 0x375   :  { %2978 = vmatmul.mubr.f32.gmra.mrb[46].mxu0 %v25313_v13  ;;  %v3411_v30 = vsub.f32 %v25320_v62, %v24355_v36  ;;  %v25321_v13 = vld [vmem:[#allocation22_spill] sm:$0xff] }
 0x376   :  { %v24354_v41 = vand.u32 4294901760, %v25321_v13 }
 0x377   :  { %v3412_v5 = vand.u32 4294901760, %v3411_v30  ;;  %v24338_v30 = vand.u32 4294901760, %v18821_v44 }
 0x378   :  { %v3418_v4 = vsub.f32 %v25321_v13, %v24354_v41 }
 0x379   :  { %v18965_v24 = vpack.c.bf16 %v3412_v5, %v3405_v28  ;;  %v18995_v28 = vpack.c.bf16 %v3454_v14, %v3447_v16  ;;  %v3460_v5 = vsub.f32 %v18815_v52, %v24341_v50  ;;  %v24337_v16 = vand.u32 4294901760, %v18904_v27 }
 0x37a   :  { %v3419_v58 = vand.u32 4294901760, %v3418_v4  ;;  %v3467_v4 = vsub.f32 %v18821_v44, %v24338_v30  ;;  %v24339_v14 = vand.u32 4294901760, %v18906_v40 }
 0x37b   :  { %v3461_v11 = vand.u32 4294901760, %v3460_v5 }
 0x37c   :  { %v18975_v57 = vpack.c.bf16 %v3426_v45, %v3419_v58  ;;  %v3468_v58 = vand.u32 4294901760, %v3467_v4  ;;  %v24335_v45 = vand.u32 4294901760, %v18823_v51  ;;  %v3488_v4 = vsub.f32 %v18904_v27, %v24337_v16 }
 0x37e   :  { %v19005_v10 = vpack.c.bf16 %v3468_v58, %v3461_v11  ;;  %v3474_v8 = vsub.f32 %v18823_v51, %v24335_v45  ;;  %v3495_v11 = vsub.f32 %v18906_v40, %v24339_v14  ;;  %v3489_v58 = vand.u32 4294901760, %v3488_v4 }
 0x37f   :  { %v24343_v14 = vand.u32 4294901760, %v18924_v19  ;;  %v24345_v4 = vand.u32 4294901760, %v18926_v46 }
 0x380   :  { %v3475_v15 = vand.u32 4294901760, %v3474_v8  ;;  %v3496_v45 = vand.u32 4294901760, %v3495_v11  ;;  %v24342_v8 = vand.u32 4294901760, %v18922_v38 }
 0x382   :  { %v19015_v5 = vpack.c.bf16 %v3482_v9, %v3475_v15  ;;  %v19025_v18 = vpack.c.bf16 %v3496_v45, %v3489_v58  ;;  %v3502_v15 = vsub.f32 %v18920_v60, %v24340_v34  ;;  %v3509_v9 = vsub.f32 %v18922_v38, %v24342_v8 }
 0x383   :  { %v3516_v45 = vsub.f32 %v18924_v19, %v24343_v14  ;;  %v3523_v58 = vsub.f32 %v18926_v46, %v24345_v4  ;;  %v24346_v8 = vand.u32 4294901760, %v18936_v53  ;;  %v24349_v4 = vand.u32 4294901760, %v18940_v6 }
 0x384   :  { %v3503_v16 = vand.u32 4294901760, %v3502_v15  ;;  %v3510_v30 = vand.u32 4294901760, %v3509_v9  ;;  %v24350_v15 = vand.u32 4294901760, %v18938_v20 }
 0x385   :  { %v3517_v34 = vand.u32 4294901760, %v3516_v45  ;;  %v3524_v50 = vand.u32 4294901760, %v3523_v58  ;;  %v24351_v45 = vand.u32 4294901760, %v18942_v0 }
 0x386   :  { %v19035_v11 = vpack.c.bf16 %v3510_v30, %v3503_v16  ;;  %v3530_v30 = vsub.f32 %v18936_v53, %v24346_v8  ;;  %v3537_v16 = vsub.f32 %v18938_v20, %v24350_v15 }
 0x387   :  { %v19045_v9 = vpack.c.bf16 %v3524_v50, %v3517_v34  ;;  %v3544_v50 = vsub.f32 %v18940_v6, %v24349_v4  ;;  %v3551_v34 = vsub.f32 %v18942_v0, %v24351_v45 }
 0x388   :  { %v3531_v14 = vand.u32 4294901760, %v3530_v30  ;;  %v3538_v33 = vand.u32 4294901760, %v3537_v16 }
 0x389   :  { %v3545_v8 = vand.u32 4294901760, %v3544_v50  ;;  %v3552_v1 = vand.u32 4294901760, %v3551_v34 }
 0x38a   :  { %v19055_v58 = vpack.c.bf16 %v3538_v33, %v3531_v14 }
 0x38b   :  { %v19063_v3 = vpack.c.bf16 %v3552_v1, %v3545_v8 }
 0x3ec   :  { %v2795_v4 = vpop.f32.mrb[0].mxu0 }
 0x3ed   :  { %v2797_v15 = vpop.f32.mrb[1].mxu0  ;;  %v2984_v1 = vmax.f32 %v2795_v4, 0.0 }
 0x3ee   :  { %v2985_v63 = vmax.f32 %v2797_v15, 0.0 }
 0x3f0   :  { %v2803_v34 = vpop.f32.mrb[2].mxu0 }
 0x3f1   :  { %v2986_v8 = vmax.f32 %v2803_v34, 0.0  ;;  %v2805_v45 = vpop.f32.mrb[3].mxu0 }
 0x3f2   :  { %v2987_v39 = vmax.f32 %v2805_v45, 0.0 }
 0x3f3   :  { %v3032_v36 = vmax.f32 %v2984_v1, %v2986_v8 }
 0x3f4   :  { %v3033_v22 = vmax.f32 %v2985_v63, %v2987_v39  ;;  %v2811_v56 = vpop.f32.mrb[4].mxu0 }
 0x3f5   :  { %v19077_v35 = vand.u32 4294901760, %v3032_v36  ;;  %v2813_v14 = vpop.f32.mrb[5].mxu0  ;;  %v2988_v1 = vmax.f32 %v2811_v56, 0.0 }
 0x3f6   :  { %v3082_v33 = vsel %vm3080_vm6, %v3033_v22, 0  ;;  %v2989_v41 = vmax.f32 %v2813_v14, 0.0 }
 0x3f7   :  { %v19083_v4 = vsub.f32 %v3032_v36, %v19077_v35  ;;  %v19085_v15 = vand.u32 4294901760, %v3082_v33 }
 0x3f8   :  { %v2819_v45 = vpop.f32.mrb[6].mxu0 }
 0x3f9   :  { %25325 = vst [vmem:[#allocation64_spill] sm:$0xff] %v19083_v4  ;;  %v19088_v34 = vsub.f32 %v3082_v33, %v19085_v15  ;;  %v2990_v39 = vmax.f32 %v2819_v45, 0.0  ;;  %v2821_v63 = vpop.f32.mrb[7].mxu0  ;;  %v19091_v8 = vand.u32 4294901760, %v19083_v4 }
 0x3fa   :  { %v2991_v22 = vmax.f32 %v2821_v63, 0.0 }
 0x3fb   :  { %25326 = vst [vmem:[#allocation65_spill] sm:$0xff] %v19088_v34  ;;  %25327 = vst [vmem:[#allocation68_spill] sm:$0xff] %v19091_v8  ;;  %v3034_v16 = vmax.f32 %v2988_v1, %v2990_v39  ;;  %v19096_v36 = vand.u32 4294901760, %v19088_v34  ;;  %v3214_v33 = vsub.f32 %v19083_v4, %v19091_v8 }
 0x3fc   :  { %v3035_v30 = vmax.f32 %v2989_v41, %v2991_v22  ;;  %v2827_v12 = vpop.f32.mrb[8].mxu0 }
 0x3fd   :  { %25328 = vst [vmem:[#allocation69_spill] sm:$0xff] %v19096_v36  ;;  %v19100_v56 = vand.u32 4294901760, %v3034_v16  ;;  %v2829_v45 = vpop.f32.mrb[9].mxu0  ;;  %v3208_v31 = vsub.f32 %v19088_v34, %v19096_v36  ;;  %v19114_v50 = vand.u32 4294901760, %v3214_v33  ;;  %v2992_v26 = vmax.f32 %v2827_v12, 0.0 }
 0x3fe   :  { %v3085_v14 = vsel %vm3080_vm6, %v3035_v30, 0 }
 0x3ff   :  { %v19108_v1 = vsub.f32 %v3034_v16, %v19100_v56  ;;  %v19110_v39 = vand.u32 4294901760, %v3085_v14  ;;  %v19112_v41 = vand.u32 4294901760, %v3208_v31  ;;  %25331 = vst [vmem:[#allocation76_spill] sm:$0xff] %v19114_v50  ;;  %v2993_v16 = vmax.f32 %v2829_v45, 0.0 }
 0x400   :  { %v2835_v22 = vpop.f32.mrb[10].mxu0 }
 0x401   :  { %25329 = vst [vmem:[#allocation72_spill] sm:$0xff] %v19108_v1  ;;  %25330 = vst [vmem:[#allocation73_spill] sm:$0xff] %v19112_v41  ;;  %v19117_v8 = vsub.f32 %v3085_v14, %v19110_v39  ;;  %v2994_v36 = vmax.f32 %v2835_v22, 0.0  ;;  %v2837_v2 = vpop.f32.mrb[11].mxu0  ;;  %3210 = vmatprep.mubr.f32.mxu1 %v19112_v41  ;;  %v19121_v30 = vand.u32 4294901760, %v19108_v1 }
 0x402   :  { %v2995_v63 = vmax.f32 %v2837_v2, 0.0  ;;  %3216 = vmatmul.mubr.f32.vlgmr.msra.gmra.mrb[0].mxu1 %v19114_v50 }
 0x403   :  { %25332 = vst [vmem:[#allocation77_spill] sm:$0xff] %v19117_v8  ;;  %25333 = vst [vmem:[#allocation79_spill] sm:$0xff] %v19121_v30  ;;  %v3036_v33 = vmax.f32 %v2992_v26, %v2994_v36  ;;  %v19127_v43 = vand.u32 4294901760, %v19117_v8  ;;  %14478 = vmatpush1.bf16.msra.mxu1 %v18955_v49  ;;  %v3229_v22 = vsub.f32 %v19108_v1, %v19121_v30 }
 0x404   :  { %v3037_v12 = vmax.f32 %v2993_v16, %v2995_v63  ;;  %v2843_v14 = vpop.f32.mrb[12].mxu0  ;;  %14479 = vmatprep.subr.bf16.mxu1 %v25298_v25 }
 0x405   :  { %25334 = vst [vmem:[#allocation80_spill] sm:$0xff] %v19127_v43  ;;  %v19133_v45 = vand.u32 4294901760, %v3036_v33  ;;  %v2845_v2 = vpop.f32.mrb[13].mxu0  ;;  %v3223_v50 = vsub.f32 %v19117_v8, %v19127_v43  ;;  %v19148_v41 = vand.u32 4294901760, %v3229_v22 }
 0x406   :  { %v3088_v26 = vsel %vm3080_vm6, %v3037_v12, 0  ;;  %v2996_v12 = vmax.f32 %v2843_v14, 0.0 }
 0x407   :  { %v19141_v49 = vsub.f32 %v3036_v33, %v19133_v45  ;;  %v19143_v63 = vand.u32 4294901760, %v3088_v26  ;;  %v19145_v16 = vand.u32 4294901760, %v3223_v50  ;;  %14481 = vmatpush1.bf16.msra.mxu1 %v18965_v24  ;;  %25337 = vst [vmem:[#allocation15_spill] sm:$0xff] %v19148_v41  ;;  %v2997_v50 = vmax.f32 %v2845_v2, 0.0 }
 0x408   :  { %v2851_v31 = vpop.f32.mrb[14].mxu0  ;;  %14482 = vmatprep.subr.bf16.mxu1 %v25298_v25 }
 0x409   :  { %25335 = vst [vmem:[#allocation83_spill] sm:$0xff] %v19141_v49  ;;  %25336 = vst [vmem:[#allocation13_spill] sm:$0xff] %v19145_v16  ;;  %v19152_v30 = vsub.f32 %v3088_v26, %v19143_v63  ;;  %v2998_v43 = vmax.f32 %v2851_v31, 0.0  ;;  %v2853_v36 = vpop.f32.mrb[15].mxu0  ;;  %3225 = vmatprep.mubr.f32.mxu1 %v19145_v16  ;;  %v19156_v33 = vand.u32 4294901760, %v19141_v49 }
 0x40a   :  { %v2999_v54 = vmax.f32 %v2853_v36, 0.0  ;;  %3231 = vmatmul.mubr.f32.gmra.mrb[2].mxu1 %v19148_v41 }
 0x40b   :  { %25338 = vst [vmem:[#allocation84_spill] sm:$0xff] %v19152_v30  ;;  %25339 = vst [vmem:[#allocation87_spill] sm:$0xff] %v19156_v33  ;;  %v3038_v22 = vmax.f32 %v2996_v12, %v2998_v43  ;;  %v19162_v17 = vand.u32 4294901760, %v19152_v30  ;;  %14484 = vmatpush1.bf16.msra.mxu1 %v18975_v57  ;;  %v3244_v26 = vsub.f32 %v19141_v49, %v19156_v33 }
 0x40c   :  { %v3039_v31 = vmax.f32 %v2997_v50, %v2999_v54  ;;  %v2859_v14 = vpop.f32.mrb[16].mxu0  ;;  %14485 = vmatprep.subr.bf16.mxu1 %v25298_v25 }
 0x40d   :  { %25340 = vst [vmem:[#allocation120_spill] sm:$0xff] %v19162_v17  ;;  %v19168_v2 = vand.u32 4294901760, %v3038_v22  ;;  %v2861_v36 = vpop.f32.mrb[17].mxu0  ;;  %v3238_v41 = vsub.f32 %v19152_v30, %v19162_v17  ;;  %v19181_v50 = vand.u32 4294901760, %v3244_v26  ;;  %v3000_v33 = vmax.f32 %v2859_v14, 0.0 }
 0x40e   :  { %v3091_v43 = vsel %vm3080_vm6, %v3039_v31, 0 }
 0x40f   :  { %v19174_v12 = vsub.f32 %v3038_v22, %v19168_v2  ;;  %v19176_v24 = vand.u32 4294901760, %v3091_v43  ;;  %v19178_v54 = vand.u32 4294901760, %v3238_v41  ;;  %14487 = vmatpush1.bf16.msra.mxu1 %v18985_v37  ;;  %25343 = vst [vmem:[#allocation14_spill] sm:$0xff] %v19181_v50  ;;  %v3001_v41 = vmax.f32 %v2861_v36, 0.0 }
 0x410   :  { %v2867_v57 = vpop.f32.mrb[18].mxu0  ;;  %14488 = vmatprep.subr.bf16.mxu1 %v25298_v25 }
 0x411   :  { %25341 = vst [vmem:[#allocation137_spill] sm:$0xff] %v19174_v12  ;;  %25342 = vst [vmem:[#allocation41_spill] sm:$0xff] %v19178_v54  ;;  %v19185_v16 = vsub.f32 %v3091_v43, %v19176_v24  ;;  %v3002_v17 = vmax.f32 %v2867_v57, 0.0  ;;  %v2869_v31 = vpop.f32.mrb[19].mxu0  ;;  %3240 = vmatprep.mubr.f32.mxu1 %v19178_v54  ;;  %v19189_v22 = vand.u32 4294901760, %v19174_v12 }
 0x412   :  { %v3003_v23 = vmax.f32 %v2869_v31, 0.0  ;;  %3246 = vmatmul.mubr.f32.gmra.mrb[4].mxu1 %v19181_v50 }
 0x413   :  { %25344 = vst [vmem:[#allocation88_spill] sm:$0xff] %v19185_v16  ;;  %25345 = vst [vmem:[#allocation91_spill] sm:$0xff] %v19189_v22  ;;  %v3040_v37 = vmax.f32 %v3000_v33, %v3002_v17  ;;  %v19193_v26 = vand.u32 4294901760, %v19185_v16  ;;  %14490 = vmatpush1.bf16.msra.mxu1 %v18995_v28  ;;  %v3259_v14 = vsub.f32 %v19174_v12, %v19189_v22 }
 0x414   :  { %v3041_v43 = vmax.f32 %v3001_v41, %v3003_v23  ;;  %v2875_v49 = vpop.f32.mrb[20].mxu0  ;;  %14491 = vmatprep.subr.bf16.mxu1 %v25298_v25 }
 0x415   :  { %25346 = vst [vmem:[#allocation92_spill] sm:$0xff] %v19193_v26  ;;  %v19199_v57 = vand.u32 4294901760, %v3040_v37  ;;  %v2877_v54 = vpop.f32.mrb[21].mxu0  ;;  %v3253_v36 = vsub.f32 %v19185_v16, %v19193_v26  ;;  %v19212_v41 = vand.u32 4294901760, %v3259_v14  ;;  %v3004_v22 = vmax.f32 %v2875_v49, 0.0 }
 0x416   :  { %v3094_v17 = vsel %vm3080_vm6, %v3041_v43, 0 }
 0x417   :  { %v19205_v33 = vsub.f32 %v3040_v37, %v19199_v57  ;;  %v19207_v31 = vand.u32 4294901760, %v3094_v17  ;;  %v19209_v23 = vand.u32 4294901760, %v3253_v36  ;;  %14493 = vmatpush1.bf16.msra.mxu1 %v19005_v10  ;;  %25349 = vst [vmem:[#allocation98_spill] sm:$0xff] %v19212_v41  ;;  %v3005_v36 = vmax.f32 %v2877_v54, 0.0 }
 0x418   :  { %v2883_v28 = vpop.f32.mrb[22].mxu0  ;;  %14494 = vmatprep.subr.bf16.mxu1 %v25298_v25 }
 0x419   :  { %25347 = vst [vmem:[#allocation95_spill] sm:$0xff] %v19205_v33  ;;  %25348 = vst [vmem:[#allocation96_spill] sm:$0xff] %v19209_v23  ;;  %v19216_v50 = vsub.f32 %v3094_v17, %v19207_v31  ;;  %v3006_v26 = vmax.f32 %v2883_v28, 0.0  ;;  %v2885_v43 = vpop.f32.mrb[23].mxu0  ;;  %3255 = vmatprep.mubr.f32.mxu1 %v19209_v23  ;;  %v19220_v37 = vand.u32 4294901760, %v19205_v33 }
 0x41a   :  { %v3007_v12 = vmax.f32 %v2885_v43, 0.0  ;;  %3261 = vmatmul.mubr.f32.gmra.mrb[6].mxu1 %v19212_v41 }
 0x41b   :  { %25350 = vst [vmem:[#allocation99_spill] sm:$0xff] %v19216_v50  ;;  %25351 = vst [vmem:[#allocation101_spill] sm:$0xff] %v19220_v37  ;;  %v3042_v10 = vmax.f32 %v3004_v22, %v3006_v26  ;;  %v19224_v14 = vand.u32 4294901760, %v19216_v50  ;;  %14496 = vmatpush1.bf16.msra.mxu1 %v19015_v5  ;;  %v3274_v49 = vsub.f32 %v19205_v33, %v19220_v37 }
 0x41c   :  { %v3043_v17 = vmax.f32 %v3005_v36, %v3007_v12  ;;  %v2891_v16 = vpop.f32.mrb[24].mxu0  ;;  %14497 = vmatprep.subr.bf16.mxu1 %v25298_v25 }
 0x41d   :  { %25352 = vst [vmem:[#allocation102_spill] sm:$0xff] %v19224_v14  ;;  %v19230_v28 = vand.u32 4294901760, %v3042_v10  ;;  %v2893_v23 = vpop.f32.mrb[25].mxu0  ;;  %v3268_v54 = vsub.f32 %v19216_v50, %v19224_v14  ;;  %v19243_v36 = vand.u32 4294901760, %v3274_v49  ;;  %v3008_v37 = vmax.f32 %v2891_v16, 0.0 }
 0x41e   :  { %v3097_v22 = vsel %vm3080_vm6, %v3043_v17, 0 }
 0x41f   :  { %v19236_v26 = vsub.f32 %v3042_v10, %v19230_v28  ;;  %v19238_v43 = vand.u32 4294901760, %v3097_v22  ;;  %v19240_v5 = vand.u32 4294901760, %v3268_v54  ;;  %14499 = vmatpush1.bf16.msra.mxu1 %v19025_v18  ;;  %25355 = vst [vmem:[#allocation108_spill] sm:$0xff] %v19243_v36  ;;  %v3009_v54 = vmax.f32 %v2893_v23, 0.0 }
 0x420   :  { %v2899_v12 = vpop.f32.mrb[26].mxu0  ;;  %14500 = vmatprep.subr.bf16.mxu1 %v25298_v25 }
 0x421   :  { %25353 = vst [vmem:[#allocation104_spill] sm:$0xff] %v19236_v26  ;;  %25354 = vst [vmem:[#allocation105_spill] sm:$0xff] %v19240_v5  ;;  %v19247_v41 = vsub.f32 %v3097_v22, %v19238_v43  ;;  %v3010_v14 = vmax.f32 %v2899_v12, 0.0  ;;  %v2901_v17 = vpop.f32.mrb[27].mxu0  ;;  %3270 = vmatprep.mubr.f32.mxu1 %v19240_v5  ;;  %v19251_v10 = vand.u32 4294901760, %v19236_v26 }
 0x422   :  { %v3011_v33 = vmax.f32 %v2901_v17, 0.0  ;;  %3276 = vmatmul.mubr.f32.gmra.mrb[8].mxu1 %v19243_v36 }
 0x423   :  { %25356 = vst [vmem:[#allocation109_spill] sm:$0xff] %v19247_v41  ;;  %25357 = vst [vmem:[#allocation112_spill] sm:$0xff] %v19251_v10  ;;  %v3044_v18 = vmax.f32 %v3008_v37, %v3010_v14  ;;  %v19255_v49 = vand.u32 4294901760, %v19247_v41  ;;  %14502 = vmatpush1.bf16.msra.mxu1 %v19035_v11  ;;  %v3289_v16 = vsub.f32 %v19236_v26, %v19251_v10 }
 0x424   :  { %v3045_v22 = vmax.f32 %v3009_v54, %v3011_v33  ;;  %v2907_v50 = vpop.f32.mrb[28].mxu0  ;;  %14503 = vmatprep.subr.bf16.mxu1 %v25298_v25 }
 0x425   :  { %25358 = vst [vmem:[#allocation113_spill] sm:$0xff] %v19255_v49  ;;  %v19261_v12 = vand.u32 4294901760, %v3044_v18  ;;  %v2909_v5 = vpop.f32.mrb[29].mxu0  ;;  %v3283_v23 = vsub.f32 %v19247_v41, %v19255_v49  ;;  %v19274_v54 = vand.u32 4294901760, %v3289_v16  ;;  %v3012_v10 = vmax.f32 %v2907_v50, 0.0 }
 0x426   :  { %v3100_v37 = vsel %vm3080_vm6, %v3045_v22, 0 }
 0x427   :  { %v19267_v14 = vsub.f32 %v3044_v18, %v19261_v12  ;;  %v19269_v17 = vand.u32 4294901760, %v3100_v37  ;;  %v19271_v11 = vand.u32 4294901760, %v3283_v23  ;;  %14505 = vmatpush1.bf16.msra.mxu1 %v19045_v9  ;;  %25361 = vst [vmem:[#allocation121_spill] sm:$0xff] %v19274_v54  ;;  %v3013_v23 = vmax.f32 %v2909_v5, 0.0 }
 0x428   :  { %v2915_v33 = vpop.f32.mrb[30].mxu0  ;;  %14506 = vmatprep.subr.bf16.mxu1 %v25298_v25 }
 0x429   :  { %25359 = vst [vmem:[#allocation116_spill] sm:$0xff] %v19267_v14  ;;  %25360 = vst [vmem:[#allocation117_spill] sm:$0xff] %v19271_v11  ;;  %v19278_v36 = vsub.f32 %v3100_v37, %v19269_v17  ;;  %v3014_v49 = vmax.f32 %v2915_v33, 0.0  ;;  %v2917_v22 = vpop.f32.mrb[31].mxu0  ;;  %3285 = vmatprep.mubr.f32.mxu1 %v19271_v11  ;;  %v19282_v18 = vand.u32 4294901760, %v19267_v14 }
 0x42a   :  { %v3015_v26 = vmax.f32 %v2917_v22, 0.0  ;;  %3291 = vmatmul.mubr.f32.gmra.mrb[10].mxu1 %v19274_v54 }
 0x42b   :  { %25362 = vst [vmem:[#allocation124_spill] sm:$0xff] %v19278_v36  ;;  %25363 = vst [vmem:[#allocation125_spill] sm:$0xff] %v19282_v18  ;;  %v3046_v9 = vmax.f32 %v3012_v10, %v3014_v49  ;;  %v19286_v16 = vand.u32 4294901760, %v19278_v36  ;;  %14508 = vmatpush1.bf16.msra.mxu1 %v19055_v58  ;;  %v3304_v50 = vsub.f32 %v19267_v14, %v19282_v18 }
 0x42c   :  { %v3047_v37 = vmax.f32 %v3013_v23, %v3015_v26  ;;  %v2923_v41 = vpop.f32.mrb[32].mxu0  ;;  %14509 = vmatprep.subr.bf16.mxu1 %v25298_v25 }
 0x42d   :  { %25364 = vst [vmem:[#allocation128_spill] sm:$0xff] %v19286_v16  ;;  %v19292_v33 = vand.u32 4294901760, %v3046_v9  ;;  %v2925_v11 = vpop.f32.mrb[33].mxu0  ;;  %v3298_v5 = vsub.f32 %v19278_v36, %v19286_v16  ;;  %v19305_v23 = vand.u32 4294901760, %v3304_v50  ;;  %v3016_v18 = vmax.f32 %v2923_v41, 0.0 }
 0x42e   :  { %v3103_v10 = vsel %vm3080_vm6, %v3047_v37, 0 }
 0x42f   :  { %v19298_v49 = vsub.f32 %v3046_v9, %v19292_v33  ;;  %v19300_v22 = vand.u32 4294901760, %v3103_v10  ;;  %v19302_v58 = vand.u32 4294901760, %v3298_v5  ;;  %14511 = vmatpush1.bf16.msra.mxu1 %v19063_v3  ;;  %25367 = vst [vmem:[#allocation133_spill] sm:$0xff] %v19305_v23  ;;  %v3017_v5 = vmax.f32 %v2925_v11, 0.0 }
 0x430   :  { %v2931_v26 = vpop.f32.mrb[34].mxu0  ;;  %14512 = vmatprep.subr.bf16.mxu1 %v25298_v25 }
 0x431   :  { %25365 = vst [vmem:[#allocation129_spill] sm:$0xff] %v19298_v49  ;;  %25366 = vst [vmem:[#allocation132_spill] sm:$0xff] %v19302_v58  ;;  %v19309_v54 = vsub.f32 %v3103_v10, %v19300_v22  ;;  %v3018_v16 = vmax.f32 %v2931_v26, 0.0  ;;  %v2933_v37 = vpop.f32.mrb[35].mxu0  ;;  %3300 = vmatprep.mubr.f32.mxu1 %v19302_v58  ;;  %v19313_v9 = vand.u32 4294901760, %v19298_v49 }
 0x432   :  { %v3019_v14 = vmax.f32 %v2933_v37, 0.0  ;;  %3306 = vmatmul.mubr.f32.gmra.mrb[12].mxu1 %v19305_v23 }
 0x433   :  { %25368 = vst [vmem:[#allocation136_spill] sm:$0xff] %v19309_v54  ;;  %25369 = vst [vmem:[#allocation140_spill] sm:$0xff] %v19313_v9  ;;  %v3048_v3 = vmax.f32 %v3016_v18, %v3018_v16  ;;  %v19317_v50 = vand.u32 4294901760, %v19309_v54  ;;  %v3319_v41 = vsub.f32 %v19298_v49, %v19313_v9 }
 0x434   :  { %v3049_v36 = vmax.f32 %v3017_v5, %v3019_v14  ;;  %v2939_v30 = vpop.f32.mrb[36].mxu0 }
 0x435   :  { %25370 = vst [vmem:[#allocation50_spill] sm:$0xff] %v19317_v50  ;;  %v19321_v10 = vand.u32 4294901760, %v3048_v3  ;;  %v2941_v26 = vpop.f32.mrb[37].mxu0  ;;  %v3313_v58 = vsub.f32 %v19309_v54, %v19317_v50  ;;  %v19333_v5 = vand.u32 4294901760, %v3319_v41  ;;  %v3020_v9 = vmax.f32 %v2939_v30, 0.0 }
 0x436   :  { %v3106_v11 = vsel %vm3080_vm6, %v3049_v36, 0 }
 0x437   :  { %25371 = vst [vmem:[#allocation52_spill] sm:$0xff] %v19321_v10  ;;  %v19327_v37 = vsub.f32 %v3048_v3, %v19321_v10  ;;  %v19329_v18 = vand.u32 4294901760, %v3106_v11  ;;  %v19331_v16 = vand.u32 4294901760, %v3313_v58  ;;  %25375 = vst [vmem:[#allocation55_spill] sm:$0xff] %v19333_v5  ;;  %v3021_v3 = vmax.f32 %v2941_v26, 0.0 }
 0x438   :  { %v2947_v14 = vpop.f32.mrb[38].mxu0 }
 0x439   :  { %25372 = vst [vmem:[#allocation16_spill] sm:$0xff] %v19327_v37  ;;  %25373 = vst [vmem:[#allocation54_spill] sm:$0xff] %v19329_v18  ;;  %v19336_v23 = vsub.f32 %v3106_v11, %v19329_v18  ;;  %v3022_v49 = vmax.f32 %v2947_v14, 0.0  ;;  %v2949_v42 = vpop.f32.mrb[39].mxu0  ;;  %3315 = vmatprep.mubr.f32.mxu1 %v19331_v16  ;;  %v19340_v36 = vand.u32 4294901760, %v19327_v37 }
 0x43a   :  { %25374 = vst [vmem:[#allocation19_spill] sm:$0xff] %v19331_v16  ;;  %v3023_v50 = vmax.f32 %v2949_v42, 0.0  ;;  %3321 = vmatmul.mubr.f32.gmra.mrb[14].mxu1 %v19333_v5 }
 0x43b   :  { %25376 = vst [vmem:[#allocation58_spill] sm:$0xff] %v19336_v23  ;;  %25377 = vst [vmem:[#allocation23_spill] sm:$0xff] %v19340_v36  ;;  %v3050_v58 = vmax.f32 %v3020_v9, %v3022_v49  ;;  %v19344_v54 = vand.u32 4294901760, %v19336_v23  ;;  %v3334_v30 = vsub.f32 %v19327_v37, %v19340_v36 }
 0x43c   :  { %v3051_v41 = vmax.f32 %v3021_v3, %v3023_v50  ;;  %v2955_v1 = vpop.f32.mrb[40].mxu0 }
 0x43d   :  { %25378 = vst [vmem:[#allocation25_spill] sm:$0xff] %v19344_v54  ;;  %v19348_v11 = vand.u32 4294901760, %v3050_v58  ;;  %v2957_v14 = vpop.f32.mrb[41].mxu0  ;;  %v3328_v16 = vsub.f32 %v19336_v23, %v19344_v54  ;;  %v19360_v3 = vand.u32 4294901760, %v3334_v30  ;;  %v3024_v36 = vmax.f32 %v2955_v1, 0.0 }
 0x43e   :  { %v3109_v26 = vsel %vm3080_vm6, %v3051_v41, 0 }
 0x43f   :  { %25379 = vst [vmem:[#allocation59_spill] sm:$0xff] %v19348_v11  ;;  %v19354_v42 = vsub.f32 %v3050_v58, %v19348_v11  ;;  %v19356_v49 = vand.u32 4294901760, %v3109_v26  ;;  %v19358_v9 = vand.u32 4294901760, %v3328_v16  ;;  %25383 = vst [vmem:[#allocation63_spill] sm:$0xff] %v19360_v3  ;;  %v3025_v58 = vmax.f32 %v2957_v14, 0.0 }
 0x440   :  { %v2963_v50 = vpop.f32.mrb[42].mxu0 }
 0x441   :  { %25380 = vst [vmem:[#allocation62_spill] sm:$0xff] %v19354_v42  ;;  %25381 = vst [vmem:[#allocation29_spill] sm:$0xff] %v19356_v49  ;;  %v19363_v5 = vsub.f32 %v3109_v26, %v19356_v49  ;;  %v3026_v37 = vmax.f32 %v2963_v50, 0.0  ;;  %v2965_v8 = vpop.f32.mrb[43].mxu0  ;;  %3330 = vmatprep.mubr.f32.mxu1 %v19358_v9  ;;  %v19367_v41 = vand.u32 4294901760, %v19354_v42 }
 0x442   :  { %25382 = vst [vmem:[#allocation30_spill] sm:$0xff] %v19358_v9  ;;  %v3027_v54 = vmax.f32 %v2965_v8, 0.0  ;;  %3336 = vmatmul.mubr.f32.gmra.mrb[16].mxu1 %v19360_v3 }
 0x443   :  { %25384 = vst [vmem:[#allocation66_spill] sm:$0xff] %v19363_v5  ;;  %25385 = vst [vmem:[#allocation31_spill] sm:$0xff] %v19367_v41  ;;  %v3052_v16 = vmax.f32 %v3024_v36, %v3026_v37  ;;  %v19371_v23 = vand.u32 4294901760, %v19363_v5  ;;  %v3349_v1 = vsub.f32 %v19354_v42, %v19367_v41 }
 0x444   :  { %v3053_v30 = vmax.f32 %v3025_v58, %v3027_v54  ;;  %v2971_v4 = vpop.f32.mrb[44].mxu0 }
 0x445   :  { %25386 = vst [vmem:[#allocation32_spill] sm:$0xff] %v19371_v23  ;;  %v19375_v26 = vand.u32 4294901760, %v3052_v16  ;;  %v2973_v50 = vpop.f32.mrb[45].mxu0  ;;  %v3343_v9 = vsub.f32 %v19363_v5, %v19371_v23  ;;  %v19387_v58 = vand.u32 4294901760, %v3349_v1  ;;  %v3028_v41 = vmax.f32 %v2971_v4, 0.0 }
 0x446   :  { %v3112_v14 = vsel %vm3080_vm6, %v3053_v30, 0 }
 0x447   :  { %25387 = vst [vmem:[#allocation67_spill] sm:$0xff] %v19375_v26  ;;  %v19381_v8 = vsub.f32 %v3052_v16, %v19375_v26  ;;  %v19383_v37 = vand.u32 4294901760, %v3112_v14  ;;  %v19385_v36 = vand.u32 4294901760, %v3343_v9  ;;  %25391 = vst [vmem:[#allocation71_spill] sm:$0xff] %v19387_v58  ;;  %v3029_v16 = vmax.f32 %v2973_v50, 0.0 }
 0x448   :  { %v2979_v54 = vpop.f32.mrb[46].mxu0 }
 0x449   :  { %25388 = vst [vmem:[#allocation70_spill] sm:$0xff] %v19381_v8  ;;  %25389 = vst [vmem:[#allocation33_spill] sm:$0xff] %v19383_v37  ;;  %v19390_v3 = vsub.f32 %v3112_v14, %v19383_v37  ;;  %v3030_v42 = vmax.f32 %v2979_v54, 0.0  ;;  %v2981_v34 = vpop.f32.mrb[47].mxu0  ;;  %3345 = vmatprep.mubr.f32.mxu1 %v19385_v36  ;;  %v19394_v30 = vand.u32 4294901760, %v19381_v8 }
 0x44a   :  { %25390 = vst [vmem:[#allocation35_spill] sm:$0xff] %v19385_v36  ;;  %v3031_v23 = vmax.f32 %v2981_v34, 0.0  ;;  %3351 = vmatmul.mubr.f32.gmra.mrb[18].mxu1 %v19387_v58  ;;  %v25422_v58 = vld [vmem:[#allocation20_spill] sm:$0xff] }
 0x44b   :  { %25392 = vst [vmem:[#allocation74_spill] sm:$0xff] %v19390_v3  ;;  %25393 = vst [vmem:[#allocation39_spill] sm:$0xff] %v19394_v30  ;;  %v3054_v9 = vmax.f32 %v3028_v41, %v3030_v42  ;;  %v19398_v5 = vand.u32 4294901760, %v19390_v3  ;;  %v3364_v14 = vsub.f32 %v19381_v8, %v19394_v30 }
 0x44c   :  { %v3055_v1 = vmax.f32 %v3029_v16, %v3031_v23 }
 0x44d   :  { %25394 = vst [vmem:[#allocation40_spill] sm:$0xff] %v19398_v5  ;;  %v19402_v4 = vand.u32 4294901760, %v3054_v9  ;;  %v3358_v54 = vsub.f32 %v19390_v3, %v19398_v5  ;;  %v19414_v41 = vand.u32 4294901760, %v3364_v14 }
 0x44e   :  { %v3115_v36 = vsel %vm3080_vm6, %v3055_v1, 0 }
 0x44f   :  { %25395 = vst [vmem:[#allocation75_spill] sm:$0xff] %v19402_v4  ;;  %v19408_v50 = vsub.f32 %v3054_v9, %v19402_v4  ;;  %v19410_v34 = vand.u32 4294901760, %v3115_v36  ;;  %v19412_v42 = vand.u32 4294901760, %v3358_v54  ;;  %25399 = vst [vmem:[#allocation78_spill] sm:$0xff] %v19414_v41 }
 0x451   :  { %25396 = vst [vmem:[#allocation37_spill] sm:$0xff] %v19408_v50  ;;  %25397 = vst [vmem:[#allocation42_spill] sm:$0xff] %v19410_v34  ;;  %v19417_v23 = vsub.f32 %v3115_v36, %v19410_v34  ;;  %3360 = vmatprep.mubr.f32.mxu1 %v19412_v42  ;;  %v19421_v16 = vand.u32 4294901760, %v19408_v50 }
 0x452   :  { %25398 = vst [vmem:[#allocation43_spill] sm:$0xff] %v19412_v42  ;;  %3366 = vmatmul.mubr.f32.gmra.mrb[20].mxu1 %v19414_v41  ;;  %v25405_v41 = vpack.c.bf16 %v18790_v61, %v18788_v59  ;;  %v25420_v42 = vld [vmem:[#allocation77_spill] sm:$0xff] }
 0x453   :  { %25400 = vst [vmem:[#allocation81_spill] sm:$0xff] %v19417_v23  ;;  %25401 = vst [vmem:[#allocation44_spill] sm:$0xff] %v19421_v16  ;;  %v19425_v1 = vand.u32 4294901760, %v19417_v23  ;;  %v3379_v9 = vsub.f32 %v19408_v50, %v19421_v16 }
 0x455   :  { %25402 = vst [vmem:[#allocation45_spill] sm:$0xff] %v19425_v1  ;;  %v3373_v14 = vsub.f32 %v19417_v23, %v19425_v1  ;;  %v19433_v36 = vand.u32 4294901760, %v3379_v9  ;;  %v25406_v9 = vpack.c.bf16 %v25320_v62, %v25319_v21 }
 0x457   :  { %v19431_v54 = vand.u32 4294901760, %v3373_v14  ;;  %25404 = vst [vmem:[#allocation85_spill] sm:$0xff] %v19433_v36  ;;  %v25407_v14 = vpack.c.bf16 %v25322_v29, %v25321_v13 }
 0x459   :  { %25403 = vst [vmem:[#allocation82_spill] sm:$0xff] %v19431_v54  ;;  %3375 = vmatprep.mubr.f32.mxu1 %v19431_v54  ;;  %v25419_v54 = vld [vmem:[#allocation17_spill] sm:$0xff] }
 0x45a   :  { %3381 = vmatmul.mubr.f32.gmra.mrb[22].mxu1 %v19433_v36  ;;  %v25418_v36 = vld [vmem:[#allocation64_spill] sm:$0xff] }
 0x45b   :  { %3571 = vmatprep.mubr.f32.mxu1 %v19085_v15 }
 0x45e   :  { %3573 = vmatmul.mubr.f32.vlgmr.msra.gmra.mrb[0].mxu1 %v19077_v35 }
 0x45f   :  { %14514 = vmatpush1.bf16.msra.mxu1 %v25405_v41  ;;  %3578 = vmatprep.mubr.f32.mxu1 %v19110_v39  ;;  %v25408_v41 = vpack.c.bf16 %v25323_v55, %v18806_v48 }
 0x460   :  { %14515 = vmatprep.subr.bf16.mxu1 %v25298_v25 }
 0x462   :  { %3580 = vmatmul.mubr.f32.gmra.mrb[2].mxu1 %v19100_v56 }
 0x463   :  { %14517 = vmatpush1.bf16.msra.mxu1 %v25406_v9  ;;  %3585 = vmatprep.mubr.f32.mxu1 %v19143_v63  ;;  %v25409_v9 = vpack.c.bf16 %v18813_v47, %v25324_v32 }
 0x464   :  { %14518 = vmatprep.subr.bf16.mxu1 %v25298_v25 }
 0x466   :  { %3587 = vmatmul.mubr.f32.gmra.mrb[4].mxu1 %v19133_v45 }
 0x467   :  { %14520 = vmatpush1.bf16.msra.mxu1 %v25407_v14  ;;  %3592 = vmatprep.mubr.f32.mxu1 %v19176_v24  ;;  %v25410_v14 = vpack.c.bf16 %v18821_v44, %v18815_v52 }
 0x468   :  { %14521 = vmatprep.subr.bf16.mxu1 %v25298_v25 }
 0x46a   :  { %3594 = vmatmul.mubr.f32.gmra.mrb[6].mxu1 %v19168_v2 }
 0x46b   :  { %14523 = vmatpush1.bf16.msra.mxu1 %v25408_v41  ;;  %3599 = vmatprep.mubr.f32.mxu1 %v19207_v31  ;;  %v25411_v41 = vpack.c.bf16 %v18826_v7, %v18823_v51 }
 0x46c   :  { %14524 = vmatprep.subr.bf16.mxu1 %v25298_v25 }
 0x46e   :  { %3601 = vmatmul.mubr.f32.gmra.mrb[8].mxu1 %v19199_v57 }
 0x46f   :  { %14526 = vmatpush1.bf16.msra.mxu1 %v25409_v9  ;;  %3606 = vmatprep.mubr.f32.mxu1 %v19238_v43  ;;  %v25412_v9 = vpack.c.bf16 %v18906_v40, %v18904_v27 }
 0x470   :  { %14527 = vmatprep.subr.bf16.mxu1 %v25298_v25 }
 0x472   :  { %3608 = vmatmul.mubr.f32.gmra.mrb[10].mxu1 %v19230_v28 }
 0x473   :  { %14529 = vmatpush1.bf16.msra.mxu1 %v25410_v14  ;;  %3613 = vmatprep.mubr.f32.mxu1 %v19269_v17  ;;  %v25413_v14 = vpack.c.bf16 %v18922_v38, %v18920_v60 }
 0x474   :  { %14530 = vmatprep.subr.bf16.mxu1 %v25298_v25 }
 0x476   :  { %3615 = vmatmul.mubr.f32.gmra.mrb[12].mxu1 %v19261_v12 }
 0x477   :  { %14532 = vmatpush1.bf16.msra.mxu1 %v25411_v41  ;;  %3620 = vmatprep.mubr.f32.mxu1 %v19300_v22  ;;  %v25414_v41 = vpack.c.bf16 %v18926_v46, %v18924_v19 }
 0x478   :  { %14533 = vmatprep.subr.bf16.mxu1 %v25298_v25 }
 0x47a   :  { %3622 = vmatmul.mubr.f32.gmra.mrb[14].mxu1 %v19292_v33 }
 0x47b   :  { %14535 = vmatpush1.bf16.msra.mxu1 %v25412_v9  ;;  %3627 = vmatprep.mubr.f32.mxu1 %v19329_v18  ;;  %v25415_v9 = vpack.c.bf16 %v18938_v20, %v18936_v53  ;;  %v25444_v18 = vld [vmem:[#allocation66_spill] sm:$0xff] }
 0x47c   :  { %14536 = vmatprep.subr.bf16.mxu1 %v25298_v25 }
 0x47e   :  { %3629 = vmatmul.mubr.f32.gmra.mrb[16].mxu1 %v19321_v10  ;;  %v25441_v10 = vld [vmem:[#allocation58_spill] sm:$0xff] }
 0x47f   :  { %14538 = vmatpush1.bf16.msra.mxu1 %v25413_v14  ;;  %3634 = vmatprep.mubr.f32.mxu1 %v19356_v49  ;;  %v25416_v14 = vpack.c.bf16 %v18942_v0, %v18940_v6  ;;  %v25438_v49 = vld [vmem:[#allocation136_spill] sm:$0xff] }
 0x480   :  { %14539 = vmatprep.subr.bf16.mxu1 %v25298_v25 }
 0x482   :  { %3636 = vmatmul.mubr.f32.gmra.mrb[18].mxu1 %v19348_v11  ;;  %v25435_v11 = vld [vmem:[#allocation124_spill] sm:$0xff] }
 0x483   :  { %14541 = vmatpush1.bf16.msra.mxu1 %v25414_v41  ;;  %3641 = vmatprep.mubr.f32.mxu1 %v19383_v37  ;;  %v25417_v41 = vld [vmem:[#allocation65_spill] sm:$0xff] }
 0x484   :  { %14542 = vmatprep.subr.bf16.mxu1 %v25298_v25  ;;  %v25432_v37 = vld [vmem:[#allocation109_spill] sm:$0xff] }
 0x486   :  { %3643 = vmatmul.mubr.f32.gmra.mrb[20].mxu1 %v19375_v26  ;;  %v25429_v26 = vld [vmem:[#allocation99_spill] sm:$0xff] }
 0x487   :  { %14544 = vmatpush1.bf16.msra.mxu1 %v25415_v9  ;;  %3648 = vmatprep.mubr.f32.mxu1 %v19410_v34  ;;  %v25421_v9 = vld [vmem:[#allocation72_spill] sm:$0xff] }
 0x488   :  { %14545 = vmatprep.subr.bf16.mxu1 %v25298_v25  ;;  %v25426_v34 = vld [vmem:[#allocation88_spill] sm:$0xff] }
 0x48a   :  { %3650 = vmatmul.mubr.f32.gmra.mrb[22].mxu1 %v19402_v4  ;;  %v25423_v4 = vld [vmem:[#allocation84_spill] sm:$0xff] }
 0x48b   :  { %14547 = vmatpush1.bf16.msra.mxu1 %v25416_v14  ;;  %3769 = vmatprep.mubr.f32.mxu1 %v25417_v41  ;;  %v25424_v14 = vld [vmem:[#allocation83_spill] sm:$0xff]  ;;  %v25425_v41 = vld [vmem:[#allocation28_spill] sm:$0xff] }
 0x48c   :  { %14548 = vmatprep.subr.bf16.mxu1 %v25298_v25 }
 0x48e   :  { %3772 = vmatmul.mubr.f32.vlgmr.msra.gmra.mrb[0].mxu1 %v25418_v36  ;;  %v25427_v36 = vld [vmem:[#allocation137_spill] sm:$0xff] }
 0x48f   :  { %14550 = vmatpush1.bf16.msra.mxu1 %v25419_v54  ;;  %3778 = vmatprep.mubr.f32.mxu1 %v25420_v42  ;;  %v25428_v42 = vld [vmem:[#allocation34_spill] sm:$0xff] }
 0x490   :  { %14551 = vmatprep.subr.bf16.mxu1 %v25298_v25 }
 0x492   :  { %3781 = vmatmul.mubr.f32.gmra.mrb[2].mxu1 %v25421_v9  ;;  %v25430_v9 = vld [vmem:[#allocation95_spill] sm:$0xff] }
 0x493   :  { %14553 = vmatpush1.bf16.msra.mxu1 %v25422_v58  ;;  %3787 = vmatprep.mubr.f32.mxu1 %v25423_v4  ;;  %v25431_v4 = vld [vmem:[#allocation36_spill] sm:$0xff] }
 0x494   :  { %14554 = vmatprep.subr.bf16.mxu1 %v25298_v25 }
 0x496   :  { %3790 = vmatmul.mubr.f32.gmra.mrb[4].mxu1 %v25424_v14  ;;  %v25433_v14 = vld [vmem:[#allocation104_spill] sm:$0xff] }
 0x497   :  { %14556 = vmatpush1.bf16.msra.mxu1 %v25425_v41  ;;  %3796 = vmatprep.mubr.f32.mxu1 %v25426_v34  ;;  %v25434_v34 = vld [vmem:[#allocation38_spill] sm:$0xff] }
 0x498   :  { %14557 = vmatprep.subr.bf16.mxu1 %v25298_v25 }
 0x49a   :  { %3799 = vmatmul.mubr.f32.gmra.mrb[6].mxu1 %v25427_v36  ;;  %v25436_v36 = vld [vmem:[#allocation116_spill] sm:$0xff] }
 0x49b   :  { %14559 = vmatpush1.bf16.msra.mxu1 %v25428_v42  ;;  %3805 = vmatprep.mubr.f32.mxu1 %v25429_v26  ;;  %v25437_v26 = vld [vmem:[#allocation51_spill] sm:$0xff] }
 0x49c   :  { %14560 = vmatprep.subr.bf16.mxu1 %v25298_v25 }
 0x49e   :  { %3808 = vmatmul.mubr.f32.gmra.mrb[8].mxu1 %v25430_v9  ;;  %v25439_v9 = vld [vmem:[#allocation129_spill] sm:$0xff] }
 0x49f   :  { %14562 = vmatpush1.bf16.msra.mxu1 %v25431_v4  ;;  %3814 = vmatprep.mubr.f32.mxu1 %v25432_v37  ;;  %v25440_v37 = vld [vmem:[#allocation53_spill] sm:$0xff] }
 0x4a0   :  { %14563 = vmatprep.subr.bf16.mxu1 %v25298_v25 }
 0x4a2   :  { %3817 = vmatmul.mubr.f32.gmra.mrb[10].mxu1 %v25433_v14  ;;  %v25442_v14 = vld [vmem:[#allocation16_spill] sm:$0xff] }
 0x4a3   :  { %14565 = vmatpush1.bf16.msra.mxu1 %v25434_v34  ;;  %3823 = vmatprep.mubr.f32.mxu1 %v25435_v11  ;;  %v25443_v11 = vld [vmem:[#allocation56_spill] sm:$0xff] }
 0x4a4   :  { %14566 = vmatprep.subr.bf16.mxu1 %v25298_v25 }
 0x4a6   :  { %3826 = vmatmul.mubr.f32.gmra.mrb[12].mxu1 %v25436_v36  ;;  %v25445_v36 = vld [vmem:[#allocation62_spill] sm:$0xff] }
 0x4a7   :  { %14568 = vmatpush1.bf16.msra.mxu1 %v25437_v26  ;;  %3832 = vmatprep.mubr.f32.mxu1 %v25438_v49  ;;  %v25446_v49 = vld [vmem:[#allocation57_spill] sm:$0xff] }
 0x4a8   :  { %14569 = vmatprep.subr.bf16.mxu1 %v25298_v25 }
 0x4aa   :  { %3835 = vmatmul.mubr.f32.gmra.mrb[14].mxu1 %v25439_v9 }
 0x4ab   :  { %14571 = vmatpush1.bf16.msra.mxu1 %v25440_v37  ;;  %3841 = vmatprep.mubr.f32.mxu1 %v25441_v10  ;;  %v25447_v10 = vld [vmem:[#allocation60_spill] sm:$0xff] }
 0x4ac   :  { %14572 = vmatprep.subr.bf16.mxu1 %v25298_v25 }
 0x4ae   :  { %3844 = vmatmul.mubr.f32.gmra.mrb[16].mxu1 %v25442_v14  ;;  %v25449_v14 = vld [vmem:[#allocation69_spill] sm:$0xff] }
 0x4af   :  { %14574 = vmatpush1.bf16.msra.mxu1 %v25443_v11  ;;  %3850 = vmatprep.mubr.f32.mxu1 %v25444_v18  ;;  %v25448_v18 = vld [vmem:[#allocation61_spill] sm:$0xff] }
 0x4b0   :  { %14575 = vmatprep.subr.bf16.mxu1 %v25298_v25 }
 0x4b2   :  { %3853 = vmatmul.mubr.f32.gmra.mrb[18].mxu1 %v25445_v36  ;;  %v25450_v36 = vand.u32 4294901760, %v18788_v59  ;;  %v25457_v59 = vld [vmem:[#allocation120_spill] sm:$0xff] }
 0x4b3   :  { %14577 = vmatpush1.bf16.msra.mxu1 %v25446_v49  ;;  %3859 = vmatprep.mubr.f32.mxu1 %v19390_v3  ;;  %v25451_v3 = vand.u32 4294901760, %v18790_v61  ;;  %v25458_v61 = vand.u32 4294901760, %v25321_v13  ;;  %v25465_v13 = vld [vmem:[#allocation102_spill] sm:$0xff] }
 0x4b4   :  { %14578 = vmatprep.subr.bf16.mxu1 %v25298_v25 }
 0x4b5   :  { %v14585_v9 = vpack.c.bf16 %v25451_v3, %v25450_v36  ;;  %v25459_v3 = vand.u32 4294901760, %v25322_v29  ;;  %v25466_v29 = vand.u32 4294901760, %v25324_v32  ;;  %v25473_v32 = vld [vmem:[#allocation128_spill] sm:$0xff] }
 0x4b6   :  { %3862 = vmatmul.mubr.f32.gmra.mrb[20].mxu1 %v19381_v8  ;;  %v25452_v8 = vld [vmem:[#allocation68_spill] sm:$0xff] }
 0x4b7   :  { %14580 = vmatpush1.bf16.msra.mxu1 %v25447_v10  ;;  %3868 = vmatprep.mubr.f32.mxu1 %v19417_v23  ;;  %v25453_v10 = vld [vmem:[#allocation80_spill] sm:$0xff]  ;;  %v25454_v23 = vand.u32 4294901760, %v25319_v21  ;;  %v14591_v36 = vpack.c.bf16 %v25459_v3, %v25458_v61  ;;  %v25467_v61 = vand.u32 4294901760, %v18813_v47  ;;  %v25474_v47 = vand.u32 4294901760, %v18823_v51  ;;  %v25481_v51 = vld [vmem:[#allocation25_spill] sm:$0xff] }
 0x4b8   :  { %14581 = vmatprep.subr.bf16.mxu1 %v25298_v25  ;;  %v25461_v21 = vld [vmem:[#allocation92_spill] sm:$0xff] }
 0x4b9   :  { %v14597_v3 = vpack.c.bf16 %v25467_v61, %v25466_v29  ;;  %v25475_v29 = vand.u32 4294901760, %v18826_v7  ;;  %v25482_v7 = vand.u32 4294901760, %v18920_v60  ;;  %v25489_v60 = vand.u32 4294901760, %v18936_v53  ;;  %v25493_v53 = vld [vmem:[#allocation54_spill] sm:$0xff] }
 0x4ba   :  { %3871 = vmatmul.mubr.f32.gmra.mrb[22].mxu1 %v19408_v50  ;;  %v25455_v50 = vand.u32 4294901760, %v25320_v62  ;;  %v25462_v62 = vand.u32 4294901760, %v18806_v48  ;;  %v25469_v48 = vld [vmem:[#allocation113_spill] sm:$0xff] }
 0x4bb   :  { %14583 = vmatpush1.bf16.msra.mxu1 %v25448_v18  ;;  %3967 = vmatprep.mubr.f32.mxu1 %v25449_v14  ;;  %v25456_v14 = vld [vmem:[#allocation79_spill] sm:$0xff]  ;;  %v14603_v61 = vpack.c.bf16 %v25475_v29, %v25474_v47  ;;  %v25483_v47 = vand.u32 4294901760, %v18922_v38  ;;  %v25490_v38 = vand.u32 4294901760, %v18938_v20  ;;  %v25494_v20 = vld [vmem:[#allocation52_spill] sm:$0xff] }
 0x4bc   :  { %14584 = vmatprep.subr.bf16.mxu1 %v25298_v25  ;;  %v14588_v49 = vpack.c.bf16 %v25455_v50, %v25454_v23  ;;  %v25463_v50 = vand.u32 4294901760, %v25323_v55  ;;  %v25470_v55 = vand.u32 4294901760, %v18815_v52  ;;  %v25477_v52 = vld [vmem:[#allocation50_spill] sm:$0xff] }
 0x4bd   :  { %v14609_v29 = vpack.c.bf16 %v25483_v47, %v25482_v7  ;;  %v14615_v7 = vpack.c.bf16 %v25490_v38, %v25489_v60 }
 0x4be   :  { %3971 = vmatmul.mubr.f32.vlgmr.msra.gmra.mrb[0].mxu1 %v25452_v8  ;;  %v14594_v23 = vpack.c.bf16 %v25463_v50, %v25462_v62  ;;  %v25471_v62 = vand.u32 4294901760, %v18821_v44  ;;  %v25478_v44 = vand.u32 4294901760, %v18904_v27  ;;  %v25485_v27 = vld [vmem:[#allocation32_spill] sm:$0xff] }
 0x4bf   :  { %14586 = vmatpush1.bf16.msra.mxu1 %v14585_v9  ;;  %3978 = vmatprep.mubr.f32.mxu1 %v25453_v10  ;;  %v25460_v9 = vld [vmem:[#allocation87_spill] sm:$0xff] }
 0x4c0   :  { %14587 = vmatprep.subr.bf16.mxu1 %v25298_v25  ;;  %v14600_v50 = vpack.c.bf16 %v25471_v62, %v25470_v55  ;;  %v25479_v55 = vand.u32 4294901760, %v18906_v40  ;;  %v25486_v40 = vand.u32 4294901760, %v18924_v19  ;;  %v25491_v19 = vand.u32 4294901760, %v18940_v6  ;;  %v25495_v6 = vld [vmem:[#allocation29_spill] sm:$0xff] }
 0x4c2   :  { %3982 = vmatmul.mubr.f32.gmra.mrb[2].mxu1 %v25456_v14  ;;  %v14606_v62 = vpack.c.bf16 %v25479_v55, %v25478_v44  ;;  %v25487_v44 = vand.u32 4294901760, %v18926_v46  ;;  %v25492_v46 = vand.u32 4294901760, %v18942_v0  ;;  %v25496_v0 = vld [vmem:[#allocation59_spill] sm:$0xff] }
 0x4c3   :  { %14589 = vmatpush1.bf16.msra.mxu1 %v14588_v49  ;;  %3989 = vmatprep.mubr.f32.mxu1 %v25457_v59  ;;  %v25464_v49 = vld [vmem:[#allocation91_spill] sm:$0xff] }
 0x4c4   :  { %14590 = vmatprep.subr.bf16.mxu1 %v25298_v25  ;;  %v14612_v55 = vpack.c.bf16 %v25487_v44, %v25486_v40  ;;  %v14618_v47 = vpack.c.bf16 %v25492_v46, %v25491_v19  ;;  %v19694_v40 = vld [vmem:[#allocation4 + $0x18] sm:$0xff]  ;;  %v25502_v44 = vld [vmem:[#allocation75_spill] sm:$0xff]  ;;  %v19710_v19 = vld [vmem:[#allocation4 + $0x28] sm:$0xff] }
 0x4c5   :  { %v24501_v38 = vand.u32 4294901760, %v19694_v40  ;;  %v25515_v10 = vand.u32 4294901760, %v19694_v40 }
 0x4c6   :  { %3993 = vmatmul.mubr.f32.gmra.mrb[4].mxu1 %v25460_v9 }
 0x4c7   :  { %14592 = vmatpush1.bf16.msra.mxu1 %v14591_v36  ;;  %4000 = vmatprep.mubr.f32.mxu1 %v25461_v21  ;;  %v25468_v36 = vld [vmem:[#allocation101_spill] sm:$0xff] }
 0x4c8   :  { %14593 = vmatprep.subr.bf16.mxu1 %v25298_v25 }
 0x4ca   :  { %4004 = vmatmul.mubr.f32.gmra.mrb[6].mxu1 %v25464_v49 }
 0x4cb   :  { %14595 = vmatpush1.bf16.msra.mxu1 %v14594_v23  ;;  %4011 = vmatprep.mubr.f32.mxu1 %v25465_v13  ;;  %v25472_v23 = vld [vmem:[#allocation112_spill] sm:$0xff] }
 0x4cc   :  { %14596 = vmatprep.subr.bf16.mxu1 %v25298_v25  ;;  %v19822_v13 = vld [vmem:[#allocation4 + $0x98] sm:$0xff] }
 0x4ce   :  { %4015 = vmatmul.mubr.f32.gmra.mrb[8].mxu1 %v25468_v36  ;;  %v19820_v36 = vld [vmem:[#allocation4 + $0x90] sm:$0xff] }
 0x4cf   :  { %14598 = vmatpush1.bf16.msra.mxu1 %v14597_v3  ;;  %4022 = vmatprep.mubr.f32.mxu1 %v25469_v48  ;;  %v25476_v3 = vld [vmem:[#allocation125_spill] sm:$0xff] }
 0x4d0   :  { %14599 = vmatprep.subr.bf16.mxu1 %v25298_v25 }
 0x4d2   :  { %4026 = vmatmul.mubr.f32.gmra.mrb[10].mxu1 %v25472_v23  ;;  %v19806_v23 = vld [vmem:[#allocation4 + $0x88] sm:$0xff] }
 0x4d3   :  { %14601 = vmatpush1.bf16.msra.mxu1 %v14600_v50  ;;  %4033 = vmatprep.mubr.f32.mxu1 %v25473_v32  ;;  %v25480_v50 = vld [vmem:[#allocation140_spill] sm:$0xff]  ;;  %v19804_v32 = vld [vmem:[#allocation4 + $0x80] sm:$0xff]  ;;  %v24521_v48 = vand.u32 4294901760, %v19806_v23 }
 0x4d4   :  { %14602 = vmatprep.subr.bf16.mxu1 %v25298_v25 }
 0x4d6   :  { %4037 = vmatmul.mubr.f32.gmra.mrb[12].mxu1 %v25476_v3 }
 0x4d7   :  { %14604 = vmatpush1.bf16.msra.mxu1 %v14603_v61  ;;  %4044 = vmatprep.mubr.f32.mxu1 %v25477_v52  ;;  %v25484_v61 = vld [vmem:[#allocation23_spill] sm:$0xff]  ;;  %v19790_v52 = vld [vmem:[#allocation4 + $0x78] sm:$0xff] }
 0x4d8   :  { %14605 = vmatprep.subr.bf16.mxu1 %v25298_v25  ;;  %v24519_v3 = vand.u32 4294901760, %v19790_v52 }
 0x4da   :  { %4048 = vmatmul.mubr.f32.gmra.mrb[14].mxu1 %v25480_v50  ;;  %v19788_v50 = vld [vmem:[#allocation4 + $0x70] sm:$0xff] }
 0x4db   :  { %14607 = vmatpush1.bf16.msra.mxu1 %v14606_v62  ;;  %4055 = vmatprep.mubr.f32.mxu1 %v25481_v51  ;;  %v25488_v62 = vld [vmem:[#allocation31_spill] sm:$0xff] }
 0x4dc   :  { %14608 = vmatprep.subr.bf16.mxu1 %v25298_v25 }
 0x4de   :  { %4059 = vmatmul.mubr.f32.gmra.mrb[16].mxu1 %v25484_v61  ;;  %v19774_v61 = vld [vmem:[#allocation4 + $0x68] sm:$0xff] }
 0x4df   :  { %14610 = vmatpush1.bf16.msra.mxu1 %v14609_v29  ;;  %4066 = vmatprep.mubr.f32.mxu1 %v25485_v27  ;;  %v19692_v29 = vld [vmem:[#allocation4 + $0x10] sm:$0xff]  ;;  %v19772_v27 = vld [vmem:[#allocation4 + $0x60] sm:$0xff]  ;;  %v24517_v51 = vand.u32 4294901760, %v19774_v61 }
 0x4e0   :  { %14611 = vmatprep.subr.bf16.mxu1 %v25298_v25  ;;  %v24502_v60 = vand.u32 4294901760, %v19692_v29  ;;  %v25514_v59 = vand.u32 4294901760, %v19692_v29 }
 0x4e2   :  { %4070 = vmatmul.mubr.f32.gmra.mrb[18].mxu1 %v25488_v62  ;;  %v19853_v14 = vsub.f32 %v19692_v29, %v25514_v59  ;;  %v25516_v59 = vand.u32 4294901760, %v19822_v13 }
 0x4e3   :  { %14613 = vmatpush1.bf16.msra.mxu1 %v14612_v55  ;;  %4077 = vmatprep.mubr.f32.mxu1 %v19398_v5  ;;  %v19758_v5 = vld [vmem:[#allocation4 + $0x58] sm:$0xff] }
 0x4e4   :  { %14614 = vmatprep.subr.bf16.mxu1 %v25298_v25  ;;  %v24515_v62 = vand.u32 4294901760, %v19758_v5 }
 0x4e6   :  { %4081 = vmatmul.mubr.f32.gmra.mrb[20].mxu1 %v19394_v30  ;;  %v19756_v30 = vld [vmem:[#allocation4 + $0x50] sm:$0xff] }
 0x4e7   :  { %14616 = vmatpush1.bf16.msra.mxu1 %v14615_v7  ;;  %4088 = vmatprep.mubr.f32.mxu1 %v19425_v1  ;;  %v19708_v7 = vld [vmem:[#allocation4 + $0x20] sm:$0xff] }
 0x4e8   :  { %14617 = vmatprep.subr.bf16.mxu1 %v25298_v25  ;;  %v24507_v46 = vand.u32 4294901760, %v19708_v7 }
 0x4ea   :  { %4092 = vmatmul.mubr.f32.gmra.mrb[22].mxu1 %v19421_v16  ;;  %v19742_v16 = vld [vmem:[#allocation4 + $0x48] sm:$0xff] }
 0x4eb   :  { %14619 = vmatpush1.bf16.msra.mxu1 %v14618_v47  ;;  %4234 = vmatprep.mubr.f32.mxu1 %v19085_v15  ;;  %v24506_v47 = vand.u32 4294901760, %v19710_v19  ;;  %v24513_v1 = vand.u32 4294901760, %v19742_v16 }
 0x4ec   :  { %14620 = vmatprep.subr.bf16.mxu1 %v25298_v25 }
 0x4ee   :  { %4236 = vmatmul.mubr.f32.vlgmr.msra.gmra.mrb[0].mxu1 %v19077_v35 }
 0x4ef   :  { %14622 = vmatpush1.bf16.msra.mxu1 %v25419_v54  ;;  %4241 = vmatprep.mubr.f32.mxu1 %v19110_v39 }
 0x4f0   :  { %14623 = vmatprep.subr.bf16.mxu1 %v25298_v25 }
 0x4f2   :  { %4243 = vmatmul.mubr.f32.gmra.mrb[2].mxu1 %v19100_v56 }
 0x4f3   :  { %14625 = vmatpush1.bf16.msra.mxu1 %v25422_v58  ;;  %4248 = vmatprep.mubr.f32.mxu1 %v19143_v63  ;;  %v25498_v58 = vld [vmem:[#allocation33_spill] sm:$0xff] }
 0x4f4   :  { %14626 = vmatprep.subr.bf16.mxu1 %v25298_v25 }
 0x4f6   :  { %4250 = vmatmul.mubr.f32.gmra.mrb[4].mxu1 %v19133_v45 }
 0x4f7   :  { %14628 = vmatpush1.bf16.msra.mxu1 %v25425_v41  ;;  %4255 = vmatprep.mubr.f32.mxu1 %v19176_v24 }
 0x4f8   :  { %14629 = vmatprep.subr.bf16.mxu1 %v25298_v25 }
 0x4fa   :  { %4257 = vmatmul.mubr.f32.gmra.mrb[6].mxu1 %v19168_v2 }
 0x4fb   :  { %14631 = vmatpush1.bf16.msra.mxu1 %v25428_v42  ;;  %4262 = vmatprep.mubr.f32.mxu1 %v19207_v31  ;;  %v25500_v42 = vld [vmem:[#allocation60_spill] sm:$0xff] }
 0x4fc   :  { %14632 = vmatprep.subr.bf16.mxu1 %v25298_v25 }
 0x4fe   :  { %4264 = vmatmul.mubr.f32.gmra.mrb[8].mxu1 %v19199_v57 }
 0x4ff   :  { %14634 = vmatpush1.bf16.msra.mxu1 %v25431_v4  ;;  %4269 = vmatprep.mubr.f32.mxu1 %v19238_v43  ;;  %v19684_v4 = vld [vmem:[#allocation4 + $0x8] sm:$0xff] }
 0x500   :  { %14635 = vmatprep.subr.bf16.mxu1 %v25298_v25  ;;  %v24503_v41 = vand.u32 4294901760, %v19684_v4  ;;  %v25512_v9 = vand.u32 4294901760, %v19684_v4 }
 0x502   :  { %4271 = vmatmul.mubr.f32.gmra.mrb[10].mxu1 %v19230_v28 }
 0x503   :  { %14637 = vmatpush1.bf16.msra.mxu1 %v25434_v34  ;;  %4276 = vmatprep.mubr.f32.mxu1 %v19269_v17  ;;  %v25499_v34 = vld [vmem:[#allocation67_spill] sm:$0xff] }
 0x504   :  { %14638 = vmatprep.subr.bf16.mxu1 %v25298_v25 }
 0x506   :  { %4278 = vmatmul.mubr.f32.gmra.mrb[12].mxu1 %v19261_v12 }
 0x507   :  { %14640 = vmatpush1.bf16.msra.mxu1 %v25437_v26  ;;  %4283 = vmatprep.mubr.f32.mxu1 %v19300_v22  ;;  %v25497_v26 = vld [vmem:[#allocation57_spill] sm:$0xff] }
 0x508   :  { %14641 = vmatprep.subr.bf16.mxu1 %v25298_v25 }
 0x50a   :  { %4285 = vmatmul.mubr.f32.gmra.mrb[14].mxu1 %v19292_v33 }
 0x50b   :  { %14643 = vmatpush1.bf16.msra.mxu1 %v25440_v37  ;;  %4290 = vmatprep.mubr.f32.mxu1 %v25493_v53  ;;  %v19682_v37 = vld [vmem:[#allocation4] sm:$0xff] }
 0x50c   :  { %14644 = vmatprep.subr.bf16.mxu1 %v25298_v25  ;;  %v24504_v54 = vand.u32 4294901760, %v19682_v37  ;;  %v25511_v49 = vand.u32 4294901760, %v19682_v37 }
 0x50e   :  { %4292 = vmatmul.mubr.f32.gmra.mrb[16].mxu1 %v25494_v20  ;;  %v19703_v55 = vpack.c.bf16 %v24503_v41, %v24504_v54  ;;  %v19740_v54 = vld [vmem:[#allocation4 + $0x40] sm:$0xff]  ;;  %v19827_v21 = vsub.f32 %v19682_v37, %v25511_v49  ;;  %v24525_v49 = vand.u32 4294901760, %v19820_v36  ;;  %v25518_v37 = vand.u32 4294901760, %v19708_v7 }
 0x50f   :  { %14646 = vmatpush1.bf16.msra.mxu1 %v25443_v11  ;;  %4297 = vmatprep.mubr.f32.mxu1 %v25495_v6  ;;  %v25501_v11 = vld [vmem:[#allocation42_spill] sm:$0xff] }
 0x510   :  { %14647 = vmatprep.subr.bf16.mxu1 %v25298_v25  ;;  %25503 = vst [vmem:[#allocation46_spill] sm:$0xff] %v19703_v55  ;;  %v19869_v29 = vpack.c.bf16 %v25516_v59, %v24525_v49  ;;  %v25519_v59 = vand.u32 4294901760, %v19827_v21 }
 0x512   :  { %4299 = vmatmul.mubr.f32.gmra.mrb[18].mxu1 %v25496_v0  ;;  %25517 = vst [vmem:[#allocation100_spill] sm:$0xff] %v19869_v29  ;;  %v4788_v49 = vsub.f32 %v19827_v21, %v25519_v59 }
 0x513   :  { %14649 = vmatpush1.bf16.msra.mxu1 %v25497_v26  ;;  %4304 = vmatprep.mubr.f32.mxu1 %v25498_v58  ;;  %v19724_v26 = vld [vmem:[#allocation4 + $0x30] sm:$0xff] }
 0x514   :  { %14650 = vmatprep.subr.bf16.mxu1 %v25298_v25 }
 0x516   :  { %4306 = vmatmul.mubr.f32.gmra.mrb[20].mxu1 %v25499_v34 }
 0x517   :  { %14652 = vmatpush1.bf16.msra.mxu1 %v25500_v42  ;;  %4311 = vmatprep.mubr.f32.mxu1 %v25501_v11  ;;  %v19726_v42 = vld [vmem:[#allocation4 + $0x38] sm:$0xff] }
 0x518   :  { %14653 = vmatprep.subr.bf16.mxu1 %v25298_v25  ;;  %v24511_v41 = vand.u32 4294901760, %v19726_v42 }
 0x51a   :  { %4313 = vmatmul.mubr.f32.gmra.mrb[22].mxu1 %v25502_v44 }
 0x51b   :  { %14655 = vmatpush1.bf16.msra.mxu1 %v25448_v18  ;;  %4407 = vmatprep.mubr.f32.mxu1 %v19085_v15  ;;  %v19719_v18 = vpack.c.bf16 %v24501_v38, %v24502_v60  ;;  %v19735_v38 = vpack.c.bf16 %v24506_v47, %v24507_v46  ;;  %v24512_v60 = vand.u32 4294901760, %v19724_v26  ;;  %v24514_v46 = vand.u32 4294901760, %v19740_v54 }
 0x51c   :  { %14656 = vmatprep.subr.bf16.mxu1 %v25298_v25 }
 0x51d   :  { %25504 = vst [vmem:[#allocation86_spill] sm:$0xff] %v19719_v18  ;;  %25505 = vst [vmem:[#allocation89_spill] sm:$0xff] %v19735_v38  ;;  %v19751_v47 = vpack.c.bf16 %v24511_v41, %v24512_v60  ;;  %v19767_v41 = vpack.c.bf16 %v24513_v1, %v24514_v46  ;;  %v24516_v60 = vand.u32 4294901760, %v19756_v30  ;;  %v24518_v46 = vand.u32 4294901760, %v19772_v27 }
 0x51e   :  { %4409 = vmatmul.mubr.f32.vlgmr.msra.gmra.mrb[0].mxu1 %v19077_v35 }
 0x51f   :  { %14658 = vmatpush1.bf16.msra.mxu1 %v19703_v55  ;;  %4414 = vmatprep.mubr.f32.mxu1 %v19110_v39  ;;  %25506 = vst [vmem:[#allocation90_spill] sm:$0xff] %v19751_v47  ;;  %25507 = vst [vmem:[#allocation93_spill] sm:$0xff] %v19767_v41  ;;  %v19783_v1 = vpack.c.bf16 %v24515_v62, %v24516_v60  ;;  %v19799_v62 = vpack.c.bf16 %v24517_v51, %v24518_v46  ;;  %v24520_v60 = vand.u32 4294901760, %v19788_v50 }
 0x520   :  { %14659 = vmatprep.subr.bf16.mxu1 %v25298_v25  ;;  %v24522_v46 = vand.u32 4294901760, %v19804_v32 }
 0x521   :  { %25508 = vst [vmem:[#allocation94_spill] sm:$0xff] %v19783_v1  ;;  %25509 = vst [vmem:[#allocation47_spill] sm:$0xff] %v19799_v62  ;;  %v19815_v51 = vpack.c.bf16 %v24519_v3, %v24520_v60  ;;  %v19832_v3 = vsub.f32 %v19684_v4, %v25512_v9  ;;  %v19846_v9 = vld [vmem:[#allocation4 + $0xa0] sm:$0xff]  ;;  %v19848_v4 = vld [vmem:[#allocation4 + $0xa8] sm:$0xff] }
 0x522   :  { %4416 = vmatmul.mubr.f32.gmra.mrb[2].mxu1 %v19100_v56  ;;  %v19841_v60 = vpack.c.bf16 %v24521_v48, %v24522_v46  ;;  %v19858_v48 = vsub.f32 %v19694_v40, %v25515_v10  ;;  %v19874_v40 = vld [vmem:[#allocation4 + $0xb0] sm:$0xff]  ;;  %v19876_v46 = vld [vmem:[#allocation4 + $0xb8] sm:$0xff] }
 0x523   :  { %14661 = vmatpush1.bf16.msra.mxu1 %v19719_v18  ;;  %4421 = vmatprep.mubr.f32.mxu1 %v19143_v63  ;;  %25510 = vst [vmem:[#allocation97_spill] sm:$0xff] %v19815_v51  ;;  %v25520_v8 = vand.u32 4294901760, %v19832_v3 }
 0x524   :  { %14662 = vmatprep.subr.bf16.mxu1 %v25298_v25  ;;  %25513 = vst [vmem:[#allocation48_spill] sm:$0xff] %v19841_v60 }
 0x525   :  { %v4795_v10 = vsub.f32 %v19832_v3, %v25520_v8 }
 0x526   :  { %4423 = vmatmul.mubr.f32.gmra.mrb[4].mxu1 %v19133_v45 }
 0x527   :  { %14664 = vmatpush1.bf16.msra.mxu1 %v19735_v38  ;;  %4428 = vmatprep.mubr.f32.mxu1 %v19176_v24 }
 0x528   :  { %14665 = vmatprep.subr.bf16.mxu1 %v25298_v25 }
 0x52a   :  { %4430 = vmatmul.mubr.f32.gmra.mrb[6].mxu1 %v19168_v2 }
 0x52b   :  { %14667 = vmatpush1.bf16.msra.mxu1 %v19751_v47  ;;  %4435 = vmatprep.mubr.f32.mxu1 %v19207_v31  ;;  %v25526_v47 = vand.u32 4294901760, %v19853_v14 }
 0x52c   :  { %14668 = vmatprep.subr.bf16.mxu1 %v25298_v25 }
 0x52e   :  { %4437 = vmatmul.mubr.f32.gmra.mrb[8].mxu1 %v19199_v57 }
 0x52f   :  { %14670 = vmatpush1.bf16.msra.mxu1 %v19767_v41  ;;  %4442 = vmatprep.mubr.f32.mxu1 %v19238_v43 }
 0x530   :  { %14671 = vmatprep.subr.bf16.mxu1 %v25298_v25 }
 0x532   :  { %4444 = vmatmul.mubr.f32.gmra.mrb[10].mxu1 %v19230_v28 }
 0x533   :  { %14673 = vmatpush1.bf16.msra.mxu1 %v19783_v1  ;;  %4449 = vmatprep.mubr.f32.mxu1 %v19269_v17  ;;  %v25521_v1 = vand.u32 4294901760, %v19710_v19 }
 0x534   :  { %14674 = vmatprep.subr.bf16.mxu1 %v25298_v25 }
 0x535   :  { %v19895_v41 = vsub.f32 %v19710_v19, %v25521_v1  ;;  %v4789_v19 = vand.u32 4294901760, %v4788_v49 }
 0x536   :  { %4451 = vmatmul.mubr.f32.gmra.mrb[12].mxu1 %v19261_v12 }
 0x537   :  { %14676 = vmatpush1.bf16.msra.mxu1 %v19799_v62  ;;  %4456 = vmatprep.mubr.f32.mxu1 %v19300_v22  ;;  %v25525_v62 = vand.u32 4294901760, %v19724_v26 }
 0x538   :  { %14677 = vmatprep.subr.bf16.mxu1 %v25298_v25 }
 0x539   :  { %v19911_v1 = vsub.f32 %v19724_v26, %v25525_v62  ;;  %v25529_v62 = vand.u32 4294901760, %v19874_v40  ;;  %v25530_v26 = vand.u32 4294901760, %v19876_v46 }
 0x53a   :  { %4458 = vmatmul.mubr.f32.gmra.mrb[14].mxu1 %v19292_v33 }
 0x53b   :  { %14679 = vmatpush1.bf16.msra.mxu1 %v19815_v51  ;;  %4463 = vmatprep.mubr.f32.mxu1 %v25493_v53  ;;  %v25528_v51 = vand.u32 4294901760, %v19726_v42  ;;  %v19931_v49 = vpack.c.bf16 %v25530_v26, %v25529_v62 }
 0x53c   :  { %14680 = vmatprep.subr.bf16.mxu1 %v25298_v25 }
 0x53d   :  { %v19923_v38 = vsub.f32 %v19726_v42, %v25528_v51  ;;  %25531 = vst [vmem:[#allocation103_spill] sm:$0xff] %v19931_v49  ;;  %v25533_v42 = vand.u32 4294901760, %v19742_v16 }
 0x53e   :  { %4465 = vmatmul.mubr.f32.gmra.mrb[16].mxu1 %v25494_v20 }
 0x53f   :  { %14682 = vmatpush1.bf16.msra.mxu1 %v19841_v60  ;;  %4470 = vmatprep.mubr.f32.mxu1 %v25495_v6  ;;  %v19881_v60 = vsub.f32 %v19708_v7, %v25518_v37  ;;  %v25522_v7 = vand.u32 4294901760, %v19846_v9  ;;  %v25523_v37 = vand.u32 4294901760, %v19848_v4 }
 0x540   :  { %14683 = vmatprep.subr.bf16.mxu1 %v25298_v25 }
 0x541   :  { %v19903_v59 = vpack.c.bf16 %v25523_v37, %v25522_v7  ;;  %v4802_v7 = vsub.f32 %v19853_v14, %v25526_v47  ;;  %v25527_v37 = vand.u32 4294901760, %v19858_v48  ;;  %v24546_v47 = vand.u32 4294901760, %v19881_v60 }
 0x542   :  { %4472 = vmatmul.mubr.f32.gmra.mrb[18].mxu1 %v25496_v0 }
 0x543   :  { %14685 = vmatpush1.bf16.msra.mxu1 %v19869_v29  ;;  %4477 = vmatprep.mubr.f32.mxu1 %v25498_v58  ;;  %25524 = vst [vmem:[#allocation49_spill] sm:$0xff] %v19903_v59  ;;  %v4796_v29 = vand.u32 4294901760, %v4795_v10  ;;  %v4809_v8 = vsub.f32 %v19858_v48, %v25527_v37  ;;  %v25532_v37 = vand.u32 4294901760, %v19740_v54  ;;  %v4803_v26 = vand.u32 4294901760, %v4802_v7  ;;  %v25534_v10 = vld [vmem:[#allocation73_spill] sm:$0xff] }
 0x544   :  { %14686 = vmatprep.subr.bf16.mxu1 %v25298_v25  ;;  %v4816_v55 = vsub.f32 %v19881_v60, %v24546_v47 }
 0x545   :  { %v19939_v51 = vsub.f32 %v19740_v54, %v25532_v37  ;;  %v14693_v62 = vpack.c.bf16 %v4796_v29, %v4789_v19  ;;  %v4810_v18 = vand.u32 4294901760, %v4809_v8  ;;  %v25535_v54 = vand.u32 4294901760, %v19895_v41 }
 0x546   :  { %4479 = vmatmul.mubr.f32.gmra.mrb[20].mxu1 %v25499_v34  ;;  %v25536_v29 = vand.u32 4294901760, %v19756_v30  ;;  %v25537_v19 = vand.u32 4294901760, %v19758_v5 }
 0x547   :  { %14688 = vmatpush1.bf16.msra.mxu1 %v19903_v59  ;;  %4484 = vmatprep.mubr.f32.mxu1 %v25501_v11  ;;  %v19944_v59 = vsub.f32 %v19742_v16, %v25533_v42  ;;  %v4823_v37 = vsub.f32 %v19895_v41, %v25535_v54  ;;  %v14696_v47 = vpack.c.bf16 %v4810_v18, %v4803_v26  ;;  %v24551_v54 = vand.u32 4294901760, %v19939_v51  ;;  %v25539_v42 = vld [vmem:[#allocation13_spill] sm:$0xff] }
 0x548   :  { %14689 = vmatprep.subr.bf16.mxu1 %v25298_v25  ;;  %v19961_v8 = vsub.f32 %v19756_v30, %v25536_v29  ;;  %v19966_v7 = vsub.f32 %v19758_v5, %v25537_v19  ;;  %v25540_v30 = vand.u32 4294901760, %v19911_v1  ;;  %v25541_v11 = vand.u32 4294901760, %v19923_v38 }
 0x549   :  { %v24552_v16 = vand.u32 4294901760, %v19944_v59  ;;  %v25542_v18 = vand.u32 4294901760, %v19772_v27  ;;  %v25544_v19 = vand.u32 4294901760, %v19774_v61 }
 0x54a   :  { %4486 = vmatmul.mubr.f32.gmra.mrb[22].mxu1 %v25502_v44  ;;  %v4824_v44 = vand.u32 4294901760, %v4823_v37  ;;  %v4830_v29 = vsub.f32 %v19911_v1, %v25540_v30  ;;  %v4837_v5 = vsub.f32 %v19923_v38, %v25541_v11 }
 0x54b   :  { %14691 = vmatpush1.bf16.msra.mxu1 %v19931_v49  ;;  %4608 = vmatprep.mubr.f32.mxu1 %v25534_v10  ;;  %v25538_v10 = vld [vmem:[#allocation76_spill] sm:$0xff]  ;;  %v4817_v49 = vand.u32 4294901760, %v4816_v55  ;;  %v19982_v26 = vsub.f32 %v19772_v27, %v25542_v18  ;;  %v4844_v55 = vsub.f32 %v19939_v51, %v24551_v54  ;;  %v4851_v37 = vsub.f32 %v19944_v59, %v24552_v16  ;;  %v25545_v27 = vld [vmem:[#allocation41_spill] sm:$0xff] }
 0x54c   :  { %14692 = vmatprep.subr.bf16.mxu1 %v25298_v25  ;;  %v4831_v18 = vand.u32 4294901760, %v4830_v29  ;;  %v25546_v54 = vand.u32 4294901760, %v19788_v50 }
 0x54d   :  { %v14699_v30 = vpack.c.bf16 %v4824_v44, %v4817_v49  ;;  %v4845_v11 = vand.u32 4294901760, %v4844_v55  ;;  %v4852_v34 = vand.u32 4294901760, %v4851_v37  ;;  %v25550_v49 = vand.u32 4294901760, %v19790_v52 }
 0x54e   :  { %4614 = vmatmul.mubr.f32.vlgmr.msra.gmra.mrb[24].mxu1 %v25538_v10  ;;  %v19996_v10 = vsub.f32 %v19774_v61, %v25544_v19  ;;  %v20003_v16 = vsub.f32 %v19788_v50, %v25546_v54  ;;  %v25548_v61 = vand.u32 4294901760, %v19961_v8  ;;  %v25549_v19 = vand.u32 4294901760, %v19966_v7  ;;  %v25551_v50 = vld [vmem:[#allocation96_spill] sm:$0xff] }
 0x54f   :  { %14694 = vmatpush1.bf16.msra.mxu1 %v14693_v62  ;;  %4623 = vmatprep.mubr.f32.mxu1 %v25539_v42  ;;  %v25543_v62 = vld [vmem:[#allocation15_spill] sm:$0xff]  ;;  %v25547_v42 = vld [vmem:[#allocation14_spill] sm:$0xff]  ;;  %v20015_v29 = vsub.f32 %v19790_v52, %v25550_v49  ;;  %v25552_v37 = vand.u32 4294901760, %v19804_v32 }
 0x550   :  { %14695 = vmatprep.subr.bf16.mxu1 %v25298_v25  ;;  %v4865_v44 = vsub.f32 %v19966_v7, %v25549_v19  ;;  %v24554_v55 = vand.u32 4294901760, %v19996_v10  ;;  %v25555_v19 = vld [vmem:[#allocation105_spill] sm:$0xff] }
 0x552   :  { %4629 = vmatmul.mubr.f32.gmra.mrb[26].mxu1 %v25543_v62  ;;  %v4838_v62 = vand.u32 4294901760, %v4837_v5  ;;  %v24555_v5 = vand.u32 4294901760, %v19982_v26 }
 0x553   :  { %14697 = vmatpush1.bf16.msra.mxu1 %v14696_v47  ;;  %4638 = vmatprep.mubr.f32.mxu1 %v25545_v27  ;;  %v4858_v47 = vsub.f32 %v19961_v8, %v25548_v61  ;;  %v25553_v27 = vand.u32 4294901760, %v19806_v23  ;;  %v14705_v61 = vpack.c.bf16 %v4852_v34, %v4845_v11  ;;  %v25556_v34 = vand.u32 4294901760, %v19820_v36 }
 0x554   :  { %14698 = vmatprep.subr.bf16.mxu1 %v25298_v25  ;;  %v14702_v54 = vpack.c.bf16 %v4838_v62, %v4831_v18  ;;  %v4866_v62 = vand.u32 4294901760, %v4865_v44  ;;  %v4872_v49 = vsub.f32 %v19982_v26, %v24555_v5 }
 0x555   :  { %v20029_v52 = vsub.f32 %v19806_v23, %v25553_v27  ;;  %v4859_v18 = vand.u32 4294901760, %v4858_v47  ;;  %v24556_v23 = vand.u32 4294901760, %v20015_v29  ;;  %v20045_v11 = vsub.f32 %v19820_v36, %v25556_v34 }
 0x556   :  { %4644 = vmatmul.mubr.f32.gmra.mrb[28].mxu1 %v25547_v42  ;;  %v20024_v42 = vsub.f32 %v19804_v32, %v25552_v37  ;;  %v4879_v32 = vsub.f32 %v19996_v10, %v24554_v55  ;;  %v25557_v47 = vand.u32 4294901760, %v19822_v13  ;;  %v4873_v55 = vand.u32 4294901760, %v4872_v49 }
 0x557   :  { %14700 = vmatpush1.bf16.msra.mxu1 %v14699_v30  ;;  %4653 = vmatprep.mubr.f32.mxu1 %v25551_v50  ;;  %v25554_v30 = vld [vmem:[#allocation98_spill] sm:$0xff]  ;;  %v24559_v50 = vand.u32 4294901760, %v20003_v16  ;;  %v14708_v37 = vpack.c.bf16 %v4866_v62, %v4859_v18  ;;  %v25560_v18 = vand.u32 4294901760, %v19846_v9 }
 0x558   :  { %14701 = vmatprep.subr.bf16.mxu1 %v25298_v25  ;;  %v20050_v44 = vsub.f32 %v19822_v13, %v25557_v47  ;;  %v24557_v27 = vand.u32 4294901760, %v20024_v42  ;;  %v4880_v5 = vand.u32 4294901760, %v4879_v32  ;;  %v4893_v13 = vsub.f32 %v20015_v29, %v24556_v23 }
 0x559   :  { %v4886_v36 = vsub.f32 %v20003_v16, %v24559_v50  ;;  %v20066_v62 = vsub.f32 %v19846_v9, %v25560_v18  ;;  %v25563_v9 = vld [vmem:[#allocation132_spill] sm:$0xff]  ;;  %v25565_v50 = vld [vmem:[#allocation133_spill] sm:$0xff] }
 0x55a   :  { %4659 = vmatmul.mubr.f32.gmra.mrb[30].mxu1 %v25554_v30  ;;  %v24558_v30 = vand.u32 4294901760, %v20029_v52  ;;  %v4900_v49 = vsub.f32 %v20024_v42, %v24557_v27  ;;  %v14711_v18 = vpack.c.bf16 %v4880_v5, %v4873_v55  ;;  %v4894_v23 = vand.u32 4294901760, %v4893_v13 }
 0x55b   :  { %14703 = vmatpush1.bf16.msra.mxu1 %v14702_v54  ;;  %4668 = vmatprep.mubr.f32.mxu1 %v25555_v19  ;;  %v25558_v54 = vld [vmem:[#allocation108_spill] sm:$0xff]  ;;  %v25559_v19 = vld [vmem:[#allocation117_spill] sm:$0xff]  ;;  %v25564_v27 = vand.u32 4294901760, %v19874_v40  ;;  %v25568_v55 = vand.u32 4294901760, %v19876_v46 }
 0x55c   :  { %14704 = vmatprep.subr.bf16.mxu1 %v25298_v25  ;;  %v4907_v32 = vsub.f32 %v20029_v52, %v24558_v30  ;;  %v4901_v47 = vand.u32 4294901760, %v4900_v49  ;;  %v25570_v49 = vld [vmem:[#allocation55_spill] sm:$0xff] }
 0x55d   :  { %v20087_v30 = vsub.f32 %v19874_v40, %v25564_v27  ;;  %v25569_v40 = vld [vmem:[#allocation19_spill] sm:$0xff] }
 0x55e   :  { %4674 = vmatmul.mubr.f32.gmra.mrb[32].mxu1 %v25558_v54  ;;  %v25562_v54 = vand.u32 4294901760, %v19848_v4  ;;  %v4908_v34 = vand.u32 4294901760, %v4907_v32 }
 0x55f   :  { %14706 = vmatpush1.bf16.msra.mxu1 %v14705_v61  ;;  %4683 = vmatprep.mubr.f32.mxu1 %v25559_v19  ;;  %v25561_v61 = vld [vmem:[#allocation121_spill] sm:$0xff] }
 0x560   :  { %14707 = vmatprep.subr.bf16.mxu1 %v25298_v25  ;;  %v20080_v19 = vsub.f32 %v19848_v4, %v25562_v54  ;;  %v25566_v4 = vand.u32 4294901760, %v20045_v11  ;;  %v25567_v54 = vand.u32 4294901760, %v20050_v44  ;;  %v14717_v32 = vpack.c.bf16 %v4908_v34, %v4901_v47  ;;  %v25572_v34 = vld [vmem:[#allocation63_spill] sm:$0xff] }
 0x562   :  { %4689 = vmatmul.mubr.f32.gmra.mrb[34].mxu1 %v25561_v61  ;;  %v4887_v61 = vand.u32 4294901760, %v4886_v36  ;;  %v4921_v5 = vsub.f32 %v20050_v44, %v25567_v54  ;;  %v20099_v36 = vsub.f32 %v19876_v46, %v25568_v55  ;;  %v24562_v13 = vand.u32 4294901760, %v20080_v19  ;;  %v25571_v54 = vld [vmem:[#allocation30_spill] sm:$0xff] }
 0x563   :  { %14709 = vmatpush1.bf16.msra.mxu1 %v14708_v37  ;;  %4698 = vmatprep.mubr.f32.mxu1 %v25563_v9  ;;  %v4914_v37 = vsub.f32 %v20045_v11, %v25566_v4 }
 0x564   :  { %14710 = vmatprep.subr.bf16.mxu1 %v25298_v25  ;;  %v14714_v27 = vpack.c.bf16 %v4894_v23, %v4887_v61  ;;  %v4922_v4 = vand.u32 4294901760, %v4921_v5  ;;  %v4935_v23 = vsub.f32 %v20080_v19, %v24562_v13  ;;  %v24560_v61 = vand.u32 4294901760, %v20099_v36  ;;  %v25606_v13 = vld [vmem:[#allocation58_spill] sm:$0xff] }
 0x565   :  { %v4915_v9 = vand.u32 4294901760, %v4914_v37  ;;  %v25573_v37 = vld [vmem:[#allocation35_spill] sm:$0xff] }
 0x566   :  { %4704 = vmatmul.mubr.f32.gmra.mrb[36].mxu1 %v25565_v50  ;;  %v24563_v50 = vand.u32 4294901760, %v20066_v62  ;;  %v4936_v55 = vand.u32 4294901760, %v4935_v23  ;;  %v25577_v23 = vld [vmem:[#allocation82_spill] sm:$0xff] }
 0x567   :  { %14712 = vmatpush1.bf16.msra.mxu1 %v14711_v18  ;;  %4713 = vmatprep.mubr.f32.mxu1 %v25569_v40  ;;  %v24561_v18 = vand.u32 4294901760, %v20087_v30  ;;  %v14720_v47 = vpack.c.bf16 %v4922_v4, %v4915_v9 }
 0x568   :  { %14713 = vmatprep.subr.bf16.mxu1 %v25298_v25  ;;  %v4928_v46 = vsub.f32 %v20066_v62, %v24563_v50  ;;  %v25609_v50 = vld [vmem:[#allocation66_spill] sm:$0xff] }
 0x569   :  { %v4942_v40 = vsub.f32 %v20087_v30, %v24561_v18  ;;  %v25603_v18 = vld [vmem:[#allocation136_spill] sm:$0xff] }
 0x56a   :  { %4719 = vmatmul.mubr.f32.gmra.mrb[38].mxu1 %v25570_v49  ;;  %v4929_v5 = vand.u32 4294901760, %v4928_v46  ;;  %v25574_v49 = vld [vmem:[#allocation71_spill] sm:$0xff]  ;;  %v25576_v46 = vld [vmem:[#allocation78_spill] sm:$0xff] }
 0x56b   :  { %14715 = vmatpush1.bf16.msra.mxu1 %v14714_v27  ;;  %4728 = vmatprep.mubr.f32.mxu1 %v25571_v54  ;;  %v4949_v27 = vsub.f32 %v20099_v36, %v24560_v61  ;;  %v25575_v54 = vld [vmem:[#allocation43_spill] sm:$0xff]  ;;  %v4943_v9 = vand.u32 4294901760, %v4942_v40  ;;  %v14738_v40 = vpack.c.bf16 %v19923_v38, %v19911_v1  ;;  %v25600_v61 = vld [vmem:[#allocation124_spill] sm:$0xff] }
 0x56c   :  { %14716 = vmatprep.subr.bf16.mxu1 %v25298_v25 }
 0x56d   :  { %v4950_v4 = vand.u32 4294901760, %v4949_v27  ;;  %v14741_v27 = vpack.c.bf16 %v19944_v59, %v19939_v51 }
 0x56e   :  { %4734 = vmatmul.mubr.f32.gmra.mrb[40].mxu1 %v25572_v34 }
 0x56f   :  { %14718 = vmatpush1.bf16.msra.mxu1 %v14717_v32  ;;  %4743 = vmatprep.mubr.f32.mxu1 %v25573_v37  ;;  %v14723_v32 = vpack.c.bf16 %v4936_v55, %v4929_v5  ;;  %v14726_v34 = vpack.c.bf16 %v4950_v4, %v4943_v9  ;;  %v25578_v37 = vld [vmem:[#allocation85_spill] sm:$0xff]  ;;  %v14732_v5 = vpack.c.bf16 %v19858_v48, %v19853_v14 }
 0x570   :  { %14719 = vmatprep.subr.bf16.mxu1 %v25298_v25  ;;  %v14735_v55 = vpack.c.bf16 %v19895_v41, %v19881_v60  ;;  %v14753_v9 = vpack.c.bf16 %v20029_v52, %v20024_v42  ;;  %v14756_v4 = vpack.c.bf16 %v20050_v44, %v20045_v11 }
 0x572   :  { %4749 = vmatmul.mubr.f32.gmra.mrb[42].mxu1 %v25574_v49  ;;  %v14744_v49 = vpack.c.bf16 %v19966_v7, %v19961_v8 }
 0x573   :  { %14721 = vmatpush1.bf16.msra.mxu1 %v14720_v47  ;;  %4758 = vmatprep.mubr.f32.mxu1 %v25575_v54  ;;  %v14729_v47 = vpack.c.bf16 %v19832_v3, %v19827_v21  ;;  %v14747_v54 = vpack.c.bf16 %v19996_v10, %v19982_v26 }
 0x574   :  { %14722 = vmatprep.subr.bf16.mxu1 %v25298_v25 }
 0x576   :  { %4764 = vmatmul.mubr.f32.gmra.mrb[44].mxu1 %v25576_v46  ;;  %v14759_v46 = vpack.c.bf16 %v20080_v19, %v20066_v62 }
 0x577   :  { %14724 = vmatpush1.bf16.msra.mxu1 %v14723_v32  ;;  %4773 = vmatprep.mubr.f32.mxu1 %v25577_v23  ;;  %v14750_v32 = vpack.c.bf16 %v20015_v29, %v20003_v16  ;;  %v25579_v23 = vld [vmem:[#allocation67_spill] sm:$0xff] }
 0x578   :  { %14725 = vmatprep.subr.bf16.mxu1 %v25298_v25 }
 0x57a   :  { %4779 = vmatmul.mubr.f32.gmra.mrb[46].mxu1 %v25578_v37  ;;  %v14762_v37 = vpack.c.bf16 %v20099_v36, %v20087_v30 }
 0x57b   :  { %14727 = vmatpush1.bf16.msra.mxu1 %v14726_v34  ;;  %4969 = vmatprep.mubr.f32.mxu1 %v19085_v15  ;;  %v25580_v34 = vld [vmem:[#allocation42_spill] sm:$0xff] }
 0x57c   :  { %14728 = vmatprep.subr.bf16.mxu1 %v25298_v25 }
 0x57e   :  { %4971 = vmatmul.mubr.f32.vlgmr.msra.gmra.mrb[24].mxu1 %v19077_v35 }
 0x57f   :  { %14730 = vmatpush1.bf16.msra.mxu1 %v14729_v47  ;;  %4976 = vmatprep.mubr.f32.mxu1 %v19110_v39  ;;  %v25581_v47 = vld [vmem:[#allocation75_spill] sm:$0xff] }
 0x580   :  { %14731 = vmatprep.subr.bf16.mxu1 %v25298_v25 }
 0x582   :  { %4978 = vmatmul.mubr.f32.gmra.mrb[26].mxu1 %v19100_v56 }
 0x583   :  { %14733 = vmatpush1.bf16.msra.mxu1 %v14732_v5  ;;  %4983 = vmatprep.mubr.f32.mxu1 %v19143_v63  ;;  %v25582_v5 = vld [vmem:[#allocation65_spill] sm:$0xff] }
 0x584   :  { %14734 = vmatprep.subr.bf16.mxu1 %v25298_v25 }
 0x586   :  { %4985 = vmatmul.mubr.f32.gmra.mrb[28].mxu1 %v19133_v45 }
 0x587   :  { %14736 = vmatpush1.bf16.msra.mxu1 %v14735_v55  ;;  %4990 = vmatprep.mubr.f32.mxu1 %v19176_v24  ;;  %v25583_v55 = vld [vmem:[#allocation64_spill] sm:$0xff] }
 0x588   :  { %14737 = vmatprep.subr.bf16.mxu1 %v25298_v25 }
 0x58a   :  { %4992 = vmatmul.mubr.f32.gmra.mrb[30].mxu1 %v19168_v2 }
 0x58b   :  { %14739 = vmatpush1.bf16.msra.mxu1 %v14738_v40  ;;  %4997 = vmatprep.mubr.f32.mxu1 %v19207_v31  ;;  %v25584_v40 = vld [vmem:[#allocation46_spill] sm:$0xff] }
 0x58c   :  { %14740 = vmatprep.subr.bf16.mxu1 %v25298_v25 }
 0x58e   :  { %4999 = vmatmul.mubr.f32.gmra.mrb[32].mxu1 %v19199_v57 }
 0x58f   :  { %14742 = vmatpush1.bf16.msra.mxu1 %v14741_v27  ;;  %5004 = vmatprep.mubr.f32.mxu1 %v19238_v43  ;;  %v25585_v27 = vld [vmem:[#allocation77_spill] sm:$0xff] }
 0x590   :  { %14743 = vmatprep.subr.bf16.mxu1 %v25298_v25 }
 0x592   :  { %5006 = vmatmul.mubr.f32.gmra.mrb[34].mxu1 %v19230_v28 }
 0x593   :  { %14745 = vmatpush1.bf16.msra.mxu1 %v14744_v49  ;;  %5011 = vmatprep.mubr.f32.mxu1 %v19269_v17  ;;  %v25586_v49 = vld [vmem:[#allocation72_spill] sm:$0xff] }
 0x594   :  { %14746 = vmatprep.subr.bf16.mxu1 %v25298_v25 }
 0x596   :  { %5013 = vmatmul.mubr.f32.gmra.mrb[36].mxu1 %v19261_v12 }
 0x597   :  { %14748 = vmatpush1.bf16.msra.mxu1 %v14747_v54  ;;  %5018 = vmatprep.mubr.f32.mxu1 %v19300_v22  ;;  %v25587_v54 = vld [vmem:[#allocation86_spill] sm:$0xff] }
 0x598   :  { %14749 = vmatprep.subr.bf16.mxu1 %v25298_v25 }
 0x59a   :  { %5020 = vmatmul.mubr.f32.gmra.mrb[38].mxu1 %v19292_v33 }
 0x59b   :  { %14751 = vmatpush1.bf16.msra.mxu1 %v14750_v32  ;;  %5025 = vmatprep.mubr.f32.mxu1 %v25493_v53  ;;  %v25588_v32 = vld [vmem:[#allocation84_spill] sm:$0xff] }
 0x59c   :  { %14752 = vmatprep.subr.bf16.mxu1 %v25298_v25 }
 0x59e   :  { %5027 = vmatmul.mubr.f32.gmra.mrb[40].mxu1 %v25494_v20 }
 0x59f   :  { %14754 = vmatpush1.bf16.msra.mxu1 %v14753_v9  ;;  %5032 = vmatprep.mubr.f32.mxu1 %v25495_v6  ;;  %v25589_v9 = vld [vmem:[#allocation83_spill] sm:$0xff] }
 0x5a0   :  { %14755 = vmatprep.subr.bf16.mxu1 %v25298_v25 }
 0x5a2   :  { %5034 = vmatmul.mubr.f32.gmra.mrb[42].mxu1 %v25496_v0 }
 0x5a3   :  { %14757 = vmatpush1.bf16.msra.mxu1 %v14756_v4  ;;  %5039 = vmatprep.mubr.f32.mxu1 %v25498_v58  ;;  %v25590_v4 = vld [vmem:[#allocation89_spill] sm:$0xff] }
 0x5a4   :  { %14758 = vmatprep.subr.bf16.mxu1 %v25298_v25 }
 0x5a6   :  { %5041 = vmatmul.mubr.f32.gmra.mrb[44].mxu1 %v25579_v23  ;;  %v25618_v23 = vld [vmem:[#allocation69_spill] sm:$0xff] }
 0x5a7   :  { %14760 = vmatpush1.bf16.msra.mxu1 %v14759_v46  ;;  %5046 = vmatprep.mubr.f32.mxu1 %v25580_v34  ;;  %v25591_v46 = vld [vmem:[#allocation88_spill] sm:$0xff]  ;;  %v25615_v34 = vld [vmem:[#allocation81_spill] sm:$0xff] }
 0x5a8   :  { %14761 = vmatprep.subr.bf16.mxu1 %v25298_v25 }
 0x5aa   :  { %5048 = vmatmul.mubr.f32.gmra.mrb[46].mxu1 %v25581_v47  ;;  %v25612_v47 = vld [vmem:[#allocation74_spill] sm:$0xff] }
 0x5ab   :  { %14763 = vmatpush1.bf16.msra.mxu1 %v14762_v37  ;;  %5167 = vmatprep.mubr.f32.mxu1 %v25582_v5  ;;  %v25592_v37 = vld [vmem:[#allocation137_spill] sm:$0xff]  ;;  %v25593_v5 = vld [vmem:[#allocation90_spill] sm:$0xff] }
 0x5ac   :  { %14764 = vmatprep.subr.bf16.mxu1 %v25298_v25 }
 0x5ae   :  { %5170 = vmatmul.mubr.f32.vlgmr.msra.gmra.mrb[24].mxu1 %v25583_v55  ;;  %v25594_v55 = vld [vmem:[#allocation99_spill] sm:$0xff] }
 0x5af   :  { %14766 = vmatpush1.bf16.msra.mxu1 %v25584_v40  ;;  %5176 = vmatprep.mubr.f32.mxu1 %v25585_v27  ;;  %v25595_v27 = vld [vmem:[#allocation95_spill] sm:$0xff] }
 0x5b0   :  { %14767 = vmatprep.subr.bf16.mxu1 %v25298_v25 }
 0x5b2   :  { %5179 = vmatmul.mubr.f32.gmra.mrb[26].mxu1 %v25586_v49  ;;  %v25596_v49 = vld [vmem:[#allocation93_spill] sm:$0xff] }
 0x5b3   :  { %14769 = vmatpush1.bf16.msra.mxu1 %v25587_v54  ;;  %5185 = vmatprep.mubr.f32.mxu1 %v25588_v32  ;;  %v25597_v32 = vld [vmem:[#allocation109_spill] sm:$0xff] }
 0x5b4   :  { %14770 = vmatprep.subr.bf16.mxu1 %v25298_v25 }
 0x5b6   :  { %5188 = vmatmul.mubr.f32.gmra.mrb[28].mxu1 %v25589_v9  ;;  %v25598_v9 = vld [vmem:[#allocation104_spill] sm:$0xff] }
 0x5b7   :  { %14772 = vmatpush1.bf16.msra.mxu1 %v25590_v4  ;;  %5194 = vmatprep.mubr.f32.mxu1 %v25591_v46  ;;  %v25599_v46 = vld [vmem:[#allocation94_spill] sm:$0xff] }
 0x5b8   :  { %14773 = vmatprep.subr.bf16.mxu1 %v25298_v25 }
 0x5ba   :  { %5197 = vmatmul.mubr.f32.gmra.mrb[30].mxu1 %v25592_v37  ;;  %v25601_v37 = vld [vmem:[#allocation116_spill] sm:$0xff] }
 0x5bb   :  { %14775 = vmatpush1.bf16.msra.mxu1 %v25593_v5  ;;  %5203 = vmatprep.mubr.f32.mxu1 %v25594_v55  ;;  %v25602_v55 = vld [vmem:[#allocation47_spill] sm:$0xff] }
 0x5bc   :  { %14776 = vmatprep.subr.bf16.mxu1 %v25298_v25 }
 0x5be   :  { %5206 = vmatmul.mubr.f32.gmra.mrb[32].mxu1 %v25595_v27  ;;  %v25604_v27 = vld [vmem:[#allocation129_spill] sm:$0xff] }
 0x5bf   :  { %14778 = vmatpush1.bf16.msra.mxu1 %v25596_v49  ;;  %5212 = vmatprep.mubr.f32.mxu1 %v25597_v32  ;;  %v25605_v32 = vld [vmem:[#allocation97_spill] sm:$0xff] }
 0x5c0   :  { %14779 = vmatprep.subr.bf16.mxu1 %v25298_v25 }
 0x5c2   :  { %5215 = vmatmul.mubr.f32.gmra.mrb[34].mxu1 %v25598_v9  ;;  %v25607_v9 = vld [vmem:[#allocation16_spill] sm:$0xff] }
 0x5c3   :  { %14781 = vmatpush1.bf16.msra.mxu1 %v25599_v46  ;;  %5221 = vmatprep.mubr.f32.mxu1 %v25600_v61  ;;  %v25608_v61 = vld [vmem:[#allocation48_spill] sm:$0xff] }
 0x5c4   :  { %14782 = vmatprep.subr.bf16.mxu1 %v25298_v25 }
 0x5c6   :  { %5224 = vmatmul.mubr.f32.gmra.mrb[36].mxu1 %v25601_v37  ;;  %v25610_v37 = vld [vmem:[#allocation62_spill] sm:$0xff] }
 0x5c7   :  { %14784 = vmatpush1.bf16.msra.mxu1 %v25602_v55  ;;  %5230 = vmatprep.mubr.f32.mxu1 %v25603_v18  ;;  %v25611_v18 = vld [vmem:[#allocation100_spill] sm:$0xff] }
 0x5c8   :  { %14785 = vmatprep.subr.bf16.mxu1 %v25298_v25 }
 0x5ca   :  { %5233 = vmatmul.mubr.f32.gmra.mrb[38].mxu1 %v25604_v27  ;;  %v25613_v27 = vld [vmem:[#allocation70_spill] sm:$0xff] }
 0x5cb   :  { %14787 = vmatpush1.bf16.msra.mxu1 %v25605_v32  ;;  %5239 = vmatprep.mubr.f32.mxu1 %v25606_v13  ;;  %v25614_v13 = vld [vmem:[#allocation49_spill] sm:$0xff] }
 0x5cc   :  { %14788 = vmatprep.subr.bf16.mxu1 %v25298_v25 }
 0x5ce   :  { %5242 = vmatmul.mubr.f32.gmra.mrb[40].mxu1 %v25607_v9  ;;  %v25616_v9 = vld [vmem:[#allocation37_spill] sm:$0xff] }
 0x5cf   :  { %14790 = vmatpush1.bf16.msra.mxu1 %v25608_v61  ;;  %5248 = vmatprep.mubr.f32.mxu1 %v25609_v50  ;;  %v25617_v50 = vld [vmem:[#allocation103_spill] sm:$0xff] }
 0x5d0   :  { %14791 = vmatprep.subr.bf16.mxu1 %v25298_v25 }
 0x5d2   :  { %5251 = vmatmul.mubr.f32.gmra.mrb[42].mxu1 %v25610_v37  ;;  %v25619_v37 = vand.u32 4294901760, %v19827_v21  ;;  %v25626_v21 = vld [vmem:[#allocation120_spill] sm:$0xff] }
 0x5d3   :  { %14793 = vmatpush1.bf16.msra.mxu1 %v25611_v18  ;;  %5257 = vmatprep.mubr.f32.mxu1 %v25612_v47  ;;  %v25620_v47 = vand.u32 4294901760, %v19832_v3  ;;  %v25627_v3 = vand.u32 4294901760, %v19881_v60  ;;  %v25634_v60 = vld [vmem:[#allocation102_spill] sm:$0xff] }
 0x5d4   :  { %14794 = vmatprep.subr.bf16.mxu1 %v25298_v25 }
 0x5d5   :  { %v14801_v58 = vpack.c.bf16 %v25620_v47, %v25619_v37  ;;  %v25628_v37 = vand.u32 4294901760, %v19895_v41  ;;  %v25635_v41 = vand.u32 4294901760, %v19939_v51 }
 0x5d6   :  { %5260 = vmatmul.mubr.f32.gmra.mrb[44].mxu1 %v25613_v27  ;;  %v25621_v27 = vld [vmem:[#allocation68_spill] sm:$0xff] }
 0x5d7   :  { %14796 = vmatpush1.bf16.msra.mxu1 %v25614_v13  ;;  %5266 = vmatprep.mubr.f32.mxu1 %v25615_v34  ;;  %v25622_v13 = vld [vmem:[#allocation80_spill] sm:$0xff]  ;;  %v25623_v34 = vand.u32 4294901760, %v19853_v14  ;;  %v14807_v47 = vpack.c.bf16 %v25628_v37, %v25627_v3 }
 0x5d8   :  { %14797 = vmatprep.subr.bf16.mxu1 %v25298_v25  ;;  %v25630_v14 = vld [vmem:[#allocation92_spill] sm:$0xff] }
 0x5da   :  { %5269 = vmatmul.mubr.f32.gmra.mrb[46].mxu1 %v25616_v9  ;;  %v25624_v9 = vand.u32 4294901760, %v19858_v48  ;;  %v25631_v48 = vand.u32 4294901760, %v19911_v1  ;;  %v25638_v1 = vld [vmem:[#allocation113_spill] sm:$0xff] }
 0x5db   :  { %14799 = vmatpush1.bf16.msra.mxu1 %v25617_v50  ;;  %5365 = vmatprep.mubr.f32.mxu1 %v25618_v23  ;;  %v25625_v23 = vld [vmem:[#allocation79_spill] sm:$0xff] }
 0x5dc   :  { %14800 = vmatprep.subr.bf16.mxu1 %v25298_v25  ;;  %v14804_v18 = vpack.c.bf16 %v25624_v9, %v25623_v34  ;;  %v25636_v34 = vand.u32 4294901760, %v19944_v59  ;;  %v25642_v59 = vld [vmem:[#allocation128_spill] sm:$0xff] }
 0x5de   :  { %5369 = vmatmul.mubr.f32.vlgmr.msra.gmra.mrb[24].mxu1 %v25621_v27  ;;  %v14813_v9 = vpack.c.bf16 %v25636_v34, %v25635_v41  ;;  %v25649_v34 = vld [vmem:[#allocation140_spill] sm:$0xff] }
 0x5df   :  { %14802 = vmatpush1.bf16.msra.mxu1 %v14801_v58  ;;  %5376 = vmatprep.mubr.f32.mxu1 %v25622_v13  ;;  %v25629_v58 = vld [vmem:[#allocation87_spill] sm:$0xff]  ;;  %v25632_v13 = vand.u32 4294901760, %v19923_v38  ;;  %v25639_v38 = vand.u32 4294901760, %v19961_v8 }
 0x5e0   :  { %14803 = vmatprep.subr.bf16.mxu1 %v25298_v25 }
 0x5e1   :  { %v14810_v27 = vpack.c.bf16 %v25632_v13, %v25631_v48  ;;  %v25645_v13 = vld [vmem:[#allocation125_spill] sm:$0xff] }
 0x5e2   :  { %5380 = vmatmul.mubr.f32.gmra.mrb[26].mxu1 %v25625_v23  ;;  %v25637_v23 = vld [vmem:[#allocation101_spill] sm:$0xff] }
 0x5e3   :  { %14805 = vmatpush1.bf16.msra.mxu1 %v14804_v18  ;;  %5387 = vmatprep.mubr.f32.mxu1 %v25626_v21  ;;  %v25633_v18 = vld [vmem:[#allocation91_spill] sm:$0xff]  ;;  %v25640_v21 = vand.u32 4294901760, %v19966_v7 }
 0x5e4   :  { %14806 = vmatprep.subr.bf16.mxu1 %v25298_v25 }
 0x5e5   :  { %v14816_v3 = vpack.c.bf16 %v25640_v21, %v25639_v38  ;;  %v25653_v21 = vld [vmem:[#allocation23_spill] sm:$0xff] }
 0x5e6   :  { %5391 = vmatmul.mubr.f32.gmra.mrb[28].mxu1 %v25629_v58  ;;  %v25643_v58 = vand.u32 4294901760, %v19982_v26 }
 0x5e7   :  { %14808 = vmatpush1.bf16.msra.mxu1 %v14807_v47  ;;  %5398 = vmatprep.mubr.f32.mxu1 %v25630_v14  ;;  %v25641_v47 = vld [vmem:[#allocation112_spill] sm:$0xff]  ;;  %v25644_v14 = vand.u32 4294901760, %v19996_v10 }
 0x5e8   :  { %14809 = vmatprep.subr.bf16.mxu1 %v25298_v25 }
 0x5e9   :  { %v14819_v48 = vpack.c.bf16 %v25644_v14, %v25643_v58  ;;  %v25657_v58 = vld [vmem:[#allocation31_spill] sm:$0xff]  ;;  %v25658_v14 = vld [vmem:[#allocation40_spill] sm:$0xff] }
 0x5ea   :  { %5402 = vmatmul.mubr.f32.gmra.mrb[30].mxu1 %v25633_v18  ;;  %v25647_v18 = vand.u32 4294901760, %v20003_v16 }
 0x5eb   :  { %14811 = vmatpush1.bf16.msra.mxu1 %v14810_v27  ;;  %5409 = vmatprep.mubr.f32.mxu1 %v25634_v60  ;;  %v25646_v27 = vld [vmem:[#allocation50_spill] sm:$0xff]  ;;  %v25648_v60 = vand.u32 4294901760, %v20015_v29 }
 0x5ec   :  { %14812 = vmatprep.subr.bf16.mxu1 %v25298_v25 }
 0x5ed   :  { %v14822_v41 = vpack.c.bf16 %v25648_v60, %v25647_v18  ;;  %v25662_v18 = vld [vmem:[#allocation45_spill] sm:$0xff]  ;;  %v25663_v60 = vand.u32 4294901760, %v20087_v30 }
 0x5ee   :  { %5413 = vmatmul.mubr.f32.gmra.mrb[32].mxu1 %v25637_v23  ;;  %v25651_v23 = vand.u32 4294901760, %v20024_v42 }
 0x5ef   :  { %14814 = vmatpush1.bf16.msra.mxu1 %v14813_v9  ;;  %5420 = vmatprep.mubr.f32.mxu1 %v25638_v1  ;;  %v25650_v9 = vld [vmem:[#allocation25_spill] sm:$0xff]  ;;  %v25652_v1 = vand.u32 4294901760, %v20029_v52 }
 0x5f0   :  { %14815 = vmatprep.subr.bf16.mxu1 %v25298_v25 }
 0x5f1   :  { %v20281_v37 = vpop.f32.mrb[0].mxu1  ;;  %v14825_v38 = vpack.c.bf16 %v25652_v1, %v25651_v23 }
 0x5f2   :  { %v4412_v51 = vpop.f32.mrb[1].mxu1  ;;  %5424 = vmatmul.mubr.f32.gmra.mrb[34].mxu1 %v25641_v47  ;;  %v25656_v47 = vand.u32 4294901760, %v20050_v44 }
 0x5f3   :  { %14817 = vmatpush1.bf16.msra.mxu1 %v14816_v3  ;;  %5431 = vmatprep.mubr.f32.mxu1 %v25642_v59  ;;  %v25654_v3 = vld [vmem:[#allocation32_spill] sm:$0xff]  ;;  %v25655_v51 = vand.u32 4294901760, %v20045_v11 }
 0x5f4   :  { %14818 = vmatprep.subr.bf16.mxu1 %v25298_v25 }
 0x5f5   :  { %v20290_v8 = vpop.f32.mrb[2].mxu1  ;;  %v14828_v59 = vpack.c.bf16 %v25656_v47, %v25655_v51 }
 0x5f6   :  { %v4419_v7 = vpop.f32.mrb[3].mxu1  ;;  %5435 = vmatmul.mubr.f32.gmra.mrb[36].mxu1 %v25645_v13 }
 0x5f7   :  { %14820 = vmatpush1.bf16.msra.mxu1 %v14819_v48  ;;  %5442 = vmatprep.mubr.f32.mxu1 %v25646_v27  ;;  %v25659_v48 = vand.u32 4294901760, %v20066_v62  ;;  %v25660_v7 = vand.u32 4294901760, %v20080_v19  ;;  %v25661_v27 = vld [vmem:[#allocation39_spill] sm:$0xff] }
 0x5f8   :  { %14821 = vmatprep.subr.bf16.mxu1 %v25298_v25 }
 0x5f9   :  { %v20299_v26 = vpop.f32.mrb[4].mxu1  ;;  %v14831_v13 = vpack.c.bf16 %v25660_v7, %v25659_v48 }
 0x5fa   :  { %v4426_v10 = vpop.f32.mrb[5].mxu1  ;;  %5446 = vmatmul.mubr.f32.gmra.mrb[38].mxu1 %v25649_v34  ;;  %v25665_v34 = vld [vmem:[#allocation44_spill] sm:$0xff] }
 0x5fb   :  { %14823 = vmatpush1.bf16.msra.mxu1 %v14822_v41  ;;  %5453 = vmatprep.mubr.f32.mxu1 %v25650_v9  ;;  %v25664_v41 = vand.u32 4294901760, %v20099_v36 }
 0x5fc   :  { %14824 = vmatprep.subr.bf16.mxu1 %v25298_v25 }
 0x5fd   :  { %v20308_v16 = vpop.f32.mrb[6].mxu1  ;;  %v14834_v10 = vpack.c.bf16 %v25664_v41, %v25663_v60  ;;  %v6031_v60 = vld [vmem:[%s23993_s4 + $0xb0] sm:$0xff]  ;;  %v6032_v41 = vld [vmem:[%s23993_s4 + $0xb8] sm:$0xff] }
 0x5fe   :  { %v4433_v29 = vpop.f32.mrb[7].mxu1  ;;  %5457 = vmatmul.mubr.f32.gmra.mrb[40].mxu1 %v25653_v21 }
 0x5ff   :  { %14826 = vmatpush1.bf16.msra.mxu1 %v14825_v38  ;;  %5464 = vmatprep.mubr.f32.mxu1 %v25654_v3 }
 0x600   :  { %14827 = vmatprep.subr.bf16.mxu1 %v25298_v25 }
 0x601   :  { %v20317_v42 = vpop.f32.mrb[8].mxu1 }
 0x602   :  { %v4440_v52 = vpop.f32.mrb[9].mxu1  ;;  %5468 = vmatmul.mubr.f32.gmra.mrb[42].mxu1 %v25657_v58  ;;  %v6030_v58 = vld [vmem:[%s23993_s4 + $0xa8] sm:$0xff] }
 0x603   :  { %14829 = vmatpush1.bf16.msra.mxu1 %v14828_v59  ;;  %5475 = vmatprep.mubr.f32.mxu1 %v25658_v14  ;;  %v6029_v52 = vld [vmem:[%s23993_s4 + $0xa0] sm:$0xff] }
 0x604   :  { %14830 = vmatprep.subr.bf16.mxu1 %v25298_v25  ;;  %v6013_v14 = vld [vmem:[%s23993_s4 + $0x20] sm:$0xff] }
 0x605   :  { %v20326_v11 = vpop.f32.mrb[10].mxu1 }
 0x606   :  { %v4447_v44 = vpop.f32.mrb[11].mxu1  ;;  %5479 = vmatmul.mubr.f32.gmra.mrb[44].mxu1 %v25661_v27  ;;  %v6014_v27 = vld [vmem:[%s23993_s4 + $0x28] sm:$0xff] }
 0x607   :  { %14832 = vmatpush1.bf16.msra.mxu1 %v14831_v13  ;;  %5486 = vmatprep.mubr.f32.mxu1 %v25662_v18  ;;  %v6147_v13 = vand.u32 4294901760, %v6029_v52  ;;  %v6150_v44 = vand.u32 4294901760, %v6030_v58  ;;  %v6099_v18 = vand.u32 4294901760, %v6013_v14 }
 0x608   :  { %14833 = vmatprep.subr.bf16.mxu1 %v25298_v25 }
 0x609   :  { %v20335_v62 = vpop.f32.mrb[12].mxu1 }
 0x60a   :  { %v4454_v19 = vpop.f32.mrb[13].mxu1  ;;  %5490 = vmatmul.mubr.f32.gmra.mrb[46].mxu1 %v25665_v34  ;;  %v6153_v34 = vand.u32 4294901760, %v6031_v60 }
 0x60b   :  { %14835 = vmatpush1.bf16.msra.mxu1 %v14834_v10  ;;  %5632 = vmatprep.mubr.f32.mxu1 %v19085_v15  ;;  %v6102_v19 = vand.u32 4294901760, %v6014_v27 }
 0x60c   :  { %14836 = vmatprep.subr.bf16.mxu1 %v25298_v25 }
 0x60d   :  { %v20340_v9 = vpop.f32.mrb[14].mxu1 }
 0x60e   :  { %v4461_v23 = vpop.f32.mrb[15].mxu1  ;;  %5634 = vmatmul.mubr.f32.vlgmr.msra.gmra.mrb[24].mxu1 %v19077_v35 }
 0x60f   :  { %14838 = vmatpush1.bf16.msra.mxu1 %v25584_v40  ;;  %5639 = vmatprep.mubr.f32.mxu1 %v19110_v39  ;;  %v6156_v23 = vand.u32 4294901760, %v6032_v41 }
 0x610   :  { %14839 = vmatprep.subr.bf16.mxu1 %v25298_v25 }
 0x611   :  { %v20346_v30 = vpop.f32.mrb[16].mxu1 }
 0x612   :  { %v4468_v36 = vpop.f32.mrb[17].mxu1  ;;  %5641 = vmatmul.mubr.f32.gmra.mrb[26].mxu1 %v19100_v56 }
 0x613   :  { %14841 = vmatpush1.bf16.msra.mxu1 %v25587_v54  ;;  %5646 = vmatprep.mubr.f32.mxu1 %v19143_v63  ;;  %v6015_v36 = vld [vmem:[%s23993_s4 + $0x30] sm:$0xff] }
 0x614   :  { %14842 = vmatprep.subr.bf16.mxu1 %v25298_v25 }
 0x615   :  { %v20352_v1 = vpop.f32.mrb[18].mxu1 }
 0x616   :  { %v4475_v38 = vpop.f32.mrb[19].mxu1  ;;  %5648 = vmatmul.mubr.f32.gmra.mrb[28].mxu1 %v19133_v45 }
 0x617   :  { %14844 = vmatpush1.bf16.msra.mxu1 %v25590_v4  ;;  %5653 = vmatprep.mubr.f32.mxu1 %v19176_v24  ;;  %v25667_v4 = vld [vmem:[#allocation100_spill] sm:$0xff] }
 0x618   :  { %14845 = vmatprep.subr.bf16.mxu1 %v25298_v25  ;;  %v6016_v38 = vld [vmem:[%s23993_s4 + $0x38] sm:$0xff] }
 0x619   :  { %v20358_v40 = vpop.f32.mrb[20].mxu1 }
 0x61a   :  { %v4482_v29 = vpop.f32.mrb[21].mxu1  ;;  %5655 = vmatmul.mubr.f32.gmra.mrb[30].mxu1 %v19168_v2 }
 0x61b   :  { %14847 = vmatpush1.bf16.msra.mxu1 %v25593_v5  ;;  %5660 = vmatprep.mubr.f32.mxu1 %v19207_v31  ;;  %v25668_v5 = vld [vmem:[#allocation33_spill] sm:$0xff] }
 0x61c   :  { %14848 = vmatprep.subr.bf16.mxu1 %v25298_v25  ;;  %v6033_v29 = vld [vmem:[%s23993_s4 + $0xc0] sm:$0xff] }
 0x61d   :  { %v20364_v54 = vpop.f32.mrb[22].mxu1 }
 0x61e   :  { %25666 = vst [vmem:[#allocation106_spill] sm:$0xff] %v20364_v54  ;;  %v4489_v21 = vpop.f32.mrb[23].mxu1  ;;  %5662 = vmatmul.mubr.f32.gmra.mrb[32].mxu1 %v19199_v57 }
 0x61f   :  { %14850 = vmatpush1.bf16.msra.mxu1 %v25596_v49  ;;  %5667 = vmatprep.mubr.f32.mxu1 %v19238_v43  ;;  %v25669_v49 = vld [vmem:[#allocation67_spill] sm:$0xff]  ;;  %v20500_v21 = vpack.c.bf16 %v6150_v44, %v6147_v13 }
 0x620   :  { %14851 = vmatprep.subr.bf16.mxu1 %v25298_v25 }
 0x622   :  { %5669 = vmatmul.mubr.f32.gmra.mrb[34].mxu1 %v19230_v28 }
 0x623   :  { %14853 = vmatpush1.bf16.msra.mxu1 %v25599_v46  ;;  %5674 = vmatprep.mubr.f32.mxu1 %v19269_v17  ;;  %v25670_v46 = vld [vmem:[#allocation49_spill] sm:$0xff] }
 0x624   :  { %14854 = vmatprep.subr.bf16.mxu1 %v25298_v25 }
 0x626   :  { %5676 = vmatmul.mubr.f32.gmra.mrb[36].mxu1 %v19261_v12 }
 0x627   :  { %14856 = vmatpush1.bf16.msra.mxu1 %v25602_v55  ;;  %5681 = vmatprep.mubr.f32.mxu1 %v19300_v22  ;;  %v25671_v55 = vld [vmem:[#allocation42_spill] sm:$0xff] }
 0x628   :  { %14857 = vmatprep.subr.bf16.mxu1 %v25298_v25 }
 0x62a   :  { %5683 = vmatmul.mubr.f32.gmra.mrb[38].mxu1 %v19292_v33 }
 0x62b   :  { %14859 = vmatpush1.bf16.msra.mxu1 %v25605_v32  ;;  %5688 = vmatprep.mubr.f32.mxu1 %v25493_v53  ;;  %v25672_v32 = vld [vmem:[#allocation75_spill] sm:$0xff] }
 0x62c   :  { %14860 = vmatprep.subr.bf16.mxu1 %v25298_v25 }
 0x62e   :  { %5690 = vmatmul.mubr.f32.gmra.mrb[40].mxu1 %v25494_v20 }
 0x62f   :  { %14862 = vmatpush1.bf16.msra.mxu1 %v25608_v61  ;;  %5695 = vmatprep.mubr.f32.mxu1 %v25495_v6 }
 0x630   :  { %14863 = vmatprep.subr.bf16.mxu1 %v25298_v25 }
 0x632   :  { %5697 = vmatmul.mubr.f32.gmra.mrb[42].mxu1 %v25496_v0 }
 0x633   :  { %14865 = vmatpush1.bf16.msra.mxu1 %v25667_v4  ;;  %5702 = vmatprep.mubr.f32.mxu1 %v25668_v5  ;;  %v20502_v4 = vsub.f32 %v6029_v52, %v6147_v13  ;;  %v6035_v52 = vld [vmem:[%s23993_s4 + $0xd0] sm:$0xff] }
 0x634   :  { %14866 = vmatprep.subr.bf16.mxu1 %v25298_v25 }
 0x636   :  { %5704 = vmatmul.mubr.f32.gmra.mrb[44].mxu1 %v25669_v49 }
 0x637   :  { %14868 = vmatpush1.bf16.msra.mxu1 %v25670_v46  ;;  %5709 = vmatprep.mubr.f32.mxu1 %v25671_v55  ;;  %v6018_v46 = vld [vmem:[%s23993_s4 + $0x48] sm:$0xff] }
 0x638   :  { %14869 = vmatprep.subr.bf16.mxu1 %v25298_v25 }
 0x63a   :  { %5711 = vmatmul.mubr.f32.gmra.mrb[46].mxu1 %v25672_v32 }
 0x63b   :  { %14871 = vmatpush1.bf16.msra.mxu1 %v25617_v50  ;;  %5805 = vmatprep.mubr.f32.mxu1 %v19085_v15  ;;  %v6026_v15 = vld [vmem:[%s23993_s4 + $0x88] sm:$0xff] }
 0x63e   :  { %5807 = vmatmul.mubr.f32.vlgmr.msra.gmra.mrb[24].mxu1 %v19077_v35  ;;  %v6025_v35 = vld [vmem:[%s23993_s4 + $0x80] sm:$0xff] }
 0x63f   :  { %5812 = vmatprep.mubr.f32.mxu1 %v19110_v39  ;;  %v6135_v39 = vand.u32 4294901760, %v6025_v35 }
 0x642   :  { %5814 = vmatmul.mubr.f32.gmra.mrb[26].mxu1 %v19100_v56  ;;  %v6009_v56 = vld [vmem:[%s23993_s4] sm:$0xff] }
 0x643   :  { %5819 = vmatprep.mubr.f32.mxu1 %v19143_v63  ;;  %v6010_v63 = vld [vmem:[%s23993_s4 + $0x8] sm:$0xff] }
 0x646   :  { %5821 = vmatmul.mubr.f32.gmra.mrb[28].mxu1 %v19133_v45  ;;  %v6138_v45 = vand.u32 4294901760, %v6026_v15 }
 0x647   :  { %5826 = vmatprep.mubr.f32.mxu1 %v19176_v24  ;;  %v6087_v24 = vand.u32 4294901760, %v6009_v56 }
 0x649   :  { %v20454_v61 = vsub.f32 %v6009_v56, %v6087_v24  ;;  %v20521_v56 = vsub.f32 %v6013_v14, %v6099_v18 }
 0x64a   :  { %5828 = vmatmul.mubr.f32.gmra.mrb[30].mxu1 %v19168_v2  ;;  %v6090_v2 = vand.u32 4294901760, %v6010_v63 }
 0x64b   :  { %5833 = vmatprep.mubr.f32.mxu1 %v19207_v31 }
 0x64c   :  { %v20434_v31 = vpack.c.bf16 %v6090_v2, %v6087_v24  ;;  %v20456_v50 = vsub.f32 %v6010_v63, %v6090_v2  ;;  %v6105_v63 = vand.u32 4294901760, %v6015_v36  ;;  %v6108_v24 = vand.u32 4294901760, %v6016_v38 }
 0x64d   :  { %v6159_v2 = vand.u32 4294901760, %v6033_v29 }
 0x64e   :  { %5835 = vmatmul.mubr.f32.gmra.mrb[32].mxu1 %v19199_v57  ;;  %v20432_v57 = vpack.c.bf16 %v6138_v45, %v6135_v39  ;;  %v20544_v14 = vsub.f32 %v6016_v38, %v6108_v24 }
 0x64f   :  { %5840 = vmatprep.mubr.f32.mxu1 %v19238_v43  ;;  %v6027_v43 = vld [vmem:[%s23993_s4 + $0x90] sm:$0xff] }
 0x650   :  { %14873 = vmatprep.subr.bf16.mxu0 %v20432_v57  ;;  %25678 = vst [vmem:[#allocation118_spill] sm:$0xff] %v20544_v14 }
 0x651   :  { %14875 = vmatpush3.bf16.msra.mxu0 %v20434_v31 }
 0x652   :  { %5842 = vmatmul.mubr.f32.gmra.mrb[34].mxu1 %v19230_v28  ;;  %v20437_v28 = vsub.f32 %v6025_v35, %v6135_v39  ;;  %v20517_v35 = vsub.f32 %v6030_v58, %v6150_v44  ;;  %v20523_v39 = vpack.c.bf16 %v6156_v23, %v6153_v34  ;;  %v6036_v58 = vld [vmem:[%s23993_s4 + $0xd8] sm:$0xff]  ;;  %v20548_v44 = vsub.f32 %v6033_v29, %v6159_v2 }
 0x653   :  { %5847 = vmatprep.mubr.f32.mxu1 %v19269_v17  ;;  %v6011_v17 = vld [vmem:[%s23993_s4 + $0x10] sm:$0xff]  ;;  %v6165_v29 = vand.u32 4294901760, %v6035_v52 }
 0x654   :  { %v24566_v48 = vand.u32 4294901760, %v20437_v28  ;;  %25680 = vst [vmem:[#allocation122_spill] sm:$0xff] %v20548_v44 }
 0x656   :  { %5849 = vmatmul.mubr.f32.gmra.mrb[36].mxu1 %v19261_v12  ;;  %v6028_v12 = vld [vmem:[%s23993_s4 + $0x98] sm:$0xff] }
 0x657   :  { %5854 = vmatprep.mubr.f32.mxu1 %v19300_v22  ;;  %v6144_v22 = vand.u32 4294901760, %v6028_v12 }
 0x659   :  { %v20462_v47 = vsub.f32 %v6028_v12, %v6144_v22 }
 0x65a   :  { %5856 = vmatmul.mubr.f32.gmra.mrb[38].mxu1 %v19292_v33  ;;  %v6141_v33 = vand.u32 4294901760, %v6027_v43 }
 0x65b   :  { %5861 = vmatprep.mubr.f32.mxu1 %v25493_v53  ;;  %v6012_v53 = vld [vmem:[%s23993_s4 + $0x18] sm:$0xff] }
 0x65c   :  { %v20458_v3 = vpack.c.bf16 %v6144_v22, %v6141_v33  ;;  %v20460_v51 = vsub.f32 %v6027_v43, %v6141_v33  ;;  %v20529_v43 = vsub.f32 %v6031_v60, %v6153_v34  ;;  %v6114_v33 = vand.u32 4294901760, %v6018_v46  ;;  %v6019_v34 = vld [vmem:[%s23993_s4 + $0x50] sm:$0xff] }
 0x65d   :  { %v20532_v22 = vsub.f32 %v6032_v41, %v6156_v23  ;;  %v24567_v41 = vand.u32 4294901760, %v20454_v61  ;;  %v20565_v23 = vld [vmem:[%s23993_s4 + $0x58] sm:$0xff] }
 0x65e   :  { %5863 = vmatmul.mubr.f32.gmra.mrb[40].mxu1 %v25494_v20  ;;  %v6093_v20 = vand.u32 4294901760, %v6011_v17  ;;  %14877 = vmatprep.subr.bf16.mxu0 %v20458_v3  ;;  %25674 = vst [vmem:[#allocation110_spill] sm:$0xff] %v20529_v43  ;;  %v20570_v38 = vsub.f32 %v6018_v46, %v6114_v33  ;;  %v6117_v46 = vand.u32 4294901760, %v6019_v34 }
 0x65f   :  { %5868 = vmatprep.mubr.f32.mxu1 %v25495_v6  ;;  %v6096_v6 = vand.u32 4294901760, %v6012_v53  ;;  %25675 = vst [vmem:[#allocation111_spill] sm:$0xff] %v20532_v22 }
 0x660   :  { %v20477_v7 = vsub.f32 %v6011_v17, %v6093_v20  ;;  %25684 = vst [vmem:[#allocation130_spill] sm:$0xff] %v20570_v38 }
 0x661   :  { %v20464_v59 = vpack.c.bf16 %v6096_v6, %v6093_v20  ;;  %v20489_v10 = vsub.f32 %v6012_v53, %v6096_v6  ;;  %v20534_v53 = vpack.c.bf16 %v6108_v24, %v6105_v63  ;;  %v20536_v20 = vsub.f32 %v6015_v36, %v6105_v63 }
 0x662   :  { %5870 = vmatmul.mubr.f32.gmra.mrb[42].mxu1 %v25496_v0  ;;  %v20452_v0 = vsub.f32 %v6026_v15, %v6138_v45  ;;  %v20519_v15 = vpack.c.bf16 %v6102_v19, %v6099_v18  ;;  %v20526_v45 = vsub.f32 %v6014_v27, %v6102_v19  ;;  %v24568_v19 = vand.u32 4294901760, %v20456_v50 }
 0x663   :  { %5875 = vmatprep.mubr.f32.mxu1 %v25668_v5  ;;  %14879 = vmatpush3.bf16.msra.mxu0 %v20464_v59  ;;  %v6034_v5 = vld [vmem:[%s23993_s4 + $0xc8] sm:$0xff]  ;;  %25676 = vst [vmem:[#allocation114_spill] sm:$0xff] %v20534_v53  ;;  %25677 = vst [vmem:[#allocation115_spill] sm:$0xff] %v20536_v20  ;;  %v6307_v63 = vsub.f32 %v20454_v61, %v24567_v41 }
 0x664   :  { %14881 = vmatprep.subr.bf16.mxu0 %v20500_v21  ;;  %25673 = vst [vmem:[#allocation107_spill] sm:$0xff] %v20526_v45  ;;  %v6162_v12 = vand.u32 4294901760, %v6034_v5  ;;  %v6314_v24 = vsub.f32 %v20456_v50, %v24568_v19 }
 0x666   :  { %5877 = vmatmul.mubr.f32.gmra.mrb[44].mxu1 %v25669_v49  ;;  %v6017_v49 = vld [vmem:[%s23993_s4 + $0x40] sm:$0xff]  ;;  %v20546_v13 = vpack.c.bf16 %v6162_v12, %v6159_v2  ;;  %v20550_v27 = vsub.f32 %v6034_v5, %v6162_v12  ;;  %v6168_v5 = vand.u32 4294901760, %v6036_v58  ;;  %v24569_v2 = vand.u32 4294901760, %v20460_v51 }
 0x667   :  { %5882 = vmatprep.mubr.f32.mxu1 %v25671_v55  ;;  %v6419_v55 = vsub.f32 %v20437_v28, %v24566_v48  ;;  %14883 = vmatpush3.bf16.msra.mxu0 %v20519_v15  ;;  %v6111_v17 = vand.u32 4294901760, %v6017_v49 }
 0x668   :  { %14885 = vmatprep.subr.bf16.mxu0 %v20523_v39  ;;  %25679 = vst [vmem:[#allocation119_spill] sm:$0xff] %v20546_v13  ;;  %25681 = vst [vmem:[#allocation123_spill] sm:$0xff] %v20550_v27  ;;  %v20580_v12 = vpack.c.bf16 %v6168_v5, %v6165_v29  ;;  %v20585_v48 = vsub.f32 %v6036_v58, %v6168_v5  ;;  %v6433_v19 = vsub.f32 %v20460_v51, %v24569_v2 }
 0x669   :  { %v6420_v6 = vand.u32 4294901760, %v6419_v55  ;;  %v20552_v18 = vpack.c.bf16 %v6114_v33, %v6111_v17  ;;  %v20568_v36 = vsub.f32 %v6017_v49, %v6111_v17  ;;  %v20582_v49 = vsub.f32 %v6035_v52, %v6165_v29 }
 0x66a   :  { %5884 = vmatmul.mubr.f32.gmra.mrb[46].mxu1 %v25672_v32  ;;  %v24565_v32 = vand.u32 4294901760, %v20452_v0  ;;  %25685 = vst [vmem:[#allocation131_spill] sm:$0xff] %v20580_v12  ;;  %v24572_v17 = vand.u32 4294901760, %v20565_v23  ;;  %25687 = vst [vmem:[#allocation135_spill] sm:$0xff] %v20585_v48  ;;  %v24570_v52 = vand.u32 4294901760, %v20462_v47  ;;  %v24571_v29 = vand.u32 4294901760, %v20477_v7 }
 0x66b   :  { %25682 = vst [vmem:[#allocation126_spill] sm:$0xff] %v20552_v18  ;;  %14887 = vmatpush3.bf16.msra.mxu0 %v20534_v53  ;;  %25683 = vst [vmem:[#allocation127_spill] sm:$0xff] %v20568_v36  ;;  %v24573_v58 = vand.u32 4294901760, %v20489_v10  ;;  %v24579_v5 = vand.u32 4294901760, %v20502_v4 }
 0x66c   :  { %v6426_v60 = vsub.f32 %v20452_v0, %v24565_v32  ;;  %14889 = vmatprep.subr.bf16.mxu0 %v20546_v13  ;;  %25686 = vst [vmem:[#allocation134_spill] sm:$0xff] %v20582_v49  ;;  %v6308_v32 = vand.u32 4294901760, %v6307_v63  ;;  %v20590_v41 = vpack.c.bf16 %v24572_v17, %v6117_v46  ;;  %v6434_v63 = vand.u32 4294901760, %v6433_v19 }
 0x66d   :  { %v6321_v2 = vsub.f32 %v20477_v7, %v24571_v29 }
 0x66e   :  { %v6427_v55 = vand.u32 4294901760, %v6426_v60  ;;  %v6315_v60 = vand.u32 4294901760, %v6314_v24  ;;  %25688 = vst [vmem:[#allocation138_spill] sm:$0xff] %v20590_v41  ;;  %v6440_v24 = vsub.f32 %v20462_v47, %v24570_v52  ;;  %v24585_v52 = vand.u32 4294901760, %v20526_v45 }
 0x66f   :  { %14891 = vmatpush3.bf16.msra.mxu0 %v20552_v18  ;;  %v6322_v17 = vand.u32 4294901760, %v6321_v2 }
 0x670   :  { %v14904_v33 = vpack.c.bf16 %v6427_v55, %v6420_v6  ;;  %v14906_v6 = vpack.c.bf16 %v6315_v60, %v6308_v32  ;;  %14893 = vmatprep.subr.bf16.mxu0 %v20580_v12  ;;  %v24580_v55 = vand.u32 4294901760, %v20517_v35  ;;  %v6328_v32 = vsub.f32 %v20489_v10, %v24573_v58 }
 0x671   :  { %v6447_v60 = vsub.f32 %v20502_v4, %v24579_v5  ;;  %v6441_v29 = vand.u32 4294901760, %v6440_v24  ;;  %v24584_v58 = vand.u32 4294901760, %v20529_v43  ;;  %v6342_v5 = vsub.f32 %v20526_v45, %v24585_v52 }
 0x672   :  { %14905 = vmatprep.subr.bf16.mxu1 %v14904_v33  ;;  %v24583_v33 = vand.u32 4294901760, %v20521_v56  ;;  %v6454_v19 = vsub.f32 %v20517_v35, %v24580_v55  ;;  %v6329_v25 = vand.u32 4294901760, %v6328_v32  ;;  %v20638_v32 = vld [vmem:[%s23993_s4 + $0xe8] sm:$0xff]  ;;  %v20651_v52 = vsub.f32 %v6019_v34, %v6117_v46 }
 0x673   :  { %14907 = vmatpush3.bf16.msra.mxu1 %v14906_v6  ;;  %14895 = vmatpush3.bf16.msra.mxu0 %v20590_v41  ;;  %v6448_v12 = vand.u32 4294901760, %v6447_v60  ;;  %v14908_v55 = vpack.c.bf16 %v6441_v29, %v6434_v63  ;;  %v6461_v24 = vsub.f32 %v20529_v43, %v24584_v58  ;;  %v6343_v29 = vand.u32 4294901760, %v6342_v5  ;;  %v20649_v58 = vld [vmem:[%s23993_s4 + $0x68] sm:$0xff] }
 0x674   :  { %v6335_v6 = vsub.f32 %v20521_v56, %v24583_v33  ;;  %v6455_v18 = vand.u32 4294901760, %v6454_v19  ;;  %v20633_v33 = vld [vmem:[%s23993_s4 + $0xe0] sm:$0xff]  ;;  %v14910_v60 = vpack.c.bf16 %v6329_v25, %v6322_v17  ;;  %v24590_v63 = vand.u32 4294901760, %v20536_v20 }
 0x675   :  { %14909 = vmatprep.subr.bf16.mxu1 %v14908_v55  ;;  %v6462_v2 = vand.u32 4294901760, %v6461_v24  ;;  %v25689_v25 = vand.u32 4294901760, %v20532_v22  ;;  %v6171_v41 = vand.u32 4294901760, %v20633_v33  ;;  %v6174_v43 = vand.u32 4294901760, %v20638_v32 }
 0x676   :  { %v6336_v13 = vand.u32 4294901760, %v6335_v6  ;;  %v14912_v19 = vpack.c.bf16 %v6455_v18, %v6448_v12  ;;  %v20644_v6 = vld [vmem:[%s23993_s4 + $0x60] sm:$0xff]  ;;  %v24593_v12 = vand.u32 4294901760, %v20544_v14  ;;  %v6349_v5 = vsub.f32 %v20536_v20, %v24590_v63 }
 0x677   :  { %v6468_v18 = vsub.f32 %v20532_v22, %v25689_v25  ;;  %14911 = vmatpush3.bf16.msra.mxu1 %v14910_v60  ;;  %v6123_v55 = vand.u32 4294901760, %v20644_v6  ;;  %v6126_v24 = vand.u32 4294901760, %v20649_v58 }
 0x678   :  { %v14914_v17 = vpack.c.bf16 %v6343_v29, %v6336_v13  ;;  %14913 = vmatprep.subr.bf16.mxu1 %v14912_v19  ;;  %v6356_v46 = vsub.f32 %v20544_v14, %v24593_v12  ;;  %v6350_v60 = vand.u32 4294901760, %v6349_v5  ;;  %v20667_v13 = vpack.c.bf16 %v6174_v43, %v6171_v41 }
 0x679   :  { %v6469_v34 = vand.u32 4294901760, %v6468_v18  ;;  %v25691_v29 = vand.u32 4294901760, %v20565_v23  ;;  %v20674_v19 = vpack.c.bf16 %v6126_v24, %v6123_v55  ;;  %v24599_v18 = vand.u32 4294901760, %v20548_v44 }
 0x67a   :  { %25690 = vst [vmem:[#allocation139_spill] sm:$0xff] %v20667_v13  ;;  %v6357_v20 = vand.u32 4294901760, %v6356_v46  ;;  %14897 = vmatprep.subr.bf16.mxu0 %v20667_v13  ;;  %v24598_v12 = vand.u32 4294901760, %v20550_v27  ;;  %v24600_v5 = vand.u32 4294901760, %v20568_v36  ;;  %v24607_v14 = vand.u32 4294901760, %v20570_v38 }
 0x67b   :  { %v20672_v25 = vsub.f32 %v20565_v23, %v25691_v29  ;;  %v14916_v63 = vpack.c.bf16 %v6469_v34, %v6462_v2  ;;  %25692 = vst [vmem:[#allocation18_spill] sm:$0xff] %v20674_v19  ;;  %14915 = vmatpush3.bf16.msra.mxu1 %v14914_v17  ;;  %14899 = vmatpush3.bf16.msra.mxu0 %v20674_v19  ;;  %v24612_v23 = vand.u32 4294901760, %v20582_v49  ;;  %v24615_v2 = vand.u32 4294901760, %v20585_v48 }
 0x67c   :  { %v14918_v22 = vpack.c.bf16 %v6357_v20, %v6350_v60  ;;  %v24620_v17 = vand.u32 4294901760, %v20651_v52  ;;  %v6475_v34 = vsub.f32 %v20548_v44, %v24599_v18  ;;  %v6482_v46 = vsub.f32 %v20550_v27, %v24598_v12 }
 0x67d   :  { %14917 = vmatprep.subr.bf16.mxu1 %v14916_v63  ;;  %v6363_v20 = vsub.f32 %v20568_v36, %v24600_v5  ;;  %v6370_v63 = vsub.f32 %v20570_v38, %v24607_v14  ;;  %v6489_v60 = vsub.f32 %v20582_v49, %v24612_v23  ;;  %v6496_v29 = vsub.f32 %v20585_v48, %v24615_v2 }
 0x67e   :  { %v6377_v12 = vsub.f32 %v20651_v52, %v24620_v17  ;;  %v24626_v18 = vand.u32 4294901760, %v20672_v25  ;;  %v6476_v5 = vand.u32 4294901760, %v6475_v34  ;;  %v6483_v19 = vand.u32 4294901760, %v6482_v46 }
 0x67f   :  { %14919 = vmatpush3.bf16.msra.mxu1 %v14918_v22  ;;  %v6364_v13 = vand.u32 4294901760, %v6363_v20  ;;  %v6371_v36 = vand.u32 4294901760, %v6370_v63  ;;  %v6490_v14 = vand.u32 4294901760, %v6489_v60  ;;  %v6497_v38 = vand.u32 4294901760, %v6496_v29 }
 0x680   :  { %v6378_v27 = vand.u32 4294901760, %v6377_v12  ;;  %v6384_v23 = vsub.f32 %v20672_v25, %v24626_v18  ;;  %v14920_v49 = vpack.c.bf16 %v6483_v19, %v6476_v5  ;;  %v20711_v22 = vsub.f32 %v20633_v33, %v6171_v41 }
 0x681   :  { %v14922_v2 = vpack.c.bf16 %v6371_v36, %v6364_v13  ;;  %v14924_v48 = vpack.c.bf16 %v6497_v38, %v6490_v14  ;;  %v20714_v34 = vsub.f32 %v20638_v32, %v6174_v43  ;;  %v20717_v12 = vsub.f32 %v20644_v6, %v6123_v55  ;;  %v6039_v14 = vld [vmem:[%s23993_s4 + $0xf0] sm:$0xff]  ;;  %v6024_v38 = vld [vmem:[%s23993_s4 + $0x78] sm:$0xff] }
 0x682   :  { %v6385_v44 = vand.u32 4294901760, %v6384_v23  ;;  %14921 = vmatprep.subr.bf16.mxu1 %v14920_v49  ;;  %v20720_v46 = vsub.f32 %v20649_v58, %v6126_v24  ;;  %v6177_v43 = vand.u32 4294901760, %v6039_v14  ;;  %v6023_v36 = vld [vmem:[%s23993_s4 + $0x70] sm:$0xff]  ;;  %v6132_v32 = vand.u32 4294901760, %v6024_v38 }
 0x683   :  { %14923 = vmatpush3.bf16.msra.mxu1 %v14922_v2  ;;  %v24621_v49 = vand.u32 4294901760, %v20717_v12  ;;  %v6129_v33 = vand.u32 4294901760, %v6023_v36 }
 0x684   :  { %v14926_v17 = vpack.c.bf16 %v6385_v44, %v6378_v27  ;;  %14925 = vmatprep.subr.bf16.mxu1 %v14924_v48  ;;  %v6040_v48 = vld [vmem:[%s23993_s4 + $0xf8] sm:$0xff]  ;;  %v24625_v44 = vand.u32 4294901760, %v20711_v22  ;;  %v24622_v27 = vand.u32 4294901760, %v20714_v34  ;;  %v24623_v58 = vand.u32 4294901760, %v20720_v46 }
 0x685   :  { %v6180_v41 = vand.u32 4294901760, %v6040_v48  ;;  %v20744_v24 = vsub.f32 %v6039_v14, %v6177_v43  ;;  %v6391_v19 = vsub.f32 %v20717_v12, %v24621_v49  ;;  %v20754_v23 = vsub.f32 %v6023_v36, %v6129_v33 }
 0x686   :  { %v6503_v6 = vsub.f32 %v20711_v22, %v24625_v44  ;;  %v6510_v55 = vsub.f32 %v20714_v34, %v24622_v27  ;;  %v6398_v5 = vsub.f32 %v20720_v46, %v24623_v58  ;;  %v20756_v2 = vsub.f32 %v6024_v38, %v6132_v32 }
 0x687   :  { %14927 = vmatpush3.bf16.msra.mxu1 %v14926_v17  ;;  %v20746_v13 = vsub.f32 %v6040_v48, %v6180_v41  ;;  %v24624_v63 = vand.u32 4294901760, %v20744_v24  ;;  %v6392_v29 = vand.u32 4294901760, %v6391_v19  ;;  %v24627_v48 = vand.u32 4294901760, %v20754_v23 }
 0x688   :  { %v6504_v17 = vand.u32 4294901760, %v6503_v6  ;;  %v6511_v20 = vand.u32 4294901760, %v6510_v55  ;;  %v6399_v14 = vand.u32 4294901760, %v6398_v5  ;;  %v24628_v49 = vand.u32 4294901760, %v20756_v2 }
 0x689   :  { %v24629_v60 = vand.u32 4294901760, %v20746_v13  ;;  %v6517_v36 = vsub.f32 %v20744_v24, %v24624_v63  ;;  %v6405_v55 = vsub.f32 %v20754_v23, %v24627_v48  ;;  %v20779_v48 = vpack.c.bf16 %v6180_v41, %v6177_v43 }
 0x68a   :  { %v14928_v27 = vpack.c.bf16 %v6511_v20, %v6504_v17  ;;  %v14930_v6 = vpack.c.bf16 %v6399_v14, %v6392_v29  ;;  %v6412_v19 = vsub.f32 %v20756_v2, %v24628_v49  ;;  %v14936_v43 = vpack.c.bf16 %v20452_v0, %v20437_v28 }
 0x68b   :  { %v6524_v38 = vsub.f32 %v20746_v13, %v24629_v60  ;;  %v6518_v5 = vand.u32 4294901760, %v6517_v36  ;;  %v6406_v20 = vand.u32 4294901760, %v6405_v55  ;;  %14901 = vmatprep.subr.bf16.mxu0 %v20779_v48 }
 0x68c   :  { %14929 = vmatprep.subr.bf16.mxu1 %v14928_v27  ;;  %v6413_v58 = vand.u32 4294901760, %v6412_v19  ;;  %v20781_v27 = vpack.c.bf16 %v6132_v32, %v6129_v33 }
 0x68d   :  { %v6525_v17 = vand.u32 4294901760, %v6524_v38  ;;  %14931 = vmatpush3.bf16.msra.mxu1 %v14930_v6 }
 0x68e   :  { %v14934_v44 = vpack.c.bf16 %v6413_v58, %v6406_v20  ;;  %14903 = vmatpush3.bf16.msra.mxu0 %v20781_v27 }
 0x68f   :  { %v14932_v63 = vpack.c.bf16 %v6525_v17, %v6518_v5  ;;  %14937 = vmatprep.subr.bf16.mxu0 %v14936_v43 }
 0x691   :  { %14933 = vmatprep.subr.bf16.mxu1 %v14932_v63 }
 0x692   :  { %14935 = vmatpush3.bf16.msra.mxu1 %v14934_v44 }
 0x693   :  { %14969 = vmatprep.subr.bf16.mxu1 %v20432_v57 }
 0x711   :  { %v20774_v18 = vpop.f32.mrb[24].mxu1 }
 0x712   :  { %v5889_v29 = vmax.f32 %v20281_v37, %v20774_v18  ;;  %v5810_v14 = vpop.f32.mrb[25].mxu1 }
 0x715   :  { %v5815_v36 = vpop.f32.mrb[26].mxu1 }
 0x716   :  { %v20784_v38 = vmax.f32 %v20290_v8, %v5815_v36  ;;  %v5817_v6 = vpop.f32.mrb[27].mxu1 }
 0x718   :  { %5909 = vrot.lane.b32.xlu0 %v20784_v38, %s16959_s8 }
 0x719   :  { %v5822_v44 = vpop.f32.mrb[28].mxu1 }
 0x71a   :  { %v20793_v41 = vmax.f32 %v20299_v26, %v5822_v44  ;;  %v5824_v58 = vpop.f32.mrb[29].mxu1 }
 0x71c   :  { %5911 = vrot.lane.b32.xlu0 %v20793_v41, %s16959_s8  ;;  %5934 = vrot.lane.b32.xlu1 %v20793_v41, %s16960_s16 }
 0x71d   :  { %v5829_v8 = vpop.f32.mrb[30].mxu1 }
 0x71e   :  { %v20800_v33 = vmax.f32 %v20308_v16, %v5829_v8  ;;  %v5831_v32 = vpop.f32.mrb[31].mxu1 }
 0x720   :  { %5913 = vrot.lane.b32.xlu0 %v20800_v33, %s16959_s8  ;;  %5936 = vrot.lane.b32.xlu1 %v20800_v33, %s16960_s16 }
 0x721   :  { %v5836_v26 = vpop.f32.mrb[32].mxu1 }
 0x722   :  { %v20807_v63 = vmax.f32 %v20317_v42, %v5836_v26  ;;  %v5838_v55 = vpop.f32.mrb[33].mxu1 }
 0x724   :  { %25693 = vst [vmem:[#allocation21_spill] sm:$0xff] %v20807_v63  ;;  %5915 = vrot.lane.b32.xlu0 %v20807_v63, %s16959_s8  ;;  %5938 = vrot.lane.b32.xlu1 %v20807_v63, %s16960_s16 }
 0x725   :  { %v5843_v16 = vpop.f32.mrb[34].mxu1 }
 0x726   :  { %v20814_v19 = vmax.f32 %v20326_v11, %v5843_v16  ;;  %v5845_v5 = vpop.f32.mrb[35].mxu1 }
 0x728   :  { %25694 = vst [vmem:[#allocation22_spill] sm:$0xff] %v20814_v19  ;;  %5917 = vrot.lane.b32.xlu0 %v20814_v19, %s16959_s8  ;;  %5940 = vrot.lane.b32.xlu1 %v20814_v19, %s16960_s16 }
 0x729   :  { %v5850_v42 = vpop.f32.mrb[36].mxu1 }
 0x72a   :  { %v20821_v17 = vmax.f32 %v20335_v62, %v5850_v42  ;;  %v5852_v20 = vpop.f32.mrb[37].mxu1 }
 0x72c   :  { %25695 = vst [vmem:[#allocation24_spill] sm:$0xff] %v20821_v17  ;;  %5919 = vrot.lane.b32.xlu0 %v20821_v17, %s16959_s8  ;;  %5942 = vrot.lane.b32.xlu1 %v20821_v17, %s16960_s16 }
 0x72d   :  { %v5857_v11 = vpop.f32.mrb[38].mxu1 }
 0x72e   :  { %v20828_v14 = vmax.f32 %v20340_v9, %v5857_v11  ;;  %v5859_v36 = vpop.f32.mrb[39].mxu1 }
 0x730   :  { %25696 = vst [vmem:[#allocation26_spill] sm:$0xff] %v20828_v14  ;;  %5921 = vrot.lane.b32.xlu0 %v20828_v14, %s16959_s8  ;;  %5944 = vrot.lane.b32.xlu1 %v20828_v14, %s16960_s16 }
 0x731   :  { %v5864_v62 = vpop.f32.mrb[40].mxu1 }
 0x732   :  { %v20837_v44 = vmax.f32 %v20346_v30, %v5864_v62  ;;  %v5866_v43 = vpop.f32.mrb[41].mxu1 }
 0x734   :  { %25697 = vst [vmem:[#allocation27_spill] sm:$0xff] %v20837_v44  ;;  %5923 = vrot.lane.b32.xlu0 %v20837_v44, %s16959_s8  ;;  %5946 = vrot.lane.b32.xlu1 %v20837_v44, %s16960_s16 }
 0x735   :  { %v5871_v9 = vpop.f32.mrb[42].mxu1 }
 0x736   :  { %v20848_v32 = vmax.f32 %v20352_v1, %v5871_v9  ;;  %v5873_v26 = vpop.f32.mrb[43].mxu1 }
 0x738   :  { %25698 = vst [vmem:[#allocation17_spill] sm:$0xff] %v20848_v32  ;;  %5959 = vrot.lane.b32.xlu0 %v20800_v33, %s16961_s12  ;;  %5948 = vrot.lane.b32.xlu1 %v20848_v32, %s16960_s16 }
 0x739   :  { %v5878_v55 = vpop.f32.mrb[44].mxu1 }
 0x73a   :  { %v20856_v16 = vmax.f32 %v20358_v40, %v5878_v55  ;;  %v5880_v5 = vpop.f32.mrb[45].mxu1 }
 0x73c   :  { %25699 = vst [vmem:[#allocation20_spill] sm:$0xff] %v20856_v16  ;;  %5963 = vrot.lane.b32.xlu0 %v20814_v19, %s16961_s12  ;;  %5961 = vrot.lane.b32.xlu1 %v20807_v63, %s16961_s12 }
 0x73d   :  { %v20860_v1 = vpop.f32.mrb[46].mxu1 }
 0x73e   :  { %25700 = vst [vmem:[#allocation28_spill] sm:$0xff] %v20860_v1  ;;  %v5887_v20 = vpop.f32.mrb[47].mxu1 }
 0x740   :  { %5967 = vrot.lane.b32.xlu0 %v20828_v14, %s16961_s12  ;;  %5965 = vrot.lane.b32.xlu1 %v20821_v17, %s16961_s12 }
 0x744   :  { %5971 = vrot.lane.b32.xlu0 %v20848_v32, %s16961_s12  ;;  %5969 = vrot.lane.b32.xlu1 %v20837_v44, %s16961_s12 }
 0x748   :  { %5973 = vrot.lane.b32.xlu1 %v20856_v16, %s16961_s12 }
 0x78a   :  { %v5910_v40 = vpop.permute.xlu0 %5909 }
 0x78b   :  { %v5984_v11 = vsel %vm5983_vm7, %v5889_v29, %v5910_v40 }
 0x78c   :  { %v20873_v36 = vand.u32 4294901760, %v5984_v11 }
 0x78e   :  { %25701 = vst [vmem:[#allocation34_spill] sm:$0xff] %v20873_v36  ;;  %v20876_v62 = vsub.f32 %v5984_v11, %v20873_v36  ;;  %v5912_v43 = vpop.permute.xlu0 %5911  ;;  %v20878_v9 = vpop.permute.xlu1 %5934 }
 0x78f   :  { %25702 = vst [vmem:[#allocation36_spill] sm:$0xff] %v20878_v9  ;;  %v5985_v26 = vsel %vm5983_vm7, %v20784_v38, %v5912_v43  ;;  %v5992_v55 = vsel %vm3080_vm6, %v5910_v40, %v20878_v9 }
 0x790   :  { %v20884_v5 = vand.u32 4294901760, %v5985_v26  ;;  %v20886_v20 = vand.u32 4294901760, %v5992_v55  ;;  %v24630_v37 = vand.u32 4294901760, %v20876_v62 }
 0x792   :  { %25703 = vst [vmem:[#allocation38_spill] sm:$0xff] %v20884_v5  ;;  %25704 = vst [vmem:[#allocation51_spill] sm:$0xff] %v20886_v20  ;;  %v20890_v18 = vsub.f32 %v5985_v26, %v20884_v5  ;;  %v20893_v29 = vsub.f32 %v5992_v55, %v20886_v20  ;;  %6528 = vmatprep.mubr.f32.mxu1 %v20886_v20  ;;  %v5914_v11 = vpop.permute.xlu0 %5913  ;;  %v20896_v42 = vpop.permute.xlu1 %5936  ;;  %v6191_v60 = vsub.f32 %v20876_v62, %v24630_v37 }
 0x793   :  { %25705 = vst [vmem:[#allocation53_spill] sm:$0xff] %v20896_v42  ;;  %v5986_v38 = vsel %vm5983_vm7, %v20793_v41, %v5914_v11  ;;  %v5993_v40 = vsel %vm3080_vm6, %v5912_v43, %v20896_v42  ;;  %6530 = vmatmul.mubr.f32.vlgmr.msra.gmra.mrb[48].mxu1 %v20873_v36 }
 0x794   :  { %v20903_v49 = vand.u32 4294901760, %v5986_v38  ;;  %v20905_v26 = vand.u32 4294901760, %v5993_v40  ;;  %14971 = vmatpush3.bf16.msra.mxu1 %v20434_v31  ;;  %v24633_v55 = vand.u32 4294901760, %v20893_v29  ;;  %v6192_v16 = vand.u32 4294901760, %v6191_v60 }
 0x795   :  { %14973 = vmatprep.subr.bf16.mxu1 %v20458_v3 }
 0x796   :  { %25706 = vst [vmem:[#allocation56_spill] sm:$0xff] %v20903_v49  ;;  %25707 = vst [vmem:[#allocation61_spill] sm:$0xff] %v20905_v26  ;;  %v20915_v43 = vsub.f32 %v5986_v38, %v20903_v49  ;;  %v20918_v30 = vsub.f32 %v5993_v40, %v20905_v26  ;;  %6535 = vmatprep.mubr.f32.mxu1 %v20905_v26  ;;  %v5916_v8 = vpop.permute.xlu0 %5915  ;;  %v20921_v58 = vpop.permute.xlu1 %5938  ;;  %v6185_v6 = vsub.f32 %v20893_v29, %v24633_v55  ;;  %v25720_v26 = vld [vmem:[#allocation119_spill] sm:$0xff] }
 0x797   :  { %25708 = vst [vmem:[#allocation54_spill] sm:$0xff] %v20921_v58  ;;  %v5987_v37 = vsel %vm5983_vm7, %v20800_v33, %v5916_v8  ;;  %v5994_v41 = vsel %vm3080_vm6, %v5914_v11, %v20921_v58  ;;  %6537 = vmatmul.mubr.f32.gmra.mrb[50].mxu1 %v20884_v5  ;;  %v14938_v38 = vpack.c.bf16 %v20456_v50, %v20454_v61  ;;  %v25711_v11 = vand.u32 4294901760, %v20890_v18 }
 0x798   :  { %v20933_v40 = vand.u32 4294901760, %v5987_v37  ;;  %v20935_v1 = vand.u32 4294901760, %v5994_v41  ;;  %14975 = vmatpush3.bf16.msra.mxu1 %v20464_v59  ;;  %v6186_v54 = vand.u32 4294901760, %v6185_v6  ;;  %v24640_v55 = vand.u32 4294901760, %v20918_v30 }
 0x799   :  { %14977 = vmatprep.subr.bf16.mxu1 %v20500_v21  ;;  %v14940_v33 = vpack.c.bf16 %v20462_v47, %v20460_v51  ;;  %v6206_v58 = vsub.f32 %v20890_v18, %v25711_v11 }
 0x79a   :  { %25709 = vst [vmem:[#allocation52_spill] sm:$0xff] %v20933_v40  ;;  %25710 = vst [vmem:[#allocation29_spill] sm:$0xff] %v20935_v1  ;;  %v20947_v32 = vsub.f32 %v5987_v37, %v20933_v40  ;;  %v20950_v9 = vsub.f32 %v5994_v41, %v20935_v1  ;;  %6187 = vmatprep.mubr.f32.mxu0 %v6186_v54  ;;  %6542 = vmatprep.mubr.f32.mxu1 %v20935_v1  ;;  %v5918_v60 = vpop.permute.xlu0 %5917  ;;  %v20953_v6 = vpop.permute.xlu1 %5940 }
 0x79b   :  { %25712 = vst [vmem:[#allocation59_spill] sm:$0xff] %v20953_v6  ;;  %v6200_v44 = vsub.f32 %v20918_v30, %v24640_v55  ;;  %v5988_v11 = vsel %vm5983_vm7, %v20807_v63, %v5918_v60  ;;  %v5995_v37 = vsel %vm3080_vm6, %v5916_v8, %v20953_v6  ;;  %6193 = vmatmul.mubr.f32.vlgmr.msra.gmra.mrb[48].mxu0 %v6192_v16  ;;  %v6207_v63 = vand.u32 4294901760, %v6206_v58 }
 0x79c   :  { %6544 = vmatmul.mubr.f32.gmra.mrb[52].mxu1 %v20903_v49  ;;  %v14942_v54 = vpack.c.bf16 %v20489_v10, %v20477_v7  ;;  %v20965_v41 = vand.u32 4294901760, %v5988_v11  ;;  %v20967_v42 = vand.u32 4294901760, %v5995_v37  ;;  %14939 = vmatpush3.bf16.msra.mxu0 %v14938_v38  ;;  %v24649_v1 = vand.u32 4294901760, %v20950_v9 }
 0x79d   :  { %14979 = vmatpush3.bf16.msra.mxu1 %v20519_v15  ;;  %v6201_v55 = vand.u32 4294901760, %v6200_v44  ;;  %14941 = vmatprep.subr.bf16.mxu0 %v14940_v33  ;;  %v14944_v8 = vpack.c.bf16 %v20517_v35, %v20502_v4  ;;  %v25715_v16 = vand.u32 4294901760, %v20915_v43 }
 0x79e   :  { %25713 = vst [vmem:[#allocation57_spill] sm:$0xff] %v20965_v41  ;;  %25714 = vst [vmem:[#allocation60_spill] sm:$0xff] %v20967_v42  ;;  %14981 = vmatprep.subr.bf16.mxu1 %v20523_v39  ;;  %v20979_v38 = vsub.f32 %v5988_v11, %v20965_v41  ;;  %v20982_v44 = vsub.f32 %v5995_v37, %v20967_v42  ;;  %6549 = vmatprep.mubr.f32.mxu1 %v20967_v42  ;;  %v5920_v58 = vpop.permute.xlu0 %5919  ;;  %v20985_v33 = vpop.permute.xlu1 %5942 }
 0x79f   :  { %v6221_v6 = vsub.f32 %v20915_v43, %v25715_v16  ;;  %6202 = vmatprep.mubr.f32.mxu0 %v6201_v55  ;;  %25717 = vst [vmem:[#allocation76_spill] sm:$0xff] %v20985_v33  ;;  %v6215_v5 = vsub.f32 %v20950_v9, %v24649_v1  ;;  %v5989_v16 = vsel %vm5983_vm7, %v20814_v19, %v5920_v58 }
 0x7a0   :  { %25716 = vst [vmem:[#allocation73_spill] sm:$0xff] %v20979_v38  ;;  %v5996_v11 = vsel %vm3080_vm6, %v5918_v60, %v20985_v33  ;;  %6208 = vmatmul.mubr.f32.gmra.mrb[50].mxu0 %v6207_v63  ;;  %6551 = vmatmul.mubr.f32.gmra.mrb[54].mxu1 %v20933_v40  ;;  %v14946_v55 = vpack.c.bf16 %v20526_v45, %v20521_v56  ;;  %v20997_v37 = vand.u32 4294901760, %v5989_v16  ;;  %v24664_v42 = vand.u32 4294901760, %v20982_v44  ;;  %v25721_v63 = vld [vmem:[#allocation110_spill] sm:$0xff]  ;;  %v25722_v60 = vld [vmem:[#allocation111_spill] sm:$0xff] }
 0x7a1   :  { %v20999_v49 = vand.u32 4294901760, %v5996_v11  ;;  %14943 = vmatpush3.bf16.msra.mxu0 %v14942_v54  ;;  %14983 = vmatpush3.bf16.msra.mxu1 %v20534_v53  ;;  %v6216_v1 = vand.u32 4294901760, %v6215_v5  ;;  %v6222_v19 = vand.u32 4294901760, %v6221_v6  ;;  %v14948_v33 = vpack.c.bf16 %v25722_v60, %v25721_v63  ;;  %v25728_v63 = vld [vmem:[#allocation126_spill] sm:$0xff]  ;;  %v25729_v45 = vld [vmem:[#allocation131_spill] sm:$0xff] }
 0x7a2   :  { %25718 = vst [vmem:[#allocation13_spill] sm:$0xff] %v20997_v37  ;;  %14945 = vmatprep.subr.bf16.mxu0 %v14944_v8  ;;  %14985 = vmatprep.subr.bf16.mxu1 %v25720_v26  ;;  %v25723_v40 = vand.u32 4294901760, %v20947_v32  ;;  %v21011_v54 = vsub.f32 %v5989_v16, %v20997_v37  ;;  %v5922_v6 = vpop.permute.xlu0 %5921  ;;  %v21017_v8 = vpop.permute.xlu1 %5944  ;;  %v6230_v26 = vsub.f32 %v20982_v44, %v24664_v42 }
 0x7a3   :  { %25719 = vst [vmem:[#allocation15_spill] sm:$0xff] %v20999_v49  ;;  %v21014_v5 = vsub.f32 %v5996_v11, %v20999_v49  ;;  %6217 = vmatprep.mubr.f32.mxu0 %v6216_v1  ;;  %6556 = vmatprep.mubr.f32.mxu1 %v20999_v49  ;;  %25724 = vst [vmem:[#allocation41_spill] sm:$0xff] %v21017_v8  ;;  %v5997_v16 = vsel %vm3080_vm6, %v5920_v58, %v21017_v8  ;;  %v25725_v11 = vld [vmem:[#allocation115_spill] sm:$0xff]  ;;  %v25726_v1 = vld [vmem:[#allocation118_spill] sm:$0xff] }
 0x7a4   :  { %v6236_v36 = vsub.f32 %v20947_v32, %v25723_v40  ;;  %v5990_v40 = vsel %vm5983_vm7, %v20821_v17, %v5922_v6  ;;  %6223 = vmatmul.mubr.f32.gmra.mrb[52].mxu0 %v6222_v19  ;;  %6558 = vmatmul.mubr.f32.gmra.mrb[56].mxu1 %v20965_v41  ;;  %v14950_v20 = vpack.c.bf16 %v25726_v1, %v25725_v11  ;;  %v21031_v60 = vand.u32 4294901760, %v5997_v16  ;;  %v25730_v19 = vld [vmem:[#allocation122_spill] sm:$0xff]  ;;  %v25731_v58 = vld [vmem:[#allocation123_spill] sm:$0xff] }
 0x7a5   :  { %v21029_v49 = vand.u32 4294901760, %v5990_v40  ;;  %14947 = vmatpush3.bf16.msra.mxu0 %v14946_v55  ;;  %14987 = vmatpush3.bf16.msra.mxu1 %v25728_v63  ;;  %v6231_v42 = vand.u32 4294901760, %v6230_v26  ;;  %v24673_v53 = vand.u32 4294901760, %v21014_v5  ;;  %v14952_v8 = vpack.c.bf16 %v25731_v58, %v25730_v19  ;;  %v25737_v19 = vld [vmem:[#allocation138_spill] sm:$0xff] }
 0x7a6   :  { %25727 = vst [vmem:[#allocation14_spill] sm:$0xff] %v21031_v60  ;;  %14949 = vmatprep.subr.bf16.mxu0 %v14948_v33  ;;  %v6237_v17 = vand.u32 4294901760, %v6236_v36  ;;  %14989 = vmatprep.subr.bf16.mxu1 %v25729_v45  ;;  %v25732_v41 = vand.u32 4294901760, %v20979_v38  ;;  %v21046_v26 = vsub.f32 %v5997_v16, %v21031_v60  ;;  %v5924_v36 = vpop.permute.xlu0 %5923  ;;  %v21049_v33 = vpop.permute.xlu1 %5946  ;;  %v25734_v16 = vld [vmem:[#allocation127_spill] sm:$0xff] }
 0x7a7   :  { %v21043_v55 = vsub.f32 %v5990_v40, %v21029_v49  ;;  %6232 = vmatprep.mubr.f32.mxu0 %v6231_v42  ;;  %6563 = vmatprep.mubr.f32.mxu1 %v21031_v60  ;;  %25733 = vst [vmem:[#allocation96_spill] sm:$0xff] %v21049_v33  ;;  %v6245_v45 = vsub.f32 %v21014_v5, %v24673_v53  ;;  %v25735_v42 = vld [vmem:[#allocation130_spill] sm:$0xff] }
 0x7a8   :  { %v6251_v1 = vsub.f32 %v20979_v38, %v25732_v41  ;;  %v5991_v41 = vsel %vm5983_vm7, %v20828_v14, %v5924_v36  ;;  %v5998_v40 = vsel %vm3080_vm6, %v5922_v6, %v21049_v33  ;;  %6238 = vmatmul.mubr.f32.gmra.mrb[54].mxu0 %v6237_v17  ;;  %6565 = vmatmul.mubr.f32.gmra.mrb[58].mxu1 %v20997_v37  ;;  %v24682_v63 = vand.u32 4294901760, %v21046_v26  ;;  %v25738_v38 = vld [vmem:[#allocation139_spill] sm:$0xff]  ;;  %v25739_v17 = vld [vmem:[#allocation134_spill] sm:$0xff] }
 0x7a9   :  { %v14954_v11 = vpack.c.bf16 %v25735_v42, %v25734_v16  ;;  %v21061_v60 = vand.u32 4294901760, %v5991_v41  ;;  %v21063_v58 = vand.u32 4294901760, %v5998_v40  ;;  %14951 = vmatpush3.bf16.msra.mxu0 %v14950_v20  ;;  %14991 = vmatpush3.bf16.msra.mxu1 %v25737_v19  ;;  %v6246_v53 = vand.u32 4294901760, %v6245_v45  ;;  %v25740_v6 = vld [vmem:[#allocation135_spill] sm:$0xff] }
 0x7aa   :  { %14953 = vmatprep.subr.bf16.mxu0 %v14952_v8  ;;  %v6252_v14 = vand.u32 4294901760, %v6251_v1  ;;  %14993 = vmatprep.subr.bf16.mxu1 %v25738_v38  ;;  %v14956_v33 = vpack.c.bf16 %v25740_v6, %v25739_v17  ;;  %v25741_v37 = vand.u32 4294901760, %v21011_v54  ;;  %v21081_v8 = vpop.permute.xlu1 %5948  ;;  %v6260_v1 = vsub.f32 %v21046_v26, %v24682_v63 }
 0x7ab   :  { %25736 = vst [vmem:[#allocation98_spill] sm:$0xff] %v21063_v58  ;;  %v21075_v20 = vsub.f32 %v5991_v41, %v21061_v60  ;;  %v21078_v45 = vsub.f32 %v5998_v40, %v21063_v58  ;;  %6247 = vmatprep.mubr.f32.mxu0 %v6246_v53  ;;  %6570 = vmatprep.mubr.f32.mxu1 %v21063_v58  ;;  %v25742_v40 = vld [vmem:[#allocation18_spill] sm:$0xff] }
 0x7ac   :  { %v6266_v42 = vsub.f32 %v21011_v54, %v25741_v37  ;;  %v5999_v37 = vsel %vm3080_vm6, %v5924_v36, %v21081_v8  ;;  %6253 = vmatmul.mubr.f32.gmra.mrb[56].mxu0 %v6252_v14  ;;  %6572 = vmatmul.mubr.f32.gmra.mrb[60].mxu1 %v21029_v49  ;;  %v6261_v53 = vand.u32 4294901760, %v6260_v1  ;;  %v14958_v16 = vpack.c.bf16 %v20672_v25, %v20651_v52 }
 0x7ad   :  { %v21089_v41 = vand.u32 4294901760, %v5999_v37  ;;  %14955 = vmatpush3.bf16.msra.mxu0 %v14954_v11  ;;  %14995 = vmatpush3.bf16.msra.mxu1 %v25742_v40  ;;  %v6274_v58 = vand.u32 4294901760, %v21078_v45  ;;  %v25743_v36 = vand.u32 4294901760, %v21043_v55  ;;  %v24683_v1 = vand.u32 4294901760, %v21075_v20 }
 0x7ae   :  { %14957 = vmatprep.subr.bf16.mxu0 %v14956_v33  ;;  %v6267_v38 = vand.u32 4294901760, %v6266_v42  ;;  %14997 = vmatprep.subr.bf16.mxu1 %v20779_v48  ;;  %v25744_v42 = vand.u32 4294901760, %v20893_v29 }
 0x7af   :  { %v6281_v14 = vsub.f32 %v21043_v55, %v25743_v36  ;;  %v21100_v63 = vsub.f32 %v5999_v37, %v21089_v41  ;;  %6262 = vmatprep.mubr.f32.mxu0 %v6261_v53  ;;  %6577 = vmatprep.mubr.f32.mxu1 %v21089_v41  ;;  %v6275_v11 = vsub.f32 %v21078_v45, %v6274_v58 }
 0x7b0   :  { %6268 = vmatmul.mubr.f32.gmra.mrb[58].mxu0 %v6267_v38  ;;  %6579 = vmatmul.mubr.f32.gmra.mrb[62].mxu1 %v21061_v60  ;;  %v25745_v37 = vpack.c.bf16 %v20714_v34, %v20711_v22  ;;  %v6296_v38 = vsub.f32 %v21075_v20, %v24683_v1 }
 0x7b1   :  { %14959 = vmatpush3.bf16.msra.mxu0 %v14958_v16  ;;  %14999 = vmatpush3.bf16.msra.mxu1 %v20781_v27  ;;  %v6276_v33 = vand.u32 4294901760, %v6275_v11  ;;  %v6282_v53 = vand.u32 4294901760, %v6281_v14  ;;  %v6289_v36 = vand.u32 4294901760, %v21100_v63  ;;  %v25746_v16 = vand.u32 4294901760, %v20876_v62 }
 0x7b2   :  { %6884 = vmatprep.mubr.f32.mxu1 %v25744_v42  ;;  %14961 = vmatprep.subr.bf16.mxu0 %v25745_v37  ;;  %v25747_v14 = vpack.c.bf16 %v20720_v46, %v20717_v12  ;;  %v6297_v37 = vand.u32 4294901760, %v6296_v38  ;;  %v25757_v38 = vand.u32 4294901760, %v20460_v51  ;;  %v25762_v51 = vand.u32 4294901760, %v20489_v10 }
 0x7b3   :  { %6277 = vmatprep.mubr.f32.mxu0 %v6276_v33  ;;  %15033 = vmatprep.subr.bf16.mxu1 %v20432_v57  ;;  %v6290_v11 = vsub.f32 %v21100_v63, %v6289_v36  ;;  %v25748_v33 = vand.u32 4294901760, %v20918_v30  ;;  %v25749_v57 = vpack.c.bf16 %v20746_v13, %v20744_v24  ;;  %v25767_v10 = vand.u32 4294901760, %v20521_v56 }
 0x7b4   :  { %6283 = vmatmul.mubr.f32.gmra.mrb[60].mxu0 %v6282_v53  ;;  %6888 = vmatmul.mubr.f32.vlgmr.msra.gmra.mrb[64].mxu1 %v25746_v16  ;;  %v25750_v53 = vand.u32 4294901760, %v20437_v28  ;;  %v25751_v16 = vand.u32 4294901760, %v20452_v0  ;;  %v25756_v28 = vand.u32 4294901760, %v20456_v50  ;;  %v25761_v50 = vand.u32 4294901760, %v20477_v7 }
 0x7b5   :  { %14963 = vmatpush3.bf16.msra.mxu0 %v25747_v14  ;;  %6895 = vmatprep.mubr.f32.mxu1 %v25748_v33  ;;  %v6291_v42 = vand.u32 4294901760, %v6290_v11  ;;  %v25752_v14 = vand.u32 4294901760, %v20890_v18  ;;  %v25754_v33 = vpack.c.bf16 %v20756_v2, %v20754_v23  ;;  %v25758_v11 = vand.u32 4294901760, %v20462_v47 }
 0x7b6   :  { %15035 = vmatpush3.bf16.msra.mxu1 %v20434_v31  ;;  %14965 = vmatprep.subr.bf16.mxu0 %v25749_v57  ;;  %v15000_v1 = vpack.c.bf16 %v25751_v16, %v25750_v53  ;;  %v25753_v31 = vand.u32 4294901760, %v20950_v9  ;;  %v25763_v47 = vand.u32 4294901760, %v20502_v4  ;;  %v25766_v7 = vand.u32 4294901760, %v21014_v5  ;;  %v25773_v53 = vld [vmem:[#allocation111_spill] sm:$0xff] }
 0x7b7   :  { %15037 = vmatprep.subr.bf16.mxu1 %v20458_v3  ;;  %6292 = vmatprep.mubr.f32.mxu0 %v6291_v42  ;;  %v25755_v3 = vand.u32 4294901760, %v20454_v61  ;;  %v15004_v57 = vpack.c.bf16 %v25758_v11, %v25757_v38  ;;  %v25759_v42 = vand.u32 4294901760, %v20915_v43  ;;  %v25760_v61 = vand.u32 4294901760, %v20982_v44  ;;  %v25783_v38 = vld [vmem:[#allocation126_spill] sm:$0xff] }
 0x7b8   :  { %6899 = vmatmul.mubr.f32.gmra.mrb[66].mxu1 %v25752_v14  ;;  %6298 = vmatmul.mubr.f32.gmra.mrb[62].mxu0 %v6297_v37  ;;  %v25778_v56 = vand.u32 4294901760, %v21046_v26  ;;  %v25784_v11 = vld [vmem:[#allocation122_spill] sm:$0xff] }
 0x7b9   :  { %6906 = vmatprep.mubr.f32.mxu1 %v25753_v31  ;;  %14967 = vmatpush3.bf16.msra.mxu0 %v25754_v33  ;;  %v15002_v0 = vpack.c.bf16 %v25756_v28, %v25755_v3  ;;  %v25777_v31 = vld [vmem:[#allocation119_spill] sm:$0xff]  ;;  %v25781_v3 = vld [vmem:[#allocation118_spill] sm:$0xff] }
 0x7ba   :  { %6714 = vmatprep.mubr.f32.mxu0 %v20893_v29  ;;  %15039 = vmatpush3.bf16.msra.mxu1 %v20464_v59  ;;  %v15006_v59 = vpack.c.bf16 %v25762_v51, %v25761_v50  ;;  %v25782_v28 = vand.u32 4294901760, %v25781_v3  ;;  %v25789_v51 = vld [vmem:[#allocation131_spill] sm:$0xff]  ;;  %v21324_v3 = vld [vmem:[%s23993_s4 + $0x138] sm:$0xff] }
 0x7bb   :  { %15001 = vmatprep.subr.bf16.mxu0 %v15000_v1  ;;  %15041 = vmatprep.subr.bf16.mxu1 %v20500_v21  ;;  %v25764_v21 = vand.u32 4294901760, %v20517_v35  ;;  %v25770_v35 = vld [vmem:[#allocation114_spill] sm:$0xff] }
 0x7bc   :  { %6910 = vmatmul.mubr.f32.gmra.mrb[68].mxu1 %v25759_v42  ;;  %6717 = vmatmul.mubr.f32.vlgmr.msra.gmra.mrb[64].mxu0 %v20876_v62  ;;  %v25765_v62 = vand.u32 4294901760, %v20947_v32  ;;  %v25771_v1 = vld [vmem:[#allocation110_spill] sm:$0xff]  ;;  %v25786_v42 = vld [vmem:[#allocation123_spill] sm:$0xff] }
 0x7bd   :  { %6917 = vmatprep.mubr.f32.mxu1 %v25760_v61  ;;  %15003 = vmatpush3.bf16.msra.mxu0 %v15002_v0  ;;  %v15008_v29 = vpack.c.bf16 %v25764_v21, %v25763_v47  ;;  %v25772_v37 = vand.u32 4294901760, %v25771_v1  ;;  %v25787_v61 = vand.u32 4294901760, %v25786_v42  ;;  %v25792_v47 = vld [vmem:[#allocation130_spill] sm:$0xff]  ;;  %v21343_v42 = vld [vmem:[%s23993_s4 + $0x140] sm:$0xff] }
 0x7be   :  { %6723 = vmatprep.mubr.f32.mxu0 %v20918_v30  ;;  %15043 = vmatpush3.bf16.msra.mxu1 %v20519_v15  ;;  %v25768_v15 = vld [vmem:[#allocation107_spill] sm:$0xff]  ;;  %v25793_v21 = vand.u32 4294901760, %v25792_v47 }
 0x7bf   :  { %15005 = vmatprep.subr.bf16.mxu0 %v15004_v57  ;;  %15045 = vmatprep.subr.bf16.mxu1 %v20523_v39  ;;  %v25769_v4 = vand.u32 4294901760, %v25768_v15  ;;  %v25774_v39 = vand.u32 4294901760, %v25773_v53  ;;  %v25785_v57 = vand.u32 4294901760, %v25784_v11  ;;  %v25801_v15 = vand.u32 4294901760, %v20714_v34  ;;  %v21249_v34 = vld [vmem:[%s23993_s4 + $0x100] sm:$0xff] }
 0x7c0   :  { %6921 = vmatmul.mubr.f32.gmra.mrb[70].mxu1 %v25765_v62  ;;  %6726 = vmatmul.mubr.f32.gmra.mrb[66].mxu0 %v20890_v18  ;;  %v25775_v18 = vld [vmem:[#allocation73_spill] sm:$0xff]  ;;  %v25794_v62 = vand.u32 4294901760, %v25739_v17  ;;  %v24697_v11 = vand.u32 4294901760, %v21324_v3 }
 0x7c1   :  { %6928 = vmatprep.mubr.f32.mxu1 %v25766_v7  ;;  %15007 = vmatpush3.bf16.msra.mxu0 %v15006_v59  ;;  %v15010_v30 = vpack.c.bf16 %v25769_v4, %v25767_v10  ;;  %v15012_v16 = vpack.c.bf16 %v25774_v39, %v25772_v37  ;;  %v25776_v14 = vand.u32 4294901760, %v25775_v18  ;;  %v15016_v50 = vpack.c.bf16 %v25787_v61, %v25785_v57  ;;  %v25814_v53 = vld [vmem:[#allocation29_spill] sm:$0xff]  ;;  %v21300_v39 = vld [vmem:[%s23993_s4 + $0x128] sm:$0xff]  ;;  %v25821_v57 = vld [vmem:[#allocation15_spill] sm:$0xff] }
 0x7c2   :  { %6732 = vmatprep.mubr.f32.mxu0 %v20950_v9  ;;  %15047 = vmatpush3.bf16.msra.mxu1 %v25770_v35  ;;  %v25779_v9 = vld [vmem:[#allocation115_spill] sm:$0xff]  ;;  %v25795_v7 = vand.u32 4294901760, %v25740_v6  ;;  %v25800_v6 = vand.u32 4294901760, %v20711_v22  ;;  %v7341_v35 = vand.u32 4294901760, %v21249_v34  ;;  %v21348_v61 = vld [vmem:[%s23993_s4 + $0x148] sm:$0xff] }
 0x7c3   :  { %15009 = vmatprep.subr.bf16.mxu0 %v15008_v29  ;;  %15049 = vmatprep.subr.bf16.mxu1 %v25777_v31  ;;  %v25780_v33 = vand.u32 4294901760, %v25779_v9  ;;  %v25818_v9 = vld [vmem:[#allocation60_spill] sm:$0xff]  ;;  %v24693_v47 = vand.u32 4294901760, %v21348_v61 }
 0x7c4   :  { %6932 = vmatmul.mubr.f32.gmra.mrb[72].mxu1 %v25776_v14  ;;  %6735 = vmatmul.mubr.f32.gmra.mrb[68].mxu0 %v20915_v43  ;;  %v25788_v43 = vand.u32 4294901760, %v21011_v54  ;;  %v15020_v10 = vpack.c.bf16 %v25795_v7, %v25794_v62  ;;  %v15024_v4 = vpack.c.bf16 %v25801_v15, %v25800_v6  ;;  %v21374_v62 = vld [vmem:[%s23993_s4 + $0x158] sm:$0xff]  ;;  %v21400_v6 = vld [vmem:[%s23993_s4 + $0x168] sm:$0xff] }
 0x7c5   :  { %6939 = vmatprep.mubr.f32.mxu1 %v25778_v56  ;;  %15011 = vmatpush3.bf16.msra.mxu0 %v15010_v30  ;;  %v15014_v0 = vpack.c.bf16 %v25782_v28, %v25780_v33  ;;  %v25802_v30 = vand.u32 4294901760, %v21075_v20  ;;  %v24699_v56 = vand.u32 4294901760, %v21300_v39  ;;  %v21319_v33 = vld [vmem:[%s23993_s4 + $0x130] sm:$0xff]  ;;  %v25819_v28 = vld [vmem:[#allocation52_spill] sm:$0xff] }
 0x7c6   :  { %6741 = vmatprep.mubr.f32.mxu0 %v20982_v44  ;;  %15051 = vmatpush3.bf16.msra.mxu1 %v25783_v38  ;;  %v25790_v44 = vld [vmem:[#allocation127_spill] sm:$0xff]  ;;  %v24698_v38 = vand.u32 4294901760, %v21319_v33 }
 0x7c7   :  { %15013 = vmatprep.subr.bf16.mxu0 %v15012_v16  ;;  %15053 = vmatprep.subr.bf16.mxu1 %v25789_v51  ;;  %v25791_v59 = vand.u32 4294901760, %v25790_v44  ;;  %v25815_v16 = vmov 0.0|0.0   ;;  %v25823_v51 = vld [vmem:[#allocation57_spill] sm:$0xff] }
 0x7c8   :  { %6943 = vmatmul.mubr.f32.gmra.mrb[74].mxu1 %v25788_v43  ;;  %6744 = vmatmul.mubr.f32.gmra.mrb[70].mxu0 %v20947_v32  ;;  %v25796_v32 = vand.u32 4294901760, %v21043_v55  ;;  %v21360_v44 = vpack.c.bf16 %v24697_v11, %v24698_v38  ;;  %v5962_v38 = vpop.permute.xlu1 %5961 }
 0x7c9   :  { %6950 = vmatprep.mubr.f32.mxu1 %v6274_v58  ;;  %15015 = vmatpush3.bf16.msra.mxu0 %v15014_v0  ;;  %v15018_v29 = vpack.c.bf16 %v25793_v21, %v25791_v59  ;;  %v25797_v58 = vld [vmem:[#allocation139_spill] sm:$0xff]  ;;  %v24696_v59 = vand.u32 4294901760, %v21343_v42  ;;  %v25825_v21 = vld [vmem:[#allocation14_spill] sm:$0xff] }
 0x7ca   :  { %6750 = vmatprep.mubr.f32.mxu0 %v21014_v5  ;;  %15055 = vmatpush3.bf16.msra.mxu1 %v25737_v19  ;;  %v25798_v5 = vand.u32 4294901760, %v20651_v52  ;;  %v25799_v19 = vand.u32 4294901760, %v20672_v25  ;;  %v25804_v52 = vand.u32 4294901760, %v20717_v12  ;;  %v25805_v25 = vand.u32 4294901760, %v20720_v46  ;;  %v25808_v46 = vld [vmem:[#allocation34_spill] sm:$0xff]  ;;  %25824 = vst [vmem:[#allocation121_spill] sm:$0xff] %v21360_v44 }
 0x7cb   :  { %15017 = vmatprep.subr.bf16.mxu0 %v15016_v50  ;;  %15057 = vmatprep.subr.bf16.mxu1 %v25797_v58  ;;  %v25807_v12 = vand.u32 4294901760, %v20746_v13  ;;  %v21273_v13 = vld [vmem:[%s23993_s4 + $0x110] sm:$0xff]  ;;  %v25822_v50 = vld [vmem:[#allocation21_spill] sm:$0xff] }
 0x7cc   :  { %6954 = vmatmul.mubr.f32.gmra.mrb[76].mxu1 %v25796_v32  ;;  %6753 = vmatmul.mubr.f32.gmra.mrb[72].mxu0 %v25775_v18  ;;  %v15022_v17 = vpack.c.bf16 %v25799_v19, %v25798_v5  ;;  %v15026_v22 = vpack.c.bf16 %v25805_v25, %v25804_v52  ;;  %v25816_v18 = vld [vmem:[#allocation56_spill] sm:$0xff]  ;;  %v6069_v43 = vsel %vm5983_vm7, %v25822_v50, 0  ;;  %v21386_v32 = vpack.c.bf16 %v24693_v47, %v24696_v59  ;;  %v25828_v19 = vld [vmem:[#allocation98_spill] sm:$0xff]  ;;  %v21422_v52 = vld [vmem:[%s23993_s4 + $0x170] sm:$0xff] }
 0x7cd   :  { %6961 = vmatprep.mubr.f32.mxu1 %v6289_v36  ;;  %15019 = vmatpush3.bf16.msra.mxu0 %v15018_v29  ;;  %v21369_v29 = vld [vmem:[%s23993_s4 + $0x150] sm:$0xff]  ;;  %v21377_v7 = vand.u32 4294901760, %v6069_v43  ;;  %v24691_v5 = vand.u32 4294901760, %v21374_v62  ;;  %v21427_v25 = vld [vmem:[%s23993_s4 + $0x178] sm:$0xff] }
 0x7ce   :  { %6759 = vmatprep.mubr.f32.mxu0 %v21046_v26  ;;  %15059 = vmatpush3.bf16.msra.mxu1 %v25742_v40  ;;  %v25803_v26 = vld [vmem:[#allocation51_spill] sm:$0xff]  ;;  %v25810_v40 = vand.u32 4294901760, %v20756_v2  ;;  %v25812_v2 = vld [vmem:[#allocation38_spill] sm:$0xff]  ;;  %25827 = vst [vmem:[#allocation132_spill] sm:$0xff] %v21386_v32  ;;  %v24692_v58 = vand.u32 4294901760, %v21369_v29 }
 0x7cf   :  { %15021 = vmatprep.subr.bf16.mxu0 %v15020_v10  ;;  %15061 = vmatprep.subr.bf16.mxu1 %v20779_v48  ;;  %v21254_v48 = vld [vmem:[%s23993_s4 + $0x108] sm:$0xff]  ;;  %v25826_v10 = vld [vmem:[#allocation13_spill] sm:$0xff]  ;;  %v21404_v15 = vsub.f32 %v6069_v43, %v21377_v7 }
 0x7d0   :  { %6965 = vmatmul.mubr.f32.gmra.mrb[78].mxu1 %v25802_v30  ;;  %6762 = vmatmul.mubr.f32.gmra.mrb[74].mxu0 %v21011_v54  ;;  %v25806_v54 = vand.u32 4294901760, %v20744_v24  ;;  %v7344_v1 = vand.u32 4294901760, %v21254_v48  ;;  %v25811_v24 = vld [vmem:[#allocation61_spill] sm:$0xff] }
 0x7d1   :  { %7284 = vmatprep.mubr.f32.mxu1 %v25803_v26  ;;  %15023 = vmatpush3.bf16.msra.mxu0 %v15022_v17  ;;  %v21395_v17 = vld [vmem:[%s23993_s4 + $0x160] sm:$0xff]  ;;  %25829 = vst [vmem:[#allocation133_spill] sm:$0xff] %v21404_v15 }
 0x7d2   :  { %6768 = vmatprep.mubr.f32.mxu0 %v21078_v45  ;;  %15063 = vmatpush3.bf16.msra.mxu1 %v20781_v27  ;;  %v15028_v45 = vpack.c.bf16 %v25807_v12, %v25806_v54  ;;  %v25809_v27 = vand.u32 4294901760, %v20754_v23  ;;  %v21278_v23 = vld [vmem:[%s23993_s4 + $0x118] sm:$0xff]  ;;  %v24690_v30 = vand.u32 4294901760, %v21395_v17  ;;  %v25831_v54 = vld [vmem:[#allocation22_spill] sm:$0xff] }
 0x7d3   :  { %15025 = vmatprep.subr.bf16.mxu0 %v15024_v4  ;;  %v24705_v37 = vand.u32 4294901760, %v21278_v23  ;;  %v21413_v4 = vpack.c.bf16 %v24691_v5, %v24692_v58  ;;  %v6071_v12 = vsel %vm5983_vm7, %v25831_v54, 0  ;;  %v21544_v5 = vld [vmem:[%s23993_s4 + $0x1b8] sm:$0xff] }
 0x7d4   :  { %6771 = vmatmul.mubr.f32.gmra.mrb[76].mxu0 %v21043_v55  ;;  %v15030_v36 = vpack.c.bf16 %v25810_v40, %v25809_v27  ;;  %v24706_v55 = vand.u32 4294901760, %v21273_v13  ;;  %v24688_v40 = vand.u32 4294901760, %v21422_v52  ;;  %v25846_v58 = vld [vmem:[#allocation36_spill] sm:$0xff] }
 0x7d5   :  { %15027 = vmatpush3.bf16.msra.mxu0 %v15026_v22  ;;  %7286 = vmatmul.mubr.f32.vlgmr.msra.gmra.mrb[80].mxu1 %v25808_v46  ;;  %25830 = vst [vmem:[#allocation19_spill] sm:$0xff] %v21413_v4  ;;  %v24684_v22 = vand.u32 4294901760, %v21404_v15 }
 0x7d6   :  { %6777 = vmatprep.mubr.f32.mxu0 %v21100_v63  ;;  %7291 = vmatprep.mubr.f32.mxu1 %v25811_v24  ;;  %v21286_v63 = vpack.c.bf16 %v7344_v1, %v7341_v35  ;;  %v21310_v14 = vpack.c.bf16 %v24705_v37, %v24706_v55 }
 0x7d7   :  { %15029 = vmatprep.subr.bf16.mxu0 %v15028_v45  ;;  %v25832_v45 = vld [vmem:[#allocation24_spill] sm:$0xff] }
 0x7d8   :  { %6780 = vmatmul.mubr.f32.gmra.mrb[78].mxu0 %v21075_v20  ;;  %25813 = vst [vmem:[#allocation105_spill] sm:$0xff] %v21286_v63  ;;  %v21295_v20 = vld [vmem:[%s23993_s4 + $0x120] sm:$0xff]  ;;  %25817 = vst [vmem:[#allocation108_spill] sm:$0xff] %v21310_v14 }
 0x7d9   :  { %15031 = vmatpush3.bf16.msra.mxu0 %v15030_v36  ;;  %7293 = vmatmul.mubr.f32.gmra.mrb[82].mxu1 %v25812_v2  ;;  %v24702_v31 = vand.u32 4294901760, %v21295_v20  ;;  %v24687_v36 = vand.u32 4294901760, %v21427_v25 }
 0x7da   :  { %7131 = vmatprep.mubr.f32.mxu0 %v25803_v26  ;;  %7298 = vmatprep.mubr.f32.mxu1 %v25814_v53  ;;  %v24689_v26 = vand.u32 4294901760, %v21400_v6 }
 0x7db   :  { %15064 = vmatprep.subr.bf16.mxu0 %v25815_v16  ;;  %v21334_v0 = vpack.c.bf16 %v24699_v56, %v24702_v31  ;;  %v21474_v50 = vpack.c.bf16 %v24687_v36, %v24688_v40  ;;  %v21587_v31 = vld [vmem:[%s23993_s4 + $0x1c0] sm:$0xff] }
 0x7dc   :  { %7133 = vmatmul.mubr.f32.vlgmr.msra.gmra.mrb[80].mxu0 %v25808_v46  ;;  %v6073_v46 = vsel %vm5983_vm7, %v25832_v45, 0  ;;  %v21442_v27 = vpack.c.bf16 %v24689_v26, %v24690_v30 }
 0x7dd   :  { %7300 = vmatmul.mubr.f32.gmra.mrb[84].mxu1 %v25816_v18  ;;  %15066 = vmatpush1.bf16.msra.mxu0 %v21286_v63  ;;  %25820 = vst [vmem:[#allocation117_spill] sm:$0xff] %v21334_v0  ;;  %25837 = vst [vmem:[#allocation35_spill] sm:$0xff] %v21474_v50 }
 0x7de   :  { %7138 = vmatprep.mubr.f32.mxu0 %v25811_v24  ;;  %7305 = vmatprep.mubr.f32.mxu1 %v25818_v9  ;;  %25833 = vst [vmem:[#allocation55_spill] sm:$0xff] %v21442_v27  ;;  %v21451_v24 = vld [vmem:[%s23993_s4 + $0x180] sm:$0xff] }
 0x7df   :  { %15067 = vmatprep.subr.bf16.mxu0 %v25815_v16  ;;  %v24686_v43 = vand.u32 4294901760, %v21451_v24 }
 0x7e0   :  { %7140 = vmatmul.mubr.f32.gmra.mrb[82].mxu0 %v25812_v2  ;;  %v21456_v2 = vld [vmem:[%s23993_s4 + $0x188] sm:$0xff] }
 0x7e1   :  { %7307 = vmatmul.mubr.f32.gmra.mrb[86].mxu1 %v25819_v28  ;;  %15069 = vmatpush1.bf16.msra.mxu0 %v21310_v14  ;;  %v25875_v14 = vand.u32 4294901760, %v21319_v33 }
 0x7e2   :  { %7145 = vmatprep.mubr.f32.mxu0 %v25814_v53  ;;  %7312 = vmatprep.mubr.f32.mxu1 %v25821_v57  ;;  %v7435_v53 = vsub.f32 %v21404_v15, %v24684_v22 }
 0x7e3   :  { %15070 = vmatprep.subr.bf16.mxu0 %v25815_v16 }
 0x7e4   :  { %7147 = vmatmul.mubr.f32.gmra.mrb[84].mxu0 %v25816_v18  ;;  %v21461_v18 = vand.u32 4294901760, %v6071_v12  ;;  %v7436_v54 = vand.u32 4294901760, %v7435_v53 }
 0x7e5   :  { %7314 = vmatmul.mubr.f32.gmra.mrb[88].mxu1 %v25823_v51  ;;  %15072 = vmatpush1.bf16.msra.mxu0 %v21334_v0  ;;  %v5966_v0 = vpop.permute.xlu1 %5965 }
 0x7e6   :  { %7152 = vmatprep.mubr.f32.mxu0 %v25818_v9  ;;  %7319 = vmatprep.mubr.f32.mxu1 %v25825_v21  ;;  %25834 = vst [vmem:[#allocation30_spill] sm:$0xff] %v21461_v18  ;;  %v21463_v9 = vand.u32 4294901760, %v6073_v46  ;;  %v21494_v45 = vsub.f32 %v6071_v12, %v21461_v18 }
 0x7e7   :  { %15073 = vmatprep.subr.bf16.mxu0 %v25815_v16 }
 0x7e8   :  { %7154 = vmatmul.mubr.f32.gmra.mrb[86].mxu0 %v25819_v28  ;;  %25835 = vst [vmem:[#allocation63_spill] sm:$0xff] %v21463_v9  ;;  %v25836_v28 = vld [vmem:[#allocation26_spill] sm:$0xff]  ;;  %25840 = vst [vmem:[#allocation43_spill] sm:$0xff] %v21494_v45 }
 0x7e9   :  { %7321 = vmatmul.mubr.f32.gmra.mrb[90].mxu1 %v25826_v10  ;;  %15075 = vmatpush1.bf16.msra.mxu0 %v21360_v44  ;;  %v25864_v44 = vand.u32 4294901760, %v21300_v39 }
 0x7ea   :  { %7159 = vmatprep.mubr.f32.mxu0 %v25821_v57  ;;  %7326 = vmatprep.mubr.f32.mxu1 %v25828_v19  ;;  %v6075_v57 = vsel %vm5983_vm7, %v25836_v28, 0  ;;  %v21497_v28 = vsub.f32 %v6073_v46, %v21463_v9  ;;  %v21520_v46 = vld [vmem:[%s23993_s4 + $0x1a8] sm:$0xff] }
 0x7eb   :  { %15076 = vmatprep.subr.bf16.mxu0 %v25815_v16  ;;  %v24703_v30 = vand.u32 4294901760, %v21520_v46 }
 0x7ec   :  { %7161 = vmatmul.mubr.f32.gmra.mrb[88].mxu0 %v25823_v51  ;;  %v24685_v51 = vand.u32 4294901760, %v21456_v2  ;;  %25841 = vst [vmem:[#allocation78_spill] sm:$0xff] %v21497_v28  ;;  %v24701_v36 = vand.u32 4294901760, %v21497_v28 }
 0x7ed   :  { %7328 = vmatmul.mubr.f32.gmra.mrb[92].mxu1 %v21029_v49  ;;  %15078 = vmatpush1.bf16.msra.mxu0 %v21386_v32 }
 0x7ee   :  { %7166 = vmatprep.mubr.f32.mxu0 %v25825_v21  ;;  %7333 = vmatprep.mubr.f32.mxu1 %v21089_v41  ;;  %v21489_v21 = vand.u32 4294901760, %v6075_v57  ;;  %v21505_v22 = vpack.c.bf16 %v24685_v51, %v24686_v43  ;;  %v5960_v51 = vpop.permute.xlu0 %5959  ;;  %v24700_v43 = vand.u32 4294901760, %v21494_v45  ;;  %v21561_v11 = vsub.f32 %v21497_v28, %v24701_v36 }
 0x7ef   :  { %15079 = vmatprep.subr.bf16.mxu0 %v25815_v16  ;;  %v6001_v47 = vsel %vm6000_vm8, %v25846_v58, %v5960_v51  ;;  %v21664_v58 = vsub.f32 %v21300_v39, %v25864_v44 }
 0x7f0   :  { %7168 = vmatmul.mubr.f32.gmra.mrb[90].mxu0 %v25826_v10  ;;  %25838 = vst [vmem:[#allocation71_spill] sm:$0xff] %v21489_v21  ;;  %v25839_v10 = vld [vmem:[#allocation27_spill] sm:$0xff]  ;;  %25842 = vst [vmem:[#allocation82_spill] sm:$0xff] %v21505_v22  ;;  %v21556_v59 = vsub.f32 %v21494_v45, %v24700_v43  ;;  %v21565_v56 = vand.u32 4294901760, %v6001_v47  ;;  %v21575_v43 = vsub.f32 %v21254_v48, %v7344_v1  ;;  %v25850_v1 = vld [vmem:[#allocation17_spill] sm:$0xff] }
 0x7f1   :  { %7335 = vmatmul.mubr.f32.gmra.mrb[94].mxu1 %v21061_v60  ;;  %15081 = vmatpush1.bf16.msra.mxu0 %v21413_v4  ;;  %v25862_v4 = vld [vmem:[#allocation54_spill] sm:$0xff] }
 0x7f2   :  { %7173 = vmatprep.mubr.f32.mxu0 %v25828_v19  ;;  %15082 = vmatprep.subr.bf16.mxu0 %v25815_v16  ;;  %v6077_v19 = vsel %vm5983_vm7, %v25839_v10, 0  ;;  %25848 = vst [vmem:[#allocation77_spill] sm:$0xff] %v21565_v56  ;;  %v5964_v55 = vpop.permute.xlu0 %5963  ;;  %v21625_v37 = vsub.f32 %v6001_v47, %v21565_v56 }
 0x7f3   :  { %v21509_v12 = vand.u32 4294901760, %v6077_v19 }
 0x7f4   :  { %7175 = vmatmul.mubr.f32.gmra.mrb[92].mxu0 %v21029_v49  ;;  %v21482_v49 = vld [vmem:[%s23993_s4 + $0x190] sm:$0xff]  ;;  %25857 = vst [vmem:[#allocation84_spill] sm:$0xff] %v21625_v37 }
 0x7f5   :  { %15084 = vmatpush1.bf16.msra.mxu0 %v21442_v27  ;;  %7180 = vmatprep.mubr.f32.mxu0 %v21089_v41  ;;  %v21487_v41 = vld [vmem:[%s23993_s4 + $0x198] sm:$0xff]  ;;  %v24695_v10 = vand.u32 4294901760, %v21482_v49  ;;  %25843 = vst [vmem:[#allocation85_spill] sm:$0xff] %v21509_v12 }
 0x7f6   :  { %15085 = vmatprep.subr.bf16.mxu0 %v25815_v16  ;;  %v24694_v53 = vand.u32 4294901760, %v21487_v41 }
 0x7f8   :  { %7182 = vmatmul.mubr.f32.gmra.mrb[94].mxu0 %v21061_v60  ;;  %v21515_v60 = vld [vmem:[%s23993_s4 + $0x1a0] sm:$0xff]  ;;  %v21532_v40 = vpack.c.bf16 %v24694_v53, %v24695_v10  ;;  %v21551_v10 = vsub.f32 %v6077_v19, %v21509_v12  ;;  %v21570_v19 = vsub.f32 %v21249_v34, %v7341_v35  ;;  %v21593_v34 = vld [vmem:[%s23993_s4 + $0x1c8] sm:$0xff] }
 0x7f9   :  { %15087 = vmatpush1.bf16.msra.mxu0 %v21474_v50  ;;  %7437 = vmatprep.mubr.f32.mxu0 %v7436_v54  ;;  %v21523_v54 = vsub.f32 %v6075_v57, %v21489_v21  ;;  %v24704_v26 = vand.u32 4294901760, %v21515_v60  ;;  %v21539_v57 = vld [vmem:[%s23993_s4 + $0x1b0] sm:$0xff]  ;;  %v25855_v50 = vand.u32 4294901760, %v21544_v5 }
 0x7fa   :  { %15088 = vmatprep.subr.bf16.mxu0 %v25815_v16  ;;  %25845 = vst [vmem:[#allocation64_spill] sm:$0xff] %v21532_v40  ;;  %25847 = vst [vmem:[#allocation46_spill] sm:$0xff] %v21551_v10  ;;  %v25868_v39 = vand.u32 4294901760, %v21570_v19 }
 0x7fb   :  { %25844 = vst [vmem:[#allocation65_spill] sm:$0xff] %v21523_v54  ;;  %v24711_v53 = vand.u32 4294901760, %v21523_v54  ;;  %v21582_v36 = vpack.c.bf16 %v24703_v30, %v24704_v26  ;;  %v6079_v30 = vsel %vm5983_vm7, %v25850_v1, 0  ;;  %v25851_v26 = vld [vmem:[#allocation53_spill] sm:$0xff]  ;;  %v25854_v1 = vand.u32 4294901760, %v21539_v57 }
 0x7fc   :  { %v6002_v51 = vsel %vm6000_vm8, %v25851_v26, %v5962_v38  ;;  %v21641_v47 = vand.u32 4294901760, %v6079_v30  ;;  %v7557_v44 = vsub.f32 %v21570_v19, %v25868_v39 }
 0x7fd   :  { %15090 = vmatpush1.bf16.msra.mxu0 %v21505_v22  ;;  %25849 = vst [vmem:[#allocation72_spill] sm:$0xff] %v21582_v36  ;;  %v21598_v48 = vsub.f32 %v21523_v54, %v24711_v53  ;;  %v25853_v53 = vand.u32 4294901760, %v21278_v23  ;;  %v21621_v38 = vpack.c.bf16 %v25855_v50, %v25854_v1  ;;  %v21643_v1 = vand.u32 4294901760, %v6002_v51 }
 0x7fe   :  { %15091 = vmatprep.subr.bf16.mxu0 %v25815_v16  ;;  %25858 = vst [vmem:[#allocation83_spill] sm:$0xff] %v21641_v47  ;;  %v6003_v50 = vsel %vm6000_vm8, %v25862_v4, %v5964_v55  ;;  %v25866_v4 = vand.u32 4294901760, %v21593_v34  ;;  %v21685_v54 = vsub.f32 %v6079_v30, %v21641_v47  ;;  %v25876_v30 = vand.u32 4294901760, %v21324_v3  ;;  %v5970_v47 = vpop.permute.xlu1 %5969 }
 0x7ff   :  { %v21615_v35 = vsub.f32 %v21278_v23, %v25853_v53  ;;  %25856 = vst [vmem:[#allocation86_spill] sm:$0xff] %v21621_v38  ;;  %v21632_v23 = vld [vmem:[%s23993_s4 + $0x1d0] sm:$0xff]  ;;  %25859 = vst [vmem:[#allocation89_spill] sm:$0xff] %v21643_v1  ;;  %v25863_v53 = vand.u32 4294901760, %v21295_v20  ;;  %v7558_v63 = vand.u32 4294901760, %v7557_v44  ;;  %v25886_v44 = vand.u32 4294901760, %v21343_v42 }
 0x800   :  { %25870 = vst [vmem:[#allocation137_spill] sm:$0xff] %v21685_v54  ;;  %v21705_v28 = vsub.f32 %v21324_v3, %v25876_v30  ;;  %v25882_v3 = vand.u32 4294901760, %v21625_v37 }
 0x801   :  { %15093 = vmatpush1.bf16.msra.mxu0 %v21532_v40  ;;  %v25852_v40 = vand.u32 4294901760, %v21273_v13  ;;  %v21659_v32 = vsub.f32 %v21295_v20, %v25863_v53  ;;  %v25865_v20 = vand.u32 4294901760, %v21587_v31 }
 0x802   :  { %15094 = vmatprep.subr.bf16.mxu0 %v25815_v16  ;;  %v7441_v30 = vsub.f32 %v21625_v37, %v25882_v3 }
 0x803   :  { %v21610_v22 = vsub.f32 %v21273_v13, %v25852_v40  ;;  %v21637_v40 = vld [vmem:[%s23993_s4 + $0x1d8] sm:$0xff]  ;;  %v25860_v13 = vand.u32 4294901760, %v21551_v10  ;;  %v21676_v53 = vpack.c.bf16 %v25866_v4, %v25865_v20  ;;  %v5968_v20 = vpop.permute.xlu0 %5967  ;;  %v25874_v4 = vld [vmem:[#allocation59_spill] sm:$0xff] }
 0x804   :  { %v6004_v39 = vsel %vm6000_vm8, %v25874_v4, %v5966_v0  ;;  %v25878_v45 = vand.u32 4294901760, %v21637_v40 }
 0x805   :  { %15096 = vmatpush1.bf16.msra.mxu0 %v21582_v36  ;;  %v21650_v26 = vsub.f32 %v21551_v10, %v25860_v13  ;;  %v25861_v36 = vld [vmem:[#allocation20_spill] sm:$0xff]  ;;  %25867 = vst [vmem:[#allocation88_spill] sm:$0xff] %v21676_v53  ;;  %v25869_v10 = vand.u32 4294901760, %v21575_v43  ;;  %v21689_v13 = vand.u32 4294901760, %v6003_v50  ;;  %v25880_v0 = vand.u32 4294901760, %v21610_v22 }
 0x806   :  { %15097 = vmatprep.subr.bf16.mxu0 %v25815_v16  ;;  %v6081_v27 = vsel %vm5983_vm7, %v25861_v36, 0  ;;  %v21731_v9 = vand.u32 4294901760, %v6004_v39 }
 0x807   :  { %v7564_v36 = vsub.f32 %v21575_v43, %v25869_v10  ;;  %v21687_v55 = vand.u32 4294901760, %v6081_v27  ;;  %25872 = vst [vmem:[#allocation99_spill] sm:$0xff] %v21689_v13  ;;  %v21700_v10 = vsub.f32 %v21319_v33, %v25875_v14  ;;  %v7571_v4 = vsub.f32 %v21610_v22, %v25880_v0  ;;  %v25884_v0 = vld [vmem:[#allocation76_spill] sm:$0xff] }
 0x808   :  { %v25881_v14 = vand.u32 4294901760, %v21615_v35  ;;  %v6005_v21 = vsel %vm6000_vm8, %v25884_v0, %v5968_v20  ;;  %25885 = vst [vmem:[#allocation104_spill] sm:$0xff] %v21731_v9 }
 0x809   :  { %15099 = vmatpush1.bf16.msra.mxu0 %v21621_v38  ;;  %25871 = vst [vmem:[#allocation90_spill] sm:$0xff] %v21687_v55  ;;  %v21692_v38 = vsub.f32 %v6002_v51, %v21643_v1  ;;  %v25877_v51 = vand.u32 4294901760, %v21632_v23  ;;  %v7565_v12 = vand.u32 4294901760, %v7564_v36  ;;  %v21736_v3 = vsub.f32 %v6081_v27, %v21687_v55 }
 0x80a   :  { %15100 = vmatprep.subr.bf16.mxu0 %v25815_v16  ;;  %v7578_v33 = vsub.f32 %v21615_v35, %v25881_v14  ;;  %v21741_v36 = vsub.f32 %v21343_v42, %v25886_v44  ;;  %v7572_v20 = vand.u32 4294901760, %v7571_v4  ;;  %v21749_v27 = vand.u32 4294901760, %v6005_v21 }
 0x80b   :  { %25873 = vst [vmem:[#allocation95_spill] sm:$0xff] %v21692_v38  ;;  %v21712_v15 = vpack.c.bf16 %v25878_v45, %v25877_v51  ;;  %v21727_v51 = vsub.f32 %v6003_v50, %v21689_v13  ;;  %v25889_v55 = vand.u32 4294901760, %v21348_v61  ;;  %v15107_v44 = vpack.c.bf16 %v7565_v12, %v7558_v63 }
 0x80c   :  { %v7579_v0 = vand.u32 4294901760, %v7578_v33  ;;  %25888 = vst [vmem:[#allocation94_spill] sm:$0xff] %v21749_v27  ;;  %v25890_v45 = vand.u32 4294901760, %v21664_v58  ;;  %v7442_v33 = vand.u32 4294901760, %v7441_v30  ;;  %v21761_v50 = vsub.f32 %v6004_v39, %v21731_v9 }
 0x80d   :  { %25879 = vst [vmem:[#allocation93_spill] sm:$0xff] %v21712_v15  ;;  %15102 = vmatpush1.bf16.msra.mxu0 %v21676_v53  ;;  %25883 = vst [vmem:[#allocation109_spill] sm:$0xff] %v21727_v51  ;;  %v25887_v53 = vand.u32 4294901760, %v21659_v32  ;;  %v21754_v42 = vsub.f32 %v21348_v61, %v25889_v55  ;;  %v25891_v14 = vand.u32 4294901760, %v21692_v38  ;;  %v25892_v55 = vld [vmem:[#allocation41_spill] sm:$0xff]  ;;  %v25893_v12 = vand.u32 4294901760, %v21369_v29 }
 0x80e   :  { %15103 = vmatprep.subr.bf16.mxu0 %v25815_v16  ;;  %v7592_v4 = vsub.f32 %v21664_v58, %v25890_v45  ;;  %v6006_v63 = vsel %vm6000_vm8, %v25892_v55, %v5970_v47  ;;  %v25894_v39 = vand.u32 4294901760, %v21374_v62  ;;  %v25901_v55 = vld [vmem:[#allocation106_spill] sm:$0xff] }
 0x80f   :  { %v7585_v37 = vsub.f32 %v21659_v32, %v25887_v53  ;;  %v5972_v53 = vpop.permute.xlu0 %5971  ;;  %v7456_v13 = vsub.f32 %v21692_v38, %v25891_v14  ;;  %v21773_v45 = vsub.f32 %v21369_v29, %v25893_v12  ;;  %v15110_v14 = vpack.c.bf16 %v7579_v0, %v7572_v20  ;;  %v25897_v12 = vld [vmem:[#allocation96_spill] sm:$0xff] }
 0x810   :  { %v21778_v30 = vsub.f32 %v21374_v62, %v25894_v39  ;;  %v25896_v38 = vand.u32 4294901760, %v21705_v28  ;;  %v21788_v29 = vsub.f32 %v6005_v21, %v21749_v27  ;;  %v6007_v62 = vsel %vm6000_vm8, %v25897_v12, %v5972_v53  ;;  %v25902_v53 = vld [vmem:[#allocation28_spill] sm:$0xff]  ;;  %v5974_v27 = vpop.permute.xlu1 %5973 }
 0x811   :  { %15105 = vmatpush1.bf16.msra.mxu0 %v21712_v15  ;;  %v25895_v15 = vand.u32 4294901760, %v21700_v10  ;;  %v7586_v61 = vand.u32 4294901760, %v7585_v37  ;;  %v25898_v39 = vand.u32 4294901760, %v21556_v59  ;;  %v21795_v37 = vand.u32 4294901760, %v6006_v63 }
 0x812   :  { %15106 = vmatprep.subr.bf16.mxu0 %v25815_v16  ;;  %v7606_v47 = vsub.f32 %v21705_v28, %v25896_v38  ;;  %v7457_v0 = vand.u32 4294901760, %v7456_v13  ;;  %v25900_v38 = vand.u32 4294901760, %v21727_v51  ;;  %v25903_v12 = vmax.f32 %v25901_v55, %v25902_v53 }
 0x813   :  { %v7599_v9 = vsub.f32 %v21700_v10, %v25895_v15  ;;  %v7593_v15 = vand.u32 4294901760, %v7592_v4  ;;  %25899 = vst [vmem:[#allocation124_spill] sm:$0xff] %v21795_v37  ;;  %v25905_v13 = vand.u32 4294901760, %v21685_v54  ;;  %v25911_v53 = vand.u32 4294901760, %v21761_v50 }
 0x814   :  { %7443 = vmatmul.mubr.f32.vlgmr.msra.gmra.mrb[96].mxu0 %v7442_v33  ;;  %v7471_v21 = vsub.f32 %v21727_v51, %v25900_v38  ;;  %v6084_v59 = vsel %vm5983_vm7, %v25903_v12, 0  ;;  %v7607_v38 = vand.u32 4294901760, %v7606_v47  ;;  %v25906_v33 = vand.u32 4294901760, %v21741_v36 }
 0x815   :  { %7452 = vmatprep.mubr.f32.mxu0 %v25898_v39  ;;  %15108 = vmatpush1.bf16.msra.mxu0 %v15107_v44  ;;  %v25904_v44 = vand.u32 4294901760, %v21395_v17  ;;  %v7600_v39 = vand.u32 4294901760, %v7599_v9  ;;  %v21814_v20 = vsub.f32 %v21685_v54, %v25905_v13  ;;  %v21821_v51 = vand.u32 4294901760, %v6007_v62 }
 0x816   :  { %15109 = vmatprep.subr.bf16.mxu0 %v25815_v16  ;;  %v7613_v55 = vsub.f32 %v21741_v36, %v25906_v33  ;;  %v15113_v47 = vpack.c.bf16 %v7593_v15, %v7586_v61  ;;  %v21834_v13 = vsub.f32 %v6006_v63, %v21795_v37  ;;  %v7472_v12 = vand.u32 4294901760, %v7471_v21 }
 0x817   :  { %v21809_v4 = vsub.f32 %v21395_v17, %v25904_v44  ;;  %25907 = vst [vmem:[#allocation116_spill] sm:$0xff] %v21821_v51  ;;  %v25908_v17 = vand.u32 4294901760, %v21400_v6  ;;  %v25909_v44 = vand.u32 4294901760, %v21561_v11  ;;  %v21841_v11 = vand.u32 4294901760, %v6084_v59 }
 0x818   :  { %7458 = vmatmul.mubr.f32.gmra.mrb[98].mxu0 %v7457_v0  ;;  %v25910_v0 = vand.u32 4294901760, %v21754_v42  ;;  %v6008_v61 = vsel %vm6000_vm8, %v21081_v8, %v5974_v27  ;;  %v25914_v63 = vand.u32 4294901760, %v21427_v25  ;;  %v25916_v54 = vand.u32 4294901760, %v21778_v30 }
 0x819   :  { %v21826_v9 = vsub.f32 %v21400_v6, %v25908_v17  ;;  %7467 = vmatprep.mubr.f32.mxu0 %v25909_v44  ;;  %15111 = vmatpush1.bf16.msra.mxu0 %v15110_v14  ;;  %v7486_v6 = vsub.f32 %v21761_v50, %v25911_v53  ;;  %25912 = vst [vmem:[#allocation47_spill] sm:$0xff] %v21841_v11  ;;  %v25913_v14 = vand.u32 4294901760, %v21422_v52  ;;  %v7614_v53 = vand.u32 4294901760, %v7613_v55 }
 0x81a   :  { %v7620_v33 = vsub.f32 %v21754_v42, %v25910_v0  ;;  %15112 = vmatprep.subr.bf16.mxu0 %v25815_v16  ;;  %v21853_v21 = vsub.f32 %v21427_v25, %v25914_v63  ;;  %v15116_v44 = vpack.c.bf16 %v7607_v38, %v7600_v39  ;;  %v25915_v0 = vand.u32 4294901760, %v21773_v45 }
 0x81b   :  { %v21848_v15 = vsub.f32 %v21422_v52, %v25913_v14  ;;  %v7634_v8 = vsub.f32 %v21778_v30, %v25916_v54  ;;  %v21862_v27 = vsub.f32 %v6007_v62, %v21821_v51  ;;  %v25917_v52 = vand.u32 4294901760, %v21598_v48 }
 0x81c   :  { %7473 = vmatmul.mubr.f32.gmra.mrb[100].mxu0 %v7472_v12  ;;  %v7627_v17 = vsub.f32 %v21773_v45, %v25915_v0  ;;  %v7621_v25 = vand.u32 4294901760, %v7620_v33  ;;  %v24770_v12 = vand.u32 4294901760, %v21809_v4  ;;  %v21868_v38 = vand.u32 4294901760, %v6008_v61 }
 0x81d   :  { %7482 = vmatprep.mubr.f32.mxu0 %v25917_v52  ;;  %15114 = vmatpush1.bf16.msra.mxu0 %v15113_v47  ;;  %v7487_v55 = vand.u32 4294901760, %v7486_v6  ;;  %v25919_v14 = vand.u32 4294901760, %v21788_v29  ;;  %v21876_v48 = vsub.f32 %v6084_v59, %v21841_v11  ;;  %v25920_v47 = vand.u32 4294901760, %v21451_v24 }
 0x81e   :  { %25918 = vst [vmem:[#allocation136_spill] sm:$0xff] %v21868_v38  ;;  %15115 = vmatprep.subr.bf16.mxu0 %v25815_v16  ;;  %v25921_v63 = vand.u32 4294901760, %v21456_v2  ;;  %v24771_v0 = vand.u32 4294901760, %v21736_v3  ;;  %v7628_v52 = vand.u32 4294901760, %v7627_v17  ;;  %v24773_v62 = vand.u32 4294901760, %v21848_v15 }
 0x81f   :  { %v7501_v54 = vsub.f32 %v21788_v29, %v25919_v14  ;;  %v21881_v33 = vsub.f32 %v21451_v24, %v25920_v47  ;;  %v7635_v14 = vand.u32 4294901760, %v7634_v8  ;;  %v24772_v59 = vand.u32 4294901760, %v21853_v21 }
 0x820   :  { %v21886_v6 = vsub.f32 %v21456_v2, %v25921_v63  ;;  %7488 = vmatmul.mubr.f32.gmra.mrb[102].mxu0 %v7487_v55  ;;  %v25922_v39 = vand.u32 4294901760, %v21650_v26  ;;  %v15119_v24 = vpack.c.bf16 %v7621_v25, %v7614_v53  ;;  %v7641_v47 = vsub.f32 %v21809_v4, %v24770_v12 }
 0x821   :  { %15117 = vmatpush1.bf16.msra.mxu0 %v15116_v44  ;;  %v25923_v2 = vand.u32 4294901760, %v21826_v9  ;;  %v21900_v17 = vsub.f32 %v6008_v61, %v21868_v38  ;;  %v7502_v8 = vand.u32 4294901760, %v7501_v54  ;;  %v25924_v55 = vand.u32 4294901760, %v21834_v13 }
 0x822   :  { %7497 = vmatprep.mubr.f32.mxu0 %v25922_v39  ;;  %15118 = vmatprep.subr.bf16.mxu0 %v25815_v16  ;;  %v25925_v53 = vand.u32 4294901760, %v21482_v49  ;;  %v7511_v39 = vand.u32 4294901760, %v21814_v20  ;;  %v7525_v61 = vsub.f32 %v21736_v3, %v24771_v0  ;;  %v7662_v20 = vsub.f32 %v21853_v21, %v24772_v59 }
 0x823   :  { %v7648_v63 = vsub.f32 %v21826_v9, %v25923_v2  ;;  %v7516_v26 = vsub.f32 %v21834_v13, %v25924_v55  ;;  %v25927_v2 = vand.u32 4294901760, %v21487_v41  ;;  %v15122_v55 = vpack.c.bf16 %v7635_v14, %v7628_v52 }
 0x824   :  { %v21910_v25 = vsub.f32 %v21482_v49, %v25925_v53  ;;  %7503 = vmatmul.mubr.f32.gmra.mrb[104].mxu0 %v7502_v8  ;;  %v7655_v49 = vsub.f32 %v21848_v15, %v24773_v62  ;;  %v7642_v53 = vand.u32 4294901760, %v7641_v47  ;;  %v24774_v54 = vand.u32 4294901760, %v21881_v33 }
 0x825   :  { %v21920_v12 = vsub.f32 %v21487_v41, %v25927_v2  ;;  %7512 = vmatprep.mubr.f32.mxu0 %v7511_v39  ;;  %15120 = vmatpush1.bf16.msra.mxu0 %v15119_v24  ;;  %v7649_v0 = vand.u32 4294901760, %v7648_v63  ;;  %v7517_v41 = vand.u32 4294901760, %v7516_v26  ;;  %v25929_v52 = vand.u32 4294901760, %v21862_v27 }
 0x826   :  { %25926 = vst [vmem:[#allocation129_spill] sm:$0xff] %v21910_v25  ;;  %15121 = vmatprep.subr.bf16.mxu0 %v25815_v16  ;;  %v25930_v2 = vand.u32 4294901760, %v21515_v60  ;;  %v7526_v24 = vand.u32 4294901760, %v7525_v61  ;;  %v25932_v47 = vand.u32 4294901760, %v21876_v48  ;;  %v25933_v26 = vand.u32 4294901760, %v21520_v46 }
 0x827   :  { %25928 = vst [vmem:[#allocation97_spill] sm:$0xff] %v21920_v12  ;;  %v7531_v14 = vsub.f32 %v21862_v27, %v25929_v52  ;;  %v7656_v62 = vand.u32 4294901760, %v7655_v49  ;;  %v7663_v52 = vand.u32 4294901760, %v7662_v20  ;;  %v24784_v8 = vand.u32 4294901760, %v21910_v25 }
 0x828   :  { %v21938_v39 = vsub.f32 %v21515_v60, %v25930_v2  ;;  %v7540_v63 = vsub.f32 %v21876_v48, %v25932_v47  ;;  %v21946_v59 = vsub.f32 %v21520_v46, %v25933_v26  ;;  %7518 = vmatmul.mubr.f32.gmra.mrb[106].mxu0 %v7517_v41  ;;  %v15125_v44 = vpack.c.bf16 %v7649_v0, %v7642_v53 }
 0x829   :  { %7527 = vmatprep.mubr.f32.mxu0 %v7526_v24  ;;  %15123 = vmatpush1.bf16.msra.mxu0 %v15122_v55  ;;  %v7669_v60 = vsub.f32 %v21881_v33, %v24774_v54  ;;  %v25935_v61 = vand.u32 4294901760, %v21886_v6  ;;  %v24783_v47 = vand.u32 4294901760, %v21920_v12  ;;  %v7532_v46 = vand.u32 4294901760, %v7531_v14 }
 0x82a   :  { %25931 = vst [vmem:[#allocation58_spill] sm:$0xff] %v21938_v39  ;;  %25934 = vst [vmem:[#allocation16_spill] sm:$0xff] %v21946_v59  ;;  %15124 = vmatprep.subr.bf16.mxu0 %v25815_v16  ;;  %v25936_v49 = vand.u32 4294901760, %v21900_v17  ;;  %v25937_v55 = vand.u32 4294901760, %v21539_v57  ;;  %v7541_v53 = vand.u32 4294901760, %v7540_v63  ;;  %v25939_v41 = vand.u32 4294901760, %v21544_v5 }
 0x82b   :  { %v7676_v2 = vsub.f32 %v21886_v6, %v25935_v61  ;;  %v15128_v26 = vpack.c.bf16 %v7663_v52, %v7656_v62  ;;  %v7683_v14 = vsub.f32 %v21910_v25, %v24784_v8  ;;  %v24782_v61 = vand.u32 4294901760, %v21938_v39 }
 0x82c   :  { %v7546_v20 = vsub.f32 %v21900_v17, %v25936_v49  ;;  %v21963_v0 = vsub.f32 %v21539_v57, %v25937_v55  ;;  %v21968_v24 = vsub.f32 %v21544_v5, %v25939_v41  ;;  %7533 = vmatmul.mubr.f32.gmra.mrb[108].mxu0 %v7532_v46  ;;  %v7670_v49 = vand.u32 4294901760, %v7669_v60 }
 0x82d   :  { %7542 = vmatprep.mubr.f32.mxu0 %v7541_v53  ;;  %15126 = vmatpush1.bf16.msra.mxu0 %v15125_v44  ;;  %v7677_v54 = vand.u32 4294901760, %v7676_v2  ;;  %v7690_v57 = vsub.f32 %v21920_v12, %v24783_v47  ;;  %v24781_v63 = vand.u32 4294901760, %v21946_v59  ;;  %v25941_v62 = vand.u32 4294901760, %v21587_v31 }
 0x82e   :  { %25938 = vst [vmem:[#allocation48_spill] sm:$0xff] %v21963_v0  ;;  %25940 = vst [vmem:[#allocation66_spill] sm:$0xff] %v21968_v24  ;;  %v7547_v5 = vand.u32 4294901760, %v7546_v20  ;;  %15127 = vmatprep.subr.bf16.mxu0 %v25815_v16  ;;  %v25943_v46 = vand.u32 4294901760, %v21593_v34  ;;  %v7684_v60 = vand.u32 4294901760, %v7683_v14  ;;  %v7697_v2 = vsub.f32 %v21938_v39, %v24782_v61 }
 0x82f   :  { %v21982_v52 = vsub.f32 %v21587_v31, %v25941_v62  ;;  %v24775_v20 = vand.u32 4294901760, %v21963_v0  ;;  %v15131_v55 = vpack.c.bf16 %v7677_v54, %v7670_v49  ;;  %v7691_v53 = vand.u32 4294901760, %v7690_v57 }
 0x830   :  { %v21987_v44 = vsub.f32 %v21593_v34, %v25943_v46  ;;  %7548 = vmatmul.mubr.f32.gmra.mrb[110].mxu0 %v7547_v5  ;;  %v7704_v31 = vsub.f32 %v21946_v59, %v24781_v63  ;;  %v24776_v34 = vand.u32 4294901760, %v21968_v24  ;;  %v25945_v41 = vand.u32 4294901760, %v21632_v23 }
 0x831   :  { %25942 = vst [vmem:[#allocation62_spill] sm:$0xff] %v21982_v52  ;;  %15129 = vmatpush1.bf16.msra.mxu0 %v15128_v26  ;;  %7758 = vmatprep.mubr.f32.mxu0 %v21377_v7  ;;  %v25947_v5 = vand.u32 4294901760, %v21637_v40  ;;  %v7698_v54 = vand.u32 4294901760, %v7697_v2  ;;  %v7711_v49 = vsub.f32 %v21963_v0, %v24775_v20  ;;  %v24777_v57 = vand.u32 4294901760, %v21982_v52 }
 0x832   :  { %25944 = vst [vmem:[#allocation74_spill] sm:$0xff] %v21987_v44  ;;  %15130 = vmatprep.subr.bf16.mxu0 %v25815_v16  ;;  %v22002_v14 = vsub.f32 %v21632_v23, %v25945_v41  ;;  %v15134_v62 = vpack.c.bf16 %v7691_v53, %v7684_v60  ;;  %v7705_v46 = vand.u32 4294901760, %v7704_v31  ;;  %v7718_v23 = vsub.f32 %v21968_v24, %v24776_v34 }
 0x833   :  { %v22007_v26 = vsub.f32 %v21637_v40, %v25947_v5  ;;  %v24780_v41 = vand.u32 4294901760, %v21987_v44  ;;  %v7712_v40 = vand.u32 4294901760, %v7711_v49  ;;  %v7725_v2 = vsub.f32 %v21982_v52, %v24777_v57 }
 0x834   :  { %25946 = vst [vmem:[#allocation70_spill] sm:$0xff] %v22002_v14  ;;  %v24779_v5 = vand.u32 4294901760, %v22002_v14  ;;  %v15137_v20 = vpack.c.bf16 %v7705_v46, %v7698_v54  ;;  %v15176_v61 = vpack.c.bf16 %v21920_v12, %v21910_v25  ;;  %v25975_v25 = vld [vmem:[#allocation82_spill] sm:$0xff] }
 0x835   :  { %25948 = vst [vmem:[#allocation81_spill] sm:$0xff] %v22007_v26  ;;  %15132 = vmatpush1.bf16.msra.mxu0 %v15131_v55  ;;  %v7719_v55 = vand.u32 4294901760, %v7718_v23  ;;  %v7732_v60 = vsub.f32 %v21987_v44, %v24780_v41  ;;  %v24778_v53 = vand.u32 4294901760, %v22007_v26  ;;  %v7726_v31 = vand.u32 4294901760, %v7725_v2 }
 0x836   :  { %15133 = vmatprep.subr.bf16.mxu0 %v25815_v16  ;;  %v7739_v57 = vsub.f32 %v22002_v14, %v24779_v5  ;;  %v15155_v2 = vpack.c.bf16 %v21664_v58, %v21659_v32  ;;  %v15173_v5 = vpack.c.bf16 %v21886_v6, %v21881_v33 }
 0x837   :  { %v15140_v49 = vpack.c.bf16 %v7719_v55, %v7712_v40  ;;  %v7733_v34 = vand.u32 4294901760, %v7732_v60  ;;  %v7746_v54 = vsub.f32 %v22007_v26, %v24778_v53  ;;  %v15149_v40 = vpack.c.bf16 %v21575_v43, %v21570_v19  ;;  %v25950_v55 = vld [vmem:[#allocation99_spill] sm:$0xff]  ;;  %v25957_v53 = vld [vmem:[#allocation133_spill] sm:$0xff] }
 0x838   :  { %v7740_v46 = vand.u32 4294901760, %v7739_v57  ;;  %v25949_v57 = vld [vmem:[#allocation63_spill] sm:$0xff] }
 0x839   :  { %15135 = vmatpush1.bf16.msra.mxu0 %v15134_v62  ;;  %v15143_v62 = vpack.c.bf16 %v7733_v34, %v7726_v31  ;;  %v7747_v23 = vand.u32 4294901760, %v7746_v54  ;;  %v15152_v34 = vpack.c.bf16 %v21615_v35, %v21610_v22  ;;  %v25951_v60 = vld [vmem:[#allocation71_spill] sm:$0xff]  ;;  %v15158_v31 = vpack.c.bf16 %v21705_v28, %v21700_v10  ;;  %v25953_v54 = vld [vmem:[#allocation85_spill] sm:$0xff] }
 0x83a   :  { %15136 = vmatprep.subr.bf16.mxu0 %v25815_v16 }
 0x83d   :  { %15138 = vmatpush1.bf16.msra.mxu0 %v15137_v20  ;;  %v15146_v20 = vpack.c.bf16 %v7747_v23, %v7740_v46  ;;  %v25954_v46 = vld [vmem:[#allocation94_spill] sm:$0xff]  ;;  %v25955_v23 = vld [vmem:[#allocation83_spill] sm:$0xff] }
 0x83e   :  { %15139 = vmatprep.subr.bf16.mxu0 %v25815_v16 }
 0x841   :  { %15141 = vmatpush1.bf16.msra.mxu0 %v15140_v49  ;;  %v25952_v49 = vld [vmem:[#allocation104_spill] sm:$0xff] }
 0x842   :  { %15142 = vmatprep.subr.bf16.mxu0 %v25815_v16 }
 0x845   :  { %15144 = vmatpush1.bf16.msra.mxu0 %v15143_v62  ;;  %v15161_v62 = vpack.c.bf16 %v21754_v42, %v21741_v36 }
 0x846   :  { %15145 = vmatprep.subr.bf16.mxu0 %v25815_v16 }
 0x849   :  { %15147 = vmatpush1.bf16.msra.mxu0 %v15146_v20  ;;  %v15164_v20 = vpack.c.bf16 %v21778_v30, %v21773_v45 }
 0x84a   :  { %15148 = vmatprep.subr.bf16.mxu0 %v25815_v16 }
 0x84c   :  { %7760 = vmatmul.mubr.f32.vlgmr.msra.gmra.mrb[96].mxu0 %v21565_v56 }
 0x84d   :  { %7765 = vmatprep.mubr.f32.mxu0 %v21461_v18  ;;  %15150 = vmatpush1.bf16.msra.mxu0 %v15149_v40  ;;  %v25956_v40 = vld [vmem:[#allocation90_spill] sm:$0xff] }
 0x84e   :  { %15151 = vmatprep.subr.bf16.mxu0 %v25815_v16  ;;  %v25962_v18 = vld [vmem:[#allocation78_spill] sm:$0xff] }
 0x850   :  { %7767 = vmatmul.mubr.f32.gmra.mrb[98].mxu0 %v21643_v1 }
 0x851   :  { %7772 = vmatprep.mubr.f32.mxu0 %v25949_v57  ;;  %15153 = vmatpush1.bf16.msra.mxu0 %v15152_v34  ;;  %v15167_v34 = vpack.c.bf16 %v21826_v9, %v21809_v4  ;;  %v25960_v57 = vld [vmem:[#allocation105_spill] sm:$0xff] }
 0x852   :  { %15154 = vmatprep.subr.bf16.mxu0 %v25815_v16 }
 0x854   :  { %7774 = vmatmul.mubr.f32.gmra.mrb[100].mxu0 %v25950_v55 }
 0x855   :  { %7779 = vmatprep.mubr.f32.mxu0 %v25951_v60  ;;  %15156 = vmatpush1.bf16.msra.mxu0 %v15155_v2  ;;  %v15170_v2 = vpack.c.bf16 %v21853_v21, %v21848_v15 }
 0x856   :  { %15157 = vmatprep.subr.bf16.mxu0 %v25815_v16 }
 0x858   :  { %7781 = vmatmul.mubr.f32.gmra.mrb[102].mxu0 %v25952_v49  ;;  %v15188_v49 = vpack.c.bf16 %v22007_v26, %v22002_v14  ;;  %v25965_v14 = vld [vmem:[#allocation65_spill] sm:$0xff] }
 0x859   :  { %7786 = vmatprep.mubr.f32.mxu0 %v25953_v54  ;;  %15159 = vmatpush1.bf16.msra.mxu0 %v15158_v31  ;;  %v15185_v54 = vpack.c.bf16 %v21987_v44, %v21982_v52  ;;  %v25967_v52 = vld [vmem:[#allocation46_spill] sm:$0xff] }
 0x85a   :  { %15160 = vmatprep.subr.bf16.mxu0 %v25815_v16 }
 0x85c   :  { %7788 = vmatmul.mubr.f32.gmra.mrb[104].mxu0 %v25954_v46  ;;  %v15182_v46 = vpack.c.bf16 %v21968_v24, %v21963_v0  ;;  %v25969_v0 = vld [vmem:[#allocation137_spill] sm:$0xff] }
 0x85d   :  { %7793 = vmatprep.mubr.f32.mxu0 %v25955_v23  ;;  %15162 = vmatpush1.bf16.msra.mxu0 %v15161_v62 }
 0x85e   :  { %15163 = vmatprep.subr.bf16.mxu0 %v25815_v16 }
 0x860   :  { %7795 = vmatmul.mubr.f32.gmra.mrb[106].mxu0 %v21795_v37 }
 0x861   :  { %7800 = vmatprep.mubr.f32.mxu0 %v25956_v40  ;;  %15165 = vmatpush1.bf16.msra.mxu0 %v15164_v20 }
 0x862   :  { %15166 = vmatprep.subr.bf16.mxu0 %v25815_v16 }
 0x864   :  { %7802 = vmatmul.mubr.f32.gmra.mrb[108].mxu0 %v21821_v51 }
 0x865   :  { %7807 = vmatprep.mubr.f32.mxu0 %v21841_v11  ;;  %15168 = vmatpush1.bf16.msra.mxu0 %v15167_v34  ;;  %v15179_v11 = vpack.c.bf16 %v21946_v59, %v21938_v39 }
 0x866   :  { %v12446_v31 = vpop.f32.mrb[48].mxu1  ;;  %15169 = vmatprep.subr.bf16.mxu0 %v25815_v16 }
 0x867   :  { %v12447_v62 = vpop.f32.mrb[49].mxu1 }
 0x868   :  { %7809 = vmatmul.mubr.f32.gmra.mrb[110].mxu0 %v21868_v38  ;;  %v12448_v20 = vadd.f32 %v12447_v62, %v12446_v31 }
 0x869   :  { %15171 = vmatpush1.bf16.msra.mxu0 %v15170_v2  ;;  %7936 = vmatprep.mubr.f32.mxu0 %v25957_v53 }
 0x86a   :  { %v12449_v41 = vpop.f32.mrb[50].mxu1  ;;  %15172 = vmatprep.subr.bf16.mxu0 %v25815_v16 }
 0x86b   :  { %v12450_v34 = vpop.f32.mrb[51].mxu1 }
 0x86c   :  { %v12451_v63 = vadd.f32 %v12450_v34, %v12449_v41 }
 0x86d   :  { %15174 = vmatpush1.bf16.msra.mxu0 %v15173_v5 }
 0x86e   :  { %v12390_v47 = vpop.f32.mrb[48].mxu0  ;;  %15175 = vmatprep.subr.bf16.mxu0 %v25815_v16 }
 0x86f   :  { %v12452_v8 = vpop.f32.mrb[52].mxu1  ;;  %v12391_v31 = vpop.f32.mrb[49].mxu0 }
 0x870   :  { %v12453_v2 = vpop.f32.mrb[53].mxu1  ;;  %v12392_v62 = vadd.f32 %v12391_v31, %v12390_v47 }
 0x871   :  { %v12454_v38 = vadd.f32 %v12453_v2, %v12452_v8  ;;  %15177 = vmatpush1.bf16.msra.mxu0 %v15176_v61 }
 0x872   :  { %v22084_v51 = vadd.f32 %v12448_v20, %v12392_v62  ;;  %15178 = vmatprep.subr.bf16.mxu0 %v25815_v16 }
 0x873   :  { %v12393_v40 = vpop.f32.mrb[50].mxu0  ;;  %v12455_v41 = vpop.f32.mrb[54].mxu1 }
 0x874   :  { %v12394_v5 = vpop.f32.mrb[51].mxu0  ;;  %v12456_v34 = vpop.f32.mrb[55].mxu1 }
 0x875   :  { %v12395_v37 = vadd.f32 %v12394_v5, %v12393_v40  ;;  %v12457_v23 = vadd.f32 %v12456_v34, %v12455_v41  ;;  %15180 = vmatpush1.bf16.msra.mxu0 %v15179_v11 }
 0x876   :  { %15181 = vmatprep.subr.bf16.mxu0 %v25815_v16 }
 0x877   :  { %v22089_v47 = vadd.f32 %v12451_v63, %v12395_v37  ;;  %v12396_v8 = vpop.f32.mrb[52].mxu0  ;;  %v12458_v61 = vpop.f32.mrb[56].mxu1 }
 0x878   :  { %v12397_v20 = vpop.f32.mrb[53].mxu0  ;;  %v12459_v31 = vpop.f32.mrb[57].mxu1 }
 0x879   :  { %v12398_v2 = vadd.f32 %v12397_v20, %v12396_v8  ;;  %v12460_v62 = vadd.f32 %v12459_v31, %v12458_v61  ;;  %15183 = vmatpush1.bf16.msra.mxu0 %v15182_v46 }
 0x87a   :  { %15184 = vmatprep.subr.bf16.mxu0 %v25815_v16 }
 0x87b   :  { %v22094_v40 = vadd.f32 %v12454_v38, %v12398_v2  ;;  %v12399_v11 = vpop.f32.mrb[54].mxu0  ;;  %v12461_v41 = vpop.f32.mrb[58].mxu1 }
 0x87c   :  { %v12400_v37 = vpop.f32.mrb[55].mxu0  ;;  %v12462_v63 = vpop.f32.mrb[59].mxu1 }
 0x87d   :  { %v12401_v5 = vadd.f32 %v12400_v37, %v12399_v11  ;;  %v12463_v34 = vadd.f32 %v12462_v63, %v12461_v41  ;;  %15186 = vmatpush1.bf16.msra.mxu0 %v15185_v54  ;;  %v25958_v37 = vld [vmem:[#allocation84_spill] sm:$0xff] }
 0x87e   :  { %15187 = vmatprep.subr.bf16.mxu0 %v25815_v16 }
 0x87f   :  { %v22099_v8 = vadd.f32 %v12457_v23, %v12401_v5  ;;  %v12402_v46 = vpop.f32.mrb[56].mxu0  ;;  %v12464_v61 = vpop.f32.mrb[60].mxu1  ;;  %v25959_v5 = vld [vmem:[#allocation43_spill] sm:$0xff] }
 0x880   :  { %v12403_v38 = vpop.f32.mrb[57].mxu0  ;;  %v12465_v20 = vpop.f32.mrb[61].mxu1 }
 0x881   :  { %v12404_v31 = vadd.f32 %v12403_v38, %v12402_v46  ;;  %v12466_v2 = vadd.f32 %v12465_v20, %v12464_v61  ;;  %15189 = vmatpush1.bf16.msra.mxu0 %v15188_v49  ;;  %v25961_v38 = vld [vmem:[#allocation95_spill] sm:$0xff] }
 0x882   :  { %15190 = vmatprep.subr.bf16.mxu0 %v25815_v16 }
 0x883   :  { %v22102_v60 = vadd.f32 %v12460_v62, %v12404_v31  ;;  %v12405_v55 = vpop.f32.mrb[58].mxu0  ;;  %v12467_v11 = vpop.f32.mrb[62].mxu1 }
 0x884   :  { %v12406_v54 = vpop.f32.mrb[59].mxu0  ;;  %v12468_v41 = vpop.f32.mrb[63].mxu1  ;;  %7939 = vmatmul.mubr.f32.vlgmr.msra.gmra.mrb[96].mxu0 %v25958_v37 }
 0x885   :  { %v12407_v23 = vadd.f32 %v12406_v54, %v12405_v55  ;;  %v12469_v63 = vadd.f32 %v12468_v41, %v12467_v11  ;;  %7945 = vmatprep.mubr.f32.mxu0 %v25959_v5  ;;  %15192 = vmatpush1.bf16.msra.mxu0 %v25960_v57  ;;  %v25963_v55 = vld [vmem:[#allocation108_spill] sm:$0xff] }
 0x886   :  { %15193 = vmatprep.subr.bf16.mxu0 %v25815_v16 }
 0x887   :  { %v22108_v1 = vadd.f32 %v12463_v34, %v12407_v23  ;;  %v12408_v46 = vpop.f32.mrb[60].mxu0  ;;  %v12558_v49 = vpop.f32.mrb[64].mxu1  ;;  %v25964_v23 = vld [vmem:[#allocation109_spill] sm:$0xff] }
 0x888   :  { %v12409_v62 = vpop.f32.mrb[61].mxu0  ;;  %v12559_v61 = vpop.f32.mrb[65].mxu1  ;;  %7948 = vmatmul.mubr.f32.gmra.mrb[98].mxu0 %v25961_v38 }
 0x889   :  { %v12410_v20 = vadd.f32 %v12409_v62, %v12408_v46  ;;  %v12560_v31 = vadd.f32 %v12559_v61, %v12558_v49  ;;  %7954 = vmatprep.mubr.f32.mxu0 %v25962_v18  ;;  %15195 = vmatpush1.bf16.msra.mxu0 %v25963_v55  ;;  %v25966_v46 = vld [vmem:[#allocation117_spill] sm:$0xff] }
 0x88a   :  { %15196 = vmatprep.subr.bf16.mxu0 %v25815_v16 }
 0x88b   :  { %v22114_v11 = vadd.f32 %v12466_v2, %v12410_v20  ;;  %v12561_v54 = vpop.f32.mrb[66].mxu1  ;;  %v12411_v34 = vpop.f32.mrb[62].mxu0 }
 0x88c   :  { %v12562_v41 = vpop.f32.mrb[67].mxu1  ;;  %7957 = vmatmul.mubr.f32.gmra.mrb[100].mxu0 %v25964_v23  ;;  %v12412_v57 = vpop.f32.mrb[63].mxu0 }
 0x88d   :  { %v12563_v56 = vadd.f32 %v12562_v41, %v12561_v54  ;;  %v12413_v26 = vadd.f32 %v12412_v57, %v12411_v34  ;;  %7963 = vmatprep.mubr.f32.mxu0 %v25965_v14  ;;  %15198 = vmatpush1.bf16.msra.mxu0 %v25966_v46  ;;  %v25968_v54 = vld [vmem:[#allocation121_spill] sm:$0xff] }
 0x88e   :  { %15199 = vmatprep.subr.bf16.mxu0 %v25815_v16 }
 0x88f   :  { %v12564_v49 = vpop.f32.mrb[68].mxu1  ;;  %v22121_v62 = vadd.f32 %v12469_v63, %v12413_v26  ;;  %v12502_v2 = vpop.f32.mrb[64].mxu0 }
 0x890   :  { %v12565_v61 = vpop.f32.mrb[69].mxu1  ;;  %7966 = vmatmul.mubr.f32.gmra.mrb[102].mxu0 %v21761_v50  ;;  %v12503_v20 = vpop.f32.mrb[65].mxu0 }
 0x891   :  { %v12566_v55 = vadd.f32 %v12565_v61, %v12564_v49  ;;  %v12504_v44 = vadd.f32 %v12503_v20, %v12502_v2  ;;  %7972 = vmatprep.mubr.f32.mxu0 %v25967_v52  ;;  %15201 = vmatpush1.bf16.msra.mxu0 %v25968_v54  ;;  %v25970_v49 = vld [vmem:[#allocation132_spill] sm:$0xff] }
 0x892   :  { %15202 = vmatprep.subr.bf16.mxu0 %v25815_v16 }
 0x893   :  { %v12567_v57 = vpop.f32.mrb[70].mxu1  ;;  %v6719_v34 = vadd.f32 %v12504_v44, %v22084_v51  ;;  %v12505_v41 = vpop.f32.mrb[66].mxu0 }
 0x894   :  { %v12568_v46 = vpop.f32.mrb[71].mxu1  ;;  %7975 = vmatmul.mubr.f32.gmra.mrb[104].mxu0 %v21788_v29  ;;  %v12506_v26 = vpop.f32.mrb[67].mxu0 }
 0x895   :  { %v12569_v63 = vadd.f32 %v12568_v46, %v12567_v57  ;;  %v12507_v24 = vadd.f32 %v12506_v26, %v12505_v41  ;;  %7981 = vmatprep.mubr.f32.mxu0 %v25969_v0  ;;  %15204 = vmatpush1.bf16.msra.mxu0 %v25970_v49  ;;  %v22131_v2 = vadd.f32 %v12560_v31, %v6719_v34  ;;  %v25971_v46 = vld [vmem:[#allocation19_spill] sm:$0xff] }
 0x896   :  { %15205 = vmatprep.subr.bf16.mxu0 %v25815_v16 }
 0x897   :  { %v12570_v61 = vpop.f32.mrb[72].mxu1  ;;  %v6728_v20 = vadd.f32 %v12507_v24, %v22089_v47  ;;  %v12508_v54 = vpop.f32.mrb[68].mxu0 }
 0x898   :  { %v12571_v51 = vpop.f32.mrb[73].mxu1  ;;  %7984 = vmatmul.mubr.f32.gmra.mrb[106].mxu0 %v21834_v13  ;;  %v12509_v44 = vpop.f32.mrb[69].mxu0 }
 0x899   :  { %v12572_v59 = vadd.f32 %v12571_v51, %v12570_v61  ;;  %v12510_v39 = vadd.f32 %v12509_v44, %v12508_v54  ;;  %7990 = vmatprep.mubr.f32.mxu0 %v21736_v3  ;;  %15207 = vmatpush1.bf16.msra.mxu0 %v25971_v46  ;;  %v22138_v57 = vadd.f32 %v12563_v56, %v6728_v20  ;;  %v25972_v54 = vld [vmem:[#allocation55_spill] sm:$0xff] }
 0x89a   :  { %15208 = vmatprep.subr.bf16.mxu0 %v25815_v16 }
 0x89b   :  { %v12573_v31 = vpop.f32.mrb[74].mxu1  ;;  %v6737_v34 = vadd.f32 %v12510_v39, %v22094_v40  ;;  %v12511_v41 = vpop.f32.mrb[70].mxu0 }
 0x89c   :  { %v12574_v24 = vpop.f32.mrb[75].mxu1  ;;  %7993 = vmatmul.mubr.f32.gmra.mrb[108].mxu0 %v21862_v27  ;;  %v12512_v47 = vpop.f32.mrb[71].mxu0 }
 0x89d   :  { %v12575_v26 = vadd.f32 %v12574_v24, %v12573_v31  ;;  %v12513_v49 = vadd.f32 %v12512_v47, %v12511_v41  ;;  %7999 = vmatprep.mubr.f32.mxu0 %v21876_v48  ;;  %15210 = vmatpush1.bf16.msra.mxu0 %v25972_v54  ;;  %v22145_v61 = vadd.f32 %v12566_v55, %v6737_v34  ;;  %v25973_v31 = vld [vmem:[#allocation35_spill] sm:$0xff]  ;;  %v25974_v41 = vand.u32 4294901760, %v25957_v53 }
 0x89e   :  { %15211 = vmatprep.subr.bf16.mxu0 %v25815_v16 }
 0x89f   :  { %v12576_v56 = vpop.f32.mrb[76].mxu1  ;;  %v6746_v20 = vadd.f32 %v12513_v49, %v22099_v8  ;;  %v12514_v51 = vpop.f32.mrb[72].mxu0 }
 0x8a0   :  { %v12577_v39 = vpop.f32.mrb[77].mxu1  ;;  %8002 = vmatmul.mubr.f32.gmra.mrb[110].mxu0 %v21900_v17  ;;  %v12515_v40 = vpop.f32.mrb[73].mxu0 }
 0x8a1   :  { %v12578_v44 = vadd.f32 %v12577_v39, %v12576_v56  ;;  %v12516_v46 = vadd.f32 %v12515_v40, %v12514_v51  ;;  %15213 = vmatpush1.bf16.msra.mxu0 %v25973_v31  ;;  %8102 = vmatprep.mubr.f32.mxu0 %v25974_v41  ;;  %v22153_v24 = vadd.f32 %v12569_v63, %v6746_v20  ;;  %v25976_v41 = vld [vmem:[#allocation64_spill] sm:$0xff] }
 0x8a2   :  { %15214 = vmatprep.subr.bf16.mxu0 %v25815_v16 }
 0x8a3   :  { %v12579_v55 = vpop.f32.mrb[78].mxu1  ;;  %v6755_v34 = vadd.f32 %v12516_v46, %v22102_v60  ;;  %v12517_v8 = vpop.f32.mrb[74].mxu0 }
 0x8a4   :  { %v12580_v49 = vpop.f32.mrb[79].mxu1  ;;  %v12518_v47 = vpop.f32.mrb[75].mxu0 }
 0x8a5   :  { %v12581_v54 = vadd.f32 %v12580_v49, %v12579_v55  ;;  %v12519_v12 = vadd.f32 %v12518_v47, %v12517_v8  ;;  %15216 = vmatpush1.bf16.msra.mxu0 %v25975_v25  ;;  %v22158_v56 = vadd.f32 %v12572_v59, %v6755_v34 }
 0x8a6   :  { %15217 = vmatprep.subr.bf16.mxu0 %v25815_v16 }
 0x8a7   :  { %v6764_v53 = vadd.f32 %v12519_v12, %v22108_v1  ;;  %v12520_v63 = vpop.f32.mrb[76].mxu0  ;;  %v25977_v1 = vld [vmem:[#allocation72_spill] sm:$0xff] }
 0x8a8   :  { %v12670_v20 = vpop.f32.mrb[80].mxu1  ;;  %v12521_v51 = vpop.f32.mrb[77].mxu0 }
 0x8a9   :  { %v12522_v39 = vadd.f32 %v12521_v51, %v12520_v63  ;;  %v12671_v40 = vpop.f32.mrb[81].mxu1  ;;  %15219 = vmatpush1.bf16.msra.mxu0 %v25976_v41  ;;  %v22163_v60 = vadd.f32 %v12575_v26, %v6764_v53 }
 0x8aa   :  { %v12672_v46 = vadd.f32 %v12671_v40, %v12670_v20  ;;  %15220 = vmatprep.subr.bf16.mxu0 %v25815_v16 }
 0x8ab   :  { %v6773_v55 = vadd.f32 %v12522_v39, %v22114_v11  ;;  %v12523_v59 = vpop.f32.mrb[78].mxu0  ;;  %v25978_v11 = vld [vmem:[#allocation86_spill] sm:$0xff] }
 0x8ac   :  { %v12673_v34 = vpop.f32.mrb[82].mxu1  ;;  %v12524_v8 = vpop.f32.mrb[79].mxu0 }
 0x8ad   :  { %v12525_v49 = vadd.f32 %v12524_v8, %v12523_v59  ;;  %v12674_v47 = vpop.f32.mrb[83].mxu1  ;;  %15222 = vmatpush1.bf16.msra.mxu0 %v25977_v1  ;;  %v22168_v12 = vadd.f32 %v12578_v44, %v6773_v55 }
 0x8ae   :  { %v12675_v63 = vadd.f32 %v12674_v47, %v12673_v34  ;;  %15223 = vmatprep.subr.bf16.mxu0 %v25815_v16 }
 0x8af   :  { %v6782_v26 = vadd.f32 %v12525_v49, %v22121_v62  ;;  %v12614_v53 = vpop.f32.mrb[80].mxu0  ;;  %v25979_v62 = vld [vmem:[#allocation88_spill] sm:$0xff] }
 0x8b0   :  { %v12676_v20 = vpop.f32.mrb[84].mxu1  ;;  %v12615_v51 = vpop.f32.mrb[81].mxu0 }
 0x8b1   :  { %v12616_v40 = vadd.f32 %v12615_v51, %v12614_v53  ;;  %v12677_v41 = vpop.f32.mrb[85].mxu1  ;;  %15225 = vmatpush1.bf16.msra.mxu0 %v25978_v11  ;;  %v22173_v39 = vadd.f32 %v12581_v54, %v6782_v26 }
 0x8b2   :  { %v12678_v59 = vadd.f32 %v12677_v41, %v12676_v20  ;;  %15226 = vmatprep.subr.bf16.mxu0 %v25815_v16 }
 0x8b3   :  { %v7135_v44 = vadd.f32 %v12616_v40, %v22131_v2  ;;  %v12617_v55 = vpop.f32.mrb[82].mxu0  ;;  %v25980_v2 = vld [vmem:[#allocation93_spill] sm:$0xff]  ;;  %v25981_v40 = vand.u32 4294901760, %v21570_v19  ;;  %v25984_v19 = vand.u32 4294901760, %v25959_v5 }
 0x8b4   :  { %v12679_v34 = vpop.f32.mrb[86].mxu1  ;;  %v12618_v8 = vpop.f32.mrb[83].mxu0 }
 0x8b5   :  { %v12619_v47 = vadd.f32 %v12618_v8, %v12617_v55  ;;  %v12680_v1 = vpop.f32.mrb[87].mxu1  ;;  %15228 = vmatpush1.bf16.msra.mxu0 %v25979_v62  ;;  %v22178_v49 = vadd.f32 %v12672_v46, %v7135_v44  ;;  %v25982_v55 = vand.u32 4294901760, %v21575_v43  ;;  %v25985_v43 = vand.u32 4294901760, %v21610_v22 }
 0x8b6   :  { %v12681_v53 = vadd.f32 %v12680_v1, %v12679_v34  ;;  %15229 = vmatprep.subr.bf16.mxu0 %v25815_v16  ;;  %v25983_v34 = vand.u32 4294901760, %v25958_v37  ;;  %v25988_v22 = vand.u32 4294901760, %v25962_v18 }
 0x8b7   :  { %v7142_v54 = vadd.f32 %v12619_v47, %v22138_v57  ;;  %v12620_v26 = vpop.f32.mrb[84].mxu0  ;;  %v15233_v8 = vpack.c.bf16 %v25982_v55, %v25981_v40  ;;  %v25987_v40 = vand.u32 4294901760, %v25961_v38 }
 0x8b8   :  { %v12682_v41 = vpop.f32.mrb[88].mxu1  ;;  %v12621_v20 = vpop.f32.mrb[85].mxu0 }
 0x8b9   :  { %v12622_v51 = vadd.f32 %v12621_v20, %v12620_v26  ;;  %v12683_v11 = vpop.f32.mrb[89].mxu1  ;;  %15231 = vmatpush1.bf16.msra.mxu0 %v25980_v2  ;;  %v22187_v62 = vadd.f32 %v12675_v63, %v7142_v54  ;;  %v25986_v63 = vand.u32 4294901760, %v21615_v35  ;;  %v25989_v35 = vand.u32 4294901760, %v21659_v32 }
 0x8ba   :  { %v12684_v46 = vadd.f32 %v12683_v11, %v12682_v41  ;;  %15232 = vmatprep.subr.bf16.mxu0 %v25815_v16  ;;  %v25992_v32 = vand.u32 4294901760, %v25965_v14  ;;  %v25996_v14 = vand.u32 4294901760, %v21741_v36 }
 0x8bb   :  { %v7149_v1 = vadd.f32 %v12622_v51, %v22145_v61  ;;  %v12623_v57 = vpop.f32.mrb[86].mxu0  ;;  %v15236_v11 = vpack.c.bf16 %v25986_v63, %v25985_v43 }
 0x8bc   :  { %v12685_v44 = vpop.f32.mrb[90].mxu1  ;;  %8106 = vmatmul.mubr.f32.vlgmr.msra.gmra.mrb[96].mxu0 %v25983_v34  ;;  %v12624_v47 = vpop.f32.mrb[87].mxu0 }
 0x8bd   :  { %v12625_v26 = vadd.f32 %v12624_v47, %v12623_v57  ;;  %v12686_v20 = vpop.f32.mrb[91].mxu1  ;;  %8113 = vmatprep.mubr.f32.mxu0 %v25984_v19  ;;  %15234 = vmatpush1.bf16.msra.mxu0 %v15233_v8  ;;  %v22199_v54 = vadd.f32 %v12678_v59, %v7149_v1  ;;  %v25990_v59 = vand.u32 4294901760, %v21664_v58  ;;  %v25991_v47 = vand.u32 4294901760, %v25964_v23 }
 0x8be   :  { %v12687_v61 = vadd.f32 %v12686_v20, %v12685_v44  ;;  %15235 = vmatprep.subr.bf16.mxu0 %v25815_v16  ;;  %v25993_v58 = vand.u32 4294901760, %v21700_v10 }
 0x8bf   :  { %v7156_v37 = vadd.f32 %v12625_v26, %v22153_v24  ;;  %v12626_v41 = vpop.f32.mrb[88].mxu0  ;;  %v15239_v1 = vpack.c.bf16 %v25990_v59, %v25989_v35  ;;  %v26000_v35 = vand.u32 4294901760, %v25969_v0  ;;  %v26004_v0 = vand.u32 4294901760, %v21736_v3 }
 0x8c0   :  { %v12688_v51 = vpop.f32.mrb[92].mxu1  ;;  %8117 = vmatmul.mubr.f32.gmra.mrb[98].mxu0 %v25987_v40  ;;  %v12627_v5 = vpop.f32.mrb[89].mxu0  ;;  %v26009_v3 = vand.u32 4294901760, %v21848_v15  ;;  %v26014_v15 = vld [vmem:[#allocation129_spill] sm:$0xff] }
 0x8c1   :  { %v12628_v55 = vadd.f32 %v12627_v5, %v12626_v41  ;;  %v12689_v8 = vpop.f32.mrb[93].mxu1  ;;  %8124 = vmatprep.mubr.f32.mxu0 %v25988_v22  ;;  %15237 = vmatpush1.bf16.msra.mxu0 %v15236_v11  ;;  %v22211_v57 = vadd.f32 %v12681_v53, %v7156_v37  ;;  %v25994_v53 = vand.u32 4294901760, %v21705_v28  ;;  %v25995_v11 = vand.u32 4294901760, %v21761_v50  ;;  %v22236_v28 = vld [vmem:[%s23994_s5] sm:$0xff] }
 0x8c2   :  { %v12690_v24 = vadd.f32 %v12689_v8, %v12688_v51  ;;  %15238 = vmatprep.subr.bf16.mxu0 %v25815_v16  ;;  %v25997_v41 = vand.u32 4294901760, %v21754_v42  ;;  %v25998_v50 = vand.u32 4294901760, %v25967_v52  ;;  %v8571_v36 = vand.u32 4294901760, %v22236_v28 }
 0x8c3   :  { %v7163_v38 = vadd.f32 %v12628_v55, %v22158_v56  ;;  %v12629_v44 = vpop.f32.mrb[90].mxu0  ;;  %v15242_v19 = vpack.c.bf16 %v25994_v53, %v25993_v58  ;;  %v25999_v52 = vand.u32 4294901760, %v21788_v29  ;;  %v26020_v58 = vld [vmem:[#allocation16_spill] sm:$0xff] }
 0x8c4   :  { %v12691_v34 = vpop.f32.mrb[94].mxu1  ;;  %8128 = vmatmul.mubr.f32.gmra.mrb[100].mxu0 %v25991_v47  ;;  %v12630_v18 = vpop.f32.mrb[91].mxu0  ;;  %v15245_v10 = vpack.c.bf16 %v25997_v41, %v25996_v14  ;;  %v26021_v53 = vand.u32 4294901760, %v26020_v58  ;;  %v26028_v14 = vld [vmem:[#allocation74_spill] sm:$0xff] }
 0x8c5   :  { %v12631_v26 = vadd.f32 %v12630_v18, %v12629_v44  ;;  %v12692_v20 = vpop.f32.mrb[95].mxu1  ;;  %8135 = vmatprep.mubr.f32.mxu0 %v25992_v32  ;;  %15240 = vmatpush1.bf16.msra.mxu0 %v15239_v1  ;;  %v22223_v43 = vadd.f32 %v12684_v46, %v7163_v38  ;;  %v22241_v46 = vld [vmem:[%s23994_s5 + $0x8] sm:$0xff]  ;;  %v26003_v38 = vand.u32 4294901760, %v21834_v13  ;;  %v26010_v13 = vand.u32 4294901760, %v21853_v21  ;;  %v26016_v21 = vld [vmem:[#allocation97_spill] sm:$0xff] }
 0x8c6   :  { %v12693_v56 = vadd.f32 %v12692_v20, %v12691_v34  ;;  %15241 = vmatprep.subr.bf16.mxu0 %v25815_v16  ;;  %v8574_v42 = vand.u32 4294901760, %v22241_v46  ;;  %v26008_v34 = vand.u32 4294901760, %v21876_v48  ;;  %v26015_v18 = vand.u32 4294901760, %v26014_v15  ;;  %v26055_v15 = vld [vmem:[#allocation136_spill] sm:$0xff]  ;;  %v8559_v58 = vld [vmem:[%s23994_s5 + $0x28] sm:$0xff] }
 0x8c7   :  { %v7170_v23 = vadd.f32 %v12631_v26, %v22163_v60  ;;  %v12632_v63 = vpop.f32.mrb[92].mxu0  ;;  %v15254_v47 = vpack.c.bf16 %v26010_v13, %v26009_v3  ;;  %v26017_v26 = vand.u32 4294901760, %v26016_v21  ;;  %v26029_v41 = vand.u32 4294901760, %v26028_v14  ;;  %v26048_v3 = vld [vmem:[#allocation132_spill] sm:$0xff]  ;;  %v22419_v14 = vld [vmem:[%s23994_s5 + $0x48] sm:$0xff] }
 0x8c8   :  { %8139 = vmatmul.mubr.f32.gmra.mrb[102].mxu0 %v25995_v11  ;;  %v12633_v37 = vpop.f32.mrb[93].mxu0  ;;  %v22255_v55 = vpack.c.bf16 %v8574_v42, %v8571_v36  ;;  %v26026_v11 = vld [vmem:[#allocation62_spill] sm:$0xff]  ;;  %v26049_v13 = vld [vmem:[#allocation124_spill] sm:$0xff] }
 0x8c9   :  { %v12634_v60 = vadd.f32 %v12633_v37, %v12632_v63  ;;  %8146 = vmatprep.mubr.f32.mxu0 %v25998_v50  ;;  %15243 = vmatpush1.bf16.msra.mxu0 %v15242_v19  ;;  %v22247_v51 = vadd.f32 %v12687_v61, %v7170_v23  ;;  %v26001_v61 = vand.u32 4294901760, %v21773_v45  ;;  %v26005_v45 = vand.u32 4294901760, %v21809_v4  ;;  %v26057_v21 = vld [vmem:[#allocation72_spill] sm:$0xff] }
 0x8ca   :  { %15244 = vmatprep.subr.bf16.mxu0 %v25815_v16  ;;  %15317 = vmatprep.subr.bf16.mxu1 %v22255_v55  ;;  %v26011_v4 = vand.u32 4294901760, %v21900_v17  ;;  %v15260_v20 = vpack.c.bf16 %v26017_v26, %v26015_v18  ;;  %v26018_v17 = vld [vmem:[#allocation58_spill] sm:$0xff]  ;;  %v26027_v37 = vand.u32 4294901760, %v26026_v11  ;;  %v26056_v18 = vld [vmem:[#allocation64_spill] sm:$0xff] }
 0x8cb   :  { %v7177_v40 = vadd.f32 %v12634_v60, %v22168_v12  ;;  %v12635_v5 = vpop.f32.mrb[94].mxu0  ;;  %v26002_v12 = vand.u32 4294901760, %v21778_v30  ;;  %15319 = vmatpush3.bf16.msra.mxu1 %v22255_v55  ;;  %v26006_v30 = vand.u32 4294901760, %v21826_v9  ;;  %v26012_v9 = vand.u32 4294901760, %v21881_v33  ;;  %v26022_v33 = vld [vmem:[#allocation48_spill] sm:$0xff]  ;;  %v26030_v60 = vld [vmem:[#allocation70_spill] sm:$0xff] }
 0x8cc   :  { %8150 = vmatmul.mubr.f32.gmra.mrb[104].mxu0 %v25999_v52  ;;  %v12636_v8 = vpop.f32.mrb[95].mxu0  ;;  %v26019_v32 = vand.u32 4294901760, %v26018_v17  ;;  %v26031_v50 = vand.u32 4294901760, %v26030_v60  ;;  %v26058_v26 = vld [vmem:[#allocation86_spill] sm:$0xff] }
 0x8cd   :  { %v12637_v22 = vadd.f32 %v12636_v8, %v12635_v5  ;;  %8157 = vmatprep.mubr.f32.mxu0 %v26000_v35  ;;  %15246 = vmatpush1.bf16.msra.mxu0 %v15245_v10  ;;  %v15248_v59 = vpack.c.bf16 %v26002_v12, %v26001_v61  ;;  %v22265_v1 = vadd.f32 %v12690_v24, %v7177_v40  ;;  %v26032_v40 = vld [vmem:[#allocation81_spill] sm:$0xff]  ;;  %v26038_v12 = vld [vmem:[#allocation63_spill] sm:$0xff] }
 0x8ce   :  { %15247 = vmatprep.subr.bf16.mxu0 %v25815_v16  ;;  %v15251_v24 = vpack.c.bf16 %v26006_v30, %v26005_v45  ;;  %v15263_v19 = vpack.c.bf16 %v26021_v53, %v26019_v32  ;;  %v15269_v10 = vpack.c.bf16 %v26029_v41, %v26027_v37  ;;  %v26033_v5 = vand.u32 4294901760, %v26032_v40  ;;  %v26034_v8 = vld [vmem:[#allocation77_spill] sm:$0xff]  ;;  %v26043_v45 = vld [vmem:[#allocation104_spill] sm:$0xff] }
 0x8cf   :  { %v7184_v29 = vadd.f32 %v12637_v22, %v22173_v39  ;;  %v26007_v39 = vand.u32 4294901760, %v21862_v27  ;;  %v26013_v27 = vand.u32 4294901760, %v21886_v6  ;;  %v26023_v6 = vand.u32 4294901760, %v26022_v33  ;;  %v26035_v22 = vld [vmem:[#allocation30_spill] sm:$0xff]  ;;  %v26036_v35 = vld [vmem:[#allocation105_spill] sm:$0xff]  ;;  %v22435_v40 = vld [vmem:[%s23994_s5 + $0x58] sm:$0xff] }
 0x8d0   :  { %8161 = vmatmul.mubr.f32.gmra.mrb[106].mxu0 %v26003_v38  ;;  %v15272_v52 = vpack.c.bf16 %v26033_v5, %v26031_v50  ;;  %v26037_v61 = vld [vmem:[#allocation89_spill] sm:$0xff]  ;;  %v26041_v38 = vld [vmem:[#allocation71_spill] sm:$0xff] }
 0x8d1   :  { %8168 = vmatprep.mubr.f32.mxu0 %v26004_v0  ;;  %15249 = vmatpush1.bf16.msra.mxu0 %v15248_v59  ;;  %v22279_v44 = vadd.f32 %v12693_v56, %v7184_v29  ;;  %v15257_v48 = vpack.c.bf16 %v26013_v27, %v26012_v9  ;;  %v26024_v56 = vld [vmem:[#allocation66_spill] sm:$0xff]  ;;  %v26039_v59 = vld [vmem:[#allocation108_spill] sm:$0xff]  ;;  %v26040_v29 = vld [vmem:[#allocation99_spill] sm:$0xff] }
 0x8d2   :  { %15250 = vmatprep.subr.bf16.mxu0 %v25815_v16  ;;  %v26025_v23 = vand.u32 4294901760, %v26024_v56  ;;  %v26042_v0 = vld [vmem:[#allocation117_spill] sm:$0xff]  ;;  %v26052_v9 = vld [vmem:[#allocation116_spill] sm:$0xff]  ;;  %v26053_v27 = vld [vmem:[#allocation47_spill] sm:$0xff] }
 0x8d3   :  { %v26044_v30 = vld [vmem:[#allocation85_spill] sm:$0xff]  ;;  %v8561_v56 = vld [vmem:[%s23994_s5 + $0x38] sm:$0xff]  ;;  %v22430_v50 = vld [vmem:[%s23994_s5 + $0x50] sm:$0xff] }
 0x8d4   :  { %8172 = vmatmul.mubr.f32.gmra.mrb[108].mxu0 %v26007_v39  ;;  %v15266_v63 = vpack.c.bf16 %v26025_v23, %v26023_v6  ;;  %v26046_v39 = vld [vmem:[#allocation94_spill] sm:$0xff]  ;;  %v8558_v32 = vld [vmem:[%s23994_s5 + $0x20] sm:$0xff]  ;;  %v8560_v6 = vld [vmem:[%s23994_s5 + $0x30] sm:$0xff]  ;;  %v8601_v5 = vand.u32 4294901760, %v22430_v50 }
 0x8d5   :  { %8179 = vmatprep.mubr.f32.mxu0 %v26008_v34  ;;  %15252 = vmatpush1.bf16.msra.mxu0 %v15251_v24  ;;  %v26045_v24 = vld [vmem:[#allocation121_spill] sm:$0xff]  ;;  %v26047_v34 = vld [vmem:[#allocation83_spill] sm:$0xff]  ;;  %v8583_v53 = vand.u32 4294901760, %v8558_v32  ;;  %v8589_v23 = vand.u32 4294901760, %v8560_v6 }
 0x8d6   :  { %15253 = vmatprep.subr.bf16.mxu0 %v25815_v16  ;;  %v22414_v37 = vld [vmem:[%s23994_s5 + $0x40] sm:$0xff] }
 0x8d7   :  { %v8595_v41 = vand.u32 4294901760, %v22414_v37 }
 0x8d8   :  { %8183 = vmatmul.mubr.f32.gmra.mrb[110].mxu0 %v26011_v4  ;;  %v26051_v4 = vld [vmem:[#allocation19_spill] sm:$0xff] }
 0x8d9   :  { %15255 = vmatpush1.bf16.msra.mxu0 %v15254_v47  ;;  %8337 = vmatprep.mubr.f32.mxu0 %v21377_v7  ;;  %v26050_v47 = vld [vmem:[#allocation90_spill] sm:$0xff] }
 0x8da   :  { %15256 = vmatprep.subr.bf16.mxu0 %v25815_v16 }
 0x8dd   :  { %15258 = vmatpush1.bf16.msra.mxu0 %v15257_v48  ;;  %v26054_v48 = vld [vmem:[#allocation55_spill] sm:$0xff] }
 0x8de   :  { %15259 = vmatprep.subr.bf16.mxu0 %v25815_v16 }
 0x8e1   :  { %15261 = vmatpush1.bf16.msra.mxu0 %v15260_v20 }
 0x8e2   :  { %15262 = vmatprep.subr.bf16.mxu0 %v25815_v16 }
 0x8e5   :  { %15264 = vmatpush1.bf16.msra.mxu0 %v15263_v19  ;;  %v8586_v19 = vand.u32 4294901760, %v8559_v58 }
 0x8e6   :  { %15265 = vmatprep.subr.bf16.mxu0 %v25815_v16 }
 0x8e7   :  { %v22399_v33 = vpack.c.bf16 %v8586_v19, %v8583_v53 }
 0x8e9   :  { %15267 = vmatpush1.bf16.msra.mxu0 %v15266_v63  ;;  %v8592_v63 = vand.u32 4294901760, %v8561_v56 }
 0x8ea   :  { %15268 = vmatprep.subr.bf16.mxu0 %v25815_v16 }
 0x8eb   :  { %v22409_v11 = vpack.c.bf16 %v8592_v63, %v8589_v23 }
 0x8ed   :  { %15270 = vmatpush1.bf16.msra.mxu0 %v15269_v10  ;;  %v8598_v10 = vand.u32 4294901760, %v22419_v14 }
 0x8ee   :  { %15271 = vmatprep.subr.bf16.mxu0 %v25815_v16 }
 0x8ef   :  { %v22425_v60 = vpack.c.bf16 %v8598_v10, %v8595_v41 }
 0x8f1   :  { %15273 = vmatpush1.bf16.msra.mxu0 %v15272_v52  ;;  %v8604_v52 = vand.u32 4294901760, %v22435_v40 }
 0x8f2   :  { %15274 = vmatprep.subr.bf16.mxu0 %v25815_v16 }
 0x8f4   :  { %8339 = vmatmul.mubr.f32.vlgmr.msra.gmra.mrb[96].mxu0 %v26034_v8 }
 0x8f5   :  { %8344 = vmatprep.mubr.f32.mxu0 %v26035_v22  ;;  %15276 = vmatpush1.bf16.msra.mxu0 %v26036_v35  ;;  %v22451_v35 = vld [vmem:[%s23994_s5 + $0x68] sm:$0xff] }
 0x8f6   :  { %15277 = vmatprep.subr.bf16.mxu0 %v25815_v16 }
 0x8f8   :  { %8346 = vmatmul.mubr.f32.gmra.mrb[98].mxu0 %v26037_v61 }
 0x8f9   :  { %8351 = vmatprep.mubr.f32.mxu0 %v26038_v12  ;;  %15279 = vmatpush1.bf16.msra.mxu0 %v26039_v59 }
 0x8fa   :  { %15280 = vmatprep.subr.bf16.mxu0 %v25815_v16 }
 0x8fc   :  { %8353 = vmatmul.mubr.f32.gmra.mrb[100].mxu0 %v26040_v29 }
 0x8fd   :  { %8358 = vmatprep.mubr.f32.mxu0 %v26041_v38  ;;  %15282 = vmatpush1.bf16.msra.mxu0 %v26042_v0  ;;  %v22476_v0 = vld [vmem:[%s23994_s5 + $0x70] sm:$0xff] }
 0x8fe   :  { %15283 = vmatprep.subr.bf16.mxu0 %v25815_v16 }
 0x900   :  { %8360 = vmatmul.mubr.f32.gmra.mrb[102].mxu0 %v26043_v45 }
 0x901   :  { %8365 = vmatprep.mubr.f32.mxu0 %v26044_v30  ;;  %15285 = vmatpush1.bf16.msra.mxu0 %v26045_v24 }
 0x902   :  { %15286 = vmatprep.subr.bf16.mxu0 %v25815_v16 }
 0x904   :  { %8367 = vmatmul.mubr.f32.gmra.mrb[104].mxu0 %v26046_v39 }
 0x905   :  { %8372 = vmatprep.mubr.f32.mxu0 %v26047_v34  ;;  %15288 = vmatpush1.bf16.msra.mxu0 %v26048_v3 }
 0x906   :  { %15289 = vmatprep.subr.bf16.mxu0 %v25815_v16 }
 0x908   :  { %8374 = vmatmul.mubr.f32.gmra.mrb[106].mxu0 %v26049_v13 }
 0x909   :  { %8379 = vmatprep.mubr.f32.mxu0 %v26050_v47  ;;  %15291 = vmatpush1.bf16.msra.mxu0 %v26051_v4 }
 0x90a   :  { %15292 = vmatprep.subr.bf16.mxu0 %v25815_v16 }
 0x90c   :  { %8381 = vmatmul.mubr.f32.gmra.mrb[108].mxu0 %v26052_v9 }
 0x90d   :  { %8386 = vmatprep.mubr.f32.mxu0 %v26053_v27  ;;  %15294 = vmatpush1.bf16.msra.mxu0 %v26054_v48 }
 0x90e   :  { %15295 = vmatprep.subr.bf16.mxu0 %v25815_v16 }
 0x910   :  { %8388 = vmatmul.mubr.f32.gmra.mrb[110].mxu0 %v26055_v15 }
 0x911   :  { %15297 = vmatpush1.bf16.msra.mxu0 %v25973_v31  ;;  %8486 = vmatprep.mubr.f32.mxu0 %v21377_v7  ;;  %v26059_v31 = vld [vmem:[#allocation88_spill] sm:$0xff]  ;;  %v8556_v7 = vld [vmem:[%s23994_s5 + $0x10] sm:$0xff] }
 0x912   :  { %15298 = vmatprep.subr.bf16.mxu0 %v25815_v16 }
 0x915   :  { %15300 = vmatpush1.bf16.msra.mxu0 %v25975_v25  ;;  %v8557_v25 = vld [vmem:[%s23994_s5 + $0x18] sm:$0xff] }
 0x916   :  { %15301 = vmatprep.subr.bf16.mxu0 %v25815_v16  ;;  %v8580_v20 = vand.u32 4294901760, %v8557_v25 }
 0x918   :  { %v22503_v3 = vsub.f32 %v8557_v25, %v8580_v20 }
 0x919   :  { %15303 = vmatpush1.bf16.msra.mxu0 %v26056_v18  ;;  %v22517_v18 = vsub.f32 %v8558_v32, %v8583_v53  ;;  %v22534_v53 = vsub.f32 %v8561_v56, %v8592_v63 }
 0x91a   :  { %15304 = vmatprep.subr.bf16.mxu0 %v25815_v16 }
 0x91d   :  { %15306 = vmatpush1.bf16.msra.mxu0 %v26057_v21  ;;  %v22519_v21 = vsub.f32 %v8559_v58, %v8586_v19  ;;  %v22532_v58 = vsub.f32 %v8560_v6, %v8589_v23  ;;  %v22547_v6 = vsub.f32 %v22419_v14, %v8598_v10  ;;  %v22561_v14 = vsub.f32 %v22430_v50, %v8601_v5 }
 0x91e   :  { %15307 = vmatprep.subr.bf16.mxu0 %v25815_v16 }
 0x91f   :  { %v24819_v25 = vand.u32 4294901760, %v22519_v21 }
 0x921   :  { %15309 = vmatpush1.bf16.msra.mxu0 %v26058_v26  ;;  %v8730_v32 = vsub.f32 %v22519_v21, %v24819_v25 }
 0x922   :  { %15310 = vmatprep.subr.bf16.mxu0 %v25815_v16 }
 0x925   :  { %15312 = vmatpush1.bf16.msra.mxu0 %v26059_v31 }
 0x926   :  { %15313 = vmatprep.subr.bf16.mxu0 %v25815_v16 }
 0x929   :  { %15315 = vmatpush1.bf16.msra.mxu0 %v25980_v2  ;;  %v8577_v2 = vand.u32 4294901760, %v8556_v7 }
 0x92b   :  { %v22389_v17 = vpack.c.bf16 %v8580_v20, %v8577_v2 }
 0x92c   :  { %8488 = vmatmul.mubr.f32.vlgmr.msra.gmra.mrb[96].mxu0 %v26034_v8  ;;  %v22441_v8 = vpack.c.bf16 %v8604_v52, %v8601_v5 }
 0x92d   :  { %8493 = vmatprep.mubr.f32.mxu0 %v26035_v22  ;;  %15321 = vmatprep.subr.bf16.mxu1 %v22389_v17  ;;  %v22446_v22 = vld [vmem:[%s23994_s5 + $0x60] sm:$0xff] }
 0x92e   :  { %15323 = vmatpush3.bf16.msra.mxu1 %v22389_v17 }
 0x92f   :  { %15325 = vmatprep.subr.bf16.mxu1 %v22399_v33 }
 0x930   :  { %8495 = vmatmul.mubr.f32.gmra.mrb[98].mxu0 %v26037_v61  ;;  %v8607_v61 = vand.u32 4294901760, %v22446_v22 }
 0x931   :  { %8500 = vmatprep.mubr.f32.mxu0 %v26038_v12  ;;  %v8610_v12 = vand.u32 4294901760, %v22451_v35 }
 0x932   :  { %15327 = vmatpush3.bf16.msra.mxu1 %v22399_v33 }
 0x933   :  { %15329 = vmatprep.subr.bf16.mxu1 %v22409_v11  ;;  %v22461_v59 = vpack.c.bf16 %v8610_v12, %v8607_v61  ;;  %v22586_v5 = vsub.f32 %v22451_v35, %v8610_v12 }
 0x934   :  { %8502 = vmatmul.mubr.f32.gmra.mrb[100].mxu0 %v26040_v29  ;;  %v22466_v29 = vsub.f32 %v22236_v28, %v8571_v36  ;;  %v8613_v28 = vand.u32 4294901760, %v22476_v0 }
 0x935   :  { %8507 = vmatprep.mubr.f32.mxu0 %v26041_v38  ;;  %v22471_v38 = vsub.f32 %v22241_v46, %v8574_v42 }
 0x936   :  { %15331 = vmatpush3.bf16.msra.mxu1 %v22409_v11 }
 0x937   :  { %15333 = vmatprep.subr.bf16.mxu1 %v22425_v60  ;;  %v24823_v46 = vand.u32 4294901760, %v22471_v38 }
 0x938   :  { %8509 = vmatmul.mubr.f32.gmra.mrb[102].mxu0 %v26043_v45  ;;  %v22481_v45 = vld [vmem:[%s23994_s5 + $0x78] sm:$0xff] }
 0x939   :  { %8514 = vmatprep.mubr.f32.mxu0 %v26044_v30  ;;  %v8616_v36 = vand.u32 4294901760, %v22481_v45  ;;  %v24824_v30 = vand.u32 4294901760, %v22466_v29 }
 0x93a   :  { %15335 = vmatpush3.bf16.msra.mxu1 %v22425_v60 }
 0x93b   :  { %15337 = vmatprep.subr.bf16.mxu1 %v22441_v8  ;;  %v22493_v42 = vpack.c.bf16 %v8616_v36, %v8613_v28  ;;  %v8695_v24 = vsub.f32 %v22466_v29, %v24824_v30  ;;  %v22603_v35 = vsub.f32 %v22481_v45, %v8616_v36 }
 0x93c   :  { %8516 = vmatmul.mubr.f32.gmra.mrb[104].mxu0 %v26046_v39  ;;  %v8702_v39 = vsub.f32 %v22471_v38, %v24823_v46 }
 0x93d   :  { %8521 = vmatprep.mubr.f32.mxu0 %v26047_v34  ;;  %v22501_v34 = vsub.f32 %v8556_v7, %v8577_v2  ;;  %v24820_v7 = vand.u32 4294901760, %v22517_v18 }
 0x93e   :  { %15339 = vmatpush3.bf16.msra.mxu1 %v22441_v8 }
 0x93f   :  { %15341 = vmatprep.subr.bf16.mxu1 %v22461_v59  ;;  %v24822_v4 = vand.u32 4294901760, %v22501_v34  ;;  %v8723_v20 = vsub.f32 %v22517_v18, %v24820_v7 }
 0x940   :  { %8523 = vmatmul.mubr.f32.gmra.mrb[106].mxu0 %v26049_v13  ;;  %v8696_v13 = vand.u32 4294901760, %v8695_v24  ;;  %v8731_v24 = vand.u32 4294901760, %v8730_v32 }
 0x941   :  { %8528 = vmatprep.mubr.f32.mxu0 %v26050_v47  ;;  %v8703_v47 = vand.u32 4294901760, %v8702_v39  ;;  %v8709_v48 = vsub.f32 %v22501_v34, %v24822_v4  ;;  %v8724_v19 = vand.u32 4294901760, %v8723_v20  ;;  %v24818_v39 = vand.u32 4294901760, %v22532_v58 }
 0x942   :  { %15343 = vmatpush3.bf16.msra.mxu1 %v22461_v59 }
 0x943   :  { %15345 = vmatprep.subr.bf16.mxu1 %v22493_v42  ;;  %v8710_v26 = vand.u32 4294901760, %v8709_v48  ;;  %v8737_v48 = vsub.f32 %v22532_v58, %v24818_v39 }
 0x944   :  { %8530 = vmatmul.mubr.f32.gmra.mrb[108].mxu0 %v26052_v9  ;;  %v24821_v9 = vand.u32 4294901760, %v22503_v3 }
 0x945   :  { %8535 = vmatprep.mubr.f32.mxu0 %v26053_v27  ;;  %v22509_v27 = vpack.c.bf16 %v8703_v47, %v8696_v13  ;;  %v24817_v13 = vand.u32 4294901760, %v22534_v53  ;;  %v22538_v47 = vpack.c.bf16 %v8731_v24, %v8724_v19  ;;  %v8738_v23 = vand.u32 4294901760, %v8737_v48 }
 0x946   :  { %15347 = vmatpush3.bf16.msra.mxu1 %v22493_v42  ;;  %v24815_v24 = vand.u32 4294901760, %v22561_v14 }
 0x947   :  { %15349 = vmatprep.subr.bf16.mxu1 %v22509_v27  ;;  %v8744_v56 = vsub.f32 %v22534_v53, %v24817_v13 }
 0x948   :  { %8537 = vmatmul.mubr.f32.gmra.mrb[110].mxu0 %v26055_v15  ;;  %v8716_v15 = vsub.f32 %v22503_v3, %v24821_v9 }
 0x94a   :  { %v8717_v31 = vand.u32 4294901760, %v8716_v15  ;;  %v22544_v15 = vsub.f32 %v22414_v37, %v8595_v41  ;;  %v22564_v41 = vsub.f32 %v22435_v40, %v8604_v52  ;;  %v22581_v40 = vsub.f32 %v22446_v22, %v8607_v61 }
 0x94b   :  { %v22598_v22 = vsub.f32 %v22476_v0, %v8613_v28 }
 0x94c   :  { %v22524_v2 = vpack.c.bf16 %v8717_v31, %v8710_v26  ;;  %v24816_v63 = vand.u32 4294901760, %v22544_v15  ;;  %v24809_v26 = vand.u32 4294901760, %v22547_v6  ;;  %v8745_v31 = vand.u32 4294901760, %v8744_v56 }
 0x94d   :  { %v24814_v48 = vand.u32 4294901760, %v22564_v41 }
 0x94e   :  { %v8751_v20 = vsub.f32 %v22544_v15, %v24816_v63  ;;  %v8758_v37 = vsub.f32 %v22547_v6, %v24809_v26  ;;  %v22566_v10 = vpack.c.bf16 %v8745_v31, %v8738_v23  ;;  %v8765_v26 = vsub.f32 %v22561_v14, %v24815_v24 }
 0x94f   :  { %v8772_v50 = vsub.f32 %v22564_v41, %v24814_v48  ;;  %v24813_v31 = vand.u32 4294901760, %v22581_v40 }
 0x950   :  { %v8752_v32 = vand.u32 4294901760, %v8751_v20  ;;  %v8759_v19 = vand.u32 4294901760, %v8758_v37  ;;  %v8766_v52 = vand.u32 4294901760, %v8765_v26  ;;  %v24812_v20 = vand.u32 4294901760, %v22586_v5 }
 0x951   :  { %v8773_v23 = vand.u32 4294901760, %v8772_v50  ;;  %v24810_v26 = vand.u32 4294901760, %v22598_v22 }
 0x952   :  { %v22570_v56 = vpack.c.bf16 %v8759_v19, %v8752_v32  ;;  %v8779_v32 = vsub.f32 %v22581_v40, %v24813_v31  ;;  %v8786_v61 = vsub.f32 %v22586_v5, %v24812_v20  ;;  %v24811_v19 = vand.u32 4294901760, %v22603_v35 }
 0x953   :  { %v22590_v37 = vpack.c.bf16 %v8773_v23, %v8766_v52  ;;  %v8793_v0 = vsub.f32 %v22598_v22, %v24810_v26  ;;  %v22630_v26 = vpack.c.bf16 %v22519_v21, %v22517_v18 }
 0x954   :  { %v8780_v12 = vand.u32 4294901760, %v8779_v32  ;;  %v8787_v50 = vand.u32 4294901760, %v8786_v61  ;;  %v8800_v28 = vsub.f32 %v22603_v35, %v24811_v19  ;;  %v22622_v32 = vpack.c.bf16 %v22471_v38, %v22466_v29 }
 0x955   :  { %v8794_v36 = vand.u32 4294901760, %v8793_v0  ;;  %v22626_v61 = vpack.c.bf16 %v22503_v3, %v22501_v34  ;;  %v22642_v0 = vpack.c.bf16 %v22564_v41, %v22561_v14 }
 0x956   :  { %v22616_v45 = vpack.c.bf16 %v8787_v50, %v8780_v12  ;;  %v8801_v52 = vand.u32 4294901760, %v8800_v28  ;;  %v22634_v12 = vpack.c.bf16 %v22534_v53, %v22532_v58  ;;  %v22638_v50 = vpack.c.bf16 %v22547_v6, %v22544_v15 }
 0x957   :  { %v22646_v28 = vpack.c.bf16 %v22586_v5, %v22581_v40 }
 0x958   :  { %v22618_v23 = vpack.c.bf16 %v8801_v52, %v8794_v36  ;;  %v22650_v36 = vpack.c.bf16 %v22603_v35, %v22598_v22 }
 0x9ff   :  { %v8489_v52 = vpop.f32.mrb[96].mxu0 }
 0xa00   :  { %v16180_v19 = vadd.f32 %v8489_v52, %v22178_v49  ;;  %v8491_v20 = vpop.f32.mrb[97].mxu0 }
 0xa02   :  { %v8542_v63 = vmax.f32 %v16180_v19, 0.0 }
 0xa03   :  { %v8496_v31 = vpop.f32.mrb[98].mxu0 }
 0xa04   :  { %v16181_v48 = vadd.f32 %v8496_v31, %v22187_v62  ;;  %v8498_v24 = vpop.f32.mrb[99].mxu0 }
 0xa06   :  { %v8543_v13 = vmax.f32 %v16181_v48, 0.0 }
 0xa07   :  { %v8503_v39 = vpop.f32.mrb[100].mxu0 }
 0xa08   :  { %v8550_v25 = vmax.f32 %v8542_v63, %v8543_v13  ;;  %v16182_v7 = vadd.f32 %v8503_v39, %v22199_v54  ;;  %v8505_v9 = vpop.f32.mrb[101].mxu0 }
 0xa0a   :  { %v22655_v4 = vand.u32 4294901760, %v8550_v25  ;;  %v8544_v52 = vmax.f32 %v16182_v7, 0.0 }
 0xa0b   :  { %v8510_v46 = vpop.f32.mrb[102].mxu0 }
 0xa0c   :  { %v22658_v30 = vsub.f32 %v8550_v25, %v22655_v4  ;;  %v16183_v49 = vadd.f32 %v8510_v46, %v22211_v57  ;;  %v8512_v20 = vpop.f32.mrb[103].mxu0 }
 0xa0e   :  { %v8545_v16 = vmax.f32 %v16183_v49, 0.0  ;;  %v22662_v62 = vand.u32 4294901760, %v22658_v30 }
 0xa0f   :  { %v8517_v24 = vpop.f32.mrb[104].mxu0 }
 0xa10   :  { %v8551_v48 = vmax.f32 %v8544_v52, %v8545_v16  ;;  %v16184_v13 = vadd.f32 %v8517_v24, %v22223_v43  ;;  %v8519_v54 = vpop.f32.mrb[105].mxu0  ;;  %v8654_v9 = vsub.f32 %v22658_v30, %v22662_v62 }
 0xa12   :  { %v22667_v39 = vand.u32 4294901760, %v8551_v48  ;;  %v22669_v25 = vand.u32 4294901760, %v8654_v9  ;;  %v8546_v43 = vmax.f32 %v16184_v13, 0.0 }
 0xa13   :  { %v8524_v63 = vpop.f32.mrb[106].mxu0 }
 0xa14   :  { %v22672_v57 = vsub.f32 %v8551_v48, %v22667_v39  ;;  %v16185_v46 = vadd.f32 %v8524_v63, %v22247_v51  ;;  %v8526_v7 = vpop.f32.mrb[107].mxu0  ;;  %13380 = vmatprep.mubr.f32.mxu1 %v22669_v25 }
 0xa16   :  { %v22677_v16 = vand.u32 4294901760, %v22672_v57  ;;  %v8547_v31 = vmax.f32 %v16185_v46, 0.0 }
 0xa17   :  { %v8531_v19 = vpop.f32.mrb[108].mxu0 }
 0xa18   :  { %v8552_v49 = vmax.f32 %v8546_v43, %v8547_v31  ;;  %v16186_v20 = vadd.f32 %v8531_v19, %v22265_v1  ;;  %v8533_v52 = vpop.f32.mrb[109].mxu0  ;;  %v8664_v24 = vsub.f32 %v22672_v57, %v22677_v16 }
 0xa1a   :  { %v22682_v48 = vand.u32 4294901760, %v8552_v49  ;;  %v22684_v54 = vand.u32 4294901760, %v8664_v24  ;;  %v8548_v1 = vmax.f32 %v16186_v20, 0.0  ;;  %v9346_v24 = vld [vmem:[%s23995_s6 + $0x30] sm:$0xff] }
 0xa1b   :  { %v8538_v51 = vpop.f32.mrb[110].mxu0 }
 0xa1c   :  { %v22687_v9 = vsub.f32 %v8552_v49, %v22682_v48  ;;  %v16187_v63 = vadd.f32 %v8538_v51, %v22279_v44  ;;  %v8540_v13 = vpop.f32.mrb[111].mxu0  ;;  %13381 = vmatmul.mubr.f32.vlgmr.msra.gmra.mrb[96].mxu1 %v22684_v54  ;;  %v9347_v51 = vld [vmem:[%s23995_s6 + $0x38] sm:$0xff] }
 0xa1d   :  { %15351 = vmatpush3.bf16.msra.mxu1 %v22509_v27  ;;  %v9378_v13 = vand.u32 4294901760, %v9347_v51 }
 0xa1e   :  { %v8549_v46 = vmax.f32 %v16187_v63, 0.0  ;;  %15353 = vmatprep.subr.bf16.mxu1 %v22524_v2  ;;  %v22694_v7 = vand.u32 4294901760, %v22687_v9  ;;  %v9375_v63 = vand.u32 4294901760, %v9346_v24 }
 0xa20   :  { %v8553_v43 = vmax.f32 %v8548_v1, %v8549_v46  ;;  %v8674_v31 = vsub.f32 %v22687_v9, %v22694_v7  ;;  %v9348_v1 = vld [vmem:[%s23995_s6 + $0x40] sm:$0xff]  ;;  %v9349_v46 = vld [vmem:[%s23995_s6 + $0x48] sm:$0xff] }
 0xa21   :  { %15355 = vmatpush3.bf16.msra.mxu1 %v22524_v2 }
 0xa22   :  { %v22699_v19 = vand.u32 4294901760, %v8553_v43  ;;  %15357 = vmatprep.subr.bf16.mxu1 %v22538_v47  ;;  %v22702_v44 = vand.u32 4294901760, %v8674_v31  ;;  %v9381_v31 = vand.u32 4294901760, %v9348_v1 }
 0xa24   :  { %v22705_v27 = vsub.f32 %v8553_v43, %v22699_v19  ;;  %13383 = vmatprep.mubr.f32.mxu1 %v22702_v44  ;;  %v22869_v43 = vpack.c.bf16 %v9378_v13, %v9375_v63 }
 0xa25   :  { %15359 = vmatpush3.bf16.msra.mxu1 %v22538_v47  ;;  %v26060_v47 = vand.u32 4294901760, %v22466_v29  ;;  %v26065_v29 = vand.u32 4294901760, %v22519_v21  ;;  %v26070_v21 = vand.u32 4294901760, %v22561_v14  ;;  %v9343_v14 = vld [vmem:[%s23995_s6 + $0x18] sm:$0xff] }
 0xa26   :  { %15361 = vmatprep.subr.bf16.mxu1 %v22566_v10  ;;  %v22711_v49 = vand.u32 4294901760, %v22705_v27 }
 0xa28   :  { %v8684_v2 = vsub.f32 %v22705_v27, %v22711_v49 }
 0xa29   :  { %15363 = vmatpush3.bf16.msra.mxu1 %v22566_v10  ;;  %v26061_v10 = vand.u32 4294901760, %v22471_v38 }
 0xa2a   :  { %15365 = vmatprep.subr.bf16.mxu1 %v22570_v56  ;;  %v22717_v20 = vand.u32 4294901760, %v8684_v2  ;;  %v9384_v2 = vand.u32 4294901760, %v9349_v46 }
 0xa2c   :  { %13384 = vmatmul.mubr.f32.gmra.mrb[98].mxu1 %v22717_v20 }
 0xa2d   :  { %15367 = vmatpush3.bf16.msra.mxu1 %v22570_v56  ;;  %13418 = vmatprep.mubr.f32.mxu1 %v22655_v4  ;;  %v15444_v56 = vpack.c.bf16 %v26061_v10, %v26060_v47  ;;  %v9350_v47 = vld [vmem:[%s23995_s6 + $0x50] sm:$0xff]  ;;  %v9351_v10 = vld [vmem:[%s23995_s6 + $0x58] sm:$0xff] }
 0xa2e   :  { %15369 = vmatprep.subr.bf16.mxu1 %v22590_v37 }
 0xa31   :  { %15371 = vmatpush3.bf16.msra.mxu1 %v22590_v37  ;;  %v26062_v37 = vand.u32 4294901760, %v22501_v34  ;;  %v26066_v34 = vand.u32 4294901760, %v22532_v58  ;;  %v26072_v58 = vand.u32 4294901760, %v22581_v40 }
 0xa32   :  { %15373 = vmatprep.subr.bf16.mxu1 %v22616_v45 }
 0xa35   :  { %15375 = vmatpush3.bf16.msra.mxu1 %v22616_v45 }
 0xa36   :  { %15377 = vmatprep.subr.bf16.mxu1 %v22618_v23 }
 0xa39   :  { %15379 = vmatpush3.bf16.msra.mxu1 %v22618_v23  ;;  %v26064_v23 = vand.u32 4294901760, %v22517_v18  ;;  %v26069_v18 = vand.u32 4294901760, %v22547_v6  ;;  %v26075_v6 = vand.u32 4294901760, %v22603_v35 }
 0xa3a   :  { %15381 = vmatprep.subr.bf16.mxu1 %v22622_v32 }
 0xa3b   :  { %v15452_v38 = vpack.c.bf16 %v26065_v29, %v26064_v23  ;;  %v9387_v23 = vand.u32 4294901760, %v9350_v47  ;;  %v9390_v29 = vand.u32 4294901760, %v9351_v10 }
 0xa3c   :  { %13419 = vmatmul.mubr.f32.vlgmr.msra.gmra.mrb[96].mxu1 %v22667_v39 }
 0xa3d   :  { %13421 = vmatprep.mubr.f32.mxu1 %v22682_v48  ;;  %15383 = vmatpush3.bf16.msra.mxu1 %v22622_v32 }
 0xa3e   :  { %15385 = vmatprep.subr.bf16.mxu1 %v22626_v61 }
 0xa40   :  { %13422 = vmatmul.mubr.f32.gmra.mrb[98].mxu1 %v22699_v19 }
 0xa41   :  { %15387 = vmatpush3.bf16.msra.mxu1 %v22626_v61  ;;  %13456 = vmatprep.mubr.f32.mxu1 %v22658_v30  ;;  %v26068_v61 = vand.u32 4294901760, %v22544_v15  ;;  %v26074_v15 = vand.u32 4294901760, %v22598_v22  ;;  %v9345_v22 = vld [vmem:[%s23995_s6 + $0x28] sm:$0xff] }
 0xa42   :  { %15389 = vmatprep.subr.bf16.mxu1 %v22630_v26  ;;  %v9372_v52 = vand.u32 4294901760, %v9345_v22 }
 0xa45   :  { %15391 = vmatpush3.bf16.msra.mxu1 %v22630_v26  ;;  %v26063_v26 = vand.u32 4294901760, %v22503_v3  ;;  %v26067_v3 = vand.u32 4294901760, %v22534_v53  ;;  %v26073_v53 = vand.u32 4294901760, %v22586_v5  ;;  %v9344_v5 = vld [vmem:[%s23995_s6 + $0x20] sm:$0xff] }
 0xa46   :  { %15393 = vmatprep.subr.bf16.mxu1 %v22634_v12 }
 0xa47   :  { %v15448_v45 = vpack.c.bf16 %v26063_v26, %v26062_v37  ;;  %v15456_v32 = vpack.c.bf16 %v26067_v3, %v26066_v34 }
 0xa49   :  { %15395 = vmatpush3.bf16.msra.mxu1 %v22634_v12  ;;  %v15460_v12 = vpack.c.bf16 %v26069_v18, %v26068_v61  ;;  %v22901_v61 = vpack.c.bf16 %v9390_v29, %v9387_v23  ;;  %v22906_v18 = vld [vmem:[%s23995_s6 + $0x70] sm:$0xff] }
 0xa4a   :  { %15397 = vmatprep.subr.bf16.mxu1 %v22638_v50 }
 0xa4d   :  { %15399 = vmatpush3.bf16.msra.mxu1 %v22638_v50  ;;  %v26071_v50 = vand.u32 4294901760, %v22564_v41 }
 0xa4e   :  { %15401 = vmatprep.subr.bf16.mxu1 %v22642_v0 }
 0xa51   :  { %15403 = vmatpush3.bf16.msra.mxu1 %v22642_v0  ;;  %v15464_v0 = vpack.c.bf16 %v26071_v50, %v26070_v21 }
 0xa52   :  { %15405 = vmatprep.subr.bf16.mxu1 %v22646_v28 }
 0xa55   :  { %15407 = vmatpush3.bf16.msra.mxu1 %v22646_v28  ;;  %v15468_v28 = vpack.c.bf16 %v26073_v53, %v26072_v58  ;;  %v9399_v58 = vand.u32 4294901760, %v22906_v18 }
 0xa56   :  { %15409 = vmatprep.subr.bf16.mxu1 %v22650_v36 }
 0xa59   :  { %15411 = vmatpush3.bf16.msra.mxu1 %v22650_v36  ;;  %v15472_v36 = vpack.c.bf16 %v26075_v6, %v26074_v15 }
 0xa5a   :  { %15413 = vmatprep.subr.bf16.mxu1 %v22255_v55 }
 0xa5c   :  { %13457 = vmatmul.mubr.f32.vlgmr.msra.gmra.mrb[96].mxu1 %v22672_v57 }
 0xa5d   :  { %13459 = vmatprep.mubr.f32.mxu1 %v22687_v9  ;;  %15415 = vmatpush3.bf16.msra.mxu1 %v22255_v55 }
 0xa5e   :  { %15417 = vmatprep.subr.bf16.mxu1 %v22389_v17 }
 0xa60   :  { %13460 = vmatmul.mubr.f32.gmra.mrb[98].mxu1 %v22705_v27 }
 0xa61   :  { %15419 = vmatpush3.bf16.msra.mxu1 %v22389_v17  ;;  %13494 = vmatprep.mubr.f32.mxu1 %v22662_v62 }
 0xa62   :  { %15421 = vmatprep.subr.bf16.mxu1 %v22399_v33 }
 0xa65   :  { %15423 = vmatpush3.bf16.msra.mxu1 %v22399_v33 }
 0xa66   :  { %15425 = vmatprep.subr.bf16.mxu1 %v22409_v11 }
 0xa69   :  { %15427 = vmatpush3.bf16.msra.mxu1 %v22409_v11 }
 0xa6a   :  { %15429 = vmatprep.subr.bf16.mxu1 %v22425_v60 }
 0xa6d   :  { %15431 = vmatpush3.bf16.msra.mxu1 %v22425_v60 }
 0xa6e   :  { %15433 = vmatprep.subr.bf16.mxu1 %v22441_v8 }
 0xa71   :  { %15435 = vmatpush3.bf16.msra.mxu1 %v22441_v8 }
 0xa72   :  { %15437 = vmatprep.subr.bf16.mxu1 %v22461_v59 }
 0xa75   :  { %15439 = vmatpush3.bf16.msra.mxu1 %v22461_v59 }
 0xa76   :  { %15441 = vmatprep.subr.bf16.mxu1 %v22493_v42 }
 0xa79   :  { %15443 = vmatpush3.bf16.msra.mxu1 %v22493_v42 }
 0xa7a   :  { %15445 = vmatprep.subr.bf16.mxu1 %v15444_v56 }
 0xa7c   :  { %13495 = vmatmul.mubr.f32.vlgmr.msra.gmra.mrb[96].mxu1 %v22677_v16 }
 0xa7d   :  { %13497 = vmatprep.mubr.f32.mxu1 %v22694_v7  ;;  %15447 = vmatpush3.bf16.msra.mxu1 %v15444_v56  ;;  %v22886_v56 = vld [vmem:[%s23995_s6 + $0x68] sm:$0xff] }
 0xa7e   :  { %15449 = vmatprep.subr.bf16.mxu1 %v15448_v45  ;;  %v9396_v34 = vand.u32 4294901760, %v22886_v56 }
 0xa80   :  { %13498 = vmatmul.mubr.f32.gmra.mrb[98].mxu1 %v22711_v49 }
 0xa81   :  { %15451 = vmatpush3.bf16.msra.mxu1 %v15448_v45  ;;  %13532 = vmatprep.mubr.f32.mxu1 %v22655_v4  ;;  %v22893_v45 = vpack.c.bf16 %v9384_v2, %v9381_v31 }
 0xa82   :  { %15453 = vmatprep.subr.bf16.mxu1 %v15452_v38 }
 0xa85   :  { %15455 = vmatpush3.bf16.msra.mxu1 %v15452_v38 }
 0xa86   :  { %15457 = vmatprep.subr.bf16.mxu1 %v15456_v32 }
 0xa89   :  { %15459 = vmatpush3.bf16.msra.mxu1 %v15456_v32 }
 0xa8a   :  { %15461 = vmatprep.subr.bf16.mxu1 %v15460_v12 }
 0xa8d   :  { %15463 = vmatpush3.bf16.msra.mxu1 %v15460_v12  ;;  %v22911_v12 = vld [vmem:[%s23995_s6 + $0x78] sm:$0xff] }
 0xa8e   :  { %15465 = vmatprep.subr.bf16.mxu1 %v15464_v0  ;;  %v9402_v53 = vand.u32 4294901760, %v22911_v12 }
 0xa91   :  { %15467 = vmatpush3.bf16.msra.mxu1 %v15464_v0 }
 0xa92   :  { %15469 = vmatprep.subr.bf16.mxu1 %v15468_v28 }
 0xa95   :  { %15471 = vmatpush3.bf16.msra.mxu1 %v15468_v28 }
 0xa96   :  { %15473 = vmatprep.subr.bf16.mxu1 %v15472_v36 }
 0xa99   :  { %15475 = vmatpush3.bf16.msra.mxu1 %v15472_v36 }
 0xa9a   :  { %15477 = vmatprep.subr.bf16.mxu1 %v22255_v55 }
 0xa9c   :  { %13533 = vmatmul.mubr.f32.vlgmr.msra.gmra.mrb[96].mxu1 %v22667_v39 }
 0xa9d   :  { %13535 = vmatprep.mubr.f32.mxu1 %v22682_v48  ;;  %15479 = vmatpush3.bf16.msra.mxu1 %v22255_v55  ;;  %v9340_v55 = vld [vmem:[%s23995_s6] sm:$0xff] }
 0xa9e   :  { %15481 = vmatprep.subr.bf16.mxu1 %v22389_v17 }
 0xaa0   :  { %13536 = vmatmul.mubr.f32.gmra.mrb[98].mxu1 %v22699_v19 }
 0xaa1   :  { %15483 = vmatpush3.bf16.msra.mxu1 %v22389_v17  ;;  %13570 = vmatprep.mubr.f32.mxu1 %v22655_v4  ;;  %v9341_v17 = vld [vmem:[%s23995_s6 + $0x8] sm:$0xff] }
 0xaa2   :  { %15485 = vmatprep.subr.bf16.mxu1 %v22399_v33 }
 0xaa5   :  { %15487 = vmatpush3.bf16.msra.mxu1 %v22399_v33  ;;  %v9357_v33 = vand.u32 4294901760, %v9340_v55 }
 0xaa6   :  { %15489 = vmatprep.subr.bf16.mxu1 %v22409_v11 }
 0xaa7   :  { %v22888_v37 = vsub.f32 %v9340_v55, %v9357_v33 }
 0xaa9   :  { %15491 = vmatpush3.bf16.msra.mxu1 %v22409_v11  ;;  %v9360_v11 = vand.u32 4294901760, %v9341_v17  ;;  %v9480_v3 = vand.u32 4294901760, %v22888_v37 }
 0xaaa   :  { %15493 = vmatprep.subr.bf16.mxu1 %v22425_v60 }
 0xaab   :  { %v22835_v41 = vpack.c.bf16 %v9360_v11, %v9357_v33  ;;  %v22890_v26 = vsub.f32 %v9341_v17, %v9360_v11  ;;  %v9481_v28 = vsub.f32 %v22888_v37, %v9480_v3  ;;  %v22937_v17 = vsub.f32 %v9345_v22, %v9372_v52 }
 0xaac   :  { %v22939_v33 = vsub.f32 %v9346_v24, %v9375_v63  ;;  %v22941_v11 = vsub.f32 %v9347_v51, %v9378_v13  ;;  %v22962_v63 = vsub.f32 %v9348_v1, %v9381_v31  ;;  %v22964_v13 = vsub.f32 %v9349_v46, %v9384_v2 }
 0xaad   :  { %15495 = vmatpush3.bf16.msra.mxu1 %v22425_v60  ;;  %v9342_v60 = vld [vmem:[%s23995_s6 + $0x10] sm:$0xff]  ;;  %v9487_v32 = vand.u32 4294901760, %v22890_v26  ;;  %v22982_v2 = vsub.f32 %v9350_v47, %v9387_v23 }
 0xaae   :  { %15497 = vmatprep.subr.bf16.mxu1 %v22441_v8  ;;  %v9363_v40 = vand.u32 4294901760, %v9342_v60  ;;  %v24831_v24 = vand.u32 4294901760, %v22941_v11  ;;  %v9536_v46 = vand.u32 4294901760, %v22962_v63  ;;  %v9543_v31 = vand.u32 4294901760, %v22964_v13 }
 0xaaf   :  { %v9488_v15 = vsub.f32 %v22890_v26, %v9487_v32 }
 0xab0   :  { %v22913_v21 = vsub.f32 %v9342_v60, %v9363_v40  ;;  %v22948_v60 = vpack.c.bf16 %v9402_v53, %v9399_v58  ;;  %v9530_v1 = vsub.f32 %v22941_v11, %v24831_v24  ;;  %v9537_v24 = vsub.f32 %v22962_v63, %v9536_v46 }
 0xab1   :  { %15499 = vmatpush3.bf16.msra.mxu1 %v22441_v8  ;;  %v9366_v8 = vand.u32 4294901760, %v9343_v14  ;;  %v9544_v47 = vsub.f32 %v22964_v13, %v9543_v31 }
 0xab2   :  { %15501 = vmatprep.subr.bf16.mxu1 %v22461_v59  ;;  %v24827_v6 = vand.u32 4294901760, %v22913_v21 }
 0xab3   :  { %v22845_v35 = vpack.c.bf16 %v9366_v8, %v9363_v40  ;;  %v22915_v50 = vsub.f32 %v9343_v14, %v9366_v8  ;;  %v9482_v14 = vand.u32 4294901760, %v9481_v28  ;;  %v9489_v40 = vand.u32 4294901760, %v9488_v15 }
 0xab4   :  { %v9495_v8 = vsub.f32 %v22913_v21, %v24827_v6 }
 0xab5   :  { %15503 = vmatpush3.bf16.msra.mxu1 %v22461_v59  ;;  %v9369_v59 = vand.u32 4294901760, %v9344_v5  ;;  %v24826_v36 = vand.u32 4294901760, %v22915_v50  ;;  %v15540_v51 = vpack.c.bf16 %v9489_v40, %v9482_v14  ;;  %v22984_v40 = vsub.f32 %v9351_v10, %v9390_v29 }
 0xab6   :  { %15505 = vmatprep.subr.bf16.mxu1 %v22493_v42  ;;  %v9496_v28 = vand.u32 4294901760, %v9495_v8  ;;  %v9550_v10 = vand.u32 4294901760, %v22982_v2 }
 0xab7   :  { %v22935_v55 = vsub.f32 %v9344_v5, %v9369_v59  ;;  %v9502_v5 = vsub.f32 %v22915_v50, %v24826_v36  ;;  %v9557_v23 = vand.u32 4294901760, %v22984_v40 }
 0xab9   :  { %15507 = vmatpush3.bf16.msra.mxu1 %v22493_v42  ;;  %v22857_v42 = vpack.c.bf16 %v9372_v52, %v9369_v59  ;;  %v24830_v22 = vand.u32 4294901760, %v22935_v55  ;;  %v24828_v59 = vand.u32 4294901760, %v22937_v17  ;;  %v24829_v52 = vand.u32 4294901760, %v22939_v33 }
 0xaba   :  { %15509 = vmatprep.subr.bf16.mxu1 %v22835_v41  ;;  %v9503_v15 = vand.u32 4294901760, %v9502_v5 }
 0xabb   :  { %v9509_v36 = vsub.f32 %v22935_v55, %v24830_v22  ;;  %v9516_v6 = vsub.f32 %v22937_v17, %v24828_v59  ;;  %v9523_v14 = vsub.f32 %v22939_v33, %v24829_v52  ;;  %v9531_v22 = vand.u32 4294901760, %v9530_v1 }
 0xabc   :  { %13571 = vmatmul.mubr.f32.vlgmr.msra.gmra.mrb[96].mxu1 %v22667_v39  ;;  %v15544_v8 = vpack.c.bf16 %v9503_v15, %v9496_v28 }
 0xabd   :  { %13573 = vmatprep.mubr.f32.mxu1 %v22682_v48  ;;  %15511 = vmatpush3.bf16.msra.mxu1 %v22835_v41  ;;  %v9510_v5 = vand.u32 4294901760, %v9509_v36  ;;  %v9517_v59 = vand.u32 4294901760, %v9516_v6  ;;  %v9524_v52 = vand.u32 4294901760, %v9523_v14  ;;  %v9538_v36 = vand.u32 4294901760, %v9537_v24 }
 0xabe   :  { %15513 = vmatprep.subr.bf16.mxu1 %v22845_v35 }
 0xabf   :  { %v15548_v29 = vpack.c.bf16 %v9517_v59, %v9510_v5  ;;  %v15552_v6 = vpack.c.bf16 %v9531_v22, %v9524_v52  ;;  %v9551_v59 = vsub.f32 %v22982_v2, %v9550_v10 }
 0xac0   :  { %13574 = vmatmul.mubr.f32.gmra.mrb[98].mxu1 %v22699_v19 }
 0xac1   :  { %15515 = vmatpush3.bf16.msra.mxu1 %v22845_v35  ;;  %13608 = vmatprep.mubr.f32.mxu1 %v22669_v25  ;;  %v22881_v25 = vld [vmem:[%s23995_s6 + $0x60] sm:$0xff]  ;;  %v9552_v52 = vand.u32 4294901760, %v9551_v59  ;;  %v15580_v59 = vpack.c.bf16 %v22937_v17, %v22935_v55 }
 0xac2   :  { %15517 = vmatprep.subr.bf16.mxu1 %v22857_v42  ;;  %v9393_v38 = vand.u32 4294901760, %v22881_v25 }
 0xac4   :  { %v22921_v0 = vpack.c.bf16 %v9396_v34, %v9393_v38 }
 0xac5   :  { %15519 = vmatpush3.bf16.msra.mxu1 %v22857_v42 }
 0xac6   :  { %15521 = vmatprep.subr.bf16.mxu1 %v22869_v43 }
 0xac9   :  { %15523 = vmatpush3.bf16.msra.mxu1 %v22869_v43 }
 0xaca   :  { %15525 = vmatprep.subr.bf16.mxu1 %v22893_v45 }
 0xacd   :  { %15527 = vmatpush3.bf16.msra.mxu1 %v22893_v45 }
 0xace   :  { %15529 = vmatprep.subr.bf16.mxu1 %v22901_v61 }
 0xad1   :  { %15531 = vmatpush3.bf16.msra.mxu1 %v22901_v61 }
 0xad2   :  { %15533 = vmatprep.subr.bf16.mxu1 %v22921_v0 }
 0xad5   :  { %15535 = vmatpush3.bf16.msra.mxu1 %v22921_v0 }
 0xad6   :  { %15537 = vmatprep.subr.bf16.mxu1 %v22948_v60 }
 0xad9   :  { %15539 = vmatpush3.bf16.msra.mxu1 %v22948_v60 }
 0xada   :  { %15541 = vmatprep.subr.bf16.mxu1 %v15540_v51 }
 0xadc   :  { %13609 = vmatmul.mubr.f32.vlgmr.msra.gmra.mrb[100].mxu1 %v22684_v54  ;;  %v22999_v54 = vsub.f32 %v22881_v25, %v9393_v38  ;;  %v9558_v25 = vsub.f32 %v22984_v40, %v9557_v23 }
 0xadd   :  { %13611 = vmatprep.mubr.f32.mxu1 %v22702_v44  ;;  %15543 = vmatpush3.bf16.msra.mxu1 %v15540_v51  ;;  %v23004_v44 = vsub.f32 %v22886_v56, %v9396_v34  ;;  %v9545_v51 = vand.u32 4294901760, %v9544_v47  ;;  %v23024_v34 = vsub.f32 %v22911_v12, %v9402_v53 }
 0xade   :  { %15545 = vmatprep.subr.bf16.mxu1 %v15544_v8  ;;  %v9564_v56 = vand.u32 4294901760, %v22999_v54  ;;  %v9559_v24 = vand.u32 4294901760, %v9558_v25  ;;  %v15584_v25 = vpack.c.bf16 %v22941_v11, %v22939_v33 }
 0xadf   :  { %v9571_v38 = vand.u32 4294901760, %v23004_v44  ;;  %v15556_v22 = vpack.c.bf16 %v9545_v51, %v9538_v36  ;;  %v15572_v36 = vpack.c.bf16 %v22890_v26, %v22888_v37  ;;  %v15576_v51 = vpack.c.bf16 %v22915_v50, %v22913_v21 }
 0xae0   :  { %13612 = vmatmul.mubr.f32.gmra.mrb[102].mxu1 %v22717_v20  ;;  %v23019_v20 = vsub.f32 %v22906_v18, %v9399_v58  ;;  %v9565_v28 = vsub.f32 %v22999_v54, %v9564_v56  ;;  %v9585_v58 = vand.u32 4294901760, %v23024_v34  ;;  %v15560_v12 = vpack.c.bf16 %v9559_v24, %v9552_v52 }
 0xae1   :  { %15547 = vmatpush3.bf16.msra.mxu1 %v15544_v8  ;;  %13646 = vmatprep.mubr.f32.mxu1 %v22655_v4  ;;  %v9572_v15 = vsub.f32 %v23004_v44, %v9571_v38  ;;  %v15592_v52 = vpack.c.bf16 %v22984_v40, %v22982_v2  ;;  %v15596_v24 = vpack.c.bf16 %v23004_v44, %v22999_v54  ;;  %v26079_v37 = vand.u32 4294901760, %v22937_v17  ;;  %v10141_v17 = vld [vmem:[#allocation6 + $0x8] sm:$0xff] }
 0xae2   :  { %15549 = vmatprep.subr.bf16.mxu1 %v15548_v29  ;;  %v9578_v18 = vand.u32 4294901760, %v23019_v20  ;;  %v9566_v53 = vand.u32 4294901760, %v9565_v28  ;;  %v9586_v8 = vsub.f32 %v23024_v34, %v9585_v58  ;;  %v26078_v28 = vand.u32 4294901760, %v22935_v55 }
 0xae3   :  { %v9573_v14 = vand.u32 4294901760, %v9572_v15 }
 0xae4   :  { %v9579_v1 = vsub.f32 %v23019_v20, %v9578_v18  ;;  %v15644_v26 = vpack.c.bf16 %v26079_v37, %v26078_v28  ;;  %v10164_v28 = vld [vmem:[#allocation6 + $0xc0] sm:$0xff]  ;;  %v10165_v37 = vld [vmem:[#allocation6 + $0xc8] sm:$0xff] }
 0xae5   :  { %15551 = vmatpush3.bf16.msra.mxu1 %v15548_v29  ;;  %v15564_v5 = vpack.c.bf16 %v9573_v14, %v9566_v53  ;;  %v9587_v29 = vand.u32 4294901760, %v9586_v8  ;;  %v10162_v53 = vld [vmem:[#allocation6 + $0xb0] sm:$0xff] }
 0xae6   :  { %15553 = vmatprep.subr.bf16.mxu1 %v15552_v6  ;;  %v9580_v47 = vand.u32 4294901760, %v9579_v1 }
 0xae9   :  { %15555 = vmatpush3.bf16.msra.mxu1 %v15552_v6  ;;  %v15568_v6 = vpack.c.bf16 %v9587_v29, %v9580_v47  ;;  %v10163_v47 = vld [vmem:[#allocation6 + $0xb8] sm:$0xff] }
 0xaea   :  { %15557 = vmatprep.subr.bf16.mxu1 %v15556_v22 }
 0xaed   :  { %15559 = vmatpush3.bf16.msra.mxu1 %v15556_v22  ;;  %v15588_v22 = vpack.c.bf16 %v22964_v13, %v22962_v63  ;;  %v10142_v63 = vld [vmem:[#allocation6 + $0x10] sm:$0xff]  ;;  %v10143_v13 = vld [vmem:[#allocation6 + $0x18] sm:$0xff] }
 0xaee   :  { %15561 = vmatprep.subr.bf16.mxu1 %v15560_v12  ;;  %v10179_v40 = vand.u32 4294901760, %v10142_v63 }
 0xaf1   :  { %15563 = vmatpush3.bf16.msra.mxu1 %v15560_v12 }
 0xaf2   :  { %15565 = vmatprep.subr.bf16.mxu1 %v15564_v5 }
 0xaf5   :  { %15567 = vmatpush3.bf16.msra.mxu1 %v15564_v5 }
 0xaf6   :  { %15569 = vmatprep.subr.bf16.mxu1 %v15568_v6 }
 0xaf9   :  { %15571 = vmatpush3.bf16.msra.mxu1 %v15568_v6 }
 0xafa   :  { %15573 = vmatprep.subr.bf16.mxu1 %v15572_v36 }
 0xafc   :  { %13647 = vmatmul.mubr.f32.vlgmr.msra.gmra.mrb[100].mxu1 %v22667_v39 }
 0xafd   :  { %13649 = vmatprep.mubr.f32.mxu1 %v22682_v48  ;;  %15575 = vmatpush3.bf16.msra.mxu1 %v15572_v36 }
 0xafe   :  { %15577 = vmatprep.subr.bf16.mxu1 %v15576_v51 }
 0xb00   :  { %13650 = vmatmul.mubr.f32.gmra.mrb[102].mxu1 %v22699_v19 }
 0xb01   :  { %15579 = vmatpush3.bf16.msra.mxu1 %v15576_v51  ;;  %13684 = vmatprep.mubr.f32.mxu1 %v22658_v30  ;;  %v15600_v30 = vpack.c.bf16 %v23024_v34, %v23019_v20  ;;  %v10144_v20 = vld [vmem:[#allocation6 + $0x20] sm:$0xff]  ;;  %v10145_v34 = vld [vmem:[#allocation6 + $0x28] sm:$0xff] }
 0xb02   :  { %15581 = vmatprep.subr.bf16.mxu1 %v15580_v59  ;;  %v10185_v6 = vand.u32 4294901760, %v10144_v20  ;;  %v10188_v36 = vand.u32 4294901760, %v10145_v34 }
 0xb05   :  { %15583 = vmatpush3.bf16.msra.mxu1 %v15580_v59  ;;  %v10146_v59 = vld [vmem:[#allocation6 + $0x30] sm:$0xff] }
 0xb06   :  { %15585 = vmatprep.subr.bf16.mxu1 %v15584_v25 }
 0xb09   :  { %15587 = vmatpush3.bf16.msra.mxu1 %v15584_v25  ;;  %v10147_v25 = vld [vmem:[#allocation6 + $0x38] sm:$0xff] }
 0xb0a   :  { %15589 = vmatprep.subr.bf16.mxu1 %v15588_v22 }
 0xb0d   :  { %15591 = vmatpush3.bf16.msra.mxu1 %v15588_v22 }
 0xb0e   :  { %15593 = vmatprep.subr.bf16.mxu1 %v15592_v52 }
 0xb11   :  { %15595 = vmatpush3.bf16.msra.mxu1 %v15592_v52 }
 0xb12   :  { %15597 = vmatprep.subr.bf16.mxu1 %v15596_v24 }
 0xb15   :  { %15599 = vmatpush3.bf16.msra.mxu1 %v15596_v24 }
 0xb16   :  { %15601 = vmatprep.subr.bf16.mxu1 %v15600_v30 }
 0xb19   :  { %15603 = vmatpush3.bf16.msra.mxu1 %v15600_v30  ;;  %v10239_v30 = vand.u32 4294901760, %v10162_v53 }
 0xb1a   :  { %15605 = vmatprep.subr.bf16.mxu1 %v22835_v41 }
 0xb1c   :  { %13685 = vmatmul.mubr.f32.vlgmr.msra.gmra.mrb[100].mxu1 %v22672_v57  ;;  %v26076_v57 = vand.u32 4294901760, %v22913_v21  ;;  %v15660_v21 = vpack.c.bf16 %v9571_v38, %v9564_v56  ;;  %v10182_v56 = vand.u32 4294901760, %v10143_v13  ;;  %v10161_v38 = vld [vmem:[#allocation6 + $0xa8] sm:$0xff] }
 0xb1d   :  { %13687 = vmatprep.mubr.f32.mxu1 %v22687_v9  ;;  %15607 = vmatpush3.bf16.msra.mxu1 %v22835_v41  ;;  %v26077_v9 = vand.u32 4294901760, %v22915_v50  ;;  %v15664_v50 = vpack.c.bf16 %v9585_v58, %v9578_v18  ;;  %v23161_v18 = vsub.f32 %v10142_v63, %v10179_v40  ;;  %v10236_v29 = vand.u32 4294901760, %v10161_v38  ;;  %v10150_v63 = vld [vmem:[#allocation6 + $0x50] sm:$0xff] }
 0xb1e   :  { %15609 = vmatprep.subr.bf16.mxu1 %v22845_v35  ;;  %v23171_v8 = vsub.f32 %v10143_v13, %v10182_v56  ;;  %v23181_v24 = vpack.c.bf16 %v10182_v56, %v10179_v40  ;;  %v10151_v13 = vld [vmem:[#allocation6 + $0x58] sm:$0xff] }
 0xb20   :  { %13688 = vmatmul.mubr.f32.gmra.mrb[102].mxu1 %v22705_v27  ;;  %v15640_v27 = vpack.c.bf16 %v26077_v9, %v26076_v57  ;;  %v15770_v22 = vpack.c.bf16 %v23171_v8, %v23161_v18  ;;  %v23185_v57 = vsub.f32 %v10144_v20, %v10185_v6  ;;  %v23187_v9 = vsub.f32 %v10145_v34, %v10188_v36 }
 0xb21   :  { %15611 = vmatpush3.bf16.msra.mxu1 %v22845_v35  ;;  %13722 = vmatprep.mubr.f32.mxu1 %v22662_v62  ;;  %v15636_v62 = vpack.c.bf16 %v9487_v32, %v9480_v3  ;;  %v26080_v3 = vand.u32 4294901760, %v22939_v33  ;;  %v26081_v32 = vand.u32 4294901760, %v22941_v11  ;;  %v10159_v11 = vld [vmem:[#allocation6 + $0x98] sm:$0xff] }
 0xb22   :  { %15613 = vmatprep.subr.bf16.mxu1 %v22857_v42 }
 0xb25   :  { %15615 = vmatpush3.bf16.msra.mxu1 %v22857_v42 }
 0xb26   :  { %15617 = vmatprep.subr.bf16.mxu1 %v22869_v43 }
 0xb29   :  { %15619 = vmatpush3.bf16.msra.mxu1 %v22869_v43 }
 0xb2a   :  { %15621 = vmatprep.subr.bf16.mxu1 %v22893_v45 }
 0xb2d   :  { %15623 = vmatpush3.bf16.msra.mxu1 %v22893_v45 }
 0xb2e   :  { %15625 = vmatprep.subr.bf16.mxu1 %v22901_v61 }
 0xb31   :  { %15627 = vmatpush3.bf16.msra.mxu1 %v22901_v61 }
 0xb32   :  { %15629 = vmatprep.subr.bf16.mxu1 %v22921_v0 }
 0xb35   :  { %15631 = vmatpush3.bf16.msra.mxu1 %v22921_v0 }
 0xb36   :  { %15633 = vmatprep.subr.bf16.mxu1 %v22948_v60 }
 0xb39   :  { %15635 = vmatpush3.bf16.msra.mxu1 %v22948_v60 }
 0xb3a   :  { %15637 = vmatprep.subr.bf16.mxu1 %v15636_v62 }
 0xb3c   :  { %13723 = vmatmul.mubr.f32.vlgmr.msra.gmra.mrb[100].mxu1 %v22677_v16  ;;  %v15648_v16 = vpack.c.bf16 %v26081_v32, %v26080_v3  ;;  %v10191_v3 = vand.u32 4294901760, %v10146_v59  ;;  %v10194_v32 = vand.u32 4294901760, %v10147_v25 }
 0xb3d   :  { %13725 = vmatprep.mubr.f32.mxu1 %v22694_v7  ;;  %15639 = vmatpush3.bf16.msra.mxu1 %v15636_v62  ;;  %v15652_v7 = vpack.c.bf16 %v9543_v31, %v9536_v46  ;;  %v23183_v62 = vsub.f32 %v10161_v38, %v10236_v29 }
 0xb3e   :  { %15641 = vmatprep.subr.bf16.mxu1 %v15640_v27  ;;  %v23228_v20 = vpack.c.bf16 %v10194_v32, %v10191_v3 }
 0xb40   :  { %13726 = vmatmul.mubr.f32.gmra.mrb[102].mxu1 %v22711_v49  ;;  %v15656_v49 = vpack.c.bf16 %v9557_v23, %v9550_v10  ;;  %v10160_v10 = vld [vmem:[#allocation6 + $0xa0] sm:$0xff]  ;;  %26084 = vst [vmem:[#allocation69_spill] sm:$0xff] %v23228_v20 }
 0xb41   :  { %15643 = vmatpush3.bf16.msra.mxu1 %v15640_v27  ;;  %13760 = vmatprep.mubr.f32.mxu1 %v22655_v4  ;;  %v10233_v5 = vand.u32 4294901760, %v10160_v10  ;;  %v10242_v27 = vand.u32 4294901760, %v10163_v47 }
 0xb42   :  { %15645 = vmatprep.subr.bf16.mxu1 %v15644_v26 }
 0xb43   :  { %v23179_v52 = vsub.f32 %v10160_v10, %v10233_v5 }
 0xb45   :  { %15647 = vmatpush3.bf16.msra.mxu1 %v15644_v26  ;;  %v23190_v26 = vsub.f32 %v10162_v53, %v10239_v30 }
 0xb46   :  { %15649 = vmatprep.subr.bf16.mxu1 %v15648_v16 }
 0xb49   :  { %15651 = vmatpush3.bf16.msra.mxu1 %v15648_v16  ;;  %v23192_v16 = vpack.c.bf16 %v10236_v29, %v10233_v5  ;;  %v10206_v5 = vand.u32 4294901760, %v10151_v13 }
 0xb4a   :  { %15653 = vmatprep.subr.bf16.mxu1 %v15652_v7 }
 0xb4d   :  { %15655 = vmatpush3.bf16.msra.mxu1 %v15652_v7  ;;  %v23194_v7 = vld [vmem:[#allocation6 + $0x40] sm:$0xff] }
 0xb4e   :  { %15657 = vmatprep.subr.bf16.mxu1 %v15656_v49 }
 0xb51   :  { %15659 = vmatpush3.bf16.msra.mxu1 %v15656_v49  ;;  %v10149_v49 = vld [vmem:[#allocation6 + $0x48] sm:$0xff] }
 0xb52   :  { %15661 = vmatprep.subr.bf16.mxu1 %v15660_v21 }
 0xb55   :  { %15663 = vmatpush3.bf16.msra.mxu1 %v15660_v21  ;;  %v15772_v21 = vpack.c.bf16 %v23183_v62, %v23179_v52 }
 0xb56   :  { %15665 = vmatprep.subr.bf16.mxu1 %v15664_v50 }
 0xb59   :  { %15667 = vmatpush3.bf16.msra.mxu1 %v15664_v50  ;;  %v15774_v50 = vpack.c.bf16 %v23187_v9, %v23185_v57 }
 0xb5a   :  { %15669 = vmatprep.subr.bf16.mxu1 %v22835_v41 }
 0xb5c   :  { %13761 = vmatmul.mubr.f32.vlgmr.msra.gmra.mrb[100].mxu1 %v22667_v39 }
 0xb5d   :  { %13763 = vmatprep.mubr.f32.mxu1 %v22682_v48  ;;  %15671 = vmatpush3.bf16.msra.mxu1 %v22835_v41 }
 0xb5e   :  { %15673 = vmatprep.subr.bf16.mxu1 %v22845_v35 }
 0xb60   :  { %13764 = vmatmul.mubr.f32.gmra.mrb[102].mxu1 %v22699_v19 }
 0xb61   :  { %15675 = vmatpush3.bf16.msra.mxu1 %v22845_v35  ;;  %13798 = vmatprep.mubr.f32.mxu1 %v22655_v4 }
 0xb62   :  { %15677 = vmatprep.subr.bf16.mxu1 %v22857_v42 }
 0xb65   :  { %15679 = vmatpush3.bf16.msra.mxu1 %v22857_v42 }
 0xb66   :  { %15681 = vmatprep.subr.bf16.mxu1 %v22869_v43 }
 0xb69   :  { %15683 = vmatpush3.bf16.msra.mxu1 %v22869_v43  ;;  %v10156_v43 = vld [vmem:[#allocation6 + $0x80] sm:$0xff] }
 0xb6a   :  { %15685 = vmatprep.subr.bf16.mxu1 %v22893_v45 }
 0xb6d   :  { %15687 = vmatpush3.bf16.msra.mxu1 %v22893_v45  ;;  %v10157_v45 = vld [vmem:[#allocation6 + $0x88] sm:$0xff] }
 0xb6e   :  { %15689 = vmatprep.subr.bf16.mxu1 %v22901_v61  ;;  %v10224_v55 = vand.u32 4294901760, %v10157_v45 }
 0xb70   :  { %v23149_v31 = vsub.f32 %v10157_v45, %v10224_v55  ;;  %v23202_v45 = vpack.c.bf16 %v10188_v36, %v10185_v6 }
 0xb71   :  { %15691 = vmatpush3.bf16.msra.mxu1 %v22901_v61  ;;  %v10140_v61 = vld [vmem:[#allocation6] sm:$0xff] }
 0xb72   :  { %15693 = vmatprep.subr.bf16.mxu1 %v22921_v0  ;;  %v10173_v33 = vand.u32 4294901760, %v10140_v61  ;;  %26082 = vst [vmem:[#allocation37_spill] sm:$0xff] %v23202_v45 }
 0xb74   :  { %v23151_v2 = vsub.f32 %v10140_v61, %v10173_v33  ;;  %v23205_v61 = vsub.f32 %v10146_v59, %v10191_v3 }
 0xb75   :  { %15695 = vmatpush3.bf16.msra.mxu1 %v22921_v0  ;;  %v10221_v0 = vand.u32 4294901760, %v10156_v43 }
 0xb76   :  { %15697 = vmatprep.subr.bf16.mxu1 %v22948_v60 }
 0xb77   :  { %v23147_v46 = vsub.f32 %v10156_v43, %v10221_v0  ;;  %v23163_v58 = vpack.c.bf16 %v10224_v55, %v10221_v0  ;;  %v23200_v43 = vsub.f32 %v10163_v47, %v10242_v27  ;;  %v23207_v0 = vsub.f32 %v10147_v25, %v10194_v32  ;;  %v10152_v32 = vld [vmem:[#allocation6 + $0x60] sm:$0xff] }
 0xb78   :  { %v10245_v55 = vand.u32 4294901760, %v10164_v28  ;;  %v23251_v25 = vsub.f32 %v10151_v13, %v10206_v5 }
 0xb79   :  { %15699 = vmatpush3.bf16.msra.mxu1 %v22948_v60  ;;  %v15764_v15 = vpack.c.bf16 %v23149_v31, %v23147_v46  ;;  %15701 = vmatprep.subr.bf16.mxu0 %v23163_v58  ;;  %v15778_v40 = vpack.c.bf16 %v23207_v0, %v23205_v61 }
 0xb7a   :  { %v23221_v10 = vsub.f32 %v10164_v28, %v10245_v55  ;;  %v10169_v28 = vld [vmem:[#allocation6 + $0xe8] sm:$0xff] }
 0xb7b   :  { %15765 = vmatprep.subr.bf16.mxu1 %v15764_v15  ;;  %v10260_v3 = vand.u32 4294901760, %v10169_v28 }
 0xb7c   :  { %13799 = vmatmul.mubr.f32.vlgmr.msra.gmra.mrb[100].mxu1 %v22667_v39  ;;  %v10158_v39 = vld [vmem:[#allocation6 + $0x90] sm:$0xff] }
 0xb7d   :  { %13801 = vmatprep.mubr.f32.mxu1 %v22682_v48  ;;  %v10176_v48 = vand.u32 4294901760, %v10141_v17  ;;  %v10227_v60 = vand.u32 4294901760, %v10158_v39 }
 0xb7f   :  { %v23153_v23 = vsub.f32 %v10141_v17, %v10176_v48  ;;  %v23155_v54 = vsub.f32 %v10158_v39, %v10227_v60  ;;  %v23165_v12 = vpack.c.bf16 %v10176_v48, %v10173_v33  ;;  %v10248_v17 = vand.u32 4294901760, %v10165_v37  ;;  %v23209_v33 = vld [vmem:[#allocation6 + $0xd0] sm:$0xff]  ;;  %v23211_v39 = vld [vmem:[#allocation6 + $0xd8] sm:$0xff] }
 0xb80   :  { %13802 = vmatmul.mubr.f32.gmra.mrb[102].mxu1 %v22699_v19  ;;  %v10230_v19 = vand.u32 4294901760, %v10159_v11  ;;  %v10197_v48 = vand.u32 4294901760, %v23194_v7  ;;  %v10251_v34 = vand.u32 4294901760, %v23209_v33  ;;  %v10254_v15 = vand.u32 4294901760, %v23211_v39 }
 0xb81   :  { %v15766_v14 = vpack.c.bf16 %v23153_v23, %v23151_v2  ;;  %15703 = vmatpush3.bf16.msra.mxu0 %v23165_v12  ;;  %v23223_v56 = vsub.f32 %v10165_v37, %v10248_v17  ;;  %v23244_v6 = vpack.c.bf16 %v10248_v17, %v10245_v55  ;;  %v23260_v55 = vsub.f32 %v10169_v28, %v10260_v3 }
 0xb82   :  { %v23157_v44 = vsub.f32 %v10159_v11, %v10230_v19  ;;  %v23174_v51 = vpack.c.bf16 %v10230_v19, %v10227_v60  ;;  %v15776_v11 = vpack.c.bf16 %v23200_v43, %v23190_v26  ;;  %v10200_v60 = vand.u32 4294901760, %v10149_v49 }
 0xb83   :  { %15767 = vmatpush3.bf16.msra.mxu1 %v15766_v14  ;;  %v23217_v19 = vpack.c.bf16 %v10242_v27, %v10239_v30  ;;  %v23226_v38 = vsub.f32 %v23194_v7, %v10197_v48  ;;  %v15780_v53 = vpack.c.bf16 %v23223_v56, %v23221_v10  ;;  %v23239_v47 = vsub.f32 %v23209_v33, %v10251_v34  ;;  %v10168_v27 = vld [vmem:[#allocation6 + $0xe0] sm:$0xff]  ;;  %v10153_v7 = vld [vmem:[#allocation6 + $0x68] sm:$0xff] }
 0xb84   :  { %v15768_v1 = vpack.c.bf16 %v23157_v44, %v23155_v54  ;;  %15705 = vmatprep.subr.bf16.mxu0 %v23174_v51  ;;  %v23235_v14 = vsub.f32 %v10149_v49, %v10200_v60  ;;  %v23242_v29 = vsub.f32 %v23211_v39, %v10254_v15  ;;  %26085 = vst [vmem:[#allocation68_spill] sm:$0xff] %v23244_v6  ;;  %v10257_v37 = vand.u32 4294901760, %v10168_v27 }
 0xb85   :  { %15707 = vmatpush3.bf16.msra.mxu0 %v23181_v24  ;;  %26083 = vst [vmem:[#allocation103_spill] sm:$0xff] %v23217_v19  ;;  %v10209_v49 = vand.u32 4294901760, %v10152_v32  ;;  %v23262_v17 = vpack.c.bf16 %v10200_v60, %v10197_v48 }
 0xb86   :  { %15769 = vmatprep.subr.bf16.mxu1 %v15768_v1  ;;  %15709 = vmatprep.subr.bf16.mxu0 %v23192_v16  ;;  %v10203_v1 = vand.u32 4294901760, %v10150_v63  ;;  %v15782_v36 = vpack.c.bf16 %v23235_v14, %v23226_v38 }
 0xb87   :  { %15771 = vmatpush3.bf16.msra.mxu1 %v15770_v22  ;;  %v15784_v22 = vpack.c.bf16 %v23242_v29, %v23239_v47  ;;  %26086 = vst [vmem:[#allocation80_spill] sm:$0xff] %v23262_v17  ;;  %v23264_v33 = vsub.f32 %v10152_v32, %v10209_v49 }
 0xb88   :  { %15773 = vmatprep.subr.bf16.mxu1 %v15772_v21  ;;  %v23249_v59 = vsub.f32 %v10150_v63, %v10203_v1  ;;  %v10212_v21 = vand.u32 4294901760, %v10153_v7  ;;  %v10171_v63 = vld [vmem:[#allocation6 + $0xf8] sm:$0xff] }
 0xb89   :  { %15711 = vmatpush3.bf16.msra.mxu0 %v23202_v45  ;;  %v23279_v45 = vpack.c.bf16 %v10260_v3, %v10257_v37 }
 0xb8a   :  { %15713 = vmatprep.subr.bf16.mxu0 %v23217_v19  ;;  %v15786_v30 = vpack.c.bf16 %v23251_v25, %v23249_v59  ;;  %v23266_v39 = vsub.f32 %v10153_v7, %v10212_v21  ;;  %v23275_v7 = vpack.c.bf16 %v10206_v5, %v10203_v1 }
 0xb8b   :  { %15775 = vmatpush3.bf16.msra.mxu1 %v15774_v50  ;;  %v23258_v50 = vsub.f32 %v10168_v27, %v10257_v37  ;;  %v23273_v27 = vpack.c.bf16 %v10254_v15, %v10251_v34  ;;  %26087 = vst [vmem:[#allocation79_spill] sm:$0xff] %v23279_v45  ;;  %v10406_v34 = vand.u32 4294901760, %v23149_v31  ;;  %v23283_v15 = vpack.c.bf16 %v10212_v21, %v10209_v49 }
 0xb8c   :  { %15777 = vmatprep.subr.bf16.mxu1 %v15776_v11  ;;  %v10170_v11 = vld [vmem:[#allocation6 + $0xf0] sm:$0xff] }
 0xb8d   :  { %15715 = vmatpush3.bf16.msra.mxu0 %v23228_v20  ;;  %v15788_v13 = vpack.c.bf16 %v23260_v55, %v23258_v50  ;;  %26088 = vst [vmem:[#allocation120_spill] sm:$0xff] %v23283_v15  ;;  %v10407_v21 = vsub.f32 %v23149_v31, %v10406_v34  ;;  %v10371_v31 = vand.u32 4294901760, %v23264_v33 }
 0xb8e   :  { %15717 = vmatprep.subr.bf16.mxu0 %v23244_v6 }
 0xb8f   :  { %v23139_v4 = vpop.f32.mrb[96].mxu1  ;;  %15779 = vmatpush3.bf16.msra.mxu1 %v15778_v40  ;;  %v10263_v40 = vand.u32 4294901760, %v10170_v11 }
 0xb90   :  { %v23141_v41 = vpop.f32.mrb[97].mxu1  ;;  %15781 = vmatprep.subr.bf16.mxu1 %v15780_v53  ;;  %v10266_v53 = vand.u32 4294901760, %v10171_v63 }
 0xb91   :  { %15719 = vmatpush3.bf16.msra.mxu0 %v23262_v17  ;;  %v10496_v28 = vsub.f32 %v10170_v11, %v10263_v40 }
 0xb92   :  { %v10503_v32 = vsub.f32 %v10171_v63, %v10266_v53  ;;  %15721 = vmatprep.subr.bf16.mxu0 %v23273_v27  ;;  %v23287_v11 = vpack.c.bf16 %v10266_v53, %v10263_v40  ;;  %v10408_v53 = vand.u32 4294901760, %v10407_v21 }
 0xb93   :  { %v23143_v35 = vpop.f32.mrb[98].mxu1  ;;  %15783 = vmatpush3.bf16.msra.mxu1 %v15782_v36  ;;  %v10154_v36 = vld [vmem:[#allocation6 + $0x70] sm:$0xff] }
 0xb94   :  { %v23145_v42 = vpop.f32.mrb[99].mxu1  ;;  %15785 = vmatprep.subr.bf16.mxu1 %v15784_v22  ;;  %v10155_v22 = vld [vmem:[#allocation6 + $0x78] sm:$0xff]  ;;  %v10215_v48 = vand.u32 4294901760, %v10154_v36  ;;  %v15792_v19 = vpack.c.bf16 %v10503_v32, %v10496_v28  ;;  %26089 = vst [vmem:[#allocation87_spill] sm:$0xff] %v23287_v11 }
 0xb95   :  { %v10218_v60 = vand.u32 4294901760, %v10155_v22  ;;  %15723 = vmatpush3.bf16.msra.mxu0 %v23275_v7 }
 0xb96   :  { %v10384_v6 = vsub.f32 %v10154_v36, %v10215_v48  ;;  %15725 = vmatprep.subr.bf16.mxu0 %v23279_v45 }
 0xb97   :  { %15787 = vmatpush3.bf16.msra.mxu1 %v15786_v30  ;;  %v15790_v30 = vpack.c.bf16 %v23266_v39, %v23264_v33  ;;  %v10391_v20 = vsub.f32 %v10155_v22, %v10218_v60  ;;  %v23291_v63 = vpack.c.bf16 %v10218_v60, %v10215_v48  ;;  %v10378_v48 = vand.u32 4294901760, %v23266_v39 }
 0xb98   :  { %15789 = vmatprep.subr.bf16.mxu1 %v15788_v13  ;;  %v10399_v13 = vand.u32 4294901760, %v23147_v46 }
 0xb99   :  { %v15794_v17 = vpack.c.bf16 %v10391_v20, %v10384_v6  ;;  %15727 = vmatpush3.bf16.msra.mxu0 %v23283_v15  ;;  %26090 = vst [vmem:[#allocation92_spill] sm:$0xff] %v23291_v63 }
 0xb9a   :  { %v15828_v1 = vpack.c.bf16 %v10406_v34, %v10399_v13  ;;  %15729 = vmatprep.subr.bf16.mxu0 %v23287_v11  ;;  %v10504_v34 = vand.u32 4294901760, %v10503_v32 }
 0xb9b   :  { %15791 = vmatpush3.bf16.msra.mxu1 %v15790_v30  ;;  %v10490_v30 = vand.u32 4294901760, %v23260_v55 }
 0xb9c   :  { %15793 = vmatprep.subr.bf16.mxu1 %v15792_v19  ;;  %v10400_v19 = vsub.f32 %v23147_v46, %v10399_v13  ;;  %v23307_v13 = vpack.c.bf16 %v10378_v48, %v10371_v31 }
 0xb9d   :  { %15731 = vmatpush3.bf16.msra.mxu0 %v23291_v63  ;;  %v10505_v63 = vsub.f32 %v10503_v32, %v10504_v34 }
 0xb9e   :  { %v10401_v49 = vand.u32 4294901760, %v10400_v19  ;;  %v10491_v19 = vsub.f32 %v23260_v55, %v10490_v30 }
 0xb9f   :  { %15795 = vmatpush3.bf16.msra.mxu1 %v15794_v17 }
 0xba0   :  { %15829 = vmatprep.subr.bf16.mxu1 %v15828_v1  ;;  %v15732_v22 = vpack.c.bf16 %v10408_v53, %v10401_v49  ;;  %v10385_v1 = vand.u32 4294901760, %v10384_v6  ;;  %v10379_v49 = vsub.f32 %v23266_v39, %v10378_v48  ;;  %v10492_v53 = vand.u32 4294901760, %v10491_v19 }
 0xba1   :  { %v10427_v19 = vand.u32 4294901760, %v23179_v52 }
 0xba2   :  { %15733 = vmatprep.subr.bf16.mxu0 %v15732_v22  ;;  %v10380_v22 = vand.u32 4294901760, %v10379_v49  ;;  %v10386_v11 = vsub.f32 %v10384_v6, %v10385_v1 }
 0xba4   :  { %v10387_v45 = vand.u32 4294901760, %v10386_v11 }
 0xc4f   :  { %v13800_v5 = vpop.f32.mrb[100].mxu1 }
 0xc50   :  { %v10127_v37 = vmax.f32 %v23139_v4, %v13800_v5  ;;  %v10104_v3 = vpop.f32.mrb[101].mxu1 }
 0xc51   :  { %v10126_v17 = vmax.f32 %v23141_v41, %v10104_v3  ;;  %v10483_v41 = vand.u32 4294901760, %v23258_v50  ;;  %v10372_v3 = vsub.f32 %v23264_v33, %v10371_v31 }
 0xc52   :  { %10131 = vrot.lane.b32.xlu1 %v10127_v37, %s16960_s16 }
 0xc53   :  { %v13803_v40 = vpop.f32.mrb[102].mxu1  ;;  %v23305_v60 = vpack.c.bf16 %v10490_v30, %v10483_v41  ;;  %v10484_v5 = vsub.f32 %v23258_v50, %v10483_v41  ;;  %v10506_v30 = vand.u32 4294901760, %v10505_v63 }
 0xc54   :  { %v10129_v46 = vmax.f32 %v23143_v35, %v13803_v40  ;;  %v10116_v36 = vpop.f32.mrb[103].mxu1  ;;  %v10497_v35 = vand.u32 4294901760, %v10496_v28 }
 0xc55   :  { %v10128_v4 = vmax.f32 %v23145_v42, %v10116_v36  ;;  %v10392_v42 = vand.u32 4294901760, %v10391_v20  ;;  %v10485_v40 = vand.u32 4294901760, %v10484_v5  ;;  %v10373_v36 = vand.u32 4294901760, %v10372_v3 }
 0xc56   :  { %10135 = vrot.lane.b32.xlu0 %v10129_v46, %s16960_s16  ;;  %v23311_v37 = vpack.c.bf16 %v10504_v34, %v10497_v35  ;;  %v10498_v46 = vsub.f32 %v10496_v28, %v10497_v35  ;;  %v10287_v28 = vand.u32 4294901760, %v23151_v2  ;;  %v10294_v35 = vand.u32 4294901760, %v23153_v23 }
 0xc57   :  { %v23315_v21 = vpack.c.bf16 %v10392_v42, %v10385_v1  ;;  %v23317_v15 = vpack.c.bf16 %v10492_v53, %v10485_v40  ;;  %v10393_v41 = vsub.f32 %v10391_v20, %v10392_v42  ;;  %v23319_v55 = vpack.c.bf16 %v10380_v22, %v10373_v36 }
 0xc58   :  { %v10499_v50 = vand.u32 4294901760, %v10498_v46  ;;  %v10288_v20 = vsub.f32 %v23151_v2, %v10287_v28  ;;  %v10295_v34 = vsub.f32 %v23153_v23, %v10294_v35  ;;  %v10420_v1 = vand.u32 4294901760, %v23157_v44 }
 0xc59   :  { %v10394_v33 = vand.u32 4294901760, %v10393_v41  ;;  %v10301_v42 = vand.u32 4294901760, %v23161_v18  ;;  %v10434_v2 = vand.u32 4294901760, %v23183_v62 }
 0xc5a   :  { %v23321_v31 = vpack.c.bf16 %v10506_v30, %v10499_v50  ;;  %v10289_v23 = vand.u32 4294901760, %v10288_v20  ;;  %v10296_v49 = vand.u32 4294901760, %v10295_v34  ;;  %v10421_v46 = vsub.f32 %v23157_v44, %v10420_v1 }
 0xc5b   :  { %v23323_v39 = vpack.c.bf16 %v10394_v33, %v10387_v45  ;;  %v10413_v45 = vand.u32 4294901760, %v23155_v54  ;;  %v10302_v50 = vsub.f32 %v23161_v18, %v10301_v42  ;;  %v15836_v30 = vpack.c.bf16 %v10434_v2, %v10427_v19 }
 0xc5c   :  { %v10315_v33 = vand.u32 4294901760, %v23185_v57  ;;  %v10322_v44 = vand.u32 4294901760, %v23187_v9  ;;  %v10422_v18 = vand.u32 4294901760, %v10421_v46  ;;  %v10435_v34 = vsub.f32 %v23183_v62, %v10434_v2 }
 0xc5d   :  { %v10414_v40 = vsub.f32 %v23155_v54, %v10413_v45  ;;  %v15832_v22 = vpack.c.bf16 %v10420_v1, %v10413_v45  ;;  %v10441_v45 = vand.u32 4294901760, %v23190_v26  ;;  %v10448_v1 = vand.u32 4294901760, %v23200_v43 }
 0xc5e   :  { %v10316_v62 = vsub.f32 %v23185_v57, %v10315_v33 }
 0xc5f   :  { %v10415_v20 = vand.u32 4294901760, %v10414_v40  ;;  %v10442_v2 = vsub.f32 %v23190_v26, %v10441_v45 }
 0xc61   :  { %v15736_v40 = vpack.c.bf16 %v10422_v18, %v10415_v20 }
 0xcc4   :  { %v10132_v48 = vpop.permute.xlu1 %10131 }
 0xcc5   :  { %v10138_v6 = vsel %vm3080_vm6, %v10126_v17, %v10132_v48  ;;  %v10308_v17 = vand.u32 4294901760, %v23171_v8 }
 0xcc6   :  { %v23328_v32 = vand.u32 4294901760, %v10138_v6 }
 0xcc7   :  { %v15834_v41 = vpack.c.bf16 %v10308_v17, %v10301_v42  ;;  %v10309_v48 = vsub.f32 %v23171_v8, %v10308_v17 }
 0xcc8   :  { %v23333_v11 = vsub.f32 %v10138_v6, %v23328_v32  ;;  %v10136_v63 = vpop.permute.xlu0 %10135  ;;  %v15734_v6 = vpack.c.bf16 %v10296_v49, %v10289_v23  ;;  %v10449_v23 = vsub.f32 %v23200_v43, %v10448_v1  ;;  %v10317_v43 = vand.u32 4294901760, %v10316_v62 }
 0xcc9   :  { %v10139_v5 = vsel %vm3080_vm6, %v10128_v4, %v10136_v63  ;;  %v15830_v4 = vpack.c.bf16 %v10294_v35, %v10287_v28  ;;  %v10428_v35 = vsub.f32 %v23179_v52, %v10427_v19  ;;  %v10303_v63 = vand.u32 4294901760, %v10302_v50 }
 0xcca   :  { %v23342_v3 = vand.u32 4294901760, %v10139_v5  ;;  %v24850_v53 = vand.u32 4294901760, %v23333_v11  ;;  %v10310_v42 = vand.u32 4294901760, %v10309_v48  ;;  %v10336_v52 = vand.u32 4294901760, %v23207_v0 }
 0xccb   :  { %v10323_v19 = vsub.f32 %v23187_v9, %v10322_v44  ;;  %v10429_v46 = vand.u32 4294901760, %v10428_v35  ;;  %v15840_v50 = vpack.c.bf16 %v10448_v1, %v10441_v45  ;;  %v10455_v48 = vand.u32 4294901760, %v23221_v10 }
 0xccc   :  { %v23348_v36 = vsub.f32 %v10139_v5, %v23342_v3  ;;  %v10277_v28 = vsub.f32 %v23333_v11, %v24850_v53  ;;  %v10329_v5 = vand.u32 4294901760, %v23205_v61  ;;  %v10462_v53 = vand.u32 4294901760, %v23223_v56 }
 0xccd   :  { %v15738_v57 = vpack.c.bf16 %v10310_v42, %v10303_v63  ;;  %v10337_v26 = vsub.f32 %v23207_v0, %v10336_v52  ;;  %v10324_v20 = vand.u32 4294901760, %v10323_v19  ;;  %v10350_v0 = vand.u32 4294901760, %v23235_v14 }
 0xcce   :  { %10646 = vmatprep.mubr.f32.mxu1 %v23348_v36  ;;  %v10270_v54 = vand.u32 4294901760, %v23348_v36  ;;  %v10278_v49 = vand.u32 4294901760, %v10277_v28  ;;  %v10330_v9 = vsub.f32 %v23205_v61, %v10329_v5  ;;  %v10450_v28 = vand.u32 4294901760, %v10449_v23 }
 0xccf   :  { %10649 = vmatmul.mubr.f32.vlgmr.msra.gmra.mrb[104].mxu1 %v23333_v11  ;;  %v10463_v18 = vsub.f32 %v23223_v56, %v10462_v53  ;;  %v15844_v35 = vpack.c.bf16 %v10462_v53, %v10455_v48  ;;  %v10343_v61 = vand.u32 4294901760, %v23226_v38  ;;  %v10476_v63 = vand.u32 4294901760, %v23242_v29 }
 0xcd0   :  { %15831 = vmatpush3.bf16.msra.mxu1 %v15830_v4  ;;  %10923 = vmatprep.mubr.f32.mxu1 %v23342_v3  ;;  %v10271_v8 = vsub.f32 %v23348_v36, %v10270_v54  ;;  %v10436_v4 = vand.u32 4294901760, %v10435_v34  ;;  %v10338_v34 = vand.u32 4294901760, %v10337_v26  ;;  %v15742_v45 = vpack.c.bf16 %v10324_v20, %v10317_v43  ;;  %v26100_v36 = vld [vmem:[#allocation92_spill] sm:$0xff]  ;;  %v11041_v20 = vld [vmem:[#allocation7 + $0x30] sm:$0xff] }
 0xcd1   :  { %15833 = vmatprep.subr.bf16.mxu1 %v15832_v22  ;;  %v15838_v22 = vpack.c.bf16 %v10322_v44, %v10315_v33  ;;  %v10456_v44 = vsub.f32 %v23221_v10, %v10455_v48  ;;  %v10344_v10 = vsub.f32 %v23226_v38, %v10343_v61  ;;  %v10351_v56 = vsub.f32 %v23235_v14, %v10350_v0 }
 0xcd2   :  { %v10272_v17 = vand.u32 4294901760, %v10271_v8  ;;  %v15740_v33 = vpack.c.bf16 %v10436_v4, %v10429_v46  ;;  %v10469_v8 = vand.u32 4294901760, %v23239_v47  ;;  %v10464_v42 = vand.u32 4294901760, %v10463_v18 }
 0xcd3   :  { %v10457_v53 = vand.u32 4294901760, %v10456_v44  ;;  %v15846_v62 = vpack.c.bf16 %v10350_v0, %v10343_v61  ;;  %v10364_v19 = vand.u32 4294901760, %v23251_v25  ;;  %v10345_v38 = vand.u32 4294901760, %v10344_v10  ;;  %v11044_v10 = vld [vmem:[#allocation7 + $0x48] sm:$0xff] }
 0xcd4   :  { %15835 = vmatpush3.bf16.msra.mxu1 %v15834_v41  ;;  %10273 = vmatprep.mubr.f32.mxu0 %v10272_v17  ;;  %v10443_v41 = vand.u32 4294901760, %v10442_v2  ;;  %v10357_v17 = vand.u32 4294901760, %v23249_v59  ;;  %v15848_v23 = vpack.c.bf16 %v10476_v63, %v10469_v8  ;;  %v11070_v0 = vand.u32 4294901760, %v11041_v20 }
 0xcd5   :  { %10279 = vmatmul.mubr.f32.vlgmr.msra.gmra.mrb[112].mxu0 %v10278_v49  ;;  %15837 = vmatprep.subr.bf16.mxu1 %v15836_v30  ;;  %v15842_v30 = vpack.c.bf16 %v10336_v52, %v10329_v5  ;;  %v10470_v5 = vsub.f32 %v23239_v47, %v10469_v8  ;;  %v10477_v52 = vsub.f32 %v23242_v29, %v10476_v63  ;;  %v10352_v49 = vand.u32 4294901760, %v10351_v56 }
 0xcd6   :  { %15735 = vmatpush3.bf16.msra.mxu0 %v15734_v6  ;;  %10509 = vmatprep.mubr.f32.mxu0 %v23342_v3  ;;  %v10331_v6 = vand.u32 4294901760, %v10330_v9  ;;  %v15744_v1 = vpack.c.bf16 %v10450_v28, %v10443_v41  ;;  %v10358_v14 = vsub.f32 %v23249_v59, %v10357_v17  ;;  %v15748_v47 = vpack.c.bf16 %v10464_v42, %v10457_v53  ;;  %v11042_v41 = vld [vmem:[#allocation7 + $0x38] sm:$0xff] }
 0xcd7   :  { %15737 = vmatprep.subr.bf16.mxu0 %v15736_v40  ;;  %v10365_v40 = vsub.f32 %v23251_v25, %v10364_v19  ;;  %v10471_v46 = vand.u32 4294901760, %v10470_v5  ;;  %v10478_v29 = vand.u32 4294901760, %v10477_v52  ;;  %v15850_v4 = vpack.c.bf16 %v10364_v19, %v10357_v17  ;;  %v11045_v5 = vld [vmem:[#allocation7 + $0x50] sm:$0xff]  ;;  %v11046_v52 = vld [vmem:[#allocation7 + $0x58] sm:$0xff] }
 0xcd8   :  { %15839 = vmatpush3.bf16.msra.mxu1 %v15838_v22  ;;  %v15746_v2 = vpack.c.bf16 %v10338_v34, %v10331_v6  ;;  %v15750_v22 = vpack.c.bf16 %v10352_v49, %v10345_v38  ;;  %v26091_v25 = vmov 0.0|0.0   ;;  %v11073_v6 = vand.u32 4294901760, %v11042_v41 }
 0xcd9   :  { %15841 = vmatprep.subr.bf16.mxu1 %v15840_v50  ;;  %v10359_v50 = vand.u32 4294901760, %v10358_v14  ;;  %v10366_v48 = vand.u32 4294901760, %v10365_v40  ;;  %v23461_v34 = vsub.f32 %v11041_v20, %v11070_v0  ;;  %v11079_v53 = vand.u32 4294901760, %v11044_v10  ;;  %v11049_v40 = vld [vmem:[#allocation7 + $0x70] sm:$0xff] }
 0xcda   :  { %15739 = vmatpush3.bf16.msra.mxu0 %v15738_v57  ;;  %v15752_v57 = vpack.c.bf16 %v10478_v29, %v10471_v46  ;;  %v23463_v8 = vsub.f32 %v11042_v41, %v11073_v6  ;;  %v11085_v17 = vand.u32 4294901760, %v11046_v52  ;;  %v11094_v46 = vand.u32 4294901760, %v11049_v40 }
 0xcdb   :  { %15741 = vmatprep.subr.bf16.mxu0 %v15740_v33  ;;  %v15754_v59 = vpack.c.bf16 %v10366_v48, %v10359_v50  ;;  %v23491_v48 = vsub.f32 %v11044_v10, %v11079_v53  ;;  %v24860_v41 = vand.u32 4294901760, %v23461_v34 }
 0xcdc   :  { %15843 = vmatpush3.bf16.msra.mxu1 %v15842_v30 }
 0xcdd   :  { %15845 = vmatprep.subr.bf16.mxu1 %v15844_v35 }
 0xcde   :  { %15743 = vmatpush3.bf16.msra.mxu0 %v15742_v45  ;;  %v23470_v45 = vpack.c.bf16 %v11073_v6, %v11070_v0  ;;  %v24859_v0 = vand.u32 4294901760, %v23463_v8 }
 0xcdf   :  { %15745 = vmatprep.subr.bf16.mxu0 %v15744_v1  ;;  %v11043_v1 = vld [vmem:[#allocation7 + $0x40] sm:$0xff] }
 0xce0   :  { %15847 = vmatpush3.bf16.msra.mxu1 %v15846_v62  ;;  %v11076_v56 = vand.u32 4294901760, %v11043_v1  ;;  %v11082_v62 = vand.u32 4294901760, %v11045_v5  ;;  %v11195_v10 = vsub.f32 %v23463_v8, %v24859_v0 }
 0xce1   :  { %15849 = vmatprep.subr.bf16.mxu1 %v15848_v23  ;;  %v11048_v23 = vld [vmem:[#allocation7 + $0x68] sm:$0xff] }
 0xce2   :  { %15747 = vmatpush3.bf16.msra.mxu0 %v15746_v2  ;;  %v23475_v42 = vpack.c.bf16 %v11079_v53, %v11076_v56  ;;  %v23479_v19 = vpack.c.bf16 %v11085_v17, %v11082_v62  ;;  %v11047_v2 = vld [vmem:[#allocation7 + $0x60] sm:$0xff]  ;;  %v11091_v49 = vand.u32 4294901760, %v11048_v23  ;;  %v23489_v50 = vsub.f32 %v11043_v1, %v11076_v56 }
 0xce3   :  { %15749 = vmatprep.subr.bf16.mxu0 %v15748_v47  ;;  %v11088_v38 = vand.u32 4294901760, %v11047_v2  ;;  %v11050_v47 = vld [vmem:[#allocation7 + $0x78] sm:$0xff]  ;;  %v11188_v1 = vsub.f32 %v23461_v34, %v24860_v41 }
 0xce4   :  { %15851 = vmatpush3.bf16.msra.mxu1 %v15850_v4  ;;  %v11097_v29 = vand.u32 4294901760, %v11050_v47 }
 0xce5   :  { %15853 = vmatprep.subr.bf16.mxu1 %v23305_v60  ;;  %v26093_v60 = vld [vmem:[#allocation103_spill] sm:$0xff]  ;;  %v23483_v14 = vpack.c.bf16 %v11091_v49, %v11088_v38 }
 0xce6   :  { %15751 = vmatpush3.bf16.msra.mxu0 %v15750_v22 }
 0xce7   :  { %15753 = vmatprep.subr.bf16.mxu0 %v15752_v57  ;;  %v23493_v57 = vsub.f32 %v11045_v5, %v11082_v62  ;;  %v11196_v62 = vand.u32 4294901760, %v11195_v10 }
 0xce8   :  { %15855 = vmatpush3.bf16.msra.mxu1 %v23307_v13  ;;  %v26094_v13 = vld [vmem:[#allocation69_spill] sm:$0xff] }
 0xce9   :  { %15857 = vmatprep.subr.bf16.mxu1 %v23311_v37  ;;  %v26095_v37 = vld [vmem:[#allocation68_spill] sm:$0xff] }
 0xcea   :  { %15755 = vmatpush3.bf16.msra.mxu0 %v15754_v59  ;;  %v23495_v59 = vsub.f32 %v11046_v52, %v11085_v17  ;;  %v11189_v52 = vand.u32 4294901760, %v11188_v1  ;;  %v24858_v17 = vand.u32 4294901760, %v23489_v50 }
 0xceb   :  { %15757 = vmatprep.subr.bf16.mxu0 %v23317_v15  ;;  %v26092_v15 = vld [vmem:[#allocation37_spill] sm:$0xff] }
 0xcec   :  { %15859 = vmatpush3.bf16.msra.mxu1 %v23315_v21  ;;  %v26096_v21 = vld [vmem:[#allocation80_spill] sm:$0xff] }
 0xced   :  { %15892 = vmatprep.subr.bf16.mxu1 %v26091_v25 }
 0xcee   :  { %15759 = vmatpush3.bf16.msra.mxu0 %v23319_v55  ;;  %v26097_v55 = vld [vmem:[#allocation79_spill] sm:$0xff] }
 0xcef   :  { %10925 = vmatmul.mubr.f32.vlgmr.msra.gmra.mrb[106].mxu1 %v23328_v32  ;;  %15761 = vmatprep.subr.bf16.mxu0 %v23321_v31  ;;  %v26098_v31 = vld [vmem:[#allocation120_spill] sm:$0xff] }
 0xcf2   :  { %15763 = vmatpush3.bf16.msra.mxu0 %v23323_v39  ;;  %v26099_v39 = vld [vmem:[#allocation87_spill] sm:$0xff] }
 0xcf3   :  { %15797 = vmatprep.subr.bf16.mxu0 %v23163_v58 }
 0xcf5   :  { %10511 = vmatmul.mubr.f32.vlgmr.msra.gmra.mrb[114].mxu0 %v23328_v32 }
 0xcf6   :  { %15799 = vmatpush3.bf16.msra.mxu0 %v23165_v12  ;;  %10753 = vmatprep.mubr.f32.mxu0 %v10270_v54  ;;  %v26101_v54 = vand.u32 4294901760, %v23333_v11 }
 0xcf7   :  { %15801 = vmatprep.subr.bf16.mxu0 %v23174_v51 }
 0xcfa   :  { %15803 = vmatpush3.bf16.msra.mxu0 %v23181_v24 }
 0xcfb   :  { %15805 = vmatprep.subr.bf16.mxu0 %v23192_v16 }
 0xcfe   :  { %15807 = vmatpush3.bf16.msra.mxu0 %v26092_v15 }
 0xcff   :  { %15809 = vmatprep.subr.bf16.mxu0 %v26093_v60 }
 0xd02   :  { %15811 = vmatpush3.bf16.msra.mxu0 %v26094_v13 }
 0xd03   :  { %15813 = vmatprep.subr.bf16.mxu0 %v26095_v37 }
 0xd06   :  { %15815 = vmatpush3.bf16.msra.mxu0 %v26096_v21 }
 0xd07   :  { %15817 = vmatprep.subr.bf16.mxu0 %v23273_v27 }
 0xd0a   :  { %15819 = vmatpush3.bf16.msra.mxu0 %v23275_v7 }
 0xd0b   :  { %15821 = vmatprep.subr.bf16.mxu0 %v26097_v55 }
 0xd0e   :  { %15823 = vmatpush3.bf16.msra.mxu0 %v26098_v31 }
 0xd0f   :  { %15825 = vmatprep.subr.bf16.mxu0 %v26099_v39 }
 0xd12   :  { %15827 = vmatpush3.bf16.msra.mxu0 %v26100_v36 }
 0xd13   :  { %15861 = vmatprep.subr.bf16.mxu0 %v23163_v58  ;;  %v11035_v58 = vld [vmem:[#allocation7] sm:$0xff] }
 0xd15   :  { %10757 = vmatmul.mubr.f32.vlgmr.msra.gmra.mrb[116].mxu0 %v26101_v54 }
 0xd16   :  { %15863 = vmatpush3.bf16.msra.mxu0 %v23165_v12  ;;  %11027 = vmatprep.mubr.f32.mxu0 %v23342_v3  ;;  %v11036_v12 = vld [vmem:[#allocation7 + $0x8] sm:$0xff] }
 0xd17   :  { %15865 = vmatprep.subr.bf16.mxu0 %v23174_v51  ;;  %v11037_v51 = vld [vmem:[#allocation7 + $0x10] sm:$0xff]  ;;  %v11040_v3 = vld [vmem:[#allocation7 + $0x28] sm:$0xff] }
 0xd18   :  { %v11058_v11 = vand.u32 4294901760, %v11037_v51  ;;  %v11067_v43 = vand.u32 4294901760, %v11040_v3 }
 0xd1a   :  { %15867 = vmatpush3.bf16.msra.mxu0 %v23181_v24  ;;  %v11052_v24 = vand.u32 4294901760, %v11035_v58  ;;  %v23458_v61 = vsub.f32 %v11040_v3, %v11067_v43 }
 0xd1b   :  { %15869 = vmatprep.subr.bf16.mxu0 %v23192_v16  ;;  %v11055_v16 = vand.u32 4294901760, %v11036_v12 }
 0xd1c   :  { %v23445_v33 = vsub.f32 %v11035_v58, %v11052_v24  ;;  %v24861_v3 = vand.u32 4294901760, %v23458_v61 }
 0xd1d   :  { %v23443_v28 = vpack.c.bf16 %v11055_v16, %v11052_v24  ;;  %v23447_v44 = vsub.f32 %v11036_v12, %v11055_v16 }
 0xd1e   :  { %15871 = vmatpush3.bf16.msra.mxu0 %v26092_v15  ;;  %v11145_v4 = vand.u32 4294901760, %v23445_v33  ;;  %v23497_v15 = vsub.f32 %v11047_v2, %v11088_v38  ;;  %v24857_v2 = vand.u32 4294901760, %v23491_v48  ;;  %v23551_v38 = vpack.c.bf16 %v11196_v62, %v11189_v52 }
 0xd1f   :  { %15873 = vmatprep.subr.bf16.mxu0 %v26093_v60  ;;  %15894 = vmatpush3.bf16.msra.mxu1 %v23443_v28  ;;  %v11152_v22 = vand.u32 4294901760, %v23447_v44  ;;  %v23499_v60 = vsub.f32 %v11048_v23, %v11091_v49  ;;  %v11202_v49 = vsub.f32 %v23489_v50, %v24858_v17 }
 0xd20   :  { %15895 = vmatprep.subr.bf16.mxu1 %v26091_v25 }
 0xd22   :  { %15875 = vmatpush3.bf16.msra.mxu0 %v26094_v13  ;;  %v23501_v13 = vpack.c.bf16 %v11097_v29, %v11094_v46 }
 0xd23   :  { %15877 = vmatprep.subr.bf16.mxu0 %v26095_v37  ;;  %v23503_v37 = vsub.f32 %v11049_v40, %v11094_v46  ;;  %v11209_v40 = vsub.f32 %v23491_v48, %v24857_v2 }
 0xd25   :  { %v11210_v46 = vand.u32 4294901760, %v11209_v40  ;;  %v24852_v52 = vand.u32 4294901760, %v23503_v37 }
 0xd26   :  { %15879 = vmatpush3.bf16.msra.mxu0 %v26096_v21  ;;  %v23505_v21 = vsub.f32 %v11050_v47, %v11097_v29  ;;  %v11203_v47 = vand.u32 4294901760, %v11202_v49  ;;  %v24856_v29 = vand.u32 4294901760, %v23493_v57 }
 0xd27   :  { %15881 = vmatprep.subr.bf16.mxu0 %v23273_v27  ;;  %v11038_v27 = vld [vmem:[#allocation7 + $0x18] sm:$0xff]  ;;  %v11244_v40 = vsub.f32 %v23503_v37, %v24852_v52 }
 0xd28   :  { %v11061_v9 = vand.u32 4294901760, %v11038_v27  ;;  %v24851_v62 = vand.u32 4294901760, %v23505_v21 }
 0xd2a   :  { %15883 = vmatpush3.bf16.msra.mxu0 %v23275_v7  ;;  %v11039_v7 = vld [vmem:[#allocation7 + $0x20] sm:$0xff]  ;;  %v23451_v18 = vsub.f32 %v11038_v27, %v11061_v9  ;;  %v23456_v35 = vpack.c.bf16 %v11061_v9, %v11058_v11 }
 0xd2b   :  { %15885 = vmatprep.subr.bf16.mxu0 %v26097_v55  ;;  %v11064_v26 = vand.u32 4294901760, %v11039_v7  ;;  %v11146_v55 = vsub.f32 %v23445_v33, %v11145_v4 }
 0xd2c   :  { %15897 = vmatpush3.bf16.msra.mxu1 %v23456_v35  ;;  %v11166_v54 = vand.u32 4294901760, %v23451_v18 }
 0xd2d   :  { %v23453_v30 = vsub.f32 %v11039_v7, %v11064_v26  ;;  %v23466_v63 = vpack.c.bf16 %v11067_v43, %v11064_v26  ;;  %15898 = vmatprep.subr.bf16.mxu1 %v26091_v25  ;;  %v11147_v58 = vand.u32 4294901760, %v11146_v55  ;;  %v11181_v43 = vsub.f32 %v23458_v61, %v24861_v3 }
 0xd2e   :  { %15887 = vmatpush3.bf16.msra.mxu0 %v26098_v31  ;;  %v16963_v31 = vmov 0.0   ;;  %v11167_v24 = vsub.f32 %v23451_v18, %v11166_v54  ;;  %v24855_v55 = vand.u32 4294901760, %v23495_v59 }
 0xd2f   :  { %15889 = vmatprep.subr.bf16.mxu0 %v26099_v39  ;;  %13836 = vmatprep.mubr.msk.f32.mxu1 %vm16962_vm9, %v16963_v31  ;;  %v11153_v39 = vsub.f32 %v23447_v44, %v11152_v22  ;;  %v24862_v7 = vand.u32 4294901760, %v23453_v30  ;;  %v11182_v6 = vand.u32 4294901760, %v11181_v43  ;;  %v24854_v43 = vand.u32 4294901760, %v23497_v15 }
 0xd30   :  { %15900 = vmatpush3.bf16.msra.mxu1 %v23466_v63 }
 0xd31   :  { %15901 = vmatprep.subr.bf16.mxu1 %v26091_v25  ;;  %v11154_v12 = vand.u32 4294901760, %v11153_v39  ;;  %v11174_v26 = vsub.f32 %v23453_v30, %v24862_v7  ;;  %v11230_v1 = vsub.f32 %v23497_v15, %v24854_v43 }
 0xd32   :  { %15891 = vmatpush3.bf16.msra.mxu0 %v26100_v36 }
 0xd33   :  { %16036 = vmatprep.subr.bf16.mxu0 %v26091_v25  ;;  %v23527_v16 = vpack.c.bf16 %v11154_v12, %v11147_v58  ;;  %v11175_v20 = vand.u32 4294901760, %v11174_v26  ;;  %v15929_v12 = vpack.c.bf16 %v11210_v46, %v11203_v47  ;;  %v11251_v47 = vsub.f32 %v23505_v21, %v24851_v62 }
 0xd34   :  { %15903 = vmatpush3.bf16.msra.mxu1 %v23470_v45  ;;  %v11245_v46 = vand.u32 4294901760, %v11244_v40  ;;  %v15953_v40 = vpack.c.bf16 %v23491_v48, %v23489_v50  ;;  %v15956_v62 = vpack.c.bf16 %v23495_v59, %v23493_v57 }
 0xd35   :  { %11029 = vmatmul.mubr.f32.vlgmr.msra.gmra.mrb[118].mxu0 %v23328_v32  ;;  %v23449_v32 = vsub.f32 %v11037_v51, %v11058_v11  ;;  %15904 = vmatprep.subr.bf16.mxu1 %v26091_v25  ;;  %v11168_v11 = vand.u32 4294901760, %v11167_v24  ;;  %v23547_v53 = vpack.c.bf16 %v11182_v6, %v11175_v20  ;;  %v11223_v24 = vsub.f32 %v23495_v59, %v24855_v55 }
 0xd36   :  { %14046 = vmatprep.mubr.msk.f32.mxu0 %vm16962_vm9, %v16963_v31  ;;  %v24853_v20 = vand.u32 4294901760, %v23499_v60 }
 0xd37   :  { %v11159_v36 = vand.u32 4294901760, %v23449_v32  ;;  %v11224_v26 = vand.u32 4294901760, %v11223_v24  ;;  %v15944_v24 = vpack.c.bf16 %v23451_v18, %v23449_v32 }
 0xd38   :  { %15906 = vmatpush3.bf16.msra.mxu1 %v23475_v42  ;;  %v11237_v10 = vsub.f32 %v23499_v60, %v24853_v20  ;;  %v15959_v20 = vpack.c.bf16 %v23499_v60, %v23497_v15 }
 0xd39   :  { %15907 = vmatprep.subr.bf16.mxu1 %v26091_v25  ;;  %v11160_v51 = vsub.f32 %v23449_v32, %v11159_v36  ;;  %v26105_v32 = vand.u32 4294901760, %v23463_v8 }
 0xd3b   :  { %v11161_v27 = vand.u32 4294901760, %v11160_v51  ;;  %v11216_v51 = vsub.f32 %v23493_v57, %v24856_v29 }
 0xd3c   :  { %15909 = vmatpush3.bf16.msra.mxu1 %v23479_v19 }
 0xd3d   :  { %15910 = vmatprep.subr.bf16.mxu1 %v26091_v25  ;;  %v23531_v9 = vpack.c.bf16 %v11168_v11, %v11161_v27  ;;  %v11217_v11 = vand.u32 4294901760, %v11216_v51  ;;  %v15941_v51 = vpack.c.bf16 %v23447_v44, %v23445_v33  ;;  %v26102_v33 = vand.u32 4294901760, %v23453_v30 }
 0xd3e   :  { %v26103_v44 = vand.u32 4294901760, %v23458_v61 }
 0xd3f   :  { %v15932_v6 = vpack.c.bf16 %v11224_v26, %v11217_v11  ;;  %v15947_v11 = vpack.c.bf16 %v23458_v61, %v23453_v30  ;;  %v26108_v30 = vand.u32 4294901760, %v23493_v57  ;;  %v26109_v61 = vand.u32 4294901760, %v23495_v59  ;;  %v11706_v59 = vld [vmem:[#allocation9 + $0x68] sm:$0xff] }
 0xd40   :  { %15912 = vmatpush3.bf16.msra.mxu1 %v23483_v14 }
 0xd41   :  { %15913 = vmatprep.subr.bf16.mxu1 %v26091_v25 }
 0xd44   :  { %15915 = vmatpush3.bf16.msra.mxu1 %v23501_v13 }
 0xd45   :  { %15916 = vmatprep.subr.bf16.mxu1 %v26091_v25 }
 0xda2   :  { %v13036_v56 = vpop.f32.mrb[104].mxu1 }
 0xda3   :  { %v13037_v5 = vpop.f32.mrb[105].mxu1 }
 0xda4   :  { %v13038_v23 = vadd.f32 %v13037_v5, %v13036_v56  ;;  %v11231_v56 = vand.u32 4294901760, %v11230_v1  ;;  %v11238_v5 = vand.u32 4294901760, %v11237_v10 }
 0xda6   :  { %v15935_v49 = vpack.c.bf16 %v11238_v5, %v11231_v56  ;;  %v15950_v56 = vpack.c.bf16 %v23463_v8, %v23461_v34  ;;  %v26111_v8 = vand.u32 4294901760, %v23499_v60  ;;  %v11707_v60 = vld [vmem:[#allocation9 + $0x70] sm:$0xff] }
 0xda8   :  { %v12966_v39 = vpop.f32.mrb[112].mxu0 }
 0xda9   :  { %v12967_v58 = vpop.f32.mrb[113].mxu0 }
 0xdaa   :  { %v12968_v27 = vadd.f32 %v12967_v58, %v12966_v39  ;;  %v11252_v39 = vand.u32 4294901760, %v11251_v47 }
 0xdac   :  { %v15938_v58 = vpack.c.bf16 %v11252_v39, %v11245_v46 }
 0xdc2   :  { %v13106_v26 = vpop.f32.mrb[106].mxu1 }
 0xdc3   :  { %v13107_v1 = vpop.f32.mrb[107].mxu1 }
 0xdc4   :  { %v13108_v10 = vadd.f32 %v13107_v1, %v13106_v26  ;;  %v15962_v26 = vpack.c.bf16 %v23505_v21, %v23503_v37 }
 0xdc8   :  { %v13001_v5 = vpop.f32.mrb[114].mxu0 }
 0xdc9   :  { %v13002_v47 = vpop.f32.mrb[115].mxu0 }
 0xdca   :  { %v13003_v46 = vadd.f32 %v13002_v47, %v13001_v5 }
 0xdcc   :  { %v10513_v39 = vadd.f32 %v13003_v46, %v12968_v27 }
 0xdce   :  { %v10651_v52 = vadd.f32 %v13038_v23, %v10513_v39 }
 0xde8   :  { %v13071_v1 = vpop.f32.mrb[116].mxu0 }
 0xde9   :  { %v13072_v43 = vpop.f32.mrb[117].mxu0 }
 0xdea   :  { %v13073_v55 = vadd.f32 %v13072_v43, %v13071_v1  ;;  %v11699_v43 = vld [vmem:[#allocation9 + $0x30] sm:$0xff]  ;;  %v11702_v1 = vld [vmem:[#allocation9 + $0x48] sm:$0xff] }
 0xdec   :  { %v10759_v29 = vadd.f32 %v13073_v55, %v10651_v52  ;;  %v11701_v52 = vld [vmem:[#allocation9 + $0x40] sm:$0xff] }
 0xdee   :  { %v10927_v2 = vadd.f32 %v13108_v10, %v10759_v29 }
 0xe08   :  { %v13141_v17 = vpop.f32.mrb[118].mxu0 }
 0xe09   :  { %v13142_v0 = vpop.f32.mrb[119].mxu0 }
 0xe0a   :  { %v13143_v41 = vadd.f32 %v13142_v0, %v13141_v17 }
 0xe0c   :  { %v11031_v5 = vadd.f32 %v13143_v41, %v10927_v2  ;;  %v11697_v2 = vld [vmem:[#allocation9 + $0x20] sm:$0xff] }
 0xe0d   :  { %v11722_v55 = vand.u32 4294901760, %v11697_v2 }
 0xe0e   :  { %v11034_v27 = vmax.f32 %v11031_v5, 0.0 }
 0xe10   :  { %v23599_v47 = vand.u32 4294901760, %v11034_v27 }
 0xe12   :  { %v23602_v23 = vsub.f32 %v11034_v27, %v23599_v47 }
 0xe14   :  { %v11134_v46 = vand.u32 4294901760, %v23602_v23 }
 0xe16   :  { %v11135_v39 = vsub.f32 %v23602_v23, %v11134_v46 }
 0xe18   :  { %v11136_v3 = vand.u32 4294901760, %v11135_v39  ;;  %v23638_v39 = vsub.f32 %v11697_v2, %v11722_v55 }
 0xe1a   :  { %13837 = vmatmul.mubr.f32.vlgmr.msra.gmra.mrb[108].mxu1 %v11136_v3  ;;  %v11694_v3 = vld [vmem:[#allocation9 + $0x8] sm:$0xff] }
 0xe1b   :  { %15918 = vmatpush3.bf16.msra.mxu1 %v23527_v16  ;;  %13871 = vmatprep.mubr.msk.f32.mxu1 %vm16962_vm9, %v16963_v31  ;;  %v11693_v16 = vld [vmem:[#allocation9] sm:$0xff]  ;;  %v11713_v0 = vand.u32 4294901760, %v11694_v3 }
 0xe1c   :  { %15919 = vmatprep.subr.bf16.mxu1 %v26091_v25  ;;  %v11710_v41 = vand.u32 4294901760, %v11693_v16 }
 0xe1f   :  { %15921 = vmatpush3.bf16.msra.mxu1 %v23531_v9  ;;  %v11695_v9 = vld [vmem:[#allocation9 + $0x10] sm:$0xff] }
 0xe20   :  { %15922 = vmatprep.subr.bf16.mxu1 %v26091_v25  ;;  %v11716_v17 = vand.u32 4294901760, %v11695_v9 }
 0xe22   :  { %v23632_v10 = vsub.f32 %v11695_v9, %v11716_v17  ;;  %v11737_v9 = vand.u32 4294901760, %v11702_v1 }
 0xe23   :  { %15924 = vmatpush3.bf16.msra.mxu1 %v23547_v53  ;;  %v11696_v53 = vld [vmem:[#allocation9 + $0x18] sm:$0xff] }
 0xe24   :  { %15925 = vmatprep.subr.bf16.mxu1 %v26091_v25  ;;  %v11719_v29 = vand.u32 4294901760, %v11696_v53  ;;  %v23654_v2 = vsub.f32 %v11702_v1, %v11737_v9 }
 0xe26   :  { %v23634_v5 = vpack.c.bf16 %v11719_v29, %v11716_v17  ;;  %v23636_v27 = vsub.f32 %v11696_v53, %v11719_v29 }
 0xe27   :  { %15927 = vmatpush3.bf16.msra.mxu1 %v23551_v38  ;;  %v11698_v38 = vld [vmem:[#allocation9 + $0x28] sm:$0xff] }
 0xe28   :  { %15928 = vmatprep.subr.bf16.mxu1 %v26091_v25 }
 0xe2b   :  { %15930 = vmatpush3.bf16.msra.mxu1 %v15929_v12  ;;  %v11725_v12 = vand.u32 4294901760, %v11698_v38 }
 0xe2c   :  { %15931 = vmatprep.subr.bf16.mxu1 %v26091_v25 }
 0xe2d   :  { %v23644_v7 = vsub.f32 %v11698_v38, %v11725_v12 }
 0xe2f   :  { %15933 = vmatpush3.bf16.msra.mxu1 %v15932_v6  ;;  %v11700_v6 = vld [vmem:[#allocation9 + $0x38] sm:$0xff] }
 0xe30   :  { %15934 = vmatprep.subr.bf16.mxu1 %v26091_v25 }
 0xe33   :  { %15936 = vmatpush3.bf16.msra.mxu1 %v15935_v49  ;;  %v23626_v49 = vpack.c.bf16 %v11713_v0, %v11710_v41 }
 0xe34   :  { %15937 = vmatprep.subr.bf16.mxu1 %v26091_v25 }
 0xe35   :  { %16038 = vmatpush3.bf16.msra.mxu0 %v23626_v49 }
 0xe36   :  { %16039 = vmatprep.subr.bf16.mxu0 %v26091_v25 }
 0xe37   :  { %15939 = vmatpush3.bf16.msra.mxu1 %v15938_v58  ;;  %v23628_v58 = vsub.f32 %v11693_v16, %v11710_v41  ;;  %v11728_v16 = vand.u32 4294901760, %v11699_v43  ;;  %v11734_v41 = vand.u32 4294901760, %v11701_v52 }
 0xe38   :  { %15940 = vmatprep.subr.bf16.mxu1 %v26091_v25 }
 0xe39   :  { %v23652_v17 = vsub.f32 %v11701_v52, %v11734_v41  ;;  %16041 = vmatpush3.bf16.msra.mxu0 %v23634_v5 }
 0xe3a   :  { %13872 = vmatmul.mubr.f32.vlgmr.msra.gmra.mrb[108].mxu1 %v23599_v47  ;;  %16042 = vmatprep.subr.bf16.mxu0 %v26091_v25 }
 0xe3b   :  { %15942 = vmatpush3.bf16.msra.mxu1 %v15941_v51  ;;  %13906 = vmatprep.mubr.msk.f32.mxu1 %vm16962_vm9, %v16963_v31  ;;  %v23630_v51 = vsub.f32 %v11694_v3, %v11713_v0  ;;  %v11731_v3 = vand.u32 4294901760, %v11700_v6  ;;  %v23648_v0 = vsub.f32 %v11699_v43, %v11728_v16 }
 0xe3c   :  { %15943 = vmatprep.subr.bf16.mxu1 %v26091_v25 }
 0xe3d   :  { %v23650_v53 = vsub.f32 %v11700_v6, %v11731_v3  ;;  %v23668_v38 = vpack.c.bf16 %v11731_v3, %v11728_v16 }
 0xe3f   :  { %15945 = vmatpush3.bf16.msra.mxu1 %v15944_v24  ;;  %v23660_v24 = vpack.c.bf16 %v11725_v12, %v11722_v55 }
 0xe40   :  { %15946 = vmatprep.subr.bf16.mxu1 %v26091_v25 }
 0xe41   :  { %16044 = vmatpush3.bf16.msra.mxu0 %v23660_v24 }
 0xe42   :  { %16045 = vmatprep.subr.bf16.mxu0 %v26091_v25 }
 0xe43   :  { %15948 = vmatpush3.bf16.msra.mxu1 %v15947_v11  ;;  %v23676_v11 = vpack.c.bf16 %v11737_v9, %v11734_v41 }
 0xe44   :  { %15949 = vmatprep.subr.bf16.mxu1 %v26091_v25 }
 0xe45   :  { %16047 = vmatpush3.bf16.msra.mxu0 %v23668_v38 }
 0xe46   :  { %16048 = vmatprep.subr.bf16.mxu0 %v26091_v25 }
 0xe47   :  { %15951 = vmatpush3.bf16.msra.mxu1 %v15950_v56 }
 0xe48   :  { %15952 = vmatprep.subr.bf16.mxu1 %v26091_v25 }
 0xe49   :  { %16050 = vmatpush3.bf16.msra.mxu0 %v23676_v11 }
 0xe4a   :  { %16051 = vmatprep.subr.bf16.mxu0 %v26091_v25 }
 0xe4b   :  { %15954 = vmatpush3.bf16.msra.mxu1 %v15953_v40  ;;  %v16004_v40 = vpack.c.bf16 %v26109_v61, %v26108_v30 }
 0xe4c   :  { %15955 = vmatprep.subr.bf16.mxu1 %v26091_v25 }
 0xe4f   :  { %15957 = vmatpush3.bf16.msra.mxu1 %v15956_v62  ;;  %v15992_v62 = vpack.c.bf16 %v11166_v54, %v11159_v36  ;;  %v26106_v36 = vand.u32 4294901760, %v23489_v50  ;;  %v26107_v54 = vand.u32 4294901760, %v23491_v48  ;;  %v26112_v50 = vand.u32 4294901760, %v23503_v37 }
 0xe50   :  { %15958 = vmatprep.subr.bf16.mxu1 %v26091_v25  ;;  %v26113_v48 = vand.u32 4294901760, %v23505_v21  ;;  %v11752_v37 = vand.u32 4294901760, %v11707_v60 }
 0xe51   :  { %v16001_v56 = vpack.c.bf16 %v26107_v54, %v26106_v36 }
 0xe52   :  { %v23803_v16 = vsub.f32 %v11707_v60, %v11752_v37 }
 0xe53   :  { %15960 = vmatpush3.bf16.msra.mxu1 %v15959_v20  ;;  %v15989_v20 = vpack.c.bf16 %v11152_v22, %v11145_v4  ;;  %v15995_v4 = vpack.c.bf16 %v26103_v44, %v26102_v33  ;;  %v26104_v22 = vand.u32 4294901760, %v23461_v34  ;;  %v26110_v34 = vand.u32 4294901760, %v23497_v15 }
 0xe54   :  { %15961 = vmatprep.subr.bf16.mxu1 %v26091_v25  ;;  %v11749_v15 = vand.u32 4294901760, %v11706_v59 }
 0xe55   :  { %v15998_v18 = vpack.c.bf16 %v26105_v32, %v26104_v22  ;;  %v11831_v22 = vand.u32 4294901760, %v23638_v39  ;;  %v11838_v32 = vand.u32 4294901760, %v23644_v7 }
 0xe56   :  { %v23800_v1 = vsub.f32 %v11706_v59, %v11749_v15 }
 0xe57   :  { %15963 = vmatpush3.bf16.msra.mxu1 %v15962_v26  ;;  %v16007_v26 = vpack.c.bf16 %v26111_v8, %v26110_v34  ;;  %v11832_v54 = vsub.f32 %v23638_v39, %v11831_v22  ;;  %v11845_v34 = vand.u32 4294901760, %v23648_v0  ;;  %v11852_v8 = vand.u32 4294901760, %v23650_v53 }
 0xe58   :  { %15964 = vmatprep.subr.bf16.mxu1 %v26091_v25 }
 0xe59   :  { %v11833_v61 = vand.u32 4294901760, %v11832_v54 }
 0xe5a   :  { %13907 = vmatmul.mubr.f32.vlgmr.msra.gmra.mrb[108].mxu1 %v23602_v23  ;;  %v16010_v23 = vpack.c.bf16 %v26113_v48, %v26112_v50  ;;  %v11846_v50 = vsub.f32 %v23648_v0, %v11845_v34  ;;  %v11853_v48 = vsub.f32 %v23650_v53, %v11852_v8 }
 0xe5b   :  { %15966 = vmatpush3.bf16.msra.mxu1 %v23443_v28  ;;  %13941 = vmatprep.mubr.msk.f32.mxu1 %vm16962_vm9, %v16963_v31 }
 0xe5c   :  { %15967 = vmatprep.subr.bf16.mxu1 %v26091_v25 }
 0xe5f   :  { %15969 = vmatpush3.bf16.msra.mxu1 %v23456_v35 }
 0xe60   :  { %15970 = vmatprep.subr.bf16.mxu1 %v26091_v25 }
 0xe63   :  { %15972 = vmatpush3.bf16.msra.mxu1 %v23466_v63 }
 0xe64   :  { %15973 = vmatprep.subr.bf16.mxu1 %v26091_v25 }
 0xe67   :  { %15975 = vmatpush3.bf16.msra.mxu1 %v23470_v45 }
 0xe68   :  { %15976 = vmatprep.subr.bf16.mxu1 %v26091_v25 }
 0xe6b   :  { %15978 = vmatpush3.bf16.msra.mxu1 %v23475_v42 }
 0xe6c   :  { %15979 = vmatprep.subr.bf16.mxu1 %v26091_v25 }
 0xe6f   :  { %15981 = vmatpush3.bf16.msra.mxu1 %v23479_v19 }
 0xe70   :  { %15982 = vmatprep.subr.bf16.mxu1 %v26091_v25 }
 0xe73   :  { %15984 = vmatpush3.bf16.msra.mxu1 %v23483_v14 }
 0xe74   :  { %15985 = vmatprep.subr.bf16.mxu1 %v26091_v25 }
 0xe77   :  { %15987 = vmatpush3.bf16.msra.mxu1 %v23501_v13 }
 0xe78   :  { %15988 = vmatprep.subr.bf16.mxu1 %v26091_v25 }
 0xe7a   :  { %13942 = vmatmul.mubr.f32.vlgmr.msra.gmra.mrb[108].mxu1 %v11134_v46  ;;  %v11810_v46 = vand.u32 4294901760, %v23630_v51 }
 0xe7b   :  { %15990 = vmatpush3.bf16.msra.mxu1 %v15989_v20  ;;  %13976 = vmatprep.mubr.msk.f32.mxu1 %vm16962_vm9, %v16963_v31  ;;  %v11817_v20 = vand.u32 4294901760, %v23632_v10 }
 0xe7c   :  { %15991 = vmatprep.subr.bf16.mxu1 %v26091_v25  ;;  %v11811_v12 = vsub.f32 %v23630_v51, %v11810_v46 }
 0xe7d   :  { %v11818_v44 = vsub.f32 %v23632_v10, %v11817_v20 }
 0xe7e   :  { %v11812_v9 = vand.u32 4294901760, %v11811_v12 }
 0xe7f   :  { %15993 = vmatpush3.bf16.msra.mxu1 %v15992_v62  ;;  %v11824_v62 = vand.u32 4294901760, %v23636_v27 }
 0xe80   :  { %15994 = vmatprep.subr.bf16.mxu1 %v26091_v25 }
 0xe83   :  { %15996 = vmatpush3.bf16.msra.mxu1 %v15995_v4  ;;  %v11825_v4 = vsub.f32 %v23636_v27, %v11824_v62 }
 0xe84   :  { %15997 = vmatprep.subr.bf16.mxu1 %v26091_v25 }
 0xe85   :  { %v11826_v36 = vand.u32 4294901760, %v11825_v4 }
 0xe87   :  { %15999 = vmatpush3.bf16.msra.mxu1 %v15998_v18  ;;  %v11819_v18 = vand.u32 4294901760, %v11818_v44  ;;  %v11894_v44 = vand.u32 4294901760, %v23800_v1 }
 0xe88   :  { %16000 = vmatprep.subr.bf16.mxu1 %v26091_v25 }
 0xe89   :  { %v16064_v30 = vpack.c.bf16 %v11826_v36, %v11819_v18  ;;  %v11895_v36 = vsub.f32 %v23800_v1, %v11894_v44 }
 0xe8b   :  { %16002 = vmatpush3.bf16.msra.mxu1 %v16001_v56  ;;  %v11839_v56 = vsub.f32 %v23644_v7, %v11838_v32 }
 0xe8c   :  { %16003 = vmatprep.subr.bf16.mxu1 %v26091_v25 }
 0xe8f   :  { %16005 = vmatpush3.bf16.msra.mxu1 %v16004_v40  ;;  %v11840_v40 = vand.u32 4294901760, %v11839_v56  ;;  %v11896_v56 = vand.u32 4294901760, %v11895_v36 }
 0xe90   :  { %16006 = vmatprep.subr.bf16.mxu1 %v26091_v25 }
 0xe93   :  { %16008 = vmatpush3.bf16.msra.mxu1 %v16007_v26  ;;  %v16067_v26 = vpack.c.bf16 %v11840_v40, %v11833_v61  ;;  %v24864_v61 = vand.u32 4294901760, %v23803_v16 }
 0xe94   :  { %16009 = vmatprep.subr.bf16.mxu1 %v26091_v25 }
 0xe97   :  { %16011 = vmatpush3.bf16.msra.mxu1 %v16010_v23  ;;  %v11847_v23 = vand.u32 4294901760, %v11846_v50 }
 0xe98   :  { %16012 = vmatprep.subr.bf16.mxu1 %v26091_v25 }
 0xe9a   :  { %13977 = vmatmul.mubr.f32.vlgmr.msra.gmra.mrb[108].mxu1 %v23599_v47 }
 0xe9b   :  { %16014 = vmatpush3.bf16.msra.mxu1 %v23443_v28  ;;  %14011 = vmatprep.mubr.msk.f32.mxu1 %vm16962_vm9, %v16963_v31  ;;  %v11703_v28 = vld [vmem:[#allocation9 + $0x50] sm:$0xff] }
 0xe9c   :  { %16015 = vmatprep.subr.bf16.mxu1 %v26091_v25 }
 0xe9f   :  { %16017 = vmatpush3.bf16.msra.mxu1 %v23456_v35  ;;  %v11704_v35 = vld [vmem:[#allocation9 + $0x58] sm:$0xff] }
 0xea0   :  { %16018 = vmatprep.subr.bf16.mxu1 %v26091_v25 }
 0xea3   :  { %16020 = vmatpush3.bf16.msra.mxu1 %v23466_v63  ;;  %v11740_v63 = vand.u32 4294901760, %v11703_v28 }
 0xea4   :  { %16021 = vmatprep.subr.bf16.mxu1 %v26091_v25 }
 0xea5   :  { %v23794_v43 = vsub.f32 %v11703_v28, %v11740_v63  ;;  %v11854_v28 = vand.u32 4294901760, %v11853_v48  ;;  %v11902_v48 = vsub.f32 %v23803_v16, %v24864_v61 }
 0xea7   :  { %16023 = vmatpush3.bf16.msra.mxu1 %v23470_v45  ;;  %v11743_v45 = vand.u32 4294901760, %v11704_v35  ;;  %v11873_v60 = vand.u32 4294901760, %v23794_v43 }
 0xea8   :  { %16024 = vmatprep.subr.bf16.mxu1 %v26091_v25 }
 0xea9   :  { %v23776_v57 = vpack.c.bf16 %v11743_v45, %v11740_v63  ;;  %v23796_v6 = vsub.f32 %v11704_v35, %v11743_v45  ;;  %v11859_v35 = vand.u32 4294901760, %v23652_v17  ;;  %v11866_v63 = vand.u32 4294901760, %v23654_v2 }
 0xeaa   :  { %v16070_v45 = vpack.c.bf16 %v11854_v28, %v11847_v23  ;;  %v11903_v28 = vand.u32 4294901760, %v11902_v48 }
 0xeab   :  { %16026 = vmatpush3.bf16.msra.mxu1 %v23475_v42  ;;  %v11705_v42 = vld [vmem:[#allocation9 + $0x60] sm:$0xff]  ;;  %16053 = vmatpush3.bf16.msra.mxu0 %v23776_v57  ;;  %v11867_v59 = vsub.f32 %v23654_v2, %v11866_v63 }
 0xeac   :  { %16027 = vmatprep.subr.bf16.mxu1 %v26091_v25  ;;  %16054 = vmatprep.subr.bf16.mxu0 %v26091_v25 }
 0xeaf   :  { %16029 = vmatpush3.bf16.msra.mxu1 %v23479_v19  ;;  %v11746_v19 = vand.u32 4294901760, %v11705_v42 }
 0xeb0   :  { %16030 = vmatprep.subr.bf16.mxu1 %v26091_v25 }
 0xeb1   :  { %v23798_v52 = vsub.f32 %v11705_v42, %v11746_v19  ;;  %v11860_v42 = vsub.f32 %v23652_v17, %v11859_v35 }
 0xeb3   :  { %16032 = vmatpush3.bf16.msra.mxu1 %v23483_v14  ;;  %v23780_v14 = vpack.c.bf16 %v11749_v15, %v11746_v19  ;;  %v11861_v19 = vand.u32 4294901760, %v11860_v42  ;;  %v11868_v15 = vand.u32 4294901760, %v11867_v59 }
 0xeb4   :  { %16033 = vmatprep.subr.bf16.mxu1 %v26091_v25 }
 0xeb5   :  { %16056 = vmatpush3.bf16.msra.mxu0 %v23780_v14 }
 0xeb6   :  { %16057 = vmatprep.subr.bf16.mxu0 %v26091_v25 }
 0xeb7   :  { %16035 = vmatpush3.bf16.msra.mxu1 %v23501_v13  ;;  %v11708_v13 = vld [vmem:[#allocation9 + $0x78] sm:$0xff] }
 0xeb8   :  { %v11755_v21 = vand.u32 4294901760, %v11708_v13 }
 0xeba   :  { %14012 = vmatmul.mubr.f32.vlgmr.msra.gmra.mrb[108].mxu1 %v23599_v47  ;;  %v11803_v47 = vand.u32 4294901760, %v23628_v58  ;;  %v23786_v29 = vpack.c.bf16 %v11755_v21, %v11752_v37  ;;  %v23805_v3 = vsub.f32 %v11708_v13, %v11755_v21  ;;  %v11880_v13 = vand.u32 4294901760, %v23796_v6 }
 0xebb   :  { %v16073_v37 = vpack.c.bf16 %v11868_v15, %v11861_v19  ;;  %v11874_v21 = vsub.f32 %v23794_v43, %v11873_v60  ;;  %v16085_v19 = vpack.c.bf16 %v23630_v51, %v23628_v58  ;;  %v16088_v15 = vpack.c.bf16 %v23636_v27, %v23632_v10 }
 0xebc   :  { %v11804_v55 = vsub.f32 %v23628_v58, %v11803_v47  ;;  %16059 = vmatpush3.bf16.msra.mxu0 %v23786_v29  ;;  %v24863_v40 = vand.u32 4294901760, %v23805_v3  ;;  %v16106_v36 = vpack.c.bf16 %v23805_v3, %v23803_v16  ;;  %v16139_v58 = vpack.c.bf16 %v11838_v32, %v11831_v22 }
 0xebd   :  { %16060 = vmatprep.subr.bf16.mxu0 %v26091_v25  ;;  %v11875_v12 = vand.u32 4294901760, %v11874_v21  ;;  %v16091_v21 = vpack.c.bf16 %v23644_v7, %v23638_v39  ;;  %v16142_v51 = vpack.c.bf16 %v11852_v8, %v11845_v34  ;;  %v16145_v10 = vpack.c.bf16 %v11866_v63, %v11859_v35 }
 0xebe   :  { %v11805_v41 = vand.u32 4294901760, %v11804_v55  ;;  %v11881_v55 = vsub.f32 %v23796_v6, %v11880_v13  ;;  %v11909_v23 = vsub.f32 %v23805_v3, %v24863_v40  ;;  %v16148_v7 = vpack.c.bf16 %v11880_v13, %v11873_v60 }
 0xebf   :  { %v26114_v39 = vand.u32 4294901760, %v23803_v16 }
 0xec0   :  { %v23810_v33 = vpack.c.bf16 %v11812_v9, %v11805_v41  ;;  %v11882_v41 = vand.u32 4294901760, %v11881_v55  ;;  %v11887_v9 = vand.u32 4294901760, %v23798_v52  ;;  %v11910_v42 = vand.u32 4294901760, %v11909_v23 }
 0xec1   :  { %v16094_v55 = vpack.c.bf16 %v23650_v53, %v23648_v0  ;;  %v26115_v0 = vand.u32 4294901760, %v23805_v3 }
 0xec2   :  { %v16076_v4 = vpack.c.bf16 %v11882_v41, %v11875_v12  ;;  %v11888_v18 = vsub.f32 %v23798_v52, %v11887_v9  ;;  %v16082_v59 = vpack.c.bf16 %v11910_v42, %v11903_v28  ;;  %v16097_v12 = vpack.c.bf16 %v23654_v2, %v23652_v17 }
 0xec3   :  { %v16100_v41 = vpack.c.bf16 %v23796_v6, %v23794_v43  ;;  %v16151_v27 = vpack.c.bf16 %v11894_v44, %v11887_v9  ;;  %v16154_v53 = vpack.c.bf16 %v26115_v0, %v26114_v39 }
 0xec4   :  { %v11889_v54 = vand.u32 4294901760, %v11888_v18  ;;  %v16103_v18 = vpack.c.bf16 %v23800_v1, %v23798_v52 }
 0xec6   :  { %v16079_v50 = vpack.c.bf16 %v11896_v56, %v11889_v54 }
 0xf8d   :  { %v11688_v54 = vpop.f32.mrb[108].mxu1 }
 0xf8e   :  { %v11692_v56 = vmax.f32 %v11688_v54, 0.0  ;;  %v14013_v48 = vpop.f32.mrb[109].mxu1 }
 0xf90   :  { %v23882_v23 = vand.u32 4294901760, %v11692_v56 }
 0xf92   :  { %v11791_v28 = vsub.f32 %v11692_v56, %v23882_v23 }
 0xf94   :  { %v11792_v42 = vand.u32 4294901760, %v11791_v28 }
 0xf96   :  { %v11793_v40 = vsub.f32 %v11791_v28, %v11792_v42 }
 0xf98   :  { %v11794_v61 = vand.u32 4294901760, %v11793_v40 }
 0xf9a   :  { %14047 = vmatmul.mubr.f32.vlgmr.msra.gmra.mrb[120].mxu0 %v11794_v61 }
 0xf9b   :  { %16062 = vmatpush3.bf16.msra.mxu0 %v23810_v33  ;;  %14081 = vmatprep.mubr.msk.f32.mxu0 %vm16962_vm9, %v16963_v31  ;;  %v16133_v33 = vpack.c.bf16 %v11810_v46, %v11803_v47 }
 0xf9c   :  { %16063 = vmatprep.subr.bf16.mxu0 %v26091_v25 }
 0xf9f   :  { %16065 = vmatpush3.bf16.msra.mxu0 %v16064_v30  ;;  %v16136_v30 = vpack.c.bf16 %v11824_v62, %v11817_v20 }
 0xfa0   :  { %16066 = vmatprep.subr.bf16.mxu0 %v26091_v25 }
 0xfa3   :  { %16068 = vmatpush3.bf16.msra.mxu0 %v16067_v26 }
 0xfa4   :  { %16069 = vmatprep.subr.bf16.mxu0 %v26091_v25 }
 0xfa7   :  { %16071 = vmatpush3.bf16.msra.mxu0 %v16070_v45 }
 0xfa8   :  { %16072 = vmatprep.subr.bf16.mxu0 %v26091_v25 }
 0xfab   :  { %16074 = vmatpush3.bf16.msra.mxu0 %v16073_v37 }
 0xfac   :  { %16075 = vmatprep.subr.bf16.mxu0 %v26091_v25 }
 0xfaf   :  { %16077 = vmatpush3.bf16.msra.mxu0 %v16076_v4 }
 0xfb0   :  { %16078 = vmatprep.subr.bf16.mxu0 %v26091_v25 }
 0xfb3   :  { %16080 = vmatpush3.bf16.msra.mxu0 %v16079_v50 }
 0xfb4   :  { %16081 = vmatprep.subr.bf16.mxu0 %v26091_v25 }
 0xfb7   :  { %16083 = vmatpush3.bf16.msra.mxu0 %v16082_v59 }
 0xfb8   :  { %16084 = vmatprep.subr.bf16.mxu0 %v26091_v25 }
 0xfba   :  { %14082 = vmatmul.mubr.f32.vlgmr.msra.gmra.mrb[120].mxu0 %v23882_v23 }
 0xfbb   :  { %16086 = vmatpush3.bf16.msra.mxu0 %v16085_v19  ;;  %14116 = vmatprep.mubr.msk.f32.mxu0 %vm16962_vm9, %v16963_v31 }
 0xfbc   :  { %16087 = vmatprep.subr.bf16.mxu0 %v26091_v25 }
 0xfbf   :  { %16089 = vmatpush3.bf16.msra.mxu0 %v16088_v15 }
 0xfc0   :  { %16090 = vmatprep.subr.bf16.mxu0 %v26091_v25 }
 0xfc3   :  { %16092 = vmatpush3.bf16.msra.mxu0 %v16091_v21 }
 0xfc4   :  { %16093 = vmatprep.subr.bf16.mxu0 %v26091_v25 }
 0xfc7   :  { %16095 = vmatpush3.bf16.msra.mxu0 %v16094_v55 }
 0xfc8   :  { %16096 = vmatprep.subr.bf16.mxu0 %v26091_v25 }
 0xfcb   :  { %16098 = vmatpush3.bf16.msra.mxu0 %v16097_v12 }
 0xfcc   :  { %16099 = vmatprep.subr.bf16.mxu0 %v26091_v25 }
 0xfcf   :  { %16101 = vmatpush3.bf16.msra.mxu0 %v16100_v41 }
 0xfd0   :  { %16102 = vmatprep.subr.bf16.mxu0 %v26091_v25 }
 0xfd3   :  { %16104 = vmatpush3.bf16.msra.mxu0 %v16103_v18 }
 0xfd4   :  { %16105 = vmatprep.subr.bf16.mxu0 %v26091_v25 }
 0xfd7   :  { %16107 = vmatpush3.bf16.msra.mxu0 %v16106_v36 }
 0xfd8   :  { %16108 = vmatprep.subr.bf16.mxu0 %v26091_v25 }
 0xfda   :  { %14117 = vmatmul.mubr.f32.vlgmr.msra.gmra.mrb[120].mxu0 %v11791_v28 }
 0xfdb   :  { %16110 = vmatpush3.bf16.msra.mxu0 %v23626_v49  ;;  %14151 = vmatprep.mubr.msk.f32.mxu0 %vm16962_vm9, %v16963_v31 }
 0xfdc   :  { %16111 = vmatprep.subr.bf16.mxu0 %v26091_v25 }
 0xfdf   :  { %16113 = vmatpush3.bf16.msra.mxu0 %v23634_v5 }
 0xfe0   :  { %16114 = vmatprep.subr.bf16.mxu0 %v26091_v25 }
 0xfe3   :  { %16116 = vmatpush3.bf16.msra.mxu0 %v23660_v24 }
 0xfe4   :  { %16117 = vmatprep.subr.bf16.mxu0 %v26091_v25 }
 0xfe7   :  { %16119 = vmatpush3.bf16.msra.mxu0 %v23668_v38 }
 0xfe8   :  { %16120 = vmatprep.subr.bf16.mxu0 %v26091_v25 }
 0xfeb   :  { %16122 = vmatpush3.bf16.msra.mxu0 %v23676_v11 }
 0xfec   :  { %16123 = vmatprep.subr.bf16.mxu0 %v26091_v25 }
 0xfef   :  { %16125 = vmatpush3.bf16.msra.mxu0 %v23776_v57 }
 0xff0   :  { %16126 = vmatprep.subr.bf16.mxu0 %v26091_v25 }
 0xff3   :  { %16128 = vmatpush3.bf16.msra.mxu0 %v23780_v14 }
 0xff4   :  { %16129 = vmatprep.subr.bf16.mxu0 %v26091_v25 }
 0xff7   :  { %16131 = vmatpush3.bf16.msra.mxu0 %v23786_v29 }
 0xff8   :  { %16132 = vmatprep.subr.bf16.mxu0 %v26091_v25 }
 0xffa   :  { %14152 = vmatmul.mubr.f32.vlgmr.msra.gmra.mrb[120].mxu0 %v11792_v42 }
 0xffb   :  { %16134 = vmatpush3.bf16.msra.mxu0 %v16133_v33  ;;  %14186 = vmatprep.mubr.msk.f32.mxu0 %vm16962_vm9, %v16963_v31 }
 0xffc   :  { %16135 = vmatprep.subr.bf16.mxu0 %v26091_v25 }
 0xfff   :  { %16137 = vmatpush3.bf16.msra.mxu0 %v16136_v30 }
0x1000   :  { %16138 = vmatprep.subr.bf16.mxu0 %v26091_v25 }
0x1003   :  { %16140 = vmatpush3.bf16.msra.mxu0 %v16139_v58 }
0x1004   :  { %16141 = vmatprep.subr.bf16.mxu0 %v26091_v25 }
0x1007   :  { %16143 = vmatpush3.bf16.msra.mxu0 %v16142_v51 }
0x1008   :  { %16144 = vmatprep.subr.bf16.mxu0 %v26091_v25 }
0x100b   :  { %16146 = vmatpush3.bf16.msra.mxu0 %v16145_v10 }
0x100c   :  { %16147 = vmatprep.subr.bf16.mxu0 %v26091_v25 }
0x100f   :  { %16149 = vmatpush3.bf16.msra.mxu0 %v16148_v7 }
0x1010   :  { %16150 = vmatprep.subr.bf16.mxu0 %v26091_v25 }
0x1013   :  { %16152 = vmatpush3.bf16.msra.mxu0 %v16151_v27 }
0x1014   :  { %16153 = vmatprep.subr.bf16.mxu0 %v26091_v25 }
0x1017   :  { %16155 = vmatpush3.bf16.msra.mxu0 %v16154_v53 }
0x1018   :  { %16156 = vmatprep.subr.bf16.mxu0 %v26091_v25 }
0x101a   :  { %14187 = vmatmul.mubr.f32.vlgmr.msra.gmra.mrb[120].mxu0 %v23882_v23 }
0x101b   :  { %16158 = vmatpush3.bf16.msra.mxu0 %v23626_v49  ;;  %14221 = vmatprep.mubr.msk.f32.mxu0 %vm16962_vm9, %v16963_v31 }
0x101c   :  { %16159 = vmatprep.subr.bf16.mxu0 %v26091_v25 }
0x101f   :  { %16161 = vmatpush3.bf16.msra.mxu0 %v23634_v5 }
0x1020   :  { %16162 = vmatprep.subr.bf16.mxu0 %v26091_v25 }
0x1023   :  { %16164 = vmatpush3.bf16.msra.mxu0 %v23660_v24 }
0x1024   :  { %16165 = vmatprep.subr.bf16.mxu0 %v26091_v25 }
0x1027   :  { %16167 = vmatpush3.bf16.msra.mxu0 %v23668_v38 }
0x1028   :  { %16168 = vmatprep.subr.bf16.mxu0 %v26091_v25 }
0x102b   :  { %16170 = vmatpush3.bf16.msra.mxu0 %v23676_v11 }
0x102c   :  { %16171 = vmatprep.subr.bf16.mxu0 %v26091_v25 }
0x102f   :  { %16173 = vmatpush3.bf16.msra.mxu0 %v23776_v57 }
0x1030   :  { %16174 = vmatprep.subr.bf16.mxu0 %v26091_v25 }
0x1033   :  { %16176 = vmatpush3.bf16.msra.mxu0 %v23780_v14 }
0x1034   :  { %16177 = vmatprep.subr.bf16.mxu0 %v26091_v25 }
0x1037   :  { %16179 = vmatpush3.bf16.msra.mxu0 %v23786_v29 }
0x103a   :  { %14222 = vmatmul.mubr.f32.vlgmr.msra.gmra.mrb[120].mxu0 %v23882_v23 }
0x110d   :  { %v12346_v31 = vpop.f32.mrb[120].mxu0 }
0x110e   :  { %12350 = vst [vmem:[%s23999_s10] sm:$0xff] %v12346_v31  ;;  %v14223_v49 = vpop.f32.mrb[121].mxu0 }
0x110f   :  { %12355 = vsyncpa [#allocation3], 1 }
0x1110   :  { %12356 = vsyncpa [#allocation5], 1 }
0x1111   :  { %12357 = vsyncpa [#allocation8], 1 }

</bundles_post_ra>
